<compile_context>
chip_gen: v7x
topology: tpu7x:2x2x1
jax: 0.10.0
libtpu: 0.0.40
codegen_flags: <defaults>
</compile_context>

<pallas_src>
import functools

import jax
import jax.numpy as jnp
from jax.experimental import pallas as pl
from jax.experimental.pallas import tpu as pltpu


# ---------------------------------------------------------------------------
# Fused ResBlock kernel (per batch item): conv3x3 + IN + ReLU, conv3x3 + IN,
# residual add.  All operands stay in VMEM; convs are 9 shifted bf16 GEMMs.
# ---------------------------------------------------------------------------
def _resblock_kernel(x_ref, w1_ref, b1_ref, w2_ref, b2_ref, o_ref, pad_sc,
                     *, H, W, C, eps):
    Hp, Wp = H + 2, W + 2

    # Zero the padded scratch every grid step (grid dim is "parallel", so no
    # cross-iteration init tricks; the border must be zero for both convs).
    pad_sc[...] = jnp.zeros((Hp, Wp, C), pad_sc.dtype)

    def conv3x3(w_ref, b_ref):
        # Direct conv: 9 taps, each a (H*W, C) x (C, C) MXU GEMM, f32 acc.
        acc = jnp.zeros((H * W, C), jnp.float32)
        for t in range(9):                      # static unroll
            dy, dx = t // 3, t % 3
            patch = pad_sc[dy:dy + H, dx:dx + W, :].reshape(H * W, C)
            acc = acc + jnp.dot(patch, w_ref[t],
                                preferred_element_type=jnp.float32)
        return acc + b_ref[...]                 # (H*W, C) f32

    def instance_norm(y):
        m = jnp.mean(y, axis=0, keepdims=True)            # per-channel mean
        c = y - m
        v = jnp.mean(c * c, axis=0, keepdims=True)        # biased variance
        return c * jax.lax.rsqrt(v + eps)

    x = x_ref[0]                                           # (H, W, C) f32

    # ---- Conv2dBlock #1: zero-pad -> conv -> InstanceNorm -> ReLU ----------
    pad_sc[1:1 + H, 1:1 + W, :] = x.astype(pad_sc.dtype)
    y = jnp.maximum(instance_norm(conv3x3(w1_ref, b1_ref)), 0.0)

    # ---- Conv2dBlock #2: zero-pad -> conv -> InstanceNorm ------------------
    pad_sc[1:1 + H, 1:1 + W, :] = y.reshape(H, W, C).astype(pad_sc.dtype)
    y = instance_norm(conv3x3(w2_ref, b2_ref))

    # ---- residual ----------------------------------------------------------
    o_ref[0] = (y.reshape(H, W, C) + x).astype(o_ref.dtype)


# ---------------------------------------------------------------------------
# One-time weight preparation (outside the forward): PyTorch (Cout,Cin,3,3)
# f32 -> tap-major (9, Cin, Cout) bf16; biases kept f32.
# ---------------------------------------------------------------------------
def prepare_params(w1, b1, w2, b2):
    def prep(w):
        cout, cin, kh, kw = w.shape
        return (w.transpose(2, 3, 1, 0)                 # (kh, kw, Cin, Cout)
                 .reshape(kh * kw, cin, cout)
                 .astype(jnp.bfloat16))
    return {
        "w1": prep(w1), "b1": b1.reshape(1, -1).astype(jnp.float32),
        "w2": prep(w2), "b2": b2.reshape(1, -1).astype(jnp.float32),
    }


# ---------------------------------------------------------------------------
# Forward wrappers
# ---------------------------------------------------------------------------
def resblock_forward_nhwc(params, x, *, eps=1e-5):
    """x: (B, H, W, C) float32, channels-last."""
    B, H, W, C = x.shape
    Hp, Wp = H + 2, W + 2
    w1, b1, w2, b2 = params["w1"], params["b1"], params["w2"], params["b2"]

    kernel = functools.partial(_resblock_kernel, H=H, W=W, C=C, eps=eps)

    # Deliberate VMEM budget: double-buffered f32 in/out blocks, both bf16
    # weight blocks, the bf16 padded scratch, plus slack for the f32 GEMM
    # accumulator temporaries.  Clamped to v7x's 64 MiB physical VMEM.
    est = (2 * 2 * H * W * C * 4            # x + out blocks, double-buffered
           + 2 * 2 * 9 * C * C * 2          # two (9,C,C) bf16 weight blocks
           + Hp * Wp * C * 2                # padded scratch
           + 4 * H * W * C * 4)             # accumulator / temp slack
    vmem_limit = int(min(64 * 1024 * 1024, max(8 * 1024 * 1024, 2 * est)))

    return pl.pallas_call(
        kernel,
        out_shape=jax.ShapeDtypeStruct((B, H, W, C), jnp.float32),
        grid=(B,),
        in_specs=[
            pl.BlockSpec((1, H, W, C), lambda b: (b, 0, 0, 0)),   # x (f32)
            pl.BlockSpec((9, C, C), lambda b: (0, 0, 0)),         # w1 (bf16)
            pl.BlockSpec((1, C), lambda b: (0, 0)),               # b1 (f32)
            pl.BlockSpec((9, C, C), lambda b: (0, 0, 0)),         # w2 (bf16)
            pl.BlockSpec((1, C), lambda b: (0, 0)),               # b2 (f32)
        ],
        out_specs=pl.BlockSpec((1, H, W, C), lambda b: (b, 0, 0, 0)),
        scratch_shapes=[pltpu.VMEM((Hp, Wp, C), jnp.bfloat16)],
        compiler_params=pltpu.CompilerParams(
            dimension_semantics=("parallel",),
            vmem_limit_bytes=vmem_limit),
    )(x.astype(jnp.float32), w1, b1, w2, b2)


def resblock_forward_nchw(params, x_nchw, *, eps=1e-5):
    """PyTorch-layout (NCHW) convenience wrapper."""
    y = resblock_forward_nhwc(params, x_nchw.transpose(0, 2, 3, 1), eps=eps)
    return y.transpose(0, 3, 1, 2)


# ---------------------------------------------------------------------------
# Pure-JAX f32 reference (for correctness check)
# ---------------------------------------------------------------------------
def resblock_reference_nhwc(x, w1, b1, w2, b2, eps=1e-5):
    def conv(h, w, b):
        y = jax.lax.conv_general_dilated(
            h, w.transpose(2, 3, 1, 0), window_strides=(1, 1),
            padding=((1, 1), (1, 1)),
            dimension_numbers=("NHWC", "HWIO", "NHWC"))
        return y + b.reshape(1, 1, 1, -1)

    def inorm(y):
        m = jnp.mean(y, axis=(1, 2), keepdims=True)
        c = y - m
        v = jnp.mean(c * c, axis=(1, 2), keepdims=True)
        return c * jax.lax.rsqrt(v + eps)

    y = jnp.maximum(inorm(conv(x, w1, b1)), 0.0)
    y = inorm(conv(y, w2, b2))
    return y + x


if __name__ == "__main__":
    key = jax.random.PRNGKey(0)
    kx, kw1, kb1, kw2, kb2 = jax.random.split(key, 5)

    # Small shapes; C=128 keeps every vector load/store lane-dense.
    B, H, W, dim = 2, 16, 16, 128

    x_nhwc = jax.random.normal(kx, (B, H, W, dim), jnp.float32)
    fan = dim * 9
    w1 = jax.random.normal(kw1, (dim, dim, 3, 3), jnp.float32) * jnp.sqrt(2.0 / fan)
    b1 = jax.random.normal(kb1, (dim,), jnp.float32) * 0.01
    w2 = jax.random.normal(kw2, (dim, dim, 3, 3), jnp.float32) * jnp.sqrt(2.0 / fan)
    b2 = jax.random.normal(kb2, (dim,), jnp.float32) * 0.01

    params = prepare_params(w1, b1, w2, b2)

    out = jax.jit(resblock_forward_nhwc)(params, x_nhwc)
    jax.block_until_ready(out)
    assert out.shape == (B, H, W, dim)

    # Correctness vs f32 reference (loose tolerance: bf16 MXU operands).
    ref = resblock_reference_nhwc(x_nhwc, w1, b1, w2, b2)
    err = float(jnp.max(jnp.abs(out - ref)))
    assert err < 0.25, f"max abs err too large: {err}"

    print("KERNEL_OK")
</pallas_src>

<mosaic_0001>
module attributes {stable_mosaic.version = 11 : i64} {
  func.func @_resblock_kernel(%arg0: i32, %arg1: memref<1x16x16x128xf32, #tpu.memory_space<vmem>>, %arg2: memref<9x128x128xbf16, #tpu.memory_space<vmem>>, %arg3: memref<1x128xf32, #tpu.memory_space<vmem>>, %arg4: memref<9x128x128xbf16, #tpu.memory_space<vmem>>, %arg5: memref<1x128xf32, #tpu.memory_space<vmem>>, %arg6: memref<1x16x16x128xf32, #tpu.memory_space<vmem>>, %arg7: memref<18x18x128xbf16, #tpu.memory_space<vmem>>) attributes {dimension_semantics = [#tpu.dimension_semantics<parallel>], iteration_bounds = array<i64: 2>, scalar_prefetch = 0 : i64, scratch_operands = 1 : i64, tpu.core_type = #tpu.core_type<tc>, window_params = [{transform_indices = @transform_0, window_bounds = array<i64: 1, 16, 16, 128>}, {pipeline_mode = #tpu.pipeline_mode<synchronous>, transform_indices = @transform_1, window_bounds = array<i64: 9, 128, 128>}, {pipeline_mode = #tpu.pipeline_mode<synchronous>, transform_indices = @transform_2, window_bounds = array<i64: 1, 128>}, {pipeline_mode = #tpu.pipeline_mode<synchronous>, transform_indices = @transform_3, window_bounds = array<i64: 9, 128, 128>}, {pipeline_mode = #tpu.pipeline_mode<synchronous>, transform_indices = @transform_4, window_bounds = array<i64: 1, 128>}, {transform_indices = @transform_5, window_bounds = array<i64: 1, 16, 16, 128>}]} {
    %cst = arith.constant 0.000000e+00 : bf16
    %0 = vector.broadcast %cst : bf16 to vector<18x18x128xbf16>
    %c0 = arith.constant 0 : index
    %c0_0 = arith.constant 0 : index
    %c0_1 = arith.constant 0 : index
    %1 = vector.load %arg7[%c0, %c0_0, %c0_1] : memref<18x18x128xbf16, #tpu.memory_space<vmem>>, vector<18x18x128xbf16>
    tpu.vector_store %arg7[%c0, %c0_0, %c0_1], %0 {strides = array<i32>} : memref<18x18x128xbf16, #tpu.memory_space<vmem>>, vector<18x18x128xbf16>,
    %c0_2 = arith.constant 0 : index
    %c0_3 = arith.constant 0 : index
    %c0_4 = arith.constant 0 : index
    %c0_5 = arith.constant 0 : index
    %2 = vector.load %arg1[%c0_2, %c0_3, %c0_4, %c0_5] : memref<1x16x16x128xf32, #tpu.memory_space<vmem>>, vector<1x16x16x128xf32>
    %3 = vector.shape_cast %2 : vector<1x16x16x128xf32> to vector<16x16x128xf32>
    %4 = arith.truncf %3 : vector<16x16x128xf32> to vector<16x16x128xbf16>
    %c1 = arith.constant 1 : index
    %c1_6 = arith.constant 1 : index
    %c0_7 = arith.constant 0 : index
    %5 = vector.load %arg7[%c1, %c1_6, %c0_7] : memref<18x18x128xbf16, #tpu.memory_space<vmem>>, vector<16x16x128xbf16>
    tpu.vector_store %arg7[%c1, %c1_6, %c0_7], %4 {strides = array<i32>} : memref<18x18x128xbf16, #tpu.memory_space<vmem>>, vector<16x16x128xbf16>,
    %cst_8 = arith.constant 0.000000e+00 : f32
    %6 = vector.broadcast %cst_8 : f32 to vector<256x128xf32>
    %c0_9 = arith.constant 0 : index
    %c0_10 = arith.constant 0 : index
    %c0_11 = arith.constant 0 : index
    %7 = vector.load %arg7[%c0_9, %c0_10, %c0_11] : memref<18x18x128xbf16, #tpu.memory_space<vmem>>, vector<16x16x128xbf16>
    %8 = vector.shape_cast %7 : vector<16x16x128xbf16> to vector<256x128xbf16>
    %c0_12 = arith.constant 0 : index
    %c0_13 = arith.constant 0 : index
    %c0_14 = arith.constant 0 : index
    %9 = vector.load %arg2[%c0_12, %c0_13, %c0_14] : memref<9x128x128xbf16, #tpu.memory_space<vmem>>, vector<1x128x128xbf16>
    %10 = vector.shape_cast %9 : vector<1x128x128xbf16> to vector<128x128xbf16>
    %cst_15 = arith.constant dense<0.000000e+00> : vector<256x128xf32>
    %11 = tpu.matmul %8, %10, %cst_15 {dimension_numbers = #tpu.dot_dimension_numbers<[1], [0], [0], [1], [0, 0, 1, 1], [], []>} : vector<256x128xbf16>, vector<128x128xbf16>, vector<256x128xf32> -> vector<256x128xf32>
    %12 = arith.addf %6, %11 : vector<256x128xf32>
    %c0_16 = arith.constant 0 : index
    %c1_17 = arith.constant 1 : index
    %c0_18 = arith.constant 0 : index
    %13 = vector.load %arg7[%c0_16, %c1_17, %c0_18] : memref<18x18x128xbf16, #tpu.memory_space<vmem>>, vector<16x16x128xbf16>
    %14 = vector.shape_cast %13 : vector<16x16x128xbf16> to vector<256x128xbf16>
    %c1_19 = arith.constant 1 : index
    %c0_20 = arith.constant 0 : index
    %c0_21 = arith.constant 0 : index
    %15 = vector.load %arg2[%c1_19, %c0_20, %c0_21] : memref<9x128x128xbf16, #tpu.memory_space<vmem>>, vector<1x128x128xbf16>
    %16 = vector.shape_cast %15 : vector<1x128x128xbf16> to vector<128x128xbf16>
    %cst_22 = arith.constant dense<0.000000e+00> : vector<256x128xf32>
    %17 = tpu.matmul %14, %16, %cst_22 {dimension_numbers = #tpu.dot_dimension_numbers<[1], [0], [0], [1], [0, 0, 1, 1], [], []>} : vector<256x128xbf16>, vector<128x128xbf16>, vector<256x128xf32> -> vector<256x128xf32>
    %18 = arith.addf %12, %17 : vector<256x128xf32>
    %c0_23 = arith.constant 0 : index
    %c2 = arith.constant 2 : index
    %c0_24 = arith.constant 0 : index
    %19 = vector.load %arg7[%c0_23, %c2, %c0_24] : memref<18x18x128xbf16, #tpu.memory_space<vmem>>, vector<16x16x128xbf16>
    %20 = vector.shape_cast %19 : vector<16x16x128xbf16> to vector<256x128xbf16>
    %c2_25 = arith.constant 2 : index
    %c0_26 = arith.constant 0 : index
    %c0_27 = arith.constant 0 : index
    %21 = vector.load %arg2[%c2_25, %c0_26, %c0_27] : memref<9x128x128xbf16, #tpu.memory_space<vmem>>, vector<1x128x128xbf16>
    %22 = vector.shape_cast %21 : vector<1x128x128xbf16> to vector<128x128xbf16>
    %cst_28 = arith.constant dense<0.000000e+00> : vector<256x128xf32>
    %23 = tpu.matmul %20, %22, %cst_28 {dimension_numbers = #tpu.dot_dimension_numbers<[1], [0], [0], [1], [0, 0, 1, 1], [], []>} : vector<256x128xbf16>, vector<128x128xbf16>, vector<256x128xf32> -> vector<256x128xf32>
    %24 = arith.addf %18, %23 : vector<256x128xf32>
    %c1_29 = arith.constant 1 : index
    %c0_30 = arith.constant 0 : index
    %c0_31 = arith.constant 0 : index
    %25 = vector.load %arg7[%c1_29, %c0_30, %c0_31] : memref<18x18x128xbf16, #tpu.memory_space<vmem>>, vector<16x16x128xbf16>
    %26 = vector.shape_cast %25 : vector<16x16x128xbf16> to vector<256x128xbf16>
    %c3 = arith.constant 3 : index
    %c0_32 = arith.constant 0 : index
    %c0_33 = arith.constant 0 : index
    %27 = vector.load %arg2[%c3, %c0_32, %c0_33] : memref<9x128x128xbf16, #tpu.memory_space<vmem>>, vector<1x128x128xbf16>
    %28 = vector.shape_cast %27 : vector<1x128x128xbf16> to vector<128x128xbf16>
    %cst_34 = arith.constant dense<0.000000e+00> : vector<256x128xf32>
    %29 = tpu.matmul %26, %28, %cst_34 {dimension_numbers = #tpu.dot_dimension_numbers<[1], [0], [0], [1], [0, 0, 1, 1], [], []>} : vector<256x128xbf16>, vector<128x128xbf16>, vector<256x128xf32> -> vector<256x128xf32>
    %30 = arith.addf %24, %29 : vector<256x128xf32>
    %c1_35 = arith.constant 1 : index
    %c1_36 = arith.constant 1 : index
    %c0_37 = arith.constant 0 : index
    %31 = vector.load %arg7[%c1_35, %c1_36, %c0_37] : memref<18x18x128xbf16, #tpu.memory_space<vmem>>, vector<16x16x128xbf16>
    %32 = vector.shape_cast %31 : vector<16x16x128xbf16> to vector<256x128xbf16>
    %c4 = arith.constant 4 : index
    %c0_38 = arith.constant 0 : index
    %c0_39 = arith.constant 0 : index
    %33 = vector.load %arg2[%c4, %c0_38, %c0_39] : memref<9x128x128xbf16, #tpu.memory_space<vmem>>, vector<1x128x128xbf16>
    %34 = vector.shape_cast %33 : vector<1x128x128xbf16> to vector<128x128xbf16>
    %cst_40 = arith.constant dense<0.000000e+00> : vector<256x128xf32>
    %35 = tpu.matmul %32, %34, %cst_40 {dimension_numbers = #tpu.dot_dimension_numbers<[1], [0], [0], [1], [0, 0, 1, 1], [], []>} : vector<256x128xbf16>, vector<128x128xbf16>, vector<256x128xf32> -> vector<256x128xf32>
    %36 = arith.addf %30, %35 : vector<256x128xf32>
    %c1_41 = arith.constant 1 : index
    %c2_42 = arith.constant 2 : index
    %c0_43 = arith.constant 0 : index
    %37 = vector.load %arg7[%c1_41, %c2_42, %c0_43] : memref<18x18x128xbf16, #tpu.memory_space<vmem>>, vector<16x16x128xbf16>
    %38 = vector.shape_cast %37 : vector<16x16x128xbf16> to vector<256x128xbf16>
    %c5 = arith.constant 5 : index
    %c0_44 = arith.constant 0 : index
    %c0_45 = arith.constant 0 : index
    %39 = vector.load %arg2[%c5, %c0_44, %c0_45] : memref<9x128x128xbf16, #tpu.memory_space<vmem>>, vector<1x128x128xbf16>
    %40 = vector.shape_cast %39 : vector<1x128x128xbf16> to vector<128x128xbf16>
    %cst_46 = arith.constant dense<0.000000e+00> : vector<256x128xf32>
    %41 = tpu.matmul %38, %40, %cst_46 {dimension_numbers = #tpu.dot_dimension_numbers<[1], [0], [0], [1], [0, 0, 1, 1], [], []>} : vector<256x128xbf16>, vector<128x128xbf16>, vector<256x128xf32> -> vector<256x128xf32>
    %42 = arith.addf %36, %41 : vector<256x128xf32>
    %c2_47 = arith.constant 2 : index
    %c0_48 = arith.constant 0 : index
    %c0_49 = arith.constant 0 : index
    %43 = vector.load %arg7[%c2_47, %c0_48, %c0_49] : memref<18x18x128xbf16, #tpu.memory_space<vmem>>, vector<16x16x128xbf16>
    %44 = vector.shape_cast %43 : vector<16x16x128xbf16> to vector<256x128xbf16>
    %c6 = arith.constant 6 : index
    %c0_50 = arith.constant 0 : index
    %c0_51 = arith.constant 0 : index
    %45 = vector.load %arg2[%c6, %c0_50, %c0_51] : memref<9x128x128xbf16, #tpu.memory_space<vmem>>, vector<1x128x128xbf16>
    %46 = vector.shape_cast %45 : vector<1x128x128xbf16> to vector<128x128xbf16>
    %cst_52 = arith.constant dense<0.000000e+00> : vector<256x128xf32>
    %47 = tpu.matmul %44, %46, %cst_52 {dimension_numbers = #tpu.dot_dimension_numbers<[1], [0], [0], [1], [0, 0, 1, 1], [], []>} : vector<256x128xbf16>, vector<128x128xbf16>, vector<256x128xf32> -> vector<256x128xf32>
    %48 = arith.addf %42, %47 : vector<256x128xf32>
    %c2_53 = arith.constant 2 : index
    %c1_54 = arith.constant 1 : index
    %c0_55 = arith.constant 0 : index
    %49 = vector.load %arg7[%c2_53, %c1_54, %c0_55] : memref<18x18x128xbf16, #tpu.memory_space<vmem>>, vector<16x16x128xbf16>
    %50 = vector.shape_cast %49 : vector<16x16x128xbf16> to vector<256x128xbf16>
    %c7 = arith.constant 7 : index
    %c0_56 = arith.constant 0 : index
    %c0_57 = arith.constant 0 : index
    %51 = vector.load %arg2[%c7, %c0_56, %c0_57] : memref<9x128x128xbf16, #tpu.memory_space<vmem>>, vector<1x128x128xbf16>
    %52 = vector.shape_cast %51 : vector<1x128x128xbf16> to vector<128x128xbf16>
    %cst_58 = arith.constant dense<0.000000e+00> : vector<256x128xf32>
    %53 = tpu.matmul %50, %52, %cst_58 {dimension_numbers = #tpu.dot_dimension_numbers<[1], [0], [0], [1], [0, 0, 1, 1], [], []>} : vector<256x128xbf16>, vector<128x128xbf16>, vector<256x128xf32> -> vector<256x128xf32>
    %54 = arith.addf %48, %53 : vector<256x128xf32>
    %c2_59 = arith.constant 2 : index
    %c2_60 = arith.constant 2 : index
    %c0_61 = arith.constant 0 : index
    %55 = vector.load %arg7[%c2_59, %c2_60, %c0_61] : memref<18x18x128xbf16, #tpu.memory_space<vmem>>, vector<16x16x128xbf16>
    %56 = vector.shape_cast %55 : vector<16x16x128xbf16> to vector<256x128xbf16>
    %c8 = arith.constant 8 : index
    %c0_62 = arith.constant 0 : index
    %c0_63 = arith.constant 0 : index
    %57 = vector.load %arg2[%c8, %c0_62, %c0_63] : memref<9x128x128xbf16, #tpu.memory_space<vmem>>, vector<1x128x128xbf16>
    %58 = vector.shape_cast %57 : vector<1x128x128xbf16> to vector<128x128xbf16>
    %cst_64 = arith.constant dense<0.000000e+00> : vector<256x128xf32>
    %59 = tpu.matmul %56, %58, %cst_64 {dimension_numbers = #tpu.dot_dimension_numbers<[1], [0], [0], [1], [0, 0, 1, 1], [], []>} : vector<256x128xbf16>, vector<128x128xbf16>, vector<256x128xf32> -> vector<256x128xf32>
    %60 = arith.addf %54, %59 : vector<256x128xf32>
    %c0_65 = arith.constant 0 : index
    %c0_66 = arith.constant 0 : index
    %61 = vector.load %arg3[%c0_65, %c0_66] : memref<1x128xf32, #tpu.memory_space<vmem>>, vector<1x128xf32>
    %62 = vector.broadcast %61 : vector<1x128xf32> to vector<256x128xf32>
    %63 = arith.addf %60, %62 : vector<256x128xf32>
    %cst_67 = arith.constant dense<0.000000e+00> : vector<128xf32>
    %64 = vector.multi_reduction <add>, %63, %cst_67 [0] : vector<256x128xf32> to vector<128xf32>
    %65 = vector.shape_cast %64 : vector<128xf32> to vector<1x128xf32>
    %cst_68 = arith.constant 2.560000e+02 : f32
    %66 = vector.broadcast %cst_68 : f32 to vector<1x128xf32>
    %67 = arith.divf %65, %66 : vector<1x128xf32>
    %68 = vector.broadcast %67 : vector<1x128xf32> to vector<256x128xf32>
    %69 = arith.subf %63, %68 : vector<256x128xf32>
    %70 = arith.mulf %69, %69 : vector<256x128xf32>
    %cst_69 = arith.constant dense<0.000000e+00> : vector<128xf32>
    %71 = vector.multi_reduction <add>, %70, %cst_69 [0] : vector<256x128xf32> to vector<128xf32>
    %72 = vector.shape_cast %71 : vector<128xf32> to vector<1x128xf32>
    %cst_70 = arith.constant 2.560000e+02 : f32
    %73 = vector.broadcast %cst_70 : f32 to vector<1x128xf32>
    %74 = arith.divf %72, %73 : vector<1x128xf32>
    %cst_71 = arith.constant 9.99999974E-6 : f32
    %75 = vector.broadcast %cst_71 : f32 to vector<1x128xf32>
    %76 = arith.addf %74, %75 : vector<1x128xf32>
    %77 = math.rsqrt %76 : vector<1x128xf32>
    %78 = vector.broadcast %77 : vector<1x128xf32> to vector<256x128xf32>
    %79 = arith.mulf %69, %78 : vector<256x128xf32>
    %cst_72 = arith.constant 0.000000e+00 : f32
    %80 = vector.broadcast %cst_72 : f32 to vector<256x128xf32>
    %81 = arith.maximumf %79, %80 : vector<256x128xf32>
    %82 = vector.shape_cast %81 : vector<256x128xf32> to vector<16x16x128xf32>
    %83 = arith.truncf %82 : vector<16x16x128xf32> to vector<16x16x128xbf16>
    %c1_73 = arith.constant 1 : index
    %c1_74 = arith.constant 1 : index
    %c0_75 = arith.constant 0 : index
    %84 = vector.load %arg7[%c1_73, %c1_74, %c0_75] : memref<18x18x128xbf16, #tpu.memory_space<vmem>>, vector<16x16x128xbf16>
    tpu.vector_store %arg7[%c1_73, %c1_74, %c0_75], %83 {strides = array<i32>} : memref<18x18x128xbf16, #tpu.memory_space<vmem>>, vector<16x16x128xbf16>,
    %cst_76 = arith.constant 0.000000e+00 : f32
    %85 = vector.broadcast %cst_76 : f32 to vector<256x128xf32>
    %c0_77 = arith.constant 0 : index
    %c0_78 = arith.constant 0 : index
    %c0_79 = arith.constant 0 : index
    %86 = vector.load %arg7[%c0_77, %c0_78, %c0_79] : memref<18x18x128xbf16, #tpu.memory_space<vmem>>, vector<16x16x128xbf16>
    %87 = vector.shape_cast %86 : vector<16x16x128xbf16> to vector<256x128xbf16>
    %c0_80 = arith.constant 0 : index
    %c0_81 = arith.constant 0 : index
    %c0_82 = arith.constant 0 : index
    %88 = vector.load %arg4[%c0_80, %c0_81, %c0_82] : memref<9x128x128xbf16, #tpu.memory_space<vmem>>, vector<1x128x128xbf16>
    %89 = vector.shape_cast %88 : vector<1x128x128xbf16> to vector<128x128xbf16>
    %cst_83 = arith.constant dense<0.000000e+00> : vector<256x128xf32>
    %90 = tpu.matmul %87, %89, %cst_83 {dimension_numbers = #tpu.dot_dimension_numbers<[1], [0], [0], [1], [0, 0, 1, 1], [], []>} : vector<256x128xbf16>, vector<128x128xbf16>, vector<256x128xf32> -> vector<256x128xf32>
    %91 = arith.addf %85, %90 : vector<256x128xf32>
    %c0_84 = arith.constant 0 : index
    %c1_85 = arith.constant 1 : index
    %c0_86 = arith.constant 0 : index
    %92 = vector.load %arg7[%c0_84, %c1_85, %c0_86] : memref<18x18x128xbf16, #tpu.memory_space<vmem>>, vector<16x16x128xbf16>
    %93 = vector.shape_cast %92 : vector<16x16x128xbf16> to vector<256x128xbf16>
    %c1_87 = arith.constant 1 : index
    %c0_88 = arith.constant 0 : index
    %c0_89 = arith.constant 0 : index
    %94 = vector.load %arg4[%c1_87, %c0_88, %c0_89] : memref<9x128x128xbf16, #tpu.memory_space<vmem>>, vector<1x128x128xbf16>
    %95 = vector.shape_cast %94 : vector<1x128x128xbf16> to vector<128x128xbf16>
    %cst_90 = arith.constant dense<0.000000e+00> : vector<256x128xf32>
    %96 = tpu.matmul %93, %95, %cst_90 {dimension_numbers = #tpu.dot_dimension_numbers<[1], [0], [0], [1], [0, 0, 1, 1], [], []>} : vector<256x128xbf16>, vector<128x128xbf16>, vector<256x128xf32> -> vector<256x128xf32>
    %97 = arith.addf %91, %96 : vector<256x128xf32>
    %c0_91 = arith.constant 0 : index
    %c2_92 = arith.constant 2 : index
    %c0_93 = arith.constant 0 : index
    %98 = vector.load %arg7[%c0_91, %c2_92, %c0_93] : memref<18x18x128xbf16, #tpu.memory_space<vmem>>, vector<16x16x128xbf16>
    %99 = vector.shape_cast %98 : vector<16x16x128xbf16> to vector<256x128xbf16>
    %c2_94 = arith.constant 2 : index
    %c0_95 = arith.constant 0 : index
    %c0_96 = arith.constant 0 : index
    %100 = vector.load %arg4[%c2_94, %c0_95, %c0_96] : memref<9x128x128xbf16, #tpu.memory_space<vmem>>, vector<1x128x128xbf16>
    %101 = vector.shape_cast %100 : vector<1x128x128xbf16> to vector<128x128xbf16>
    %cst_97 = arith.constant dense<0.000000e+00> : vector<256x128xf32>
    %102 = tpu.matmul %99, %101, %cst_97 {dimension_numbers = #tpu.dot_dimension_numbers<[1], [0], [0], [1], [0, 0, 1, 1], [], []>} : vector<256x128xbf16>, vector<128x128xbf16>, vector<256x128xf32> -> vector<256x128xf32>
    %103 = arith.addf %97, %102 : vector<256x128xf32>
    %c1_98 = arith.constant 1 : index
    %c0_99 = arith.constant 0 : index
    %c0_100 = arith.constant 0 : index
    %104 = vector.load %arg7[%c1_98, %c0_99, %c0_100] : memref<18x18x128xbf16, #tpu.memory_space<vmem>>, vector<16x16x128xbf16>
    %105 = vector.shape_cast %104 : vector<16x16x128xbf16> to vector<256x128xbf16>
    %c3_101 = arith.constant 3 : index
    %c0_102 = arith.constant 0 : index
    %c0_103 = arith.constant 0 : index
    %106 = vector.load %arg4[%c3_101, %c0_102, %c0_103] : memref<9x128x128xbf16, #tpu.memory_space<vmem>>, vector<1x128x128xbf16>
    %107 = vector.shape_cast %106 : vector<1x128x128xbf16> to vector<128x128xbf16>
    %cst_104 = arith.constant dense<0.000000e+00> : vector<256x128xf32>
    %108 = tpu.matmul %105, %107, %cst_104 {dimension_numbers = #tpu.dot_dimension_numbers<[1], [0], [0], [1], [0, 0, 1, 1], [], []>} : vector<256x128xbf16>, vector<128x128xbf16>, vector<256x128xf32> -> vector<256x128xf32>
    %109 = arith.addf %103, %108 : vector<256x128xf32>
    %c1_105 = arith.constant 1 : index
    %c1_106 = arith.constant 1 : index
    %c0_107 = arith.constant 0 : index
    %110 = vector.load %arg7[%c1_105, %c1_106, %c0_107] : memref<18x18x128xbf16, #tpu.memory_space<vmem>>, vector<16x16x128xbf16>
    %111 = vector.shape_cast %110 : vector<16x16x128xbf16> to vector<256x128xbf16>
    %c4_108 = arith.constant 4 : index
    %c0_109 = arith.constant 0 : index
    %c0_110 = arith.constant 0 : index
    %112 = vector.load %arg4[%c4_108, %c0_109, %c0_110] : memref<9x128x128xbf16, #tpu.memory_space<vmem>>, vector<1x128x128xbf16>
    %113 = vector.shape_cast %112 : vector<1x128x128xbf16> to vector<128x128xbf16>
    %cst_111 = arith.constant dense<0.000000e+00> : vector<256x128xf32>
    %114 = tpu.matmul %111, %113, %cst_111 {dimension_numbers = #tpu.dot_dimension_numbers<[1], [0], [0], [1], [0, 0, 1, 1], [], []>} : vector<256x128xbf16>, vector<128x128xbf16>, vector<256x128xf32> -> vector<256x128xf32>
    %115 = arith.addf %109, %114 : vector<256x128xf32>
    %c1_112 = arith.constant 1 : index
    %c2_113 = arith.constant 2 : index
    %c0_114 = arith.constant 0 : index
    %116 = vector.load %arg7[%c1_112, %c2_113, %c0_114] : memref<18x18x128xbf16, #tpu.memory_space<vmem>>, vector<16x16x128xbf16>
    %117 = vector.shape_cast %116 : vector<16x16x128xbf16> to vector<256x128xbf16>
    %c5_115 = arith.constant 5 : index
    %c0_116 = arith.constant 0 : index
    %c0_117 = arith.constant 0 : index
    %118 = vector.load %arg4[%c5_115, %c0_116, %c0_117] : memref<9x128x128xbf16, #tpu.memory_space<vmem>>, vector<1x128x128xbf16>
    %119 = vector.shape_cast %118 : vector<1x128x128xbf16> to vector<128x128xbf16>
    %cst_118 = arith.constant dense<0.000000e+00> : vector<256x128xf32>
    %120 = tpu.matmul %117, %119, %cst_118 {dimension_numbers = #tpu.dot_dimension_numbers<[1], [0], [0], [1], [0, 0, 1, 1], [], []>} : vector<256x128xbf16>, vector<128x128xbf16>, vector<256x128xf32> -> vector<256x128xf32>
    %121 = arith.addf %115, %120 : vector<256x128xf32>
    %c2_119 = arith.constant 2 : index
    %c0_120 = arith.constant 0 : index
    %c0_121 = arith.constant 0 : index
    %122 = vector.load %arg7[%c2_119, %c0_120, %c0_121] : memref<18x18x128xbf16, #tpu.memory_space<vmem>>, vector<16x16x128xbf16>
    %123 = vector.shape_cast %122 : vector<16x16x128xbf16> to vector<256x128xbf16>
    %c6_122 = arith.constant 6 : index
    %c0_123 = arith.constant 0 : index
    %c0_124 = arith.constant 0 : index
    %124 = vector.load %arg4[%c6_122, %c0_123, %c0_124] : memref<9x128x128xbf16, #tpu.memory_space<vmem>>, vector<1x128x128xbf16>
    %125 = vector.shape_cast %124 : vector<1x128x128xbf16> to vector<128x128xbf16>
    %cst_125 = arith.constant dense<0.000000e+00> : vector<256x128xf32>
    %126 = tpu.matmul %123, %125, %cst_125 {dimension_numbers = #tpu.dot_dimension_numbers<[1], [0], [0], [1], [0, 0, 1, 1], [], []>} : vector<256x128xbf16>, vector<128x128xbf16>, vector<256x128xf32> -> vector<256x128xf32>
    %127 = arith.addf %121, %126 : vector<256x128xf32>
    %c2_126 = arith.constant 2 : index
    %c1_127 = arith.constant 1 : index
    %c0_128 = arith.constant 0 : index
    %128 = vector.load %arg7[%c2_126, %c1_127, %c0_128] : memref<18x18x128xbf16, #tpu.memory_space<vmem>>, vector<16x16x128xbf16>
    %129 = vector.shape_cast %128 : vector<16x16x128xbf16> to vector<256x128xbf16>
    %c7_129 = arith.constant 7 : index
    %c0_130 = arith.constant 0 : index
    %c0_131 = arith.constant 0 : index
    %130 = vector.load %arg4[%c7_129, %c0_130, %c0_131] : memref<9x128x128xbf16, #tpu.memory_space<vmem>>, vector<1x128x128xbf16>
    %131 = vector.shape_cast %130 : vector<1x128x128xbf16> to vector<128x128xbf16>
    %cst_132 = arith.constant dense<0.000000e+00> : vector<256x128xf32>
    %132 = tpu.matmul %129, %131, %cst_132 {dimension_numbers = #tpu.dot_dimension_numbers<[1], [0], [0], [1], [0, 0, 1, 1], [], []>} : vector<256x128xbf16>, vector<128x128xbf16>, vector<256x128xf32> -> vector<256x128xf32>
    %133 = arith.addf %127, %132 : vector<256x128xf32>
    %c2_133 = arith.constant 2 : index
    %c2_134 = arith.constant 2 : index
    %c0_135 = arith.constant 0 : index
    %134 = vector.load %arg7[%c2_133, %c2_134, %c0_135] : memref<18x18x128xbf16, #tpu.memory_space<vmem>>, vector<16x16x128xbf16>
    %135 = vector.shape_cast %134 : vector<16x16x128xbf16> to vector<256x128xbf16>
    %c8_136 = arith.constant 8 : index
    %c0_137 = arith.constant 0 : index
    %c0_138 = arith.constant 0 : index
    %136 = vector.load %arg4[%c8_136, %c0_137, %c0_138] : memref<9x128x128xbf16, #tpu.memory_space<vmem>>, vector<1x128x128xbf16>
    %137 = vector.shape_cast %136 : vector<1x128x128xbf16> to vector<128x128xbf16>
    %cst_139 = arith.constant dense<0.000000e+00> : vector<256x128xf32>
    %138 = tpu.matmul %135, %137, %cst_139 {dimension_numbers = #tpu.dot_dimension_numbers<[1], [0], [0], [1], [0, 0, 1, 1], [], []>} : vector<256x128xbf16>, vector<128x128xbf16>, vector<256x128xf32> -> vector<256x128xf32>
    %139 = arith.addf %133, %138 : vector<256x128xf32>
    %c0_140 = arith.constant 0 : index
    %c0_141 = arith.constant 0 : index
    %140 = vector.load %arg5[%c0_140, %c0_141] : memref<1x128xf32, #tpu.memory_space<vmem>>, vector<1x128xf32>
    %141 = vector.broadcast %140 : vector<1x128xf32> to vector<256x128xf32>
    %142 = arith.addf %139, %141 : vector<256x128xf32>
    %cst_142 = arith.constant dense<0.000000e+00> : vector<128xf32>
    %143 = vector.multi_reduction <add>, %142, %cst_142 [0] : vector<256x128xf32> to vector<128xf32>
    %144 = vector.shape_cast %143 : vector<128xf32> to vector<1x128xf32>
    %cst_143 = arith.constant 2.560000e+02 : f32
    %145 = vector.broadcast %cst_143 : f32 to vector<1x128xf32>
    %146 = arith.divf %144, %145 : vector<1x128xf32>
    %147 = vector.broadcast %146 : vector<1x128xf32> to vector<256x128xf32>
    %148 = arith.subf %142, %147 : vector<256x128xf32>
    %149 = arith.mulf %148, %148 : vector<256x128xf32>
    %cst_144 = arith.constant dense<0.000000e+00> : vector<128xf32>
    %150 = vector.multi_reduction <add>, %149, %cst_144 [0] : vector<256x128xf32> to vector<128xf32>
    %151 = vector.shape_cast %150 : vector<128xf32> to vector<1x128xf32>
    %cst_145 = arith.constant 2.560000e+02 : f32
    %152 = vector.broadcast %cst_145 : f32 to vector<1x128xf32>
    %153 = arith.divf %151, %152 : vector<1x128xf32>
    %cst_146 = arith.constant 9.99999974E-6 : f32
    %154 = vector.broadcast %cst_146 : f32 to vector<1x128xf32>
    %155 = arith.addf %153, %154 : vector<1x128xf32>
    %156 = math.rsqrt %155 : vector<1x128xf32>
    %157 = vector.broadcast %156 : vector<1x128xf32> to vector<256x128xf32>
    %158 = arith.mulf %148, %157 : vector<256x128xf32>
    %159 = vector.shape_cast %158 : vector<256x128xf32> to vector<16x16x128xf32>
    %160 = arith.addf %159, %3 : vector<16x16x128xf32>
    %c0_147 = arith.constant 0 : index
    %c0_148 = arith.constant 0 : index
    %c0_149 = arith.constant 0 : index
    %c0_150 = arith.constant 0 : index
    %161 = vector.load %arg6[%c0_147, %c0_148, %c0_149, %c0_150] : memref<1x16x16x128xf32, #tpu.memory_space<vmem>>, vector<1x16x16x128xf32>
    %162 = vector.shape_cast %161 : vector<1x16x16x128xf32> to vector<16x16x128xf32>
    %163 = vector.shape_cast %160 : vector<16x16x128xf32> to vector<1x16x16x128xf32>
    tpu.vector_store %arg6[%c0_147, %c0_148, %c0_149, %c0_150], %163 {strides = array<i32>} : memref<1x16x16x128xf32, #tpu.memory_space<vmem>>, vector<1x16x16x128xf32>,
    return
  }
  func.func @transform_0(%arg0: i32) -> (i32, i32, i32, i32) {
    %c0_i32 = arith.constant 0 : i32
    %c0_i32_0 = arith.constant 0 : i32
    %c0_i32_1 = arith.constant 0 : i32
    %c0_i32_2 = arith.constant 0 : i32
    return %arg0, %c0_i32, %c0_i32_0, %c0_i32_1 : i32, i32, i32, i32
  }
  func.func @transform_1(%arg0: i32) -> (i32, i32, i32) {
    %c0_i32 = arith.constant 0 : i32
    %c0_i32_0 = arith.constant 0 : i32
    %c0_i32_1 = arith.constant 0 : i32
    %c0_i32_2 = arith.constant 0 : i32
    return %c0_i32, %c0_i32_0, %c0_i32_1 : i32, i32, i32
  }
  func.func @transform_2(%arg0: i32) -> (i32, i32) {
    %c0_i32 = arith.constant 0 : i32
    %c0_i32_0 = arith.constant 0 : i32
    %c0_i32_1 = arith.constant 0 : i32
    return %c0_i32, %c0_i32_0 : i32, i32
  }
  func.func @transform_3(%arg0: i32) -> (i32, i32, i32) {
    %c0_i32 = arith.constant 0 : i32
    %c0_i32_0 = arith.constant 0 : i32
    %c0_i32_1 = arith.constant 0 : i32
    %c0_i32_2 = arith.constant 0 : i32
    return %c0_i32, %c0_i32_0, %c0_i32_1 : i32, i32, i32
  }
  func.func @transform_4(%arg0: i32) -> (i32, i32) {
    %c0_i32 = arith.constant 0 : i32
    %c0_i32_0 = arith.constant 0 : i32
    %c0_i32_1 = arith.constant 0 : i32
    return %c0_i32, %c0_i32_0 : i32, i32
  }
  func.func @transform_5(%arg0: i32) -> (i32, i32, i32, i32) {
    %c0_i32 = arith.constant 0 : i32
    %c0_i32_0 = arith.constant 0 : i32
    %c0_i32_1 = arith.constant 0 : i32
    %c0_i32_2 = arith.constant 0 : i32
    return %arg0, %c0_i32, %c0_i32_0, %c0_i32_1 : i32, i32, i32, i32
  }
}

</mosaic_0001>

<bundles_post_ra>
// kernel: resblock_forward_nhwc.1
= control target key start
LH: loop header
LB: loop body
LE: loop exit
PB: predicated region body
PF: predicated region fallthrough
CT: control target
= control target key end

     0   :  { %10 = vsyncpa [#allocation4], 0  ;;  %s18818_s0 = inlined_call_operand.hbm [shape: f32[2,16,16,128], index: 0, kind: input, shape index: {}]   ;;  %s18819_s1 = inlined_call_operand.hbm [shape: bf16[9,128,128], index: 1, kind: input, shape index: {}]   ;;  %s18820_s2 = inlined_call_operand.hbm [shape: f32[1,128], index: 2, kind: input, shape index: {}]   ;;  %s18821_s3 = inlined_call_operand.hbm [shape: bf16[9,128,128], index: 3, kind: input, shape index: {}]   ;;  %s18822_s4 = inlined_call_operand.vmem [shape: f32[1,128], index: 4, kind: input, shape index: {}]   ;;  %s18823_s5 = inlined_call_operand.hbm [shape: f32[2,16,16,128], index: 5, kind: output, shape index: {}]  }
   0x1   :  { %12 = vsyncpa [#allocation4 + $0x1], 0 }
   0x2   :  { %13 = vsyncpa [#allocation7], 0 }
   0x3   :  { %14 = vsyncpa [#allocation10], 0 }
   0x4   :  { %15 = vsyncpa [#allocation5], 0 }
   0x5   :  { %17 = vsyncpa [#allocation5 + $0x1], 0  ;;  %s14827_s18 = smov 0   ;;  %s14829_s19 = smov 0  }
   0x6   :  { %s14831_s20 = smov 0   ;;  %s14833_s21 = smov 0  }
   0x7 LB: > { %s14848_s22 = sadd.s32 4294967295, %s14783_s21   ;;  %s11684_s23 = sadd.s32 4294967294, %s14783_s21   ;;  %s14783_s21 = sphi %s14833_s21, %s19167_s21   ;;  %s14779_s20 = sphi %s14831_s20, %s19166_s20   ;;  %s14775_s19 = sphi %s14829_s19, %s19165_s19   ;;  %s14771_s18 = sphi %s14827_s18, %s19164_s18  }
   0x8   : > { %p43_p0 = scmp.ne.s32.totalorder %s14775_s19, %s14771_s18  ;;  %p18824_p1 = scmp.eq.s32.totalorder %s14848_s22, 0 }
   0x9   : > { %p157_p3 = scmp.eq.s32.totalorder %s11684_s23, 1  ;;  %p11685_p5 = scmp.ge.s32.totalorder %s14783_s21, 1 }
   0xa   : > { %p14857_p4 = por %p18824_p1, %p43_p0  ;;  %p164_p7 = scmp.lt.s32.totalorder %s14783_s21, 3 }
   0xb   : > { %p14862_p6 = por %p157_p3, %p43_p0  ;;  %s14785_s27 = smov [#allocation6]  }
   0xc   : > { %s18915_s24 = scalar_select %p14857_p4, 1, 0 }
   0xd   : > { %s18916_s25 = scalar_select %p14862_p6, 1, 0 }
   0xe   : > { %p14867_p8 = pnand %p11685_p5, %p164_p7  ;;  %s176_s28 = sshll.u32 %s14785_s27, 4  ;;  %s14871_s28 = int_to_ptr.vmem [resolvable:$true] %s176_s28 }
   0xf   : > { %s14786_s30 = smov [#allocation8]   ;;  %s14787_s7 = smov [#allocation9]  }
  0x10   : > { %s18917_s26 = scalar_select %p14867_p8, 1, 0 }
  0x11   : > { %p14188_p9 = pneg %p14867_p8  ;;  %s190_s6 = sshll.u32 %s14786_s30, 4  ;;  %s14882_s6 = int_to_ptr.vmem [resolvable:$true] %s190_s6 }
  0x12   : > { %s14884_s8 = sshll.u32 %s14787_s7, 4  ;;  %s14595_s11 = scalar_lea.hbm %s18819_s1, 9216  ;;  %s201_s8 = int_to_ptr.vmem [resolvable:$true] %s14884_s8 }
  0x13   : > { %p14878_p11 = pnand %p14188_p9, %p18824_p1  ;;  %p14596_p12 = scmp.ne.s32.totalorder %s18819_s1, %s14595_s11 }
  0x14   : > { %p14602_p5 = scmp.lt.u32.totalorder %s14595_s11, %s18819_s1 }
  0x15   : > { %p14894_p13 = pneg %p14878_p11 }
  0x17   : > { %p14598_p0 = pnand %p14894_p13, %p14596_p12 }
  0x19   : > { %p14599_p3 = pneg %p14598_p0 }
  0x1b   : > { %p14604_p7 = pnand %p14602_p5, %p14599_p3 }
  0x1d   : > { %14607 = shalt.err (!%p14604_p7)
}
  0x1e   : > { %s14608_s17 = scalar_lea.vmem %s14871_s28, 9216  ;;  %p14616_p2 = scmp.lt.s32.totalorder %s14871_s28, %s14871_s28 }
  0x1f   : > { %p14609_p9 = scmp.ne.s32.totalorder %s14871_s28, %s14608_s17  ;;  %p14617_p6 = scmp.lt.s32.totalorder %s14608_s17, %s14608_s17 }
  0x21   : > { %p14611_p10 = pnand %p14609_p9, %p14894_p13  ;;  %p14618_p12 = por %p14617_p6, %p14616_p2 }
  0x23   : > { %p14612_p1 = pneg %p14611_p10 }
  0x25   : > { %p14619_p0 = pnand %p14618_p12, %p14612_p1 }
  0x27   : > { %14622 = shalt.err (!%p14619_p0)
}
  0x28   : > { %s14788_s23 = smov 64   ;;  %s14789_s27 = smov 4  }
  0x29   : > { %14191 = dma.hbm_to_vmem [thread:$0]  (!%p14878_p11), %s18819_s1, 9216, %s14871_s28, [#allocation7], %s14788_s23, %s14788_s23, %s14789_s27  }
  0x2a   : > { %s14623_s11 = scalar_lea.hbm %s18820_s2, 16 }
  0x2b   : > { %p14624_p1 = scmp.ne.s32.totalorder %s18820_s2, %s14623_s11  ;;  %p14630_p10 = scmp.lt.u32.totalorder %s14623_s11, %s18820_s2 }
  0x2d   : > { %p14626_p2 = pnand %p14624_p1, %p14894_p13 }
  0x2f   : > { %p14627_p6 = pneg %p14626_p2 }
  0x31   : > { %p14632_p3 = pnand %p14630_p10, %p14627_p6 }
  0x33   : > { %14635 = shalt.err (!%p14632_p3)
}
  0x34   : > { %s14636_s28 = scalar_lea.vmem %s14882_s6, 16  ;;  %s14643_s17 = scalar_lea.vmem %s14882_s6, 32 }
  0x35   : > { %p14637_p5 = scmp.ne.s32.totalorder %s14882_s6, %s14636_s28  ;;  %p14644_p12 = scmp.lt.s32.totalorder %s14882_s6, %s14882_s6 }
  0x36   : > { %p14645_p0 = scmp.lt.s32.totalorder %s14643_s17, %s14636_s28 }
  0x37   : > { %p14639_p7 = pnand %p14637_p5, %p14894_p13 }
  0x38   : > { %p14646_p1 = por %p14645_p0, %p14644_p12 }
  0x39   : > { %p14640_p9 = pneg %p14639_p7 }
  0x3b   : > { %p14647_p2 = pnand %p14646_p1, %p14640_p9 }
  0x3d   : > { %14650 = shalt.err (!%p14647_p2)
}
  0x3e   : > { %14194 = dma.hbm_to_vmem [thread:$0]  (!%p14878_p11), %s18820_s2, 16, %s14882_s6, [#allocation7]  }
  0x3f   : > { %s14651_s11 = scalar_lea.hbm %s18821_s3, 9216 }
  0x40   : > { %p14652_p6 = scmp.ne.s32.totalorder %s18821_s3, %s14651_s11  ;;  %p14658_p5 = scmp.lt.u32.totalorder %s14651_s11, %s18821_s3 }
  0x42   : > { %p14654_p10 = pnand %p14652_p6, %p14894_p13 }
  0x44   : > { %p14655_p3 = pneg %p14654_p10 }
  0x46   : > { %p14660_p7 = pnand %p14658_p5, %p14655_p3 }
  0x48   : > { %14663 = shalt.err (!%p14660_p7)
}
  0x49   : > { %s14664_s28 = scalar_lea.vmem %s201_s8, 9216  ;;  %p14672_p1 = scmp.lt.s32.totalorder %s201_s8, %s201_s8 }
  0x4a   : > { %p14665_p9 = scmp.ne.s32.totalorder %s201_s8, %s14664_s28  ;;  %p14673_p2 = scmp.lt.s32.totalorder %s14664_s28, %s14664_s28 }
  0x4c   : > { %p14667_p12 = pnand %p14665_p9, %p14894_p13  ;;  %p14674_p4 = por %p14673_p2, %p14672_p1 }
  0x4e   : > { %p14668_p0 = pneg %p14667_p12 }
  0x50   : > { %p14675_p8 = pnand %p14674_p4, %p14668_p0 }
  0x52   : > { %14678 = shalt.err (!%p14675_p8)
}
  0x53   : > { %14197 = dma.hbm_to_vmem [thread:$0]  (!%p14878_p11), %s18821_s3, 9216, %s201_s8, [#allocation10], %s14788_s23, %s14788_s23, %s14789_s27  }
  0x54   : > { %s14965_s14 = sadd.s32 1, %s14783_s21   ;;  %s30_s30 = sadd.s32 1, %s14779_s20 }
  0x55   : > { %s27_s29 = ssub.s32 %s14783_s21, %s14965_s14  ;;  %p37_p8 = scmp.ne.s32.totalorder %s14779_s20, %s14775_s19 }
  0x56   : > { %p28_p4 = scmp.eq.s32.totalorder %s27_s29, 0  ;;  %p38_p13 = scmp.eq.s32.totalorder %s14783_s21, 0 }
  0x57   : > { %p14209_p6 = scmp.lt.s32.totalorder %s14783_s21, 2  ;;  %p18920_p3 = scmp.eq.s32.totalorder %s14848_s22, 1 }
  0x58   : > { %s14975_s7 = scalar_select %p28_p4, %s14779_s20, %s30_s30  }
  0x59   : > { %p39_p10 = por %p38_p13, %p37_p8  ;;  %p14979_p5 = por %p18920_p3, %p37_p8 }
  0x5a   : > { %s217_s10 = sand.u32 1, %s14779_s20   ;;  %s12298_s11 = sshll.u32 %s14783_s21, 12 }
  0x5b   : > { %s11690_s8 = sshll.u32 %s217_s10, 8  ;;  %s14988_s12 = scalar_lea.hbm %s18818_s0, %s12298_s11 }
  0x5c   : > { %s221_s13 = scalar_lea.vmem [#allocation3], %s11690_s8  ;;  %p14990_p11 = pnand %p14209_p6, %p39_p10 }
  0x5d   : > { %s228_s15 = sshll.u32 %s221_s13, 4  ;;  %s14996_s28 = scalar_lea.sflag [#allocation4], %s217_s10  ;;  %s14994_s15 = int_to_ptr.vmem [resolvable:$true] %s228_s15 }
  0x5e   : > { %s14679_s6 = scalar_lea.hbm %s14988_s12, 4096  ;;  %p14681_p9 = pneg %p14990_p11 }
  0x5f   : > { %p14680_p7 = scmp.ne.s32.totalorder %s14988_s12, %s14679_s6  ;;  %s14684_s30 = scalar_lea.hbm %s18818_s0, 8192 }
  0x60   : > { %p14685_p1 = scmp.lt.u32.totalorder %s14988_s12, %s18818_s0  ;;  %p14686_p2 = scmp.lt.u32.totalorder %s14684_s30, %s14679_s6 }
  0x61   : > { %p14682_p12 = pnand %p14681_p9, %p14680_p7  ;;  %p14688_p8 = scmp.lt.u32.totalorder %s14679_s6, %s14988_s12 }
  0x62   : > { %p14687_p4 = por %p14686_p2, %p14685_p1 }
  0x63   : > { %p14683_p0 = pneg %p14682_p12 }
  0x64   : > { %p14689_p13 = por %p14688_p8, %p14687_p4 }
  0x66   : > { %p14690_p6 = pnand %p14689_p13, %p14683_p0 }
  0x68   : > { %14693 = shalt.err (!%p14690_p6)
}
  0x69   : > { %s14694_s10 = scalar_lea.vmem %s14994_s15, 4096  ;;  %s14790_s23 = smov [#allocation3]  }
  0x6a   : > { %p14695_p10 = scmp.ne.s32.totalorder %s14994_s15, %s14694_s10  ;;  %s14699_s27 = sshll.u32 %s14790_s23, 4  ;;  %s14700_s27 = int_to_ptr.vmem [resolvable:$false] %s14699_s27 }
  0x6b   : > { %s14701_s13 = scalar_lea.vmem %s14700_s27, 8192  ;;  %p14702_p12 = scmp.lt.s32.totalorder %s14994_s15, %s14700_s27 }
  0x6c   : > { %p14697_p3 = pnand %p14695_p10, %p14681_p9  ;;  %p14703_p1 = scmp.lt.s32.totalorder %s14701_s13, %s14694_s10 }
  0x6e   : > { %p14698_p7 = pneg %p14697_p3  ;;  %p14704_p2 = por %p14703_p1, %p14702_p12 }
  0x70   : > { %p14705_p4 = pnand %p14704_p2, %p14698_p7 }
  0x72   : > { %14708 = shalt.err (!%p14705_p4)
}
  0x73   : > { %s14791_s6 = smov 128   ;;  %s14792_s17 = smov 8  }
  0x74   : > { %14201 = dma.hbm_to_vmem [thread:$0]  (!%p14990_p11), %s14988_s12, 4096, %s14994_s15, %s14996_s28, %s14791_s6, %s14791_s6, %s14792_s17  }
  0x75   : > { %p18923_p9 = scmp.ne.s32.totalorder %s18917_s26, 0 }
  0x77   : > { %240 = sbr.rel (%p18923_p9) target bundleno = 2184 (0x888), region = 40 }
  0x7e   : > { %s15027_s29 = sand.u32 1, %s14775_s19   ;;  %p18924_p0 = scmp.ne.s32.totalorder %s18915_s24, 0 }
  0x7f   : > { %s11694_s30 = sshll.u32 %s15027_s29, 8  ;;  %s243_s11 = scalar_lea.sflag [#allocation4], %s15027_s29 }
  0x80   : > { %s15033_s8 = scalar_lea.vmem [#allocation3], %s11694_s30 }
  0x81   : > { %14754 = dma.done.wait (%p18924_p0), %s243_s11, 4096  }
  0x82   : > { %14756 = vsyncadd (%p18924_p0), %s243_s11, 4294963200  ;;  %p18925_p11 = scmp.eq.s32.totalorder %s14848_s22, 0 }
  0x84   : > { %14758 = dma.done.wait (%p18925_p11), [#allocation7], 9232   ;;  %p18926_p8 = pmov %p18925_p11 }
  0x86   : > { %14760 = vsyncadd (%p18926_p8), [#allocation7], 4294958064  ;;  %p18927_p13 = pmov %p18926_p8 }
  0x87   : > { %p18928_p6 = pmov %p18926_p8 }
  0x88   : > { %14762 = dma.done.wait (%p18927_p13), [#allocation10], 9216  }
  0x89   : > { %14764 = vsyncadd (%p18928_p6), [#allocation10], 4294958080  ;;  %v14793_v0 = vmov 0   ;;  %v14256_v1 = vld [vmem:[#allocation6 + $0x40] sm:$0xff]   ;;  %v14257_v2 = vld [vmem:[#allocation6 + $0x48] sm:$0xff]   ;;  %vm792_vm5 = vcmask 1043456  }
  0x8a   : > { %286 = vst [vmem:[#allocation2] sm:$0xf] %v14793_v0  ;;  %287 = vst [vmem:[#allocation2 + $0x4] sm:$0xf] %v14793_v0  ;;  %vm973_vm0 = vsmask.f32 3328  ;;  %12796 = vmatprep.subr.bf16.mxu0 %v14256_v1 }
  0x8b   : > { %288 = vst [vmem:[#allocation2 + $0x8] sm:$0x1] %v14793_v0  ;;  %289 = vst [vmem:[#allocation2 + $0xc] sm:$0xf] %v14793_v0  ;;  %vm974_vm1 = vsmask.f32 7440  ;;  %12797 = vmatpush3.bf16.msra.mxu0 %v14256_v1 }
  0x8c   : > { %290 = vst [vmem:[#allocation2 + $0x10] sm:$0xf] %v14793_v0  ;;  %291 = vst [vmem:[#allocation2 + $0x14] sm:$0x1] %v14793_v0  ;;  %vm468_vm2 = vsmask.f32 256  ;;  %12798 = vmatprep.subr.bf16.mxu0 %v14257_v2 }
  0x8d   : > { %292 = vst [vmem:[#allocation2 + $0x18] sm:$0xf] %v14793_v0  ;;  %293 = vst [vmem:[#allocation2 + $0x1c] sm:$0xf] %v14793_v0  ;;  %v14258_v3 = vld [vmem:[#allocation6 + $0x50] sm:$0xff]   ;;  %v14259_v4 = vld [vmem:[#allocation6 + $0x58] sm:$0xff]  }
  0x8e   : > { %294 = vst [vmem:[#allocation2 + $0x20] sm:$0x1] %v14793_v0  ;;  %295 = vst [vmem:[#allocation2 + $0x24] sm:$0xf] %v14793_v0  ;;  %vm469_vm3 = vsmask.f32 4368 }
  0x8f   : > { %296 = vst [vmem:[#allocation2 + $0x28] sm:$0xf] %v14793_v0  ;;  %297 = vst [vmem:[#allocation2 + $0x2c] sm:$0x1] %v14793_v0  ;;  %vm793_vm4 = vsmask.f32 7938  ;;  %12799 = vmatpush3.bf16.msra.mxu0 %v14257_v2 }
  0x90   : > { %298 = vst [vmem:[#allocation2 + $0x30] sm:$0xf] %v14793_v0  ;;  %299 = vst [vmem:[#allocation2 + $0x34] sm:$0xf] %v14793_v0  ;;  %12800 = vmatprep.subr.bf16.mxu0 %v14258_v3  ;;  %v340_v12 = vld [vmem:[%s15033_s8] sm:$0xff]  ;;  %v341_v13 = vld [vmem:[%s15033_s8 + $0x8] sm:$0xff] }
  0x91   : > { %300 = vst [vmem:[#allocation2 + $0x38] sm:$0x1] %v14793_v0  ;;  %301 = vst [vmem:[#allocation2 + $0x3c] sm:$0xf] %v14793_v0  ;;  %v909_v5 = vld [vmem:[#allocation2] sm:$0xf]  ;;  %v12299_v15 = vpack.c.bf16 %v340_v12, %v340_v12  ;;  %v12300_v16 = vpack.c.bf16 %v341_v13, %v341_v13 }
  0x92   : > { %302 = vst [vmem:[#allocation2 + $0x40] sm:$0xf] %v14793_v0  ;;  %303 = vst [vmem:[#allocation2 + $0x44] sm:$0x1] %v14793_v0  ;;  %v910_v6 = vld [vmem:[#allocation2 + $0x4] sm:$0xf] }
  0x93   : > { %304 = vst [vmem:[#allocation2 + $0x48] sm:$0xf] %v14793_v0  ;;  %305 = vst [vmem:[#allocation2 + $0x4c] sm:$0xf] %v14793_v0  ;;  %v957_v7 = vld [vmem:[#allocation2 + $0x8] sm:$0x1]  ;;  %12801 = vmatpush3.bf16.msra.mxu0 %v14258_v3 }
  0x94   : > { %306 = vst [vmem:[#allocation2 + $0x50] sm:$0x1] %v14793_v0  ;;  %307 = vst [vmem:[#allocation2 + $0x54] sm:$0xf] %v14793_v0  ;;  %v977_v8 = vshrl.u32 %v909_v5, 16  ;;  %v980_v9 = vshll.u32 %v909_v5, 16  ;;  %12802 = vmatprep.subr.bf16.mxu0 %v14259_v4 }
  0x95   : > { %308 = vst [vmem:[#allocation2 + $0x58] sm:$0xf] %v14793_v0  ;;  %309 = vst [vmem:[#allocation2 + $0x5c] sm:$0x1] %v14793_v0  ;;  %v986_v10 = vshll.u32 %v910_v6, 16  ;;  %v990_v11 = vshrl.u32 %v910_v6, 16 }
  0x96   : > { %310 = vst [vmem:[#allocation2 + $0x60] sm:$0xf] %v14793_v0  ;;  %311 = vst [vmem:[#allocation2 + $0x64] sm:$0xf] %v14793_v0  ;;  %v996_v14 = vshll.u32 %v957_v7, 16  ;;  %vm799_vm6 = vcmask 1040384  }
  0x97   : > { %312 = vst [vmem:[#allocation2 + $0x68] sm:$0x1] %v14793_v0  ;;  %313 = vst [vmem:[#allocation2 + $0x6c] sm:$0xf] %v14793_v0  ;;  %v979_v17 = vrot.slane %v977_v8, 4  ;;  %v982_v18 = vrot.slane %v980_v9, 5  ;;  %12803 = vmatpush3.bf16.msra.mxu0 %v14259_v4 }
  0x98   : > { %314 = vst [vmem:[#allocation2 + $0x70] sm:$0xf] %v14793_v0  ;;  %315 = vst [vmem:[#allocation2 + $0x74] sm:$0x1] %v14793_v0  ;;  %v988_v19 = vrot.slane %v986_v10, 5  ;;  %v992_v20 = vrot.slane %v990_v11, 4 }
  0x99   : > { %316 = vst [vmem:[#allocation2 + $0x78] sm:$0xf] %v14793_v0  ;;  %317 = vst [vmem:[#allocation2 + $0x7c] sm:$0xf] %v14793_v0  ;;  %v14260_v21 = vld [vmem:[#allocation6 + $0x60] sm:$0xff]   ;;  %v18929_v22 = vmov 0  ;;  %v983_v26 = vor.u32 %v982_v18, %v979_v17 }
  0x9a   : > { %318 = vst [vmem:[#allocation2 + $0x80] sm:$0x1] %v14793_v0  ;;  %319 = vst [vmem:[#allocation2 + $0x84] sm:$0xf] %v14793_v0  ;;  %v472_v23 = vshrl.u32 %v12299_v15, 16  ;;  %v475_v24 = vshll.u32 %v12299_v15, 16  ;;  %v993_v27 = vor.u32 %v992_v20, %v988_v19  ;;  %12804 = vmatprep.subr.bf16.mxu0 %v14260_v21 }
  0x9b   : > { %320 = vst [vmem:[#allocation2 + $0x88] sm:$0xf] %v14793_v0  ;;  %321 = vst [vmem:[#allocation2 + $0x8c] sm:$0x1] %v14793_v0  ;;  %v480_v25 = vshrl.u32 %v12300_v16, 16  ;;  %v998_v28 = vrot.slane %v996_v14, 5  ;;  %12805 = vmatpush3.bf16.msra.mxu0 %v14260_v21 }
  0x9c   : > { %322 = vst [vmem:[#allocation2 + $0x90] sm:$0xf] %v14793_v0  ;;  %323 = vst [vmem:[#allocation2 + $0x94] sm:$0xf] %v14793_v0  ;;  %v18932_v29 = vmov 0  ;;  %v483_v30 = vshll.u32 %v12300_v16, 16 }
  0x9d   : > { %324 = vst [vmem:[#allocation2 + $0x98] sm:$0x1] %v14793_v0  ;;  %325 = vst [vmem:[#allocation2 + $0x9c] sm:$0xf] %v14793_v0  ;;  %v342_v31 = vld [vmem:[%s15033_s8 + $0x10] sm:$0xff]  ;;  %v343_v32 = vld [vmem:[%s15033_s8 + $0x18] sm:$0xff] }
  0x9e   : > { %326 = vst [vmem:[#allocation2 + $0xa0] sm:$0xf] %v14793_v0  ;;  %327 = vst [vmem:[#allocation2 + $0xa4] sm:$0x1] %v14793_v0  ;;  %v474_v33 = vrot.slane %v472_v23, 7  ;;  %v482_v34 = vrot.slane %v480_v25, 7  ;;  %v12301_v36 = vpack.c.bf16 %v342_v31, %v342_v31  ;;  %v12302_v42 = vpack.c.bf16 %v343_v32, %v343_v32 }
  0x9f   : > { %328 = vst [vmem:[#allocation2 + $0xa8] sm:$0xf] %v14793_v0  ;;  %329 = vst [vmem:[#allocation2 + $0xac] sm:$0xf] %v14793_v0  ;;  %v18935_v35 = vmov 0  ;;  %v984_v37 = vrot.slane %v983_v26, 4 }
  0xa0   : > { %330 = vst [vmem:[#allocation2 + $0xb0] sm:$0x1] %v14793_v0  ;;  %331 = vst [vmem:[#allocation2 + $0xb4] sm:$0xf] %v14793_v0  ;;  %v994_v38 = vrot.slane %v993_v27, 4  ;;  %v18938_v40 = vmov 0  ;;  %v477_v44 = vor.u32 %v475_v24, %v474_v33  ;;  %v485_v46 = vor.u32 %v483_v30, %v482_v34 }
  0xa1   : > { %332 = vst [vmem:[#allocation2 + $0xb8] sm:$0xf] %v14793_v0  ;;  %333 = vst [vmem:[#allocation2 + $0xbc] sm:$0x1] %v14793_v0  ;;  %v795_v39 = vld [vmem:[#allocation2 + $0xc] sm:$0xf] }
  0xa2   : > { %334 = vst [vmem:[#allocation2 + $0xc0] sm:$0xf] %v14793_v0  ;;  %335 = vst [vmem:[#allocation2 + $0xc4] sm:$0xf] %v14793_v0  ;;  %v801_v41 = vld [vmem:[#allocation2 + $0x14] sm:$0x1] }
  0xa3   : > { %336 = vst [vmem:[#allocation2 + $0xc8] sm:$0x1] %v14793_v0  ;;  %337 = vst [vmem:[#allocation2 + $0xcc] sm:$0xf] %v14793_v0  ;;  %v14261_v43 = vld [vmem:[#allocation6 + $0x68] sm:$0xff]   ;;  %v478_v45 = vrot.slane %v474_v33, 4 }
  0xa4   : > { %338 = vst [vmem:[#allocation2 + $0xd0] sm:$0xf] %v14793_v0  ;;  %339 = vst [vmem:[#allocation2 + $0xd4] sm:$0x1] %v14793_v0  ;;  %v487_v47 = vrot.slane %v482_v34, 4  ;;  %v344_v48 = vld [vmem:[%s15033_s8 + $0x20] sm:$0xff]  ;;  %12806 = vmatprep.subr.bf16.mxu0 %v14261_v43 }
  0xa5   : > { %vm15051_vm7 = vmor %vm973_vm0, %vm974_vm1  ;;  %v489_v51 = vshrl.u32 %v12301_v36, 16  ;;  %v492_v52 = vshll.u32 %v12301_v36, 16  ;;  %v345_v53 = vld [vmem:[%s15033_s8 + $0x28] sm:$0xff]  ;;  %v346_v54 = vld [vmem:[%s15033_s8 + $0x30] sm:$0xff]  ;;  %v497_v61 = vshrl.u32 %v12302_v42, 16  ;;  %v500_v62 = vshll.u32 %v12302_v42, 16  ;;  %12807 = vmatpush3.bf16.msra.mxu0 %v14261_v43 }
  0xa6   : > { %v18930_v22 = vsel %vm15051_vm7, 4294967295, %v18929_v22  ;;  %vm15057_vm8 = vmor %vm468_vm2, %vm469_vm3  ;;  %v989_v49 = vsel %vm15051_vm7, %v984_v37, %v988_v19  ;;  %v999_v50 = vsel %vm15051_vm7, %v994_v38, %v998_v28  ;;  %v347_v59 = vld [vmem:[%s15033_s8 + $0x38] sm:$0xff]  ;;  %v12303_v63 = vpack.c.bf16 %v344_v48, %v344_v48  ;;  %v14262_v0 = vld [vmem:[#allocation6 + $0x70] sm:$0xff]   ;;  %s18645_s12 = scalar_lea.vmem [#allocation11], %s11694_s30  ;;  %s12363_s15 = sshll.u32 %s14848_s22, 12 }
  0xa7   : > { %18931 = vst [vmem:[#allocation16_spill] sm:$0xff] %v18930_v22  ;;  %v18933_v29 = vsel %vm15057_vm8, 4294967295, %v18932_v29  ;;  %vm15065_vm9 = vmand %vm792_vm5, %vm793_vm4  ;;  %v11731_v55 = vcombine.low %v989_v49, %v999_v50  ;;  %v486_v56 = vsel %vm15057_vm8, %v478_v45, %v485_v46  ;;  %v491_v60 = vrot.slane %v489_v51, 7  ;;  %v804_v1 = vld [vmem:[#allocation2 + $0x18] sm:$0xf]  ;;  %12808 = vmatprep.subr.bf16.mxu0 %v14262_v0  ;;  %v14263_v19 = vld [vmem:[#allocation6 + $0x78] sm:$0xff]   ;;  %s18750_s23 = scalar_lea.hbm %s18823_s5, %s12363_s15 }
  0xa8   : > { %18934 = vst [vmem:[#allocation17_spill] sm:$0xff] %v18933_v29  ;;  %v18936_v35 = vsel %vm15065_vm9, 4294967295, %v18935_v35  ;;  %vm15071_vm10 = vmand %vm799_vm6, %vm468_vm2  ;;  %v796_v57 = vsel %vm15065_vm9, %v477_v44, %v795_v39  ;;  %v12304_v2 = vpack.c.bf16 %v345_v53, %v345_v53  ;;  %v12305_v3 = vpack.c.bf16 %v346_v54, %v346_v54  ;;  %v808_v9 = vld [vmem:[#allocation2 + $0x20] sm:$0x1]  ;;  %v348_v18 = vld [vmem:[%s15033_s8 + $0x40] sm:$0xff]  ;;  %s11582_s16 = sshll.u32 %s18645_s12, 4  ;;  %s18754_s16 = int_to_ptr.vmem [resolvable:$true] %s11582_s16 }
  0xa9   : > { %18937 = vst [vmem:[#allocation18_spill] sm:$0xff] %v18936_v35  ;;  %v18939_v40 = vsel %vm15071_vm10, 4294967295, %v18938_v40  ;;  %v802_v58 = vsel %vm15071_vm10, %v487_v47, %v801_v41  ;;  %797 = vst [vmem:[#allocation2 + $0xc] sm:$0xf] %v796_v57  ;;  %12812 = vmatprep.mubr.bf16.mxu0 %v11731_v55  ;;  %v15089_v4 = vpack.c.bf16 %v347_v59, %v347_v59  ;;  %v495_v6 = vrot.slane %v491_v60, 4  ;;  %v349_v31 = vld [vmem:[%s15033_s8 + $0x48] sm:$0xff] }
  0xaa   : > { %18940 = vst [vmem:[#allocation19_spill] sm:$0xff] %v18939_v40  ;;  %798 = vst [vmem:[#allocation2 + $0x10] sm:$0xf] %v486_v56  ;;  %v494_v5 = vor.u32 %v492_v52, %v491_v60  ;;  %v499_v7 = vrot.slane %v497_v61, 7  ;;  %v506_v8 = vshrl.u32 %v12303_v63, 16  ;;  %v509_v10 = vshll.u32 %v12303_v63, 16  ;;  %12809 = vmatpush3.bf16.msra.mxu0 %v14262_v0 }
  0xab   : > { %803 = vst [vmem:[#allocation2 + $0x14] sm:$0x1] %v802_v58  ;;  %v514_v11 = vshrl.u32 %v12304_v2, 16  ;;  %v517_v12 = vshll.u32 %v12304_v2, 16  ;;  %v523_v13 = vshrl.u32 %v12305_v3, 16  ;;  %v526_v23 = vshll.u32 %v12305_v3, 16  ;;  %12810 = vmatprep.subr.bf16.mxu0 %v14263_v19 }
  0xac   : > { %v502_v14 = vor.u32 %v500_v62, %v499_v7  ;;  %v504_v15 = vrot.slane %v499_v7, 4  ;;  %v805_v16 = vsel %vm15065_vm9, %v494_v5, %v804_v1  ;;  %v508_v17 = vrot.slane %v506_v8, 7  ;;  %v811_v27 = vld [vmem:[#allocation2 + $0x24] sm:$0xf]  ;;  %v815_v28 = vld [vmem:[#allocation2 + $0x2c] sm:$0x1] }
  0xad   : > { %806 = vst [vmem:[#allocation2 + $0x18] sm:$0xf] %v805_v16  ;;  %v516_v20 = vrot.slane %v514_v11, 7  ;;  %v15094_v21 = vrot.slane %v523_v13, 7  ;;  %v531_v30 = vshrl.u32 %v15089_v4, 16  ;;  %v15103_v39 = vpack.c.bf16 %v348_v18, %v348_v18  ;;  %v15105_v46 = vld [vmem:[#allocation6] sm:$0xff]  }
  0xae   : > { %v503_v24 = vsel %vm15057_vm8, %v495_v6, %v502_v14  ;;  %v809_v25 = vsel %vm15071_vm10, %v504_v15, %v808_v9  ;;  %v512_v26 = vrot.slane %v508_v17, 4  ;;  %v511_v36 = vor.u32 %v509_v10, %v508_v17  ;;  %v818_v54 = vld [vmem:[#allocation2 + $0x30] sm:$0xf]  ;;  %v350_v59 = vld [vmem:[%s15033_s8 + $0x50] sm:$0xff]  ;;  %12811 = vmatpush3.bf16.msra.mxu0 %v14263_v19  ;;  %s11569_s22 = scalar_lea.sflag [#allocation5], %s15027_s29  ;;  %s14709_s27 = scalar_lea.vmem %s18754_s16, 4096 }
  0xaf   : > { %807 = vst [vmem:[#allocation2 + $0x1c] sm:$0xf] %v503_v24  ;;  %810 = vst [vmem:[#allocation2 + $0x20] sm:$0x1] %v809_v25  ;;  %v519_v37 = vor.u32 %v517_v12, %v516_v20  ;;  %v528_v38 = vor.u32 %v526_v23, %v15094_v21  ;;  %v521_v48 = vrot.slane %v516_v20, 4  ;;  %v15109_v49 = vpack.c.bf16 %v349_v31, %v349_v31  ;;  %v351_v19 = vld [vmem:[%s15033_s8 + $0x58] sm:$0xff]  ;;  %p14710_p10 = scmp.ne.s32.totalorder %s18754_s16, %s14709_s27 }
  0xb0   : > { %v911_v32 = vld [vmem:[#allocation2 + $0xc] sm:$0xf]  ;;  %v812_v56 = vsel %vm15065_vm9, %v511_v36, %v811_v27  ;;  %v529_v58 = vrot.slane %v15094_v21, 4  ;;  %v533_v63 = vrot.slane %v531_v30, 7  ;;  %v534_v0 = vshll.u32 %v15089_v4, 16  ;;  %12844 = vmatprep.subr.bf16.mxu0 %v15105_v46  ;;  %s14794_s13 = smov [#allocation11]  }
  0xb1   : > { %v912_v33 = vld [vmem:[#allocation2 + $0x10] sm:$0xf]  ;;  %v1001_v41 = vshrl.u32 %v911_v32, 16  ;;  %v1004_v42 = vshll.u32 %v911_v32, 16  ;;  %v520_v47 = vsel %vm15057_vm8, %v512_v26, %v519_v37  ;;  %v816_v57 = vsel %vm15071_vm10, %v521_v48, %v815_v28  ;;  %813 = vst [vmem:[#allocation2 + $0x24] sm:$0xf] %v812_v56  ;;  %p14711_p3 = pnand %p14710_p10, %p14979_p5 }
  0xb2   : > { %v958_v34 = vld [vmem:[#allocation2 + $0x14] sm:$0x1]  ;;  %v1010_v43 = vshll.u32 %v912_v33, 16  ;;  %v1014_v44 = vshrl.u32 %v912_v33, 16  ;;  %814 = vst [vmem:[#allocation2 + $0x28] sm:$0xf] %v520_v47  ;;  %v819_v3 = vsel %vm15065_vm9, %v528_v38, %v818_v54  ;;  %v536_v10 = vor.u32 %v534_v0, %v533_v63 }
  0xb3   : > { %v1020_v45 = vshll.u32 %v958_v34, 16  ;;  %v1003_v50 = vrot.slane %v1001_v41, 4  ;;  %v1006_v51 = vrot.slane %v1004_v42, 5  ;;  %817 = vst [vmem:[#allocation2 + $0x2c] sm:$0x1] %v816_v57  ;;  %v540_v5 = vshrl.u32 %v15103_v39, 16  ;;  %p14712_p7 = pneg %p14711_p3 }
  0xb4   : > { %v1012_v52 = vrot.slane %v1010_v43, 5  ;;  %v1016_v53 = vrot.slane %v1014_v44, 4  ;;  %v913_v62 = vld [vmem:[#allocation2 + $0x18] sm:$0xf]  ;;  %820 = vst [vmem:[#allocation2 + $0x30] sm:$0xf] %v819_v3  ;;  %v15122_v11 = vpack.c.bf16 %v350_v59, %v350_v59  ;;  %v537_v18 = vsel %vm15057_vm8, %v529_v58, %v536_v10 }
  0xb5   : > { %v1022_v55 = vrot.slane %v1020_v45, 5  ;;  %v1007_v60 = vor.u32 %v1006_v51, %v1003_v50  ;;  %v1025_v1 = vshrl.u32 %v913_v62, 16  ;;  %v1028_v2 = vshll.u32 %v913_v62, 16  ;;  %v14265_v26 = vld [vmem:[#allocation6 + $0x8] sm:$0xff]   ;;  %821 = vst [vmem:[#allocation2 + $0x34] sm:$0xf] %v537_v18 }
  0xb6   : > { %v1017_v61 = vor.u32 %v1016_v53, %v1012_v52  ;;  %v914_v8 = vld [vmem:[#allocation2 + $0x1c] sm:$0xf]  ;;  %v959_v9 = vld [vmem:[#allocation2 + $0x20] sm:$0x1]  ;;  %v538_v31 = vrot.slane %v533_v63, 4  ;;  %v15131_v38 = vrot.slane %v540_v5, 7  ;;  %v15133_v41 = vpack.c.bf16 %v351_v19, %v351_v19 }
  0xb7   : > { %v1008_v6 = vrot.slane %v1007_v60, 4  ;;  %v1027_v12 = vrot.slane %v1025_v1, 4  ;;  %v1030_v4 = vrot.slane %v1028_v2, 5  ;;  %v1034_v13 = vshll.u32 %v914_v8, 16  ;;  %v822_v32 = vld [vmem:[#allocation2 + $0x38] sm:$0x1] }
  0xb8   : > { %v1018_v7 = vrot.slane %v1017_v61, 4  ;;  %v1038_v14 = vshrl.u32 %v914_v8, 16  ;;  %v1044_v17 = vshll.u32 %v959_v9, 16  ;;  %v915_v36 = vld [vmem:[#allocation2 + $0x24] sm:$0xf]  ;;  %v823_v51 = vsel %vm15071_vm10, %v538_v31, %v822_v32  ;;  %v14266_v53 = vld [vmem:[#allocation6 + $0x10] sm:$0xff]  }
  0xb9   : > { %v1013_v15 = vsel %vm15051_vm7, %v1008_v6, %v1012_v52  ;;  %v1031_v21 = vor.u32 %v1030_v4, %v1027_v12  ;;  %v1036_v23 = vrot.slane %v1034_v13, 5  ;;  %v916_v25 = vld [vmem:[#allocation2 + $0x28] sm:$0xf]  ;;  %v1049_v42 = vshrl.u32 %v915_v36, 16  ;;  %824 = vst [vmem:[#allocation2 + $0x38] sm:$0x1] %v823_v51 }
  0xba   : > { %v1023_v16 = vsel %vm15051_vm7, %v1018_v7, %v1022_v55  ;;  %v1040_v24 = vrot.slane %v1038_v14, 4  ;;  %v1046_v27 = vrot.slane %v1044_v17, 5  ;;  %v1058_v28 = vshll.u32 %v916_v25, 16  ;;  %v960_v37 = vld [vmem:[#allocation2 + $0x2c] sm:$0x1]  ;;  %v14267_v8 = vld [vmem:[#allocation6 + $0x18] sm:$0xff]  }
  0xbb   : > { %v11732_v20 = vcombine.low %v1013_v15, %v1023_v16  ;;  %v1062_v30 = vshrl.u32 %v916_v25, 16  ;;  %v1032_v33 = vrot.slane %v1031_v21, 4  ;;  %v1052_v43 = vshll.u32 %v915_v36, 16  ;;  %v917_v52 = vld [vmem:[#allocation2 + $0x30] sm:$0xf]  ;;  %v352_v21 = vld [vmem:[%s15033_s8 + $0x60] sm:$0xff] }
  0xbc   : > { %v1041_v34 = vor.u32 %v1040_v24, %v1036_v23  ;;  %v1060_v44 = vrot.slane %v1058_v28, 5  ;;  %v1068_v50 = vshll.u32 %v960_v37, 16  ;;  %v1051_v54 = vrot.slane %v1049_v42, 4  ;;  %v918_v0 = vld [vmem:[#allocation2 + $0x34] sm:$0xf]  ;;  %s14713_s6 = sshll.u32 %s14794_s13, 4  ;;  %s14714_s6 = int_to_ptr.vmem [resolvable:$false] %s14713_s6 }
  0xbd   : > { %12813 = vmatmul.mubr.bf16.vlgmr.msra.gmra.mrb[0].mxu0 %v11732_v20  ;;  %v1064_v45 = vrot.slane %v1062_v30, 4  ;;  %v1037_v47 = vsel %vm15051_vm7, %v1032_v33, %v1036_v23  ;;  %v1054_v55 = vrot.slane %v1052_v43, 5  ;;  %v1076_v59 = vshll.u32 %v917_v52, 16  ;;  %v825_v7 = vld [vmem:[#allocation2 + $0x3c] sm:$0xf]  ;;  %v354_v43 = vld [vmem:[%s15033_s8 + $0x70] sm:$0xff]  ;;  %p14716_p12 = scmp.lt.s32.totalorder %s18754_s16, %s14714_s6 }
  0xbe   : > { %12845 = vmatpush3.bf16.msra.mxu0 %v15105_v46  ;;  %v1042_v48 = vrot.slane %v1041_v34, 4  ;;  %v1073_v46 = vshrl.u32 %v917_v52, 16  ;;  %v1070_v58 = vrot.slane %v1068_v50, 5  ;;  %v543_v60 = vshll.u32 %v15103_v39, 16  ;;  %v829_v16 = vld [vmem:[#allocation2 + $0x44] sm:$0x1] }
  0xbf   : > { %12846 = vmatprep.subr.bf16.mxu0 %v14265_v26  ;;  %v1065_v56 = vor.u32 %v1064_v45, %v1060_v44  ;;  %v1055_v62 = vor.u32 %v1054_v55, %v1051_v54  ;;  %v1078_v2 = vrot.slane %v1076_v59, 5  ;;  %v1082_v3 = vshll.u32 %v918_v0, 16  ;;  %v14268_v23 = vld [vmem:[#allocation6 + $0x20] sm:$0xff]   ;;  %v832_v33 = vld [vmem:[#allocation2 + $0x48] sm:$0xf]  ;;  %v353_v34 = vld [vmem:[%s15033_s8 + $0x68] sm:$0xff] }
  0xc0   : > { %v1047_v57 = vsel %vm15051_vm7, %v1042_v48, %v1046_v27  ;;  %v1075_v1 = vrot.slane %v1073_v46, 4  ;;  %v1086_v5 = vshrl.u32 %v918_v0, 16  ;;  %v545_v6 = vor.u32 %v543_v60, %v15131_v38  ;;  %v961_v25 = vld [vmem:[#allocation2 + $0x38] sm:$0x1]  ;;  %v14269_v54 = vld [vmem:[#allocation6 + $0x28] sm:$0xff]   ;;  %s14715_s17 = scalar_lea.vmem %s14714_s6, 8192 }
  0xc1   : > { %v11733_v61 = vcombine.low %v1037_v47, %v1047_v57  ;;  %v1066_v63 = vrot.slane %v1065_v56, 4  ;;  %v1056_v9 = vrot.slane %v1055_v62, 4  ;;  %v546_v10 = vrot.slane %v15131_v38, 4  ;;  %v836_v56 = vld [vmem:[#allocation2 + $0x50] sm:$0x1]  ;;  %v14270_v62 = vld [vmem:[#allocation6 + $0x30] sm:$0xff]   ;;  %p14717_p1 = scmp.lt.s32.totalorder %s14715_s17, %s14709_s27 }
  0xc2   : > { %12847 = vmatpush3.bf16.msra.mxu0 %v14265_v26  ;;  %v548_v12 = vshrl.u32 %v15109_v49, 16  ;;  %v1079_v4 = vor.u32 %v1078_v2, %v1075_v1  ;;  %v1084_v13 = vrot.slane %v1082_v3, 5  ;;  %v1088_v14 = vrot.slane %v1086_v5, 4 }
  0xc3   : > { %12848 = vmatprep.subr.bf16.mxu0 %v14266_v53  ;;  %12816 = vmatprep.mubr.bf16.mxu0 %v11733_v61  ;;  %v1071_v39 = vsel %vm15051_vm7, %v1066_v63, %v1070_v58  ;;  %v551_v15 = vshll.u32 %v15109_v49, 16  ;;  %v1061_v17 = vsel %vm15051_vm7, %v1056_v9, %v1060_v44  ;;  %v826_v19 = vsel %vm15065_vm9, %v545_v6, %v825_v7  ;;  %v355_v44 = vld [vmem:[%s15033_s8 + $0x78] sm:$0xff]  ;;  %p14718_p2 = por %p14717_p1, %p14716_p12 }
  0xc4   : > { %v550_v18 = vrot.slane %v548_v12, 7  ;;  %v557_v20 = vshrl.u32 %v15122_v11, 16  ;;  %v11734_v24 = vcombine.low %v1061_v17, %v1071_v39  ;;  %v1080_v26 = vrot.slane %v1079_v4, 4  ;;  %827 = vst [vmem:[#allocation2 + $0x3c] sm:$0xf] %v826_v19 }
  0xc5   : > { %v1089_v27 = vor.u32 %v1088_v14, %v1084_v13  ;;  %v560_v49 = vshll.u32 %v15122_v11, 16  ;;  %v1092_v28 = vshll.u32 %v961_v25, 16  ;;  %v565_v38 = vshrl.u32 %v15133_v41, 16  ;;  %v839_v9 = vld [vmem:[#allocation2 + $0x54] sm:$0xf]  ;;  %p14719_p4 = pnand %p14718_p2, %p14712_p7 }
  0xc6   : > { %12849 = vmatpush3.bf16.msra.mxu0 %v14266_v53  ;;  %v553_v30 = vor.u32 %v551_v15, %v550_v18  ;;  %v555_v31 = vrot.slane %v550_v18, 4  ;;  %v559_v32 = vrot.slane %v557_v20, 7  ;;  %v1085_v36 = vsel %vm15051_vm7, %v1080_v26, %v1084_v13  ;;  %v843_v39 = vld [vmem:[#allocation2 + $0x5c] sm:$0x1]  ;;  %v846_v25 = vld [vmem:[#allocation2 + $0x60] sm:$0xf] }
  0xc7   : > { %12850 = vmatprep.subr.bf16.mxu0 %v14267_v8  ;;  %12817 = vmatmul.mubr.bf16.gmra.mrb[4].mxu0 %v11734_v24  ;;  %v1090_v37 = vrot.slane %v1089_v27, 4  ;;  %v568_v42 = vshll.u32 %v15133_v41, 16  ;;  %v1094_v45 = vrot.slane %v1092_v28, 5  ;;  %v567_v51 = vrot.slane %v565_v38, 7 }
  0xc8   : > { %v554_v11 = vsel %vm15057_vm8, %v546_v10, %v553_v30  ;;  %v830_v47 = vsel %vm15071_vm10, %v555_v31, %v829_v16  ;;  %v562_v48 = vor.u32 %v560_v49, %v559_v32  ;;  %v563_v50 = vrot.slane %v559_v32, 4  ;;  %v14271_v30 = vld [vmem:[#allocation6 + $0x38] sm:$0xff]  }
  0xc9   : > { %828 = vst [vmem:[#allocation2 + $0x40] sm:$0xf] %v554_v11  ;;  %831 = vst [vmem:[#allocation2 + $0x44] sm:$0x1] %v830_v47  ;;  %v12311_v52 = vpack.c.bf16 %v352_v21, %v352_v21  ;;  %v12312_v53 = vpack.c.bf16 %v353_v34, %v353_v34  ;;  %v1095_v41 = vsel %vm15051_vm7, %v1090_v37, %v1094_v45  ;;  %v572_v60 = vrot.slane %v567_v51, 4  ;;  %v356_v37 = vld [vmem:[%s15033_s8 + $0x80] sm:$0xff] }
  0xca   : > { %12851 = vmatpush3.bf16.msra.mxu0 %v14267_v8  ;;  %v833_v55 = vsel %vm15065_vm9, %v562_v48, %v832_v33  ;;  %v12313_v46 = vpack.c.bf16 %v354_v43, %v354_v43  ;;  %v15171_v57 = vpack.c.bf16 %v355_v44, %v355_v44  ;;  %v11735_v58 = vcombine.low %v1085_v36, %v1095_v41  ;;  %v357_v45 = vld [vmem:[%s15033_s8 + $0x88] sm:$0xff] }
  0xcb   : > { %12852 = vmatprep.subr.bf16.mxu0 %v14268_v23  ;;  %v570_v59 = vor.u32 %v568_v42, %v567_v51  ;;  %834 = vst [vmem:[#allocation2 + $0x48] sm:$0xf] %v833_v55  ;;  %v574_v61 = vshrl.u32 %v12311_v52, 16  ;;  %v919_v63 = vld [vmem:[#allocation2 + $0x3c] sm:$0xf]  ;;  %v577_v0 = vshll.u32 %v12311_v52, 16  ;;  %v837_v8 = vsel %vm15071_vm10, %v572_v60, %v836_v56 }
  0xcc   : > { %v582_v1 = vshrl.u32 %v12312_v53, 16  ;;  %v585_v2 = vshll.u32 %v12312_v53, 16  ;;  %v591_v3 = vshrl.u32 %v12313_v46, 16  ;;  %12820 = vmatprep.mubr.bf16.mxu0 %v11735_v58  ;;  %v1097_v5 = vshrl.u32 %v919_v63, 16  ;;  %838 = vst [vmem:[#allocation2 + $0x50] sm:$0x1] %v837_v8 }
  0xcd   : > { %v1100_v6 = vshll.u32 %v919_v63, 16  ;;  %v571_v7 = vsel %vm15057_vm8, %v563_v50, %v570_v59  ;;  %v576_v10 = vrot.slane %v574_v61, 7  ;;  %v594_v13 = vshll.u32 %v12313_v46, 16  ;;  %v850_v51 = vld [vmem:[#allocation2 + $0x68] sm:$0x1]  ;;  %v15199_v46 = vld [vmem:[#allocation6 + $0x80] sm:$0xff]  }
  0xce   : > { %12853 = vmatpush3.bf16.msra.mxu0 %v14268_v23  ;;  %835 = vst [vmem:[#allocation2 + $0x4c] sm:$0xf] %v571_v7  ;;  %v584_v12 = vrot.slane %v582_v1, 7  ;;  %v15177_v4 = vrot.slane %v591_v3, 7  ;;  %v1099_v14 = vrot.slane %v1097_v5, 4  ;;  %v599_v16 = vshrl.u32 %v15171_v57, 16 }
  0xcf   : > { %12854 = vmatprep.subr.bf16.mxu0 %v14269_v54  ;;  %v1102_v15 = vrot.slane %v1100_v6, 5  ;;  %v602_v17 = vshll.u32 %v15171_v57, 16  ;;  %v579_v20 = vor.u32 %v577_v0, %v576_v10  ;;  %v580_v21 = vrot.slane %v576_v10, 4 }
  0xd0   : > { %v920_v18 = vld [vmem:[#allocation2 + $0x40] sm:$0xf]  ;;  %v962_v19 = vld [vmem:[#allocation2 + $0x44] sm:$0x1]  ;;  %v587_v23 = vor.u32 %v585_v2, %v584_v12  ;;  %v589_v24 = vrot.slane %v584_v12, 4  ;;  %v596_v36 = vor.u32 %v594_v13, %v15177_v4  ;;  %v597_v48 = vrot.slane %v15177_v4, 4 }
  0xd1   : > { %v1103_v26 = vor.u32 %v1102_v15, %v1099_v14  ;;  %v1106_v27 = vshll.u32 %v920_v18, 16  ;;  %v1110_v49 = vshrl.u32 %v920_v18, 16  ;;  %v1116_v28 = vshll.u32 %v962_v19, 16 }
  0xd2   : > { %12855 = vmatpush3.bf16.msra.mxu0 %v14269_v54  ;;  %v921_v31 = vld [vmem:[#allocation2 + $0x48] sm:$0xf]  ;;  %v588_v32 = vsel %vm15057_vm8, %v580_v21, %v587_v23  ;;  %v840_v33 = vsel %vm15065_vm9, %v579_v20, %v839_v9  ;;  %v844_v34 = vsel %vm15071_vm10, %v589_v24, %v843_v39  ;;  %v601_v50 = vrot.slane %v599_v16, 7 }
  0xd3   : > { %12856 = vmatprep.subr.bf16.mxu0 %v14270_v62  ;;  %v1104_v38 = vrot.slane %v1103_v26, 4  ;;  %v1108_v42 = vrot.slane %v1106_v27, 5  ;;  %v1112_v43 = vrot.slane %v1110_v49, 4  ;;  %v1118_v44 = vrot.slane %v1116_v28, 5  ;;  %841 = vst [vmem:[#allocation2 + $0x54] sm:$0xf] %v840_v33 }
  0xd4   : > { %842 = vst [vmem:[#allocation2 + $0x58] sm:$0xf] %v588_v32  ;;  %845 = vst [vmem:[#allocation2 + $0x5c] sm:$0x1] %v844_v34  ;;  %v1121_v11 = vshrl.u32 %v921_v31, 16  ;;  %v1124_v47 = vshll.u32 %v921_v31, 16  ;;  %v847_v55 = vsel %vm15065_vm9, %v596_v36, %v846_v25  ;;  %v15197_v56 = vpack.c.bf16 %v356_v37, %v356_v37 }
  0xd5   : > { %v1109_v52 = vsel %vm15051_vm7, %v1104_v38, %v1108_v42  ;;  %v1113_v53 = vor.u32 %v1112_v43, %v1108_v42  ;;  %v15193_v54 = vld [vmem:[#allocation2 + $0x4c] sm:$0xf]  ;;  %v963_v41 = vld [vmem:[#allocation2 + $0x50] sm:$0x1]  ;;  %848 = vst [vmem:[#allocation2 + $0x60] sm:$0xf] %v847_v55  ;;  %v604_v63 = vor.u32 %v602_v17, %v601_v50  ;;  %v15203_v5 = vpack.c.bf16 %v357_v45, %v357_v45 }
  0xd6   : > { %12857 = vmatpush3.bf16.msra.mxu0 %v14270_v62  ;;  %v1123_v57 = vrot.slane %v1121_v11, 4  ;;  %v1126_v58 = vrot.slane %v1124_v47, 5  ;;  %v1130_v59 = vshll.u32 %v15193_v54, 16  ;;  %v1134_v60 = vshrl.u32 %v15193_v54, 16  ;;  %v358_v34 = vld [vmem:[%s15033_s8 + $0x90] sm:$0xff] }
  0xd7   : > { %12858 = vmatprep.subr.bf16.mxu0 %v14271_v30  ;;  %v1114_v61 = vrot.slane %v1113_v53, 4  ;;  %v1140_v62 = vshll.u32 %v963_v41, 16  ;;  %v606_v0 = vrot.slane %v601_v50, 4  ;;  %v605_v8 = vsel %vm15057_vm8, %v597_v48, %v604_v63  ;;  %v853_v47 = vld [vmem:[#allocation2 + $0x6c] sm:$0xf]  ;;  %v359_v41 = vld [vmem:[%s15033_s8 + $0x98] sm:$0xff] }
  0xd8   : > { %v1127_v1 = vor.u32 %v1126_v58, %v1123_v57  ;;  %v1132_v2 = vrot.slane %v1130_v59, 5  ;;  %v1136_v3 = vrot.slane %v1134_v60, 4  ;;  %849 = vst [vmem:[#allocation2 + $0x64] sm:$0xf] %v605_v8  ;;  %v608_v14 = vshrl.u32 %v15197_v56, 16  ;;  %v361_v8 = vld [vmem:[%s15033_s8 + $0xa8] sm:$0xff] }
  0xd9   : > { %v1119_v6 = vsel %vm15051_vm7, %v1114_v61, %v1118_v44  ;;  %v1142_v7 = vrot.slane %v1140_v62, 5  ;;  %v851_v9 = vsel %vm15071_vm10, %v606_v0, %v850_v51  ;;  %v611_v42 = vshll.u32 %v15197_v56, 16  ;;  %v857_v60 = vld [vmem:[#allocation2 + $0x74] sm:$0x1]  ;;  %v360_v61 = vld [vmem:[%s15033_s8 + $0xa0] sm:$0xff] }
  0xda   : > { %12859 = vmatpush3.bf16.msra.mxu0 %v14271_v30  ;;  %v11736_v39 = vcombine.low %v1109_v52, %v1119_v6  ;;  %v1128_v10 = vrot.slane %v1127_v1, 4  ;;  %v1137_v12 = vor.u32 %v1136_v3, %v1132_v2  ;;  %v15212_v4 = vld [vmem:[#allocation2 + $0x54] sm:$0xf]  ;;  %852 = vst [vmem:[#allocation2 + $0x68] sm:$0x1] %v851_v9  ;;  %v610_v24 = vrot.slane %v608_v14, 7 }
  0xdb   : > { %12892 = vmatprep.subr.bf16.mxu0 %v15199_v46  ;;  %v15214_v13 = vld [vmem:[#allocation2 + $0x58] sm:$0xf]  ;;  %v964_v15 = vld [vmem:[#allocation2 + $0x5c] sm:$0x1]  ;;  %v1145_v16 = vshrl.u32 %v15212_v4, 16  ;;  %v1148_v17 = vshll.u32 %v15212_v4, 16  ;;  %v12317_v55 = vpack.c.bf16 %v358_v34, %v358_v34 }
  0xdc   : > { %v1154_v18 = vshll.u32 %v15214_v13, 16  ;;  %v1158_v19 = vshrl.u32 %v15214_v13, 16  ;;  %12821 = vmatmul.mubr.bf16.gmra.mrb[8].mxu0 %v11736_v39  ;;  %v1133_v20 = vsel %vm15051_vm7, %v1128_v10, %v1132_v2  ;;  %v1138_v21 = vrot.slane %v1137_v12, 4  ;;  %v15223_v28 = vld [vmem:[#allocation2 + $0x60] sm:$0xf] }
  0xdd   : > { %v1164_v23 = vshll.u32 %v964_v15, 16  ;;  %v1147_v25 = vrot.slane %v1145_v16, 4  ;;  %v1150_v26 = vrot.slane %v1148_v17, 5  ;;  %v1169_v32 = vshrl.u32 %v15223_v28, 16  ;;  %v362_v17 = vld [vmem:[%s15033_s8 + $0xb0] sm:$0xff] }
  0xde   : > { %v1156_v27 = vrot.slane %v1154_v18, 5  ;;  %v1160_v49 = vrot.slane %v1158_v19, 4  ;;  %v1143_v30 = vsel %vm15051_vm7, %v1138_v21, %v1142_v7  ;;  %v1172_v33 = vshll.u32 %v15223_v28, 16  ;;  %v860_v21 = vld [vmem:[#allocation2 + $0x78] sm:$0xf] }
  0xdf   : > { %v1166_v31 = vrot.slane %v1164_v23, 5  ;;  %v11737_v36 = vcombine.low %v1133_v20, %v1143_v30  ;;  %v1151_v37 = vor.u32 %v1150_v26, %v1147_v25  ;;  %v1171_v43 = vrot.slane %v1169_v32, 4  ;;  %v15232_v51 = vld [vmem:[#allocation2 + $0x64] sm:$0xf]  ;;  %v864_v30 = vld [vmem:[#allocation2 + $0x80] sm:$0x1] }
  0xe0   : > { %v1161_v38 = vor.u32 %v1160_v49, %v1156_v27  ;;  %v1174_v44 = vrot.slane %v1172_v33, 5  ;;  %v614_v45 = vrot.slane %v610_v24, 4  ;;  %v616_v11 = vshrl.u32 %v15203_v5, 16  ;;  %v363_v49 = vld [vmem:[%s15033_s8 + $0xb8] sm:$0xff] }
  0xe1   : > { %12824 = vmatprep.mubr.bf16.mxu0 %v11737_v36  ;;  %v1152_v48 = vrot.slane %v1151_v37, 4  ;;  %v965_v52 = vld [vmem:[#allocation2 + $0x68] sm:$0x1]  ;;  %v613_v53 = vor.u32 %v611_v42, %v610_v24  ;;  %v1178_v56 = vshll.u32 %v15232_v51, 16  ;;  %v1182_v58 = vshrl.u32 %v15232_v51, 16 }
  0xe2   : > { %v1162_v50 = vrot.slane %v1161_v38, 4  ;;  %v1175_v57 = vor.u32 %v1174_v44, %v1171_v43  ;;  %v1188_v59 = vshll.u32 %v965_v52, 16  ;;  %v618_v0 = vrot.slane %v616_v11, 7  ;;  %v867_v43 = vld [vmem:[#allocation2 + $0x84] sm:$0xf] }
  0xe3   : > { %v1157_v62 = vsel %vm15051_vm7, %v1152_v48, %v1156_v27  ;;  %v619_v1 = vshll.u32 %v15203_v5, 16  ;;  %v1180_v6 = vrot.slane %v1178_v56, 5  ;;  %v1184_v7 = vrot.slane %v1182_v58, 4 }
  0xe4   : > { %v1167_v63 = vsel %vm15051_vm7, %v1162_v50, %v1166_v31  ;;  %v1176_v3 = vrot.slane %v1175_v57, 4  ;;  %v1190_v9 = vrot.slane %v1188_v59, 5  ;;  %v623_v10 = vrot.slane %v618_v0, 4 }
  0xe5   : > { %v11738_v2 = vcombine.low %v1157_v62, %v1167_v63  ;;  %v621_v39 = vor.u32 %v619_v1, %v618_v0  ;;  %v854_v12 = vsel %vm15065_vm9, %v613_v53, %v853_v47  ;;  %v1185_v15 = vor.u32 %v1184_v7, %v1180_v6  ;;  %v871_v53 = vld [vmem:[#allocation2 + $0x8c] sm:$0x1] }
  0xe6   : > { %v1181_v14 = vsel %vm15051_vm7, %v1176_v3, %v1180_v6  ;;  %855 = vst [vmem:[#allocation2 + $0x6c] sm:$0xf] %v854_v12  ;;  %v12318_v5 = vpack.c.bf16 %v359_v41, %v359_v41  ;;  %v625_v16 = vshrl.u32 %v12317_v55, 16  ;;  %v858_v19 = vsel %vm15071_vm10, %v623_v10, %v857_v60 }
  0xe7   : > { %12825 = vmatmul.mubr.bf16.gmra.mrb[12].mxu0 %v11738_v2  ;;  %v622_v18 = vsel %vm15057_vm8, %v614_v45, %v621_v39  ;;  %v628_v20 = vshll.u32 %v12317_v55, 16  ;;  %v12319_v23 = vpack.c.bf16 %v360_v61, %v360_v61  ;;  %v1186_v24 = vrot.slane %v1185_v15, 4  ;;  %859 = vst [vmem:[#allocation2 + $0x74] sm:$0x1] %v858_v19 }
  0xe8   : > { %856 = vst [vmem:[#allocation2 + $0x70] sm:$0xf] %v622_v18  ;;  %v627_v25 = vrot.slane %v625_v16, 7  ;;  %v633_v26 = vshrl.u32 %v12318_v5, 16  ;;  %v636_v27 = vshll.u32 %v12318_v5, 16  ;;  %v12320_v31 = vpack.c.bf16 %v361_v8, %v361_v8  ;;  %v365_v18 = vld [vmem:[%s15033_s8 + $0xc8] sm:$0xff] }
  0xe9   : > { %v642_v32 = vshrl.u32 %v12319_v23, 16  ;;  %v645_v33 = vshll.u32 %v12319_v23, 16  ;;  %v12321_v34 = vpack.c.bf16 %v362_v17, %v362_v17  ;;  %v1191_v36 = vsel %vm15051_vm7, %v1186_v24, %v1190_v9  ;;  %v874_v16 = vld [vmem:[#allocation2 + $0x90] sm:$0xf]  ;;  %v364_v17 = vld [vmem:[%s15033_s8 + $0xc0] sm:$0xff] }
  0xea   : > { %v630_v37 = vor.u32 %v628_v20, %v627_v25  ;;  %v631_v38 = vrot.slane %v627_v25, 4  ;;  %v635_v42 = vrot.slane %v633_v26, 7  ;;  %v11739_v44 = vcombine.low %v1181_v14, %v1191_v36 }
  0xeb   : > { %v644_v45 = vrot.slane %v642_v32, 7  ;;  %v650_v11 = vshrl.u32 %v12320_v31, 16  ;;  %v653_v47 = vshll.u32 %v12320_v31, 16  ;;  %v15258_v41 = vpack.c.bf16 %v363_v49, %v363_v49  ;;  %v366_v49 = vld [vmem:[%s15033_s8 + $0xd0] sm:$0xff] }
  0xec   : > { %v638_v48 = vor.u32 %v636_v27, %v635_v42  ;;  %v640_v50 = vrot.slane %v635_v42, 4  ;;  %v861_v52 = vsel %vm15065_vm9, %v630_v37, %v860_v21  ;;  %12828 = vmatprep.mubr.bf16.mxu0 %v11739_v44  ;;  %v659_v59 = vshrl.u32 %v12321_v34, 16 }
  0xed   : > { %v15260_v55 = vld [vmem:[#allocation2 + $0x6c] sm:$0xf]  ;;  %862 = vst [vmem:[#allocation2 + $0x78] sm:$0xf] %v861_v52  ;;  %v647_v57 = vor.u32 %v645_v33, %v644_v45  ;;  %v648_v56 = vrot.slane %v644_v45, 4  ;;  %v652_v58 = vrot.slane %v650_v11, 7  ;;  %v15289_v33 = vpack.c.bf16 %v364_v17, %v364_v17 }
  0xee   : > { %v1193_v60 = vshrl.u32 %v15260_v55, 16  ;;  %v1196_v61 = vshll.u32 %v15260_v55, 16  ;;  %v639_v62 = vsel %vm15057_vm8, %v631_v38, %v638_v48  ;;  %v865_v63 = vsel %vm15071_vm10, %v640_v50, %v864_v30  ;;  %v966_v1 = vld [vmem:[#allocation2 + $0x74] sm:$0x1] }
  0xef   : > { %v15268_v0 = vld [vmem:[#allocation2 + $0x70] sm:$0xf]  ;;  %863 = vst [vmem:[#allocation2 + $0x7c] sm:$0xf] %v639_v62  ;;  %866 = vst [vmem:[#allocation2 + $0x80] sm:$0x1] %v865_v63  ;;  %v655_v2 = vor.u32 %v653_v47, %v652_v58  ;;  %v868_v6 = vsel %vm15065_vm9, %v647_v57, %v867_v43  ;;  %v15302_v48 = vpack.c.bf16 %v366_v49, %v366_v49 }
  0xf0   : > { %v657_v3 = vrot.slane %v652_v58, 4  ;;  %v15272_v7 = vrot.slane %v659_v59, 7  ;;  %v1195_v8 = vrot.slane %v1193_v60, 4  ;;  %v1198_v9 = vrot.slane %v1196_v61, 5  ;;  %869 = vst [vmem:[#allocation2 + $0x84] sm:$0xf] %v868_v6 }
  0xf1   : > { %v1202_v39 = vshll.u32 %v15268_v0, 16  ;;  %v1206_v10 = vshrl.u32 %v15268_v0, 16  ;;  %v1212_v12 = vshll.u32 %v966_v1, 16  ;;  %v656_v14 = vsel %vm15057_vm8, %v648_v56, %v655_v2 }
  0xf2   : > { %v872_v15 = vsel %vm15071_vm10, %v657_v3, %v871_v53  ;;  %v662_v5 = vshll.u32 %v12321_v34, 16  ;;  %v1199_v19 = vor.u32 %v1198_v9, %v1195_v8  ;;  %870 = vst [vmem:[#allocation2 + $0x88] sm:$0xf] %v656_v14  ;;  %v665_v23 = vrot.slane %v15272_v7, 4 }
  0xf3   : > { %v1204_v20 = vrot.slane %v1202_v39, 5  ;;  %v1208_v21 = vrot.slane %v1206_v10, 4  ;;  %873 = vst [vmem:[#allocation2 + $0x8c] sm:$0x1] %v872_v15  ;;  %v1214_v24 = vrot.slane %v1212_v12, 5  ;;  %v667_v26 = vshrl.u32 %v15258_v41, 16 }
  0xf4   : > { %v664_v25 = vor.u32 %v662_v5, %v15272_v7  ;;  %v670_v27 = vshll.u32 %v15258_v41, 16  ;;  %v1200_v30 = vrot.slane %v1199_v19, 4  ;;  %v15287_v32 = vld [vmem:[#allocation2 + $0x78] sm:$0xf]  ;;  %v15291_v34 = vpack.c.bf16 %v365_v18, %v365_v18 }
  0xf5   : > { %v1209_v31 = vor.u32 %v1208_v21, %v1204_v20  ;;  %v1217_v36 = vshrl.u32 %v15287_v32, 16  ;;  %v1220_v37 = vshll.u32 %v15287_v32, 16  ;;  %v669_v38 = vrot.slane %v667_v26, 7  ;;  %v878_v39 = vld [vmem:[#allocation2 + $0x98] sm:$0x1] }
  0xf6   : > { %v875_v42 = vsel %vm15065_vm9, %v664_v25, %v874_v16  ;;  %v1205_v43 = vsel %vm15051_vm7, %v1200_v30, %v1204_v20  ;;  %v15299_v45 = vld [vmem:[#allocation2 + $0x7c] sm:$0xf]  ;;  %v967_v11 = vld [vmem:[#allocation2 + $0x80] sm:$0x1]  ;;  %v676_v47 = vshrl.u32 %v15289_v33, 16  ;;  %vm2003_vm11 = vcmask 1042432  }
  0xf7   : > { %v1210_v44 = vrot.slane %v1209_v31, 4  ;;  %876 = vst [vmem:[#allocation2 + $0x90] sm:$0xf] %v875_v42  ;;  %v1219_v50 = vrot.slane %v1217_v36, 4  ;;  %v1222_v52 = vrot.slane %v1220_v37, 5  ;;  %v1226_v53 = vshll.u32 %v15299_v45, 16 }
  0xf8   : > { %v1230_v41 = vshrl.u32 %v15299_v45, 16  ;;  %v15306_v57 = vld [vmem:[#allocation2 + $0x84] sm:$0xf]  ;;  %v1236_v58 = vshll.u32 %v967_v11, 16  ;;  %v672_v17 = vor.u32 %v670_v27, %v669_v38  ;;  %v674_v18 = vrot.slane %v669_v38, 4  ;;  %v367_v42 = vld [vmem:[%s15033_s8 + $0xd8] sm:$0xff] }
  0xf9   : > { %v1215_v56 = vsel %vm15051_vm7, %v1210_v44, %v1214_v24  ;;  %v1241_v59 = vshrl.u32 %v15306_v57, 16  ;;  %v1244_v60 = vshll.u32 %v15306_v57, 16  ;;  %v1223_v62 = vor.u32 %v1222_v52, %v1219_v50  ;;  %v15312_v2 = vld [vmem:[#allocation2 + $0x88] sm:$0xf]  ;;  %v881_v50 = vld [vmem:[#allocation2 + $0x9c] sm:$0xf] }
  0xfa   : > { %v11740_v61 = vcombine.low %v1205_v43, %v1215_v56  ;;  %v1228_v63 = vrot.slane %v1226_v53, 5  ;;  %v1232_v1 = vrot.slane %v1230_v41, 4  ;;  %v968_v3 = vld [vmem:[#allocation2 + $0x8c] sm:$0x1]  ;;  %v1238_v6 = vrot.slane %v1236_v58, 5  ;;  %v368_v58 = vld [vmem:[%s15033_s8 + $0xe0] sm:$0xff] }
  0xfb   : > { %v1243_v7 = vrot.slane %v1241_v59, 4  ;;  %v1246_v8 = vrot.slane %v1244_v60, 5  ;;  %v1250_v9 = vshll.u32 %v15312_v2, 16  ;;  %v1224_v10 = vrot.slane %v1223_v62, 4  ;;  %v6452_v22 = vld [vmem:[#allocation2 + $0x8c] sm:$0x1] }
  0xfc   : > { %12829 = vmatmul.mubr.bf16.gmra.mrb[16].mxu0 %v11740_v61  ;;  %v1233_v12 = vor.u32 %v1232_v1, %v1228_v63  ;;  %v1254_v14 = vshrl.u32 %v15312_v2, 16  ;;  %v1260_v15 = vshll.u32 %v968_v3, 16  ;;  %v673_v49 = vsel %vm15057_vm8, %v665_v23, %v672_v17  ;;  %v885_v1 = vld [vmem:[#allocation2 + $0xa4] sm:$0x1] }
  0xfd   : > { %v1247_v5 = vor.u32 %v1246_v8, %v1243_v7  ;;  %v1252_v16 = vrot.slane %v1250_v9, 5  ;;  %v1229_v19 = vsel %vm15051_vm7, %v1224_v10, %v1228_v63  ;;  %v879_v30 = vsel %vm15071_vm10, %v674_v18, %v878_v39  ;;  %877 = vst [vmem:[#allocation2 + $0x94] sm:$0xf] %v673_v49  ;;  %v892_v49 = vld [vmem:[#allocation2 + $0xb0] sm:$0x1] }
  0xfe   : > { %v1234_v20 = vrot.slane %v1233_v12, 4  ;;  %v1256_v21 = vrot.slane %v1254_v14, 4  ;;  %v1262_v24 = vrot.slane %v1260_v15, 5  ;;  %v15318_v25 = vld [vmem:[#allocation2 + $0x90] sm:$0xf]  ;;  %v678_v38 = vrot.slane %v676_v47, 7 }
  0xff   : > { %v1248_v26 = vrot.slane %v1247_v5, 4  ;;  %v1265_v31 = vshrl.u32 %v15318_v25, 16  ;;  %880 = vst [vmem:[#allocation2 + $0x98] sm:$0x1] %v879_v30  ;;  %v1268_v37 = vshll.u32 %v15318_v25, 16  ;;  %v679_v11 = vshll.u32 %v15289_v33, 16 }
 0x100   : > { %v1239_v27 = vsel %vm15051_vm7, %v1234_v20, %v1238_v6  ;;  %v1257_v36 = vor.u32 %v1256_v21, %v1252_v16  ;;  %v682_v41 = vrot.slane %v678_v38, 4  ;;  %v684_v56 = vshrl.u32 %v15291_v34, 16  ;;  %v888_v6 = vld [vmem:[#allocation2 + $0xa8] sm:$0xf]  ;;  %v369_v15 = vld [vmem:[%s15033_s8 + $0xe8] sm:$0xff] }
 0x101   : > { %v11741_v43 = vcombine.low %v1229_v19, %v1239_v27  ;;  %v1253_v23 = vsel %vm15051_vm7, %v1248_v26, %v1252_v16  ;;  %v1267_v44 = vrot.slane %v1265_v31, 4  ;;  %v1270_v53 = vrot.slane %v1268_v37, 5 }
 0x102   : > { %v1258_v52 = vrot.slane %v1257_v36, 4  ;;  %v681_v59 = vor.u32 %v679_v11, %v678_v38  ;;  %v687_v60 = vshll.u32 %v15291_v34, 16  ;;  %v12326_v47 = vpack.c.bf16 %v367_v42, %v367_v42 }
 0x103   : > { %12832 = vmatprep.mubr.bf16.mxu0 %v11741_v43  ;;  %v693_v61 = vshrl.u32 %v15302_v48, 16  ;;  %v1271_v63 = vor.u32 %v1270_v53, %v1267_v44  ;;  %v686_v33 = vrot.slane %v684_v56, 7  ;;  %v696_v3 = vshll.u32 %v15302_v48, 16  ;;  %v895_v56 = vld [vmem:[#allocation2 + $0xb4] sm:$0xf] }
 0x104   : > { %v1263_v62 = vsel %vm15051_vm7, %v1258_v52, %v1262_v24  ;;  %v882_v8 = vsel %vm15065_vm9, %v681_v59, %v881_v50  ;;  %v701_v39 = vshrl.u32 %v12326_v47, 16  ;;  %v704_v14 = vshll.u32 %v12326_v47, 16  ;;  %v15342_v5 = vld [vmem:[#allocation2 + $0x94] sm:$0xf] }
 0x105   : > { %v11742_v7 = vcombine.low %v1253_v23, %v1263_v62  ;;  %v695_v9 = vrot.slane %v693_v61, 7  ;;  %v1272_v34 = vrot.slane %v1271_v63, 4  ;;  %v689_v10 = vor.u32 %v687_v60, %v686_v33  ;;  %883 = vst [vmem:[#allocation2 + $0x9c] sm:$0xf] %v882_v8 }
 0x106   : > { %v691_v12 = vrot.slane %v686_v33, 4  ;;  %v15344_v16 = vld [vmem:[#allocation2 + $0x98] sm:$0x1]  ;;  %v703_v18 = vrot.slane %v701_v39, 7  ;;  %v12327_v19 = vpack.c.bf16 %v368_v58, %v368_v58  ;;  %v1274_v20 = vshll.u32 %v15342_v5, 16 }
 0x107   : > { %12833 = vmatmul.mubr.bf16.gmra.mrb[20].mxu0 %v11742_v7  ;;  %v698_v17 = vor.u32 %v696_v3, %v695_v9  ;;  %v699_v48 = vrot.slane %v695_v9, 4  ;;  %v1278_v21 = vshrl.u32 %v15342_v5, 16  ;;  %v1284_v24 = vshll.u32 %v15344_v16, 16 }
 0x108   : > { %v690_v26 = vsel %vm15057_vm8, %v682_v41, %v689_v10  ;;  %v886_v30 = vsel %vm15071_vm10, %v691_v12, %v885_v1  ;;  %v706_v31 = vor.u32 %v704_v14, %v703_v18  ;;  %v708_v27 = vrot.slane %v703_v18, 4 }
 0x109   : > { %884 = vst [vmem:[#allocation2 + $0xa0] sm:$0xf] %v690_v26  ;;  %v889_v36 = vsel %vm15065_vm9, %v698_v17, %v888_v6  ;;  %v1276_v37 = vrot.slane %v1274_v20, 5  ;;  %v1280_v38 = vrot.slane %v1278_v21, 4  ;;  %v1286_v42 = vrot.slane %v1284_v24, 5 }
 0x10a   : > { %887 = vst [vmem:[#allocation2 + $0xa4] sm:$0x1] %v886_v30  ;;  %890 = vst [vmem:[#allocation2 + $0xa8] sm:$0xf] %v889_v36  ;;  %v12328_v43 = vpack.c.bf16 %v369_v15, %v369_v15  ;;  %v707_v23 = vsel %vm15057_vm8, %v699_v48, %v706_v31  ;;  %v893_v44 = vsel %vm15071_vm10, %v708_v27, %v892_v49  ;;  %v710_v11 = vshrl.u32 %v12327_v19, 16 }
 0x10b   : > { %v713_v50 = vshll.u32 %v12327_v19, 16  ;;  %v1281_v52 = vor.u32 %v1280_v38, %v1276_v37  ;;  %891 = vst [vmem:[#allocation2 + $0xac] sm:$0xf] %v707_v23  ;;  %894 = vst [vmem:[#allocation2 + $0xb0] sm:$0x1] %v893_v44  ;;  %v1277_v58 = vsel %vm15051_vm7, %v1272_v34, %v1276_v37  ;;  %vm2004_vm12 = vcmask 1046532  }
 0x10c   : > { %v718_v53 = vshrl.u32 %v12328_v43, 16  ;;  %v721_v41 = vshll.u32 %v12328_v43, 16  ;;  %v15361_v59 = vld [vmem:[#allocation2 + $0x9c] sm:$0xf]  ;;  %v712_v60 = vrot.slane %v710_v11, 7  ;;  %vm15456_vm13 = vmor %vm2003_vm11, %vm2004_vm12 }
 0x10d   : > { %v1282_v47 = vrot.slane %v1281_v52, 4  ;;  %v1289_v61 = vshrl.u32 %v15361_v59, 16  ;;  %v1292_v62 = vshll.u32 %v15361_v59, 16  ;;  %v899_v37 = vld [vmem:[#allocation2 + $0xbc] sm:$0x1] }
 0x10e   : > { %v720_v63 = vrot.slane %v718_v53, 7  ;;  %v715_v33 = vor.u32 %v713_v50, %v712_v60  ;;  %v716_v1 = vrot.slane %v712_v60, 4 }
 0x10f   : > { %v1287_v3 = vsel %vm15051_vm7, %v1282_v47, %v1286_v42  ;;  %v1291_v7 = vrot.slane %v1289_v61, 4  ;;  %v1294_v8 = vrot.slane %v1292_v62, 5 }
 0x110   : > { %v15367_v6 = vld [vmem:[#allocation2 + $0xa0] sm:$0xf]  ;;  %v723_v9 = vor.u32 %v721_v41, %v720_v63  ;;  %v11743_v39 = vcombine.low %v1277_v58, %v1287_v3  ;;  %v896_v15 = vsel %vm15065_vm9, %v715_v33, %v895_v56  ;;  %v725_v11 = vrot.slane %v720_v63, 4 }
 0x111   : > { %v15369_v34 = vld [vmem:[#allocation2 + $0xa4] sm:$0x1]  ;;  %v1298_v10 = vshll.u32 %v15367_v6, 16  ;;  %v1302_v12 = vshrl.u32 %v15367_v6, 16  ;;  %v15373_v14 = vld [vmem:[#allocation2 + $0xa8] sm:$0xf]  ;;  %v1295_v17 = vor.u32 %v1294_v8, %v1291_v7 }
 0x112   : > { %v1308_v48 = vshll.u32 %v15369_v34, 16  ;;  %v1313_v18 = vshrl.u32 %v15373_v14, 16  ;;  %v1316_v19 = vshll.u32 %v15373_v14, 16  ;;  %897 = vst [vmem:[#allocation2 + $0xb4] sm:$0xf] %v896_v15  ;;  %12836 = vmatprep.mubr.bf16.mxu0 %v11743_v39  ;;  %v724_v49 = vsel %vm15057_vm8, %v716_v1, %v723_v9 }
 0x113   : > { %v1300_v20 = vrot.slane %v1298_v10, 5  ;;  %v1304_v21 = vrot.slane %v1302_v12, 4  ;;  %v15380_v24 = vld [vmem:[#allocation2 + $0xac] sm:$0xf]  ;;  %v15382_v26 = vld [vmem:[#allocation2 + $0xb0] sm:$0x1]  ;;  %v900_v58 = vsel %vm15071_vm10, %v725_v11, %v899_v37 }
 0x114   : > { %v1296_v30 = vrot.slane %v1295_v17, 4  ;;  %v1310_v31 = vrot.slane %v1308_v48, 5  ;;  %v1315_v27 = vrot.slane %v1313_v18, 4  ;;  %v1318_v36 = vrot.slane %v1316_v19, 5  ;;  %898 = vst [vmem:[#allocation2 + $0xb8] sm:$0xf] %v724_v49 }
 0x115   : > { %v1305_v38 = vor.u32 %v1304_v21, %v1300_v20  ;;  %v1322_v42 = vshll.u32 %v15380_v24, 16  ;;  %v1326_v43 = vshrl.u32 %v15380_v24, 16  ;;  %v1332_v23 = vshll.u32 %v15382_v26, 16  ;;  %901 = vst [vmem:[#allocation2 + $0xbc] sm:$0x1] %v900_v58  ;;  %v14280_v58 = vld [vmem:[#allocation6 + $0x90] sm:$0xff]  }
 0x116   : > { %v1319_v44 = vor.u32 %v1318_v36, %v1315_v27  ;;  %v1301_v50 = vsel %vm15051_vm7, %v1296_v30, %v1300_v20  ;;  %v15417_v11 = vld [vmem:[#allocation2 + $0x10] sm:$0xf]  ;;  %v15749_v35 = vld [vmem:[#allocation2 + $0xac] sm:$0xf] }
 0x117   : > { %v1306_v52 = vrot.slane %v1305_v38, 4  ;;  %v1324_v53 = vrot.slane %v1322_v42, 5  ;;  %v1328_v41 = vrot.slane %v1326_v43, 4  ;;  %v1334_v61 = vrot.slane %v1332_v23, 5  ;;  %v14500_v38 = vld [vmem:[#allocation2] sm:$0xf] }
 0x118   : > { %v1320_v56 = vrot.slane %v1319_v44, 4  ;;  %v15414_v42 = vld [vmem:[#allocation2 + $0x4] sm:$0xf]  ;;  %v14502_v44 = vld [vmem:[#allocation2 + $0xc] sm:$0xf]  ;;  %18945 = vst [vmem:[#allocation22_spill] sm:$0xff] %v15749_v35 }
 0x119   : > { %v1311_v60 = vsel %vm15051_vm7, %v1306_v52, %v1310_v31  ;;  %v1329_v47 = vor.u32 %v1328_v41, %v1324_v53  ;;  %v15395_v62 = vld [vmem:[#allocation2 + $0xb4] sm:$0xf]  ;;  %v11755_v43 = vcombine.low %v14500_v38, %v15414_v42  ;;  %v14504_v52 = vld [vmem:[#allocation2 + $0x18] sm:$0xf] }
 0x11a   : > { %v11744_v33 = vcombine.low %v1301_v50, %v1311_v60  ;;  %v1337_v63 = vshrl.u32 %v15395_v62, 16  ;;  %v1340_v1 = vshll.u32 %v15395_v62, 16  ;;  %v1325_v3 = vsel %vm15051_vm7, %v1320_v56, %v1324_v53  ;;  %v15420_v53 = vld [vmem:[#allocation2 + $0x1c] sm:$0xf]  ;;  %v14277_v56 = vld [vmem:[#allocation6 + $0x88] sm:$0xff]  }
 0x11b   : > { %v1330_v7 = vrot.slane %v1329_v47, 4  ;;  %v15401_v8 = vld [vmem:[#allocation2 + $0xb8] sm:$0xf]  ;;  %v11756_v50 = vcombine.low %v14502_v44, %v15417_v11  ;;  %v11757_v41 = vcombine.low %v14504_v52, %v15420_v53  ;;  %v15424_v60 = vld [vmem:[#allocation2 + $0x28] sm:$0xf] }
 0x11c   : > { %12837 = vmatmul.mubr.bf16.gmra.mrb[24].mxu0 %v11744_v33  ;;  %v1339_v9 = vrot.slane %v1337_v63, 4  ;;  %v1342_v39 = vrot.slane %v1340_v1, 5  ;;  %v1346_v10 = vshll.u32 %v15401_v8, 16  ;;  %v1350_v12 = vshrl.u32 %v15401_v8, 16  ;;  %v15407_v20 = vld [vmem:[#allocation2 + $0xbc] sm:$0x1] }
 0x11d   : > { %v1335_v15 = vsel %vm15051_vm7, %v1330_v7, %v1334_v61  ;;  %v1356_v30 = vshll.u32 %v15407_v20, 16  ;;  %v14507_v47 = vld [vmem:[#allocation2 + $0x24] sm:$0xf]  ;;  %v14508_v33 = vld [vmem:[#allocation2 + $0x30] sm:$0xf] }
 0x11e   : > { %v11745_v17 = vcombine.low %v1325_v3, %v1335_v15  ;;  %v1343_v48 = vor.u32 %v1342_v39, %v1339_v9  ;;  %v1348_v18 = vrot.slane %v1346_v10, 5  ;;  %v1352_v19 = vrot.slane %v1350_v12, 4  ;;  %v15427_v63 = vld [vmem:[#allocation2 + $0x34] sm:$0xf]  ;;  %v14510_v7 = vld [vmem:[#allocation2 + $0x3c] sm:$0xf] }
 0x11f   : > { %v1358_v36 = vrot.slane %v1356_v30, 5  ;;  %v11758_v61 = vcombine.low %v14507_v47, %v15424_v60  ;;  %v11759_v1 = vcombine.low %v14508_v33, %v15427_v63  ;;  %v14283_v3 = vld [vmem:[#allocation6 + $0x98] sm:$0xff]   ;;  %v15430_v9 = vld [vmem:[#allocation2 + $0x40] sm:$0xf]  ;;  %v14512_v12 = vld [vmem:[#allocation2 + $0x48] sm:$0xf]  ;;  %v11767_v30 = vcombine.low %v15318_v25, %v15342_v5 }
 0x120   : > { %12840 = vmatprep.mubr.bf16.mxu0 %v11745_v17  ;;  %v1344_v21 = vrot.slane %v1343_v48, 4  ;;  %v1353_v49 = vor.u32 %v1352_v19, %v1348_v18  ;;  %v11760_v39 = vcombine.low %v14510_v7, %v15430_v9  ;;  %v14289_v10 = vld [vmem:[#allocation6 + $0xa8] sm:$0xff]   ;;  %v11761_v15 = vcombine.low %v14512_v12, %v15193_v54  ;;  %v14292_v17 = vld [vmem:[#allocation6 + $0xb0] sm:$0xff]   ;;  %v15438_v54 = vld [vmem:[#allocation6 + $0xc0] sm:$0xff]  }
 0x121   : > { %v11762_v48 = vcombine.low %v15212_v4, %v15214_v13  ;;  %v11763_v19 = vcombine.low %v15223_v28, %v15232_v51  ;;  %v11765_v4 = vcombine.low %v15287_v32, %v15299_v45  ;;  %v11766_v13 = vcombine.low %v15306_v57, %v15312_v2  ;;  %v1955_v28 = vld [vmem:[#allocation2] sm:$0xe]  ;;  %v14513_v51 = vld [vmem:[#allocation2 + $0x8] sm:$0x1] }
 0x122   : > { %v1354_v31 = vrot.slane %v1353_v49, 4  ;;  %v1349_v27 = vsel %vm15051_vm7, %v1344_v21, %v1348_v18  ;;  %v14295_v18 = vld [vmem:[#allocation6 + $0xb8] sm:$0xff]   ;;  %v11764_v21 = vcombine.low %v15260_v55, %v15268_v0  ;;  %v2011_v49 = vrot.slane %v14513_v51, 5 }
 0x123   : > { %v2008_v32 = vrot.slane %v15414_v42, 5  ;;  %v11768_v25 = vcombine.low %v15361_v59, %v15367_v6  ;;  %v1956_v59 = vld [vmem:[#allocation2 + $0xc] sm:$0xe]  ;;  %v2015_v33 = vrot.slane %v15417_v11, 5  ;;  %v2036_v51 = vrot.slane %v15427_v63, 5 }
 0x124   : > { %v1359_v37 = vsel %vm15051_vm7, %v1354_v31, %v1358_v36  ;;  %v370_v31 = vld [vmem:[%s15033_s8 + $0xf0] sm:$0xff]  ;;  %v11780_v12 = vrot.slane %v1956_v59, 9  ;;  %v14519_v59 = vld [vmem:[#allocation2 + $0x44] sm:$0x1] }
 0x125   : > { %v11746_v23 = vcombine.low %v1349_v27, %v1359_v37  ;;  %v371_v27 = vld [vmem:[%s15033_s8 + $0xf8] sm:$0xff]  ;;  %v12329_v55 = vpack.c.bf16 %v370_v31, %v370_v31  ;;  %v11779_v37 = vrot.slane %v1955_v28, 9  ;;  %v2010_v44 = vrot.slane %v2008_v32, 4 }
 0x126   : > { %v12330_v0 = vpack.c.bf16 %v371_v27, %v371_v27 }
 0x127   : > { %12841 = vmatmul.mubr.bf16.gmra.mrb[28].mxu0 %v11746_v23  ;;  %v727_v45 = vshrl.u32 %v12329_v55, 16  ;;  %v730_v2 = vshll.u32 %v12329_v55, 16  ;;  %v18941_v23 = vmov 0  ;;  %v14516_v55 = vld [vmem:[#allocation2 + $0x2c] sm:$0x1] }
 0x128   : > { %12860 = vmatprep.mubr.bf16.mxu0 %v11755_v43  ;;  %v735_v36 = vshrl.u32 %v12330_v0, 16  ;;  %v738_v43 = vshll.u32 %v12330_v0, 16  ;;  %v18942_v23 = vsel %vm15456_vm13, 4294967295, %v18941_v23  ;;  %v2032_v0 = vrot.slane %v14516_v55, 5 }
 0x129   : > { %v729_v57 = vrot.slane %v727_v45, 7  ;;  %18943 = vst [vmem:[#allocation20_spill] sm:$0xff] %v18942_v23  ;;  %v6434_v23 = vld [vmem:[#allocation2 + $0x6c] sm:$0xf] }
 0x12a   : > { %v15452_v38 = vrot.slane %v735_v36, 7  ;;  %v2038_v36 = vrot.slane %v2036_v51, 4 }
 0x12b   : > { %v733_v42 = vrot.slane %v729_v57, 4 }
 0x12c   : > { %v740_v52 = vor.u32 %v738_v43, %v15452_v38 }
 0x12f   : > { %12861 = vmatmul.mubr.bf16.vlgmr.msra.gmra.mrb[0].mxu0 %v11756_v50  ;;  %v732_v50 = vor.u32 %v730_v2, %v729_v57  ;;  %v2043_v2 = vrot.slane %v15430_v9, 5 }
 0x130   : > { %12893 = vmatpush3.bf16.msra.mxu0 %v15199_v46  ;;  %12864 = vmatprep.mubr.bf16.mxu0 %v11757_v41  ;;  %v14286_v46 = vld [vmem:[#allocation6 + $0xa0] sm:$0xff]   ;;  %v11769_v41 = vcombine.low %v15373_v14, %v15380_v24  ;;  %v2009_v14 = vsel %vm15456_vm13, %v11779_v37, %v2008_v32  ;;  %v14297_v32 = vld [vmem:[#allocation6 + $0xc8] sm:$0xff]  }
 0x131   : > { %12894 = vmatprep.subr.bf16.mxu0 %v14277_v56  ;;  %v14517_v37 = vld [vmem:[#allocation2 + $0x38] sm:$0x1] }
 0x132   : > { %v2039_v57 = vrot.slane %v14517_v37, 5 }
 0x134   : > { %12895 = vmatpush3.bf16.msra.mxu0 %v14277_v56  ;;  %v902_v56 = vld [vmem:[#allocation2 + $0xc0] sm:$0xf] }
 0x135   : > { %12896 = vmatprep.subr.bf16.mxu0 %v14280_v58  ;;  %v903_v47 = vsel %vm15065_vm9, %v732_v50, %v902_v56  ;;  %v14298_v50 = vld [vmem:[#allocation6 + $0xd0] sm:$0xff]  }
 0x136   : > { %904 = vst [vmem:[#allocation2 + $0xc0] sm:$0xf] %v903_v47  ;;  %v2045_v47 = vrot.slane %v2043_v2, 4 }
 0x137   : > { %12865 = vmatmul.mubr.bf16.gmra.mrb[4].mxu0 %v11758_v61  ;;  %v1957_v61 = vld [vmem:[#allocation2 + $0x18] sm:$0xe] }
 0x138   : > { %12868 = vmatprep.mubr.bf16.mxu0 %v11759_v1  ;;  %12897 = vmatpush3.bf16.msra.mxu0 %v14280_v58  ;;  %v741_v58 = vsel %vm15057_vm8, %v733_v42, %v740_v52  ;;  %v2022_v1 = vrot.slane %v15420_v53, 5  ;;  %v1958_v53 = vld [vmem:[#allocation2 + $0x24] sm:$0xe]  ;;  %v14518_v42 = vld [vmem:[#allocation2 + $0x4c] sm:$0xf] }
 0x139   : > { %12898 = vmatprep.subr.bf16.mxu0 %v14283_v3  ;;  %905 = vst [vmem:[#allocation2 + $0xc4] sm:$0xf] %v741_v58  ;;  %v1961_v52 = vld [vmem:[#allocation2 + $0x48] sm:$0xe] }
 0x13a   : > { %v11785_v9 = vrot.slane %v1961_v52, 9 }
 0x13c   : > { %12899 = vmatpush3.bf16.msra.mxu0 %v14283_v3  ;;  %v2012_v3 = vsel %vm15456_vm13, %v2010_v44, %v2011_v49  ;;  %v1960_v44 = vld [vmem:[#allocation2 + $0x3c] sm:$0xe] }
 0x13d   : > { %12900 = vmatprep.subr.bf16.mxu0 %v14286_v46  ;;  %v11784_v58 = vrot.slane %v1960_v44, 9 }
 0x13f   : > { %12869 = vmatmul.mubr.bf16.gmra.mrb[8].mxu0 %v11760_v39  ;;  %v11770_v39 = vcombine.low %v15395_v62, %v15401_v8 }
 0x140   : > { %12872 = vmatprep.mubr.bf16.mxu0 %v11761_v15  ;;  %12901 = vmatpush3.bf16.msra.mxu0 %v14286_v46  ;;  %v14514_v46 = vld [vmem:[#allocation2 + $0x14] sm:$0x1]  ;;  %v2017_v15 = vrot.slane %v2015_v33, 4 }
 0x141   : > { %12902 = vmatprep.subr.bf16.mxu0 %v14289_v10  ;;  %v2018_v7 = vrot.slane %v14514_v46, 5  ;;  %v2044_v46 = vsel %vm15456_vm13, %v11784_v58, %v2043_v2  ;;  %v14302_v2 = vld [vmem:[#allocation6 + $0xf0] sm:$0xff]   ;;  %v14528_v58 = vld [vmem:[#allocation2 + $0x80] sm:$0x1] }
 0x144   : > { %12903 = vmatpush3.bf16.msra.mxu0 %v14289_v10  ;;  %v11795_v10 = vcombine.low %v2009_v14, %v2012_v3  ;;  %v14299_v3 = vld [vmem:[#allocation6 + $0xd8] sm:$0xff]  }
 0x145   : > { %12904 = vmatprep.subr.bf16.mxu0 %v14292_v17 }
 0x147   : > { %12873 = vmatmul.mubr.bf16.gmra.mrb[12].mxu0 %v11762_v48  ;;  %v2024_v48 = vrot.slane %v2022_v1, 4 }
 0x148   : > { %12876 = vmatprep.mubr.bf16.mxu0 %v11763_v19  ;;  %12905 = vmatpush3.bf16.msra.mxu0 %v14292_v17  ;;  %v11781_v17 = vrot.slane %v1957_v61, 9  ;;  %v1959_v19 = vld [vmem:[#allocation2 + $0x30] sm:$0xe]  ;;  %v2046_v61 = vrot.slane %v14519_v59, 5 }
 0x149   : > { %12906 = vmatprep.subr.bf16.mxu0 %v14295_v18  ;;  %v11783_v45 = vrot.slane %v1959_v19, 9  ;;  %v14303_v59 = vld [vmem:[#allocation6 + $0xf8] sm:$0xff]  }
 0x14a   : > { %v2023_v62 = vsel %vm15456_vm13, %v11781_v17, %v2022_v1  ;;  %v14520_v1 = vld [vmem:[#allocation2 + $0x50] sm:$0x1] }
 0x14b   : > { %v2037_v43 = vsel %vm15456_vm13, %v11783_v45, %v2036_v51  ;;  %v2053_v14 = vrot.slane %v14520_v1, 5  ;;  %v14529_v1 = vld [vmem:[#allocation2 + $0x88] sm:$0xf] }
 0x14c   : > { %12907 = vmatpush3.bf16.msra.mxu0 %v14295_v18  ;;  %v14515_v18 = vld [vmem:[#allocation2 + $0x20] sm:$0x1] }
 0x14d   : > { %12940 = vmatprep.subr.bf16.mxu0 %v15438_v54  ;;  %v2025_v11 = vrot.slane %v14515_v18, 5 }
 0x14f   : > { %12877 = vmatmul.mubr.bf16.gmra.mrb[16].mxu0 %v11764_v21  ;;  %v2016_v21 = vsel %vm15456_vm13, %v11780_v12, %v2015_v33  ;;  %v2026_v28 = vsel %vm15456_vm13, %v2024_v48, %v2025_v11  ;;  %v14522_v48 = vld [vmem:[#allocation2 + $0x64] sm:$0xf]  ;;  %v14300_v11 = vld [vmem:[#allocation6 + $0xe0] sm:$0xff]  }
 0x150   : > { %12880 = vmatprep.mubr.bf16.mxu0 %v11765_v4  ;;  %v2019_v4 = vsel %vm15456_vm13, %v2017_v15, %v2018_v7  ;;  %v11797_v31 = vcombine.low %v2023_v62, %v2026_v28  ;;  %v2047_v7 = vsel %vm15456_vm13, %v2045_v47, %v2046_v61  ;;  %v2064_v18 = vrot.slane %v14522_v48, 5  ;;  %v14523_v62 = vld [vmem:[#allocation2 + $0x5c] sm:$0x1] }
 0x151   : > { %v11796_v49 = vcombine.low %v2016_v21, %v2019_v4  ;;  %v11800_v19 = vcombine.low %v2044_v46, %v2047_v7  ;;  %v2060_v28 = vrot.slane %v14523_v62, 5  ;;  %v2081_v47 = vrot.slane %v14528_v58, 5  ;;  %v14308_v58 = vld [vmem:[#allocation2 + $0x30] sm:$0xff]  }
 0x152   : > { %v2092_v7 = vrot.slane %v15342_v5, 5 }
 0x157   : > { %12881 = vmatmul.mubr.bf16.gmra.mrb[20].mxu0 %v11766_v13  ;;  %v2029_v13 = vrot.slane %v15424_v60, 5 }
 0x158   : > { %12884 = vmatprep.mubr.bf16.mxu0 %v11767_v30  ;;  %v11782_v30 = vrot.slane %v1958_v53, 9  ;;  %v1963_v53 = vld [vmem:[#allocation2 + $0x60] sm:$0xe] }
 0x159   : > { %v2031_v27 = vrot.slane %v2029_v13, 4  ;;  %v11787_v51 = vrot.slane %v1963_v53, 9 }
 0x15a   : > { %v2030_v60 = vsel %vm15456_vm13, %v11782_v30, %v2029_v13  ;;  %v14524_v30 = vld [vmem:[#allocation2 + $0x68] sm:$0x1] }
 0x15b   : > { %v2033_v63 = vsel %vm15456_vm13, %v2031_v27, %v2032_v0  ;;  %v14301_v27 = vld [vmem:[#allocation6 + $0xe8] sm:$0xff]  }
 0x15f   : > { %12885 = vmatmul.mubr.bf16.gmra.mrb[24].mxu0 %v11768_v25  ;;  %v2040_v25 = vsel %vm15456_vm13, %v2038_v36, %v2039_v57  ;;  %v2065_v36 = vsel %vm15456_vm13, %v11787_v51, %v2064_v18  ;;  %v1964_v57 = vld [vmem:[#allocation2 + $0x6c] sm:$0xe]  ;;  %v1968_v51 = vld [vmem:[#allocation2 + $0x9c] sm:$0xe] }
 0x160   : > { %12888 = vmatprep.mubr.bf16.mxu0 %v11769_v41  ;;  %v11798_v41 = vcombine.low %v2030_v60, %v2033_v63  ;;  %v11799_v56 = vcombine.low %v2037_v43, %v2040_v25  ;;  %v14526_v60 = vld [vmem:[#allocation2 + $0x7c] sm:$0xf]  ;;  %v1965_v43 = vld [vmem:[#allocation2 + $0x78] sm:$0xe] }
 0x161   : > { %v2078_v63 = vrot.slane %v14526_v60, 5  ;;  %v1970_v60 = vld [vmem:[#allocation2 + $0xb4] sm:$0xe] }
 0x167   : > { %12889 = vmatmul.mubr.bf16.gmra.mrb[28].mxu0 %v11770_v39  ;;  %v1962_v39 = vld [vmem:[#allocation2 + $0x54] sm:$0xe] }
 0x168   : > { %12908 = vmatprep.mubr.bf16.mxu0 %v11795_v10  ;;  %v14521_v10 = vld [vmem:[#allocation2 + $0x58] sm:$0xf]  ;;  %v11786_v4 = vrot.slane %v1962_v39, 9 }
 0x169   : > { %v2057_v12 = vrot.slane %v14521_v10, 5  ;;  %v14306_v39 = vld [vmem:[#allocation6 + $0x100] sm:$0xff]   ;;  %v1967_v10 = vld [vmem:[#allocation2 + $0x90] sm:$0xe] }
 0x16a   : > { %v11791_v53 = vrot.slane %v1967_v10, 9  ;;  %v2826_v10 = vld [vmem:[#allocation2 + $0xc] sm:$0xf] }
 0x16b   : > { %v2059_v13 = vrot.slane %v2057_v12, 4  ;;  %v2058_v55 = vsel %vm15456_vm13, %v11786_v4, %v2057_v12 }
 0x16c   : > { %v2093_v62 = vsel %vm15456_vm13, %v11791_v53, %v2092_v7  ;;  %v2829_v53 = vld [vmem:[#allocation2 + $0x18] sm:$0xf] }
 0x16d   : > { %v2061_v0 = vsel %vm15456_vm13, %v2059_v13, %v2060_v28  ;;  %v2099_v13 = vrot.slane %v15367_v6, 5  ;;  %v2109_v6 = vrot.slane %v15382_v26, 5  ;;  %v11794_v26 = vrot.slane %v1970_v60, 9 }
 0x16e   : > { %v11802_v25 = vcombine.low %v2058_v55, %v2061_v0  ;;  %v2102_v0 = vrot.slane %v15369_v34, 5 }
 0x16f   : > { %12909 = vmatmul.mubr.bf16.vlgmr.msra.gmra.mrb[0].mxu0 %v11796_v49  ;;  %v2066_v49 = vrot.slane %v2064_v18, 4  ;;  %v14530_v18 = vld [vmem:[#allocation2 + $0x8c] sm:$0x1]  ;;  %v2101_v55 = vrot.slane %v2099_v13, 4 }
 0x170   : > { %12941 = vmatpush3.bf16.msra.mxu0 %v15438_v54  ;;  %12912 = vmatprep.mubr.bf16.mxu0 %v11797_v31  ;;  %v2050_v54 = vrot.slane %v14518_v42, 5  ;;  %v2067_v31 = vrot.slane %v14524_v30, 5 }
 0x171   : > { %12942 = vmatprep.subr.bf16.mxu0 %v14297_v32 }
 0x172   : > { %v2052_v33 = vrot.slane %v2050_v54, 4  ;;  %v2051_v15 = vsel %vm15456_vm13, %v11785_v9, %v2050_v54  ;;  %v2068_v37 = vsel %vm15456_vm13, %v2066_v49, %v2067_v31  ;;  %v14527_v54 = vld [vmem:[#allocation2 + $0x74] sm:$0x1]  ;;  %v1969_v49 = vld [vmem:[#allocation2 + $0xa8] sm:$0xe] }
 0x173   : > { %v11803_v44 = vcombine.low %v2065_v36, %v2068_v37  ;;  %v2074_v52 = vrot.slane %v14527_v54, 5  ;;  %v2103_v37 = vsel %vm15456_vm13, %v2101_v55, %v2102_v0  ;;  %v14322_v55 = vld [vmem:[#allocation2 + $0x9c] sm:$0xff]  }
 0x174   : > { %12943 = vmatpush3.bf16.msra.mxu0 %v14297_v32  ;;  %v2054_v17 = vsel %vm15456_vm13, %v2052_v33, %v2053_v14  ;;  %v14525_v32 = vld [vmem:[#allocation2 + $0x70] sm:$0xf]  ;;  %v1966_v33 = vld [vmem:[#allocation2 + $0x84] sm:$0xe]  ;;  %v2085_v14 = vrot.slane %v14529_v1, 5  ;;  %v14313_v1 = vld [vmem:[#allocation2 + $0x54] sm:$0xff]  }
 0x175   : > { %12944 = vmatprep.subr.bf16.mxu0 %v14298_v50  ;;  %v11801_v21 = vcombine.low %v2051_v15, %v2054_v17  ;;  %v2071_v45 = vrot.slane %v14525_v32, 5  ;;  %v11790_v17 = vrot.slane %v1966_v33, 9  ;;  %v11793_v32 = vrot.slane %v1969_v49, 9  ;;  %v14318_v33 = vld [vmem:[#allocation6 + $0x120] sm:$0xff]   ;;  %v2832_v49 = vld [vmem:[#allocation2 + $0x24] sm:$0xf] }
 0x176   : > { %v2087_v48 = vrot.slane %v2085_v14, 4 }
 0x177   : > { %12913 = vmatmul.mubr.bf16.gmra.mrb[4].mxu0 %v11798_v41  ;;  %v2073_v42 = vrot.slane %v2071_v45, 4  ;;  %v11789_v41 = vrot.slane %v1965_v43, 9  ;;  %v2086_v5 = vsel %vm15456_vm13, %v11790_v17, %v2085_v14  ;;  %v14321_v14 = vld [vmem:[#allocation6 + $0x128] sm:$0xff]   ;;  %v14317_v17 = vld [vmem:[#allocation2 + $0x78] sm:$0xff]  }
 0x178   : > { %12916 = vmatprep.mubr.bf16.mxu0 %v11799_v56  ;;  %12945 = vmatpush3.bf16.msra.mxu0 %v14298_v50  ;;  %v11788_v50 = vrot.slane %v1964_v57, 9  ;;  %v2080_v56 = vrot.slane %v2078_v63, 4 }
 0x179   : > { %12946 = vmatprep.subr.bf16.mxu0 %v14299_v3  ;;  %v2075_v9 = vsel %vm15456_vm13, %v2073_v42, %v2074_v52 }
 0x17a   : > { %v2072_v61 = vsel %vm15456_vm13, %v11788_v50, %v2071_v45  ;;  %v2082_v46 = vsel %vm15456_vm13, %v2080_v56, %v2081_v47  ;;  %v906_v50 = vld [vmem:[#allocation2 + $0xc8] sm:$0x1] }
 0x17b   : > { %v11804_v12 = vcombine.low %v2072_v61, %v2075_v9  ;;  %v14307_v56 = vld [vmem:[#allocation2 + $0x24] sm:$0xff]   ;;  %v14315_v61 = vld [vmem:[#allocation6 + $0x118] sm:$0xff]  }
 0x17c   : > { %12947 = vmatpush3.bf16.msra.mxu0 %v14299_v3  ;;  %v2079_v3 = vsel %vm15456_vm13, %v11789_v41, %v2078_v63  ;;  %v14304_v41 = vld [vmem:[#allocation2 + $0xc] sm:$0xff]  }
 0x17d   : > { %12948 = vmatprep.subr.bf16.mxu0 %v14300_v11  ;;  %v11805_v15 = vcombine.low %v2079_v3, %v2082_v46  ;;  %v14312_v47 = vld [vmem:[#allocation6 + $0x110] sm:$0xff]   ;;  %v14314_v3 = vld [vmem:[#allocation2 + $0x60] sm:$0xff]  }
 0x17e   : > { %v14311_v9 = vld [vmem:[#allocation2 + $0x48] sm:$0xff]  }
 0x17f   : > { %12917 = vmatmul.mubr.bf16.gmra.mrb[8].mxu0 %v11800_v19  ;;  %v2094_v19 = vrot.slane %v2092_v7, 4  ;;  %v14324_v46 = vld [vmem:[#allocation6 + $0x130] sm:$0xff]  }
 0x180   : > { %12920 = vmatprep.mubr.bf16.mxu0 %v11801_v21  ;;  %12949 = vmatpush3.bf16.msra.mxu0 %v14300_v11  ;;  %v2088_v11 = vrot.slane %v14530_v18, 5  ;;  %v2095_v21 = vrot.slane %v15344_v16, 5  ;;  %v2106_v16 = vrot.slane %v15380_v24, 5  ;;  %v2113_v24 = vrot.slane %v15401_v8, 5  ;;  %v14316_v7 = vld [vmem:[#allocation2 + $0x6c] sm:$0xff]  }
 0x181   : > { %12950 = vmatprep.subr.bf16.mxu0 %v14301_v27  ;;  %v2875_v18 = vshrl.u32 %v2826_v10, 16 }
 0x182   : > { %v2089_v4 = vsel %vm15456_vm13, %v2087_v48, %v2088_v11  ;;  %v2096_v28 = vsel %vm15456_vm13, %v2094_v19, %v2095_v21  ;;  %v2108_v45 = vrot.slane %v2106_v16, 4  ;;  %v2107_v57 = vsel %vm15456_vm13, %v11793_v32, %v2106_v16  ;;  %v14319_v48 = vld [vmem:[#allocation2 + $0x84] sm:$0xff]  }
 0x183   : > { %v11806_v30 = vcombine.low %v2086_v5, %v2089_v4  ;;  %v11807_v31 = vcombine.low %v2093_v62, %v2096_v28  ;;  %v2115_v43 = vrot.slane %v2113_v24, 4  ;;  %v2114_v8 = vsel %vm15456_vm13, %v11794_v26, %v2113_v24  ;;  %v15557_v62 = vld [vmem:[#allocation2 + $0x1c] sm:$0xf] }
 0x184   : > { %12951 = vmatpush3.bf16.msra.mxu0 %v14301_v27  ;;  %v11792_v27 = vrot.slane %v1968_v51, 9  ;;  %v2110_v34 = vsel %vm15456_vm13, %v2108_v45, %v2109_v6  ;;  %v2878_v11 = vshll.u32 %v2826_v10, 16  ;;  %v2899_v5 = vshrl.u32 %v2829_v53, 16  ;;  %v2835_v6 = vld [vmem:[#allocation2 + $0x30] sm:$0xf] }
 0x185   : > { %12952 = vmatprep.subr.bf16.mxu0 %v14302_v2  ;;  %v2877_v4 = vrot.slane %v2875_v18, 4  ;;  %v2902_v28 = vshll.u32 %v2829_v53, 16  ;;  %v2908_v32 = vshll.u32 %v15557_v62, 16  ;;  %v2912_v45 = vshrl.u32 %v15557_v62, 16  ;;  %v15588_v10 = vld [vmem:[#allocation2 + $0x40] sm:$0xf] }
 0x186   : > { %v2100_v36 = vsel %vm15456_vm13, %v11792_v27, %v2099_v13  ;;  %v2880_v13 = vrot.slane %v2878_v11, 5  ;;  %v15563_v27 = vld [vmem:[#allocation2 + $0x14] sm:$0x1]  ;;  %v2901_v0 = vrot.slane %v2899_v5, 4 }
 0x187   : > { %12921 = vmatmul.mubr.bf16.gmra.mrb[12].mxu0 %v11802_v25  ;;  %v11808_v63 = vcombine.low %v2100_v36, %v2103_v37  ;;  %v2116_v25 = vrot.slane %v15407_v20, 5  ;;  %v14305_v20 = vld [vmem:[#allocation2 + $0x18] sm:$0xff]   ;;  %v2923_v36 = vshrl.u32 %v2832_v49, 16  ;;  %v2926_v37 = vshll.u32 %v2832_v49, 16 }
 0x188   : > { %12924 = vmatprep.mubr.bf16.mxu0 %v11803_v44  ;;  %12953 = vmatpush3.bf16.msra.mxu0 %v14302_v2  ;;  %v11809_v2 = vcombine.low %v2107_v57, %v2110_v34  ;;  %v742_v44 = vrot.slane %v15452_v38, 4  ;;  %v14309_v38 = vld [vmem:[#allocation6 + $0x108] sm:$0xff]   ;;  %v15569_v34 = vld [vmem:[#allocation2 + $0x34] sm:$0xf]  ;;  %v2881_v60 = vor.u32 %v2880_v13, %v2877_v4  ;;  %v2904_v26 = vrot.slane %v2902_v28, 5 }
 0x189   : > { %12954 = vmatprep.subr.bf16.mxu0 %v14303_v59  ;;  %v2117_v42 = vsel %vm15456_vm13, %v2115_v43, %v2116_v25  ;;  %v2947_v43 = vshrl.u32 %v2835_v6, 16  ;;  %v2950_v25 = vshll.u32 %v2835_v6, 16  ;;  %v14325_v18 = vld [vmem:[#allocation2 + $0xb4] sm:$0xff]   ;;  %v2980_v49 = vshll.u32 %v15588_v10, 16 }
 0x18a   : > { %v907_v54 = vsel %vm15071_vm10, %v742_v44, %v906_v50  ;;  %v11810_v52 = vcombine.low %v2114_v8, %v2117_v42  ;;  %v15573_v44 = vld [vmem:[#allocation2 + $0x20] sm:$0x1]  ;;  %v15575_v50 = vrot.slane %v2908_v32, 5  ;;  %v2914_v8 = vrot.slane %v2912_v45, 4 }
 0x18b   : > { %908 = vst [vmem:[#allocation2 + $0xc8] sm:$0x1] %v907_v54  ;;  %v2956_v42 = vshll.u32 %v15569_v34, 16  ;;  %v2960_v54 = vshrl.u32 %v15569_v34, 16 }
 0x18c   : > { %12955 = vmatpush3.bf16.msra.mxu0 %v14303_v59  ;;  %v14310_v59 = vld [vmem:[#allocation2 + $0x3c] sm:$0xff]   ;;  %v2915_v11 = vor.u32 %v2914_v8, %v15575_v50 }
 0x18d   : > { %12988 = vmatprep.subr.bf16.mxu0 %v14306_v39 }
 0x18f   : > { %12925 = vmatmul.mubr.bf16.gmra.mrb[16].mxu0 %v11804_v12  ;;  %v15550_v12 = vld [vmem:[#allocation6 + $0x140] sm:$0xff]  }
 0x190   : > { %12928 = vmatprep.mubr.bf16.mxu0 %v11805_v15  ;;  %v15552_v15 = vld [vmem:[#allocation2 + $0x10] sm:$0xf] }
 0x191   : > { %v2884_v19 = vshll.u32 %v15552_v15, 16  ;;  %v2888_v21 = vshrl.u32 %v15552_v15, 16 }
 0x193   : > { %v15559_v51 = vrot.slane %v2884_v19, 5  ;;  %v2890_v16 = vrot.slane %v2888_v21, 4 }
 0x197   : > { %12929 = vmatmul.mubr.bf16.gmra.mrb[20].mxu0 %v11806_v30  ;;  %v15561_v30 = vld [vmem:[#allocation2 + $0x28] sm:$0xf] }
 0x198   : > { %12932 = vmatprep.mubr.bf16.mxu0 %v11807_v31  ;;  %v14320_v31 = vld [vmem:[#allocation2 + $0x90] sm:$0xff]   ;;  %v2932_v24 = vshll.u32 %v15561_v30, 16  ;;  %v2936_v57 = vshrl.u32 %v15561_v30, 16 }
 0x19f   : > { %12933 = vmatmul.mubr.bf16.gmra.mrb[24].mxu0 %v11808_v63  ;;  %v2891_v63 = vor.u32 %v2890_v16, %v15559_v51 }
 0x1a0   : > { %12936 = vmatprep.mubr.bf16.mxu0 %v11809_v2  ;;  %v2894_v2 = vshll.u32 %v15563_v27, 16 }
 0x1a7   : > { %12937 = vmatmul.mubr.bf16.gmra.mrb[28].mxu0 %v11810_v52  ;;  %v2925_v52 = vrot.slane %v2923_v36, 4 }
 0x1a8   : > { %12956 = vmatprep.mubr.bf16.mxu0 %v14304_v41  ;;  %v2928_v41 = vrot.slane %v2926_v37, 5 }
 0x1aa   : > { %v2929_v53 = vor.u32 %v2928_v41, %v2925_v52  ;;  %v14326_v41 = vld [vmem:[#allocation2 + $0xc0] sm:$0xff]  }
 0x1ac   : > { %v2930_v36 = vrot.slane %v2929_v53, 4 }
 0x1af   : > { %12957 = vmatmul.mubr.bf16.vlgmr.msra.gmra.mrb[0].mxu0 %v14305_v20  ;;  %v15579_v20 = vrot.slane %v2932_v24, 5 }
 0x1b0   : > { %12989 = vmatpush3.bf16.msra.mxu0 %v14306_v39  ;;  %12960 = vmatprep.mubr.bf16.mxu0 %v14307_v56  ;;  %v14327_v39 = vld [vmem:[#allocation6 + $0x138] sm:$0xff]   ;;  %v2938_v56 = vrot.slane %v2936_v57, 4  ;;  %v15604_v57 = vld [vmem:[#allocation2 + $0x4c] sm:$0xf] }
 0x1b1   : > { %12990 = vmatprep.subr.bf16.mxu0 %v14309_v38 }
 0x1b2   : > { %v2939_v19 = vor.u32 %v2938_v56, %v15579_v20 }
 0x1b4   : > { %12991 = vmatpush3.bf16.msra.mxu0 %v14309_v38  ;;  %v2838_v38 = vld [vmem:[#allocation2 + $0x3c] sm:$0xf]  ;;  %v2940_v37 = vrot.slane %v2939_v19, 4  ;;  %v15632_v19 = vld [vmem:[#allocation2 + $0x50] sm:$0x1] }
 0x1b5   : > { %12992 = vmatprep.subr.bf16.mxu0 %v14312_v47 }
 0x1b7   : > { %12961 = vmatmul.mubr.bf16.gmra.mrb[4].mxu0 %v14308_v58  ;;  %v2882_v58 = vrot.slane %v2881_v60, 4 }
 0x1b8   : > { %12964 = vmatprep.mubr.bf16.mxu0 %v14310_v59  ;;  %12993 = vmatpush3.bf16.msra.mxu0 %v14312_v47  ;;  %v2892_v47 = vrot.slane %v2891_v63, 4  ;;  %v2896_v59 = vrot.slane %v2894_v2, 5 }
 0x1b9   : > { %12994 = vmatprep.subr.bf16.mxu0 %v14315_v61  ;;  %v2887_v5 = vsel %vm15051_vm7, %v2882_v58, %v15559_v51  ;;  %v2916_v51 = vrot.slane %v2915_v11, 4 }
 0x1ba   : > { %v2897_v4 = vsel %vm15051_vm7, %v2892_v47, %v2896_v59  ;;  %v3004_v47 = vshll.u32 %v15604_v57, 16  ;;  %v3008_v59 = vshrl.u32 %v15604_v57, 16 }
 0x1bb   : > { %v11843_v60 = vcombine.low %v2887_v5, %v2897_v4 }
 0x1bc   : > { %12995 = vmatpush3.bf16.msra.mxu0 %v14315_v61  ;;  %v2905_v61 = vor.u32 %v2904_v26, %v2901_v0  ;;  %v15636_v4 = vrot.slane %v3004_v47, 5 }
 0x1bd   : > { %12996 = vmatprep.subr.bf16.mxu0 %v14318_v33 }
 0x1be   : > { %v15598_v13 = vrot.slane %v2905_v61, 4 }
 0x1bf   : > { %12965 = vmatmul.mubr.bf16.gmra.mrb[8].mxu0 %v14311_v9  ;;  %v15581_v9 = vld [vmem:[#allocation2 + $0x2c] sm:$0x1] }
 0x1c0   : > { %12968 = vmatprep.mubr.bf16.mxu0 %v14313_v1  ;;  %12997 = vmatpush3.bf16.msra.mxu0 %v14318_v33  ;;  %v14323_v33 = vld [vmem:[#allocation2 + $0xa8] sm:$0xff]   ;;  %v2918_v1 = vshll.u32 %v15573_v44, 16  ;;  %v2942_v21 = vshll.u32 %v15581_v9, 16  ;;  %v2911_v63 = vsel %vm15051_vm7, %v15598_v13, %v15575_v50  ;;  %v3010_v13 = vrot.slane %v3008_v59, 4 }
 0x1c1   : > { %12998 = vmatprep.subr.bf16.mxu0 %v14321_v14 }
 0x1c2   : > { %v2920_v0 = vrot.slane %v2918_v1, 5  ;;  %v2944_v24 = vrot.slane %v2942_v21, 5  ;;  %v2847_v21 = vld [vmem:[#allocation2 + $0x60] sm:$0xf] }
 0x1c4   : > { %12999 = vmatpush3.bf16.msra.mxu0 %v14321_v14  ;;  %v15584_v14 = vld [vmem:[#allocation2 + $0x38] sm:$0x1] }
 0x1c5   : > { %13000 = vmatprep.subr.bf16.mxu0 %v14324_v46  ;;  %v2966_v16 = vshll.u32 %v15584_v14, 16 }
 0x1c7   : > { %12969 = vmatmul.mubr.bf16.gmra.mrb[12].mxu0 %v14314_v3  ;;  %v2949_v3 = vrot.slane %v2947_v43, 4  ;;  %v2844_v43 = vld [vmem:[#allocation2 + $0x54] sm:$0xf] }
 0x1c8   : > { %12972 = vmatprep.mubr.bf16.mxu0 %v14316_v7  ;;  %13001 = vmatpush3.bf16.msra.mxu0 %v14324_v46  ;;  %v2952_v46 = vrot.slane %v2950_v25, 5  ;;  %v15586_v7 = vrot.slane %v2956_v42, 5  ;;  %v15610_v25 = vld [vmem:[#allocation2 + $0x58] sm:$0xf]  ;;  %v2968_v42 = vrot.slane %v2966_v16, 5  ;;  %v3019_v50 = vshrl.u32 %v2844_v43, 16 }
 0x1c9   : > { %13002 = vmatprep.subr.bf16.mxu0 %v14327_v39  ;;  %v3022_v61 = vshll.u32 %v2844_v43, 16  ;;  %v3032_v1 = vshrl.u32 %v15610_v25, 16  ;;  %v3011_v43 = vor.u32 %v3010_v13, %v15636_v4  ;;  %v14330_v13 = vld [vmem:[#allocation6 + $0x150] sm:$0xff]  }
 0x1ca   : > { %v2953_v28 = vor.u32 %v2952_v46, %v2949_v3  ;;  %v2921_v3 = vsel %vm15051_vm7, %v2916_v51, %v2920_v0  ;;  %v2935_v46 = vsel %vm15051_vm7, %v2930_v36, %v15579_v20  ;;  %v3021_v16 = vrot.slane %v3019_v50, 4 }
 0x1cb   : > { %v3014_v0 = vshll.u32 %v15632_v19, 16 }
 0x1cc   : > { %13003 = vmatpush3.bf16.msra.mxu0 %v14327_v39  ;;  %v2962_v39 = vrot.slane %v2960_v54, 4  ;;  %v2954_v8 = vrot.slane %v2953_v28, 4  ;;  %v15612_v54 = vrot.slane %v2980_v49, 5  ;;  %v15638_v28 = vld [vmem:[#allocation2 + $0x64] sm:$0xf] }
 0x1cd   : > { %13036 = vmatprep.subr.bf16.mxu0 %v15550_v12  ;;  %v15654_v59 = vrot.slane %v3014_v0, 5 }
 0x1ce   : > { %v2963_v32 = vor.u32 %v2962_v39, %v15586_v7 }
 0x1cf   : > { %12973 = vmatmul.mubr.bf16.gmra.mrb[16].mxu0 %v14317_v17  ;;  %v2971_v17 = vshrl.u32 %v2838_v38, 16 }
 0x1d0   : > { %12976 = vmatprep.mubr.bf16.mxu0 %v14319_v48  ;;  %v2974_v48 = vshll.u32 %v2838_v38, 16  ;;  %v2964_v56 = vrot.slane %v2963_v32, 4  ;;  %v15614_v38 = vld [vmem:[#allocation2 + $0x44] sm:$0x1]  ;;  %v15643_v32 = vld [vmem:[#allocation2 + $0x5c] sm:$0x1] }
 0x1d1   : > { %v2973_v45 = vrot.slane %v2971_v17, 4  ;;  %v2990_v53 = vshll.u32 %v15614_v38, 16 }
 0x1d2   : > { %v2976_v6 = vrot.slane %v2974_v48, 5  ;;  %v2945_v48 = vsel %vm15051_vm7, %v2940_v37, %v2944_v24  ;;  %v2969_v20 = vsel %vm15051_vm7, %v2964_v56, %v2968_v42  ;;  %v3052_v37 = vshll.u32 %v15638_v28, 16  ;;  %v15650_v56 = vld [vmem:[#allocation2 + $0x70] sm:$0xf] }
 0x1d3   : > { %v2992_v36 = vrot.slane %v2990_v53, 5  ;;  %v3056_v24 = vshrl.u32 %v15638_v28, 16  ;;  %v3080_v53 = vshrl.u32 %v15650_v56, 16 }
 0x1d4   : > { %v2977_v58 = vor.u32 %v2976_v6, %v2973_v45  ;;  %v3043_v45 = vshrl.u32 %v2847_v21, 16  ;;  %v3046_v6 = vshll.u32 %v2847_v21, 16 }
 0x1d6   : > { %v2978_v5 = vrot.slane %v2977_v58, 4  ;;  %v14329_v58 = vld [vmem:[#allocation6 + $0x148] sm:$0xff]   ;;  %v3045_v50 = vrot.slane %v3043_v45, 4 }
 0x1d7   : > { %12977 = vmatmul.mubr.bf16.gmra.mrb[20].mxu0 %v14320_v31  ;;  %v2984_v31 = vshrl.u32 %v15588_v10, 16 }
 0x1d8   : > { %12980 = vmatprep.mubr.bf16.mxu0 %v14322_v55  ;;  %v2841_v55 = vld [vmem:[#allocation2 + $0x48] sm:$0xf] }
 0x1d9   : > { %v2995_v2 = vshrl.u32 %v2841_v55, 16  ;;  %v2998_v26 = vshll.u32 %v2841_v55, 16  ;;  %v2986_v52 = vrot.slane %v2984_v31, 4  ;;  %v3034_v31 = vrot.slane %v3032_v1, 4 }
 0x1da   : > { %v15661_v1 = vrot.slane %v3052_v37, 5 }
 0x1db   : > { %v2997_v39 = vrot.slane %v2995_v2, 4  ;;  %v3000_v17 = vrot.slane %v2998_v26, 5  ;;  %v2987_v11 = vor.u32 %v2986_v52, %v15612_v54  ;;  %v11844_v2 = vcombine.low %v2911_v63, %v2921_v3 }
 0x1dc   : > { %v3038_v52 = vshll.u32 %v15643_v32, 16  ;;  %v2983_v63 = vsel %vm15051_vm7, %v2978_v5, %v15612_v54  ;;  %v3058_v3 = vrot.slane %v3056_v24, 4  ;;  %v3012_v54 = vrot.slane %v3011_v43, 4 }
 0x1dd   : > { %v3001_v55 = vor.u32 %v3000_v17, %v2997_v39  ;;  %v2988_v51 = vrot.slane %v2987_v11, 4  ;;  %v15663_v39 = vld [vmem:[#allocation2 + $0x7c] sm:$0xf]  ;;  %v15665_v17 = vld [vmem:[#allocation2 + $0x68] sm:$0x1]  ;;  %v3076_v11 = vshll.u32 %v15650_v56, 16 }
 0x1de   : > { %v3040_v5 = vrot.slane %v3038_v52, 5  ;;  %v3017_v43 = vsel %vm15051_vm7, %v3012_v54, %v15654_v59  ;;  %v14331_v52 = vld [vmem:[#allocation6 + $0x158] sm:$0xff]  }
 0x1df   : > { %12981 = vmatmul.mubr.bf16.gmra.mrb[24].mxu0 %v14323_v33  ;;  %v3028_v33 = vshll.u32 %v15610_v25, 16  ;;  %v15652_v47 = vrot.slane %v3001_v55, 4  ;;  %v3104_v55 = vshrl.u32 %v15663_v39, 16  ;;  %v15676_v24 = vrot.slane %v3076_v11, 5 }
 0x1e0   : > { %12984 = vmatprep.mubr.bf16.mxu0 %v14325_v18  ;;  %v2959_v18 = vsel %vm15051_vm7, %v2954_v8, %v15586_v7  ;;  %v3024_v7 = vrot.slane %v3022_v61, 5  ;;  %v3048_v61 = vrot.slane %v3046_v6, 5  ;;  %v3059_v6 = vor.u32 %v3058_v3, %v15661_v1  ;;  %v15701_v3 = vld [vmem:[#allocation2 + $0x80] sm:$0x1] }
 0x1e1   : > { %v15640_v49 = vrot.slane %v3028_v33, 5  ;;  %v11846_v26 = vcombine.low %v2959_v18, %v2969_v20  ;;  %v2993_v33 = vsel %vm15051_vm7, %v2988_v51, %v2992_v36  ;;  %v3062_v51 = vshll.u32 %v15665_v17, 16 }
 0x1e2   : > { %v3025_v8 = vor.u32 %v3024_v7, %v3021_v16  ;;  %v11847_v0 = vcombine.low %v2983_v63, %v2993_v33  ;;  %v3049_v45 = vor.u32 %v3048_v61, %v3045_v50  ;;  %v3106_v63 = vrot.slane %v3104_v55, 4 }
 0x1e3   : > { %v3035_v42 = vor.u32 %v3034_v31, %v15640_v49  ;;  %v3100_v31 = vshll.u32 %v15663_v39, 16  ;;  %v15696_v59 = vrot.slane %v3059_v6, 4  ;;  %v15698_v33 = vrot.slane %v3062_v51, 5  ;;  %v15718_v6 = vld [vmem:[#allocation2 + $0x94] sm:$0xf] }
 0x1e4   : > { %v3026_v21 = vrot.slane %v3025_v8, 4 }
 0x1e5   : > { %v3036_v20 = vrot.slane %v3035_v42, 4  ;;  %v15690_v61 = vrot.slane %v3100_v31, 5 }
 0x1e6   : > { %v3031_v8 = vsel %vm15051_vm7, %v3026_v21, %v15640_v49 }
 0x1e7   : > { %12985 = vmatmul.mubr.bf16.gmra.mrb[28].mxu0 %v14326_v41  ;;  %v2850_v41 = vld [vmem:[#allocation2 + $0x6c] sm:$0xf]  ;;  %v3041_v42 = vsel %vm15051_vm7, %v3036_v20, %v3040_v5  ;;  %v3107_v5 = vor.u32 %v3106_v63, %v15690_v61 }
 0x1e8   : > { %13004 = vmatprep.mubr.bf16.mxu0 %v11843_v60  ;;  %v11845_v60 = vcombine.low %v2935_v46, %v2945_v48  ;;  %v2853_v46 = vld [vmem:[#allocation2 + $0x78] sm:$0xf]  ;;  %v3067_v48 = vshrl.u32 %v2850_v41, 16  ;;  %v3070_v18 = vshll.u32 %v2850_v41, 16  ;;  %v2856_v41 = vld [vmem:[#allocation2 + $0x84] sm:$0xf]  ;;  %v11849_v31 = vcombine.low %v3031_v8, %v3041_v42 }
 0x1e9   : > { %v3091_v16 = vshrl.u32 %v2853_v46, 16  ;;  %v3094_v7 = vshll.u32 %v2853_v46, 16  ;;  %v3118_v11 = vshll.u32 %v2856_v41, 16 }
 0x1ea   : > { %v3069_v36 = vrot.slane %v3067_v48, 4  ;;  %v3072_v37 = vrot.slane %v3070_v18, 5  ;;  %v3115_v18 = vshrl.u32 %v2856_v41, 16  ;;  %v15722_v41 = vld [vmem:[#allocation2 + $0xa0] sm:$0xf] }
 0x1eb   : > { %v3096_v50 = vrot.slane %v3094_v7, 5  ;;  %v14332_v7 = vld [vmem:[#allocation6 + $0x160] sm:$0xff]  }
 0x1ec   : > { %v3073_v46 = vor.u32 %v3072_v37, %v3069_v36  ;;  %v3117_v37 = vrot.slane %v3115_v18, 4 }
 0x1ee   : > { %v3074_v51 = vrot.slane %v3073_v46, 4 }
 0x1ef   : > { %13005 = vmatmul.mubr.bf16.vlgmr.msra.gmra.mrb[0].mxu0 %v11844_v2  ;;  %v3082_v2 = vrot.slane %v3080_v53, 4 }
 0x1f0   : > { %13037 = vmatpush3.bf16.msra.mxu0 %v15550_v12  ;;  %13008 = vmatprep.mubr.bf16.mxu0 %v11845_v60  ;;  %v15674_v12 = vld [vmem:[#allocation2 + $0x74] sm:$0x1]  ;;  %v3007_v60 = vsel %vm15051_vm7, %v15652_v47, %v15636_v4  ;;  %v15692_v4 = vld [vmem:[#allocation2 + $0x88] sm:$0xf]  ;;  %v15694_v47 = vrot.slane %v3049_v45, 4 }
 0x1f1   : > { %13038 = vmatprep.subr.bf16.mxu0 %v14329_v58  ;;  %v3086_v49 = vshll.u32 %v15674_v12, 16  ;;  %v3083_v48 = vor.u32 %v3082_v2, %v15676_v24  ;;  %v3124_v53 = vshll.u32 %v15692_v4, 16  ;;  %v3128_v54 = vshrl.u32 %v15692_v4, 16  ;;  %v15716_v45 = vld [vmem:[#allocation2 + $0x8c] sm:$0x1] }
 0x1f2   : > { %v11848_v21 = vcombine.low %v3007_v60, %v3017_v43  ;;  %v3055_v55 = vsel %vm15051_vm7, %v15694_v47, %v15661_v1  ;;  %v3120_v2 = vrot.slane %v3118_v11, 5  ;;  %v2862_v60 = vld [vmem:[#allocation2 + $0x9c] sm:$0xf]  ;;  %v3134_v47 = vshll.u32 %v15716_v45, 16 }
 0x1f3   : > { %v3084_v36 = vrot.slane %v3083_v48, 4  ;;  %v15720_v43 = vrot.slane %v3124_v53, 5  ;;  %v3130_v8 = vrot.slane %v3128_v54, 4  ;;  %v3163_v46 = vshrl.u32 %v2862_v60, 16 }
 0x1f4   : > { %13039 = vmatpush3.bf16.msra.mxu0 %v14329_v58  ;;  %v3093_v58 = vrot.slane %v3091_v16, 4  ;;  %v3110_v16 = vshll.u32 %v15701_v3, 16  ;;  %v3079_v48 = vsel %vm15051_vm7, %v3074_v51, %v15676_v24  ;;  %v3172_v11 = vshll.u32 %v15722_v41, 16  ;;  %v14334_v51 = vld [vmem:[#allocation6 + $0x170] sm:$0xff]  }
 0x1f5   : > { %13040 = vmatprep.subr.bf16.mxu0 %v14330_v13  ;;  %v3176_v53 = vshrl.u32 %v15722_v41, 16  ;;  %v3121_v54 = vor.u32 %v3120_v2, %v3117_v37 }
 0x1f6   : > { %v3097_v20 = vor.u32 %v3096_v50, %v3093_v58  ;;  %v3108_v50 = vrot.slane %v3107_v5, 4  ;;  %v3112_v63 = vrot.slane %v3110_v16, 5 }
 0x1f7   : > { %13009 = vmatmul.mubr.bf16.gmra.mrb[4].mxu0 %v11846_v26  ;;  %v2859_v26 = vld [vmem:[#allocation2 + $0x90] sm:$0xf] }
 0x1f8   : > { %13012 = vmatprep.mubr.bf16.mxu0 %v11847_v0  ;;  %13041 = vmatpush3.bf16.msra.mxu0 %v14330_v13  ;;  %v3065_v13 = vsel %vm15051_vm7, %v15696_v59, %v15698_v33  ;;  %v3088_v0 = vrot.slane %v3086_v49, 5  ;;  %v3139_v1 = vshrl.u32 %v2859_v26, 16  ;;  %v3142_v42 = vshll.u32 %v2859_v26, 16  ;;  %v14333_v59 = vld [vmem:[#allocation6 + $0x168] sm:$0xff]  }
 0x1f9   : > { %13042 = vmatprep.subr.bf16.mxu0 %v14331_v52  ;;  %v3098_v58 = vrot.slane %v3097_v20, 4  ;;  %v3148_v33 = vshll.u32 %v15718_v6, 16  ;;  %v3152_v49 = vshrl.u32 %v15718_v6, 16  ;;  %v3131_v20 = vor.u32 %v3130_v8, %v15720_v43  ;;  %v15744_v8 = vld [vmem:[#allocation2 + $0xa4] sm:$0x1] }
 0x1fa   : > { %v3089_v18 = vsel %vm15051_vm7, %v3084_v36, %v3088_v0  ;;  %v3141_v5 = vrot.slane %v3139_v1, 4  ;;  %v3144_v16 = vrot.slane %v3142_v42, 5  ;;  %v3113_v24 = vsel %vm15051_vm7, %v3108_v50, %v3112_v63  ;;  %v15740_v0 = vld [vmem:[#allocation2 + $0x98] sm:$0x1]  ;;  %18944 = vst [vmem:[#allocation21_spill] sm:$0xff] %v15744_v8 }
 0x1fb   : > { %v3136_v26 = vrot.slane %v3134_v47, 5  ;;  %v15742_v36 = vrot.slane %v3148_v33, 5  ;;  %v11850_v2 = vcombine.low %v3055_v55, %v3065_v13  ;;  %v15746_v1 = vrot.slane %v3172_v11, 5  ;;  %v2865_v42 = vld [vmem:[#allocation2 + $0xa8] sm:$0xf] }
 0x1fc   : > { %13043 = vmatpush3.bf16.msra.mxu0 %v14331_v52  ;;  %v3166_v52 = vshll.u32 %v2862_v60, 16  ;;  %v11851_v60 = vcombine.low %v3079_v48, %v3089_v18  ;;  %v3132_v50 = vrot.slane %v3131_v20, 4  ;;  %v3145_v63 = vor.u32 %v3144_v16, %v3141_v5  ;;  %v2868_v48 = vld [vmem:[#allocation2 + $0xb4] sm:$0xf]  ;;  %v15753_v18 = vld [vmem:[#allocation2 + $0xb8] sm:$0xf] }
 0x1fd   : > { %13044 = vmatprep.subr.bf16.mxu0 %v14332_v7  ;;  %v3158_v47 = vshll.u32 %v15740_v0, 16  ;;  %18946 = vst [vmem:[#allocation23_spill] sm:$0xff] %v15753_v18 }
 0x1fe   : > { %v3168_v37 = vrot.slane %v3166_v52, 5  ;;  %v3187_v52 = vshrl.u32 %v2865_v42, 16  ;;  %v3137_v5 = vsel %vm15051_vm7, %v3132_v50, %v3136_v26  ;;  %v3146_v16 = vrot.slane %v3145_v63, 4 }
 0x1ff   : > { %13013 = vmatmul.mubr.bf16.gmra.mrb[8].mxu0 %v11848_v21  ;;  %v3103_v21 = vsel %vm15051_vm7, %v3098_v58, %v15690_v61  ;;  %v3178_v61 = vrot.slane %v3176_v53, 4  ;;  %v3122_v58 = vrot.slane %v3121_v54, 4  ;;  %v3190_v53 = vshll.u32 %v2865_v42, 16 }
 0x200   : > { %13016 = vmatprep.mubr.bf16.mxu0 %v11849_v31  ;;  %13045 = vmatpush3.bf16.msra.mxu0 %v14332_v7  ;;  %v3154_v7 = vrot.slane %v3152_v49, 4  ;;  %v3165_v31 = vrot.slane %v3163_v46, 4  ;;  %v11852_v33 = vcombine.low %v3103_v21, %v3113_v24  ;;  %v14335_v49 = vld [vmem:[#allocation6 + $0x178] sm:$0xff]   ;;  %v3182_v46 = vshll.u32 %v15744_v8, 16  ;;  %v15769_v8 = vld [vmem:[#allocation2 + $0xc4] sm:$0xf] }
 0x201   : > { %13046 = vmatprep.subr.bf16.mxu0 %v14333_v59  ;;  %v3179_v11 = vor.u32 %v3178_v61, %v15746_v1  ;;  %v3200_v54 = vshrl.u32 %v15749_v35, 16  ;;  %v3127_v20 = vsel %vm15051_vm7, %v3122_v58, %v15720_v43  ;;  %v3160_v21 = vrot.slane %v3158_v47, 5  ;;  %v15767_v58 = vld [vmem:[#allocation2 + $0xb0] sm:$0x1]  ;;  %v2871_v47 = vld [vmem:[#allocation2 + $0xc0] sm:$0xf] }
 0x202   : > { %v3155_v55 = vor.u32 %v3154_v7, %v15742_v36  ;;  %v3169_v13 = vor.u32 %v3168_v37, %v3165_v31  ;;  %v3211_v24 = vshrl.u32 %v2868_v48, 16  ;;  %v3214_v7 = vshll.u32 %v2868_v48, 16 }
 0x203   : > { %v3220_v31 = vshll.u32 %v15753_v18, 16  ;;  %v3224_v37 = vshrl.u32 %v15753_v18, 16  ;;  %v3184_v42 = vrot.slane %v3182_v46, 5  ;;  %v3189_v40 = vrot.slane %v3187_v52, 4  ;;  %v15778_v52 = vld [vmem:[#allocation2 + $0xbc] sm:$0x1] }
 0x204   : > { %13047 = vmatpush3.bf16.msra.mxu0 %v14333_v59  ;;  %v3196_v59 = vshll.u32 %v15749_v35, 16  ;;  %v3170_v61 = vrot.slane %v3169_v13, 4  ;;  %v3180_v43 = vrot.slane %v3179_v11, 4  ;;  %v3192_v26 = vrot.slane %v3190_v53, 5 }
 0x205   : > { %13048 = vmatprep.subr.bf16.mxu0 %v14334_v51  ;;  %v3202_v63 = vrot.slane %v3200_v54, 4  ;;  %v3213_v48 = vrot.slane %v3211_v24, 4  ;;  %v3216_v29 = vrot.slane %v3214_v7, 5  ;;  %v3222_v35 = vrot.slane %v3220_v31, 5 }
 0x206   : > { %v3198_v50 = vrot.slane %v3196_v59, 5  ;;  %v3226_v18 = vrot.slane %v3224_v37, 4  ;;  %v3206_v46 = vshll.u32 %v15767_v58, 16  ;;  %v3185_v11 = vsel %vm15051_vm7, %v3180_v43, %v3184_v42 }
 0x207   : > { %13017 = vmatmul.mubr.bf16.gmra.mrb[12].mxu0 %v11850_v2  ;;  %v15765_v2 = vld [vmem:[#allocation6 + $0x180] sm:$0xff]   ;;  %v3193_v53 = vor.u32 %v3192_v26, %v3189_v40  ;;  %v3235_v54 = vshrl.u32 %v2871_v47, 16 }
 0x208   : > { %13020 = vmatprep.mubr.bf16.mxu0 %v11851_v60  ;;  %13049 = vmatpush3.bf16.msra.mxu0 %v14334_v51  ;;  %v3156_v60 = vrot.slane %v3155_v55, 4  ;;  %v11853_v51 = vcombine.low %v3127_v20, %v3137_v5  ;;  %v3151_v55 = vsel %vm15051_vm7, %v3146_v16, %v15742_v36  ;;  %v3203_v59 = vor.u32 %v3202_v63, %v3198_v50 }
 0x209   : > { %13050 = vmatprep.subr.bf16.mxu0 %v14335_v49  ;;  %v3238_v36 = vshll.u32 %v2871_v47, 16  ;;  %v3244_v20 = vshll.u32 %v15769_v8, 16  ;;  %v3248_v5 = vshrl.u32 %v15769_v8, 16  ;;  %v3217_v16 = vor.u32 %v3216_v29, %v3213_v48 }
 0x20a   : > { %v3161_v13 = vsel %vm15051_vm7, %v3156_v60, %v3160_v21  ;;  %v3227_v21 = vor.u32 %v3226_v18, %v3222_v35  ;;  %v3194_v31 = vrot.slane %v3193_v53, 4  ;;  %v3208_v37 = vrot.slane %v3206_v46, 5 }
 0x20b   : > { %v11854_v24 = vcombine.low %v3151_v55, %v3161_v13  ;;  %v3237_v60 = vrot.slane %v3235_v54, 4  ;;  %v3246_v40 = vrot.slane %v3244_v20, 5  ;;  %v3250_v42 = vrot.slane %v3248_v5, 4 }
 0x20c   : > { %13051 = vmatpush3.bf16.msra.mxu0 %v14335_v49  ;;  %v3175_v49 = vsel %vm15051_vm7, %v3170_v61, %v15746_v1  ;;  %v3204_v1 = vrot.slane %v3203_v59, 4  ;;  %v3240_v61 = vrot.slane %v3238_v36, 5  ;;  %v3218_v43 = vrot.slane %v3217_v16, 4 }
 0x20d   : > { %13084 = vmatprep.subr.bf16.mxu0 %v15765_v2  ;;  %v11855_v7 = vcombine.low %v3175_v49, %v3185_v11  ;;  %v3228_v26 = vrot.slane %v3227_v21, 4  ;;  %v3199_v29 = vsel %vm15051_vm7, %v3194_v31, %v3198_v50  ;;  %v3251_v48 = vor.u32 %v3250_v42, %v3246_v40  ;;  %v3580_v11 = vld [vmem:[#allocation2 + $0xc] sm:$0xe] }
 0x20e   : > { %v3209_v18 = vsel %vm15051_vm7, %v3204_v1, %v3208_v37  ;;  %v3241_v47 = vor.u32 %v3240_v61, %v3237_v60  ;;  %v3223_v13 = vsel %vm15051_vm7, %v3218_v43, %v3222_v35  ;;  %v3646_v49 = vrot.slane %v15552_v15, 5 }
 0x20f   : > { %13021 = vmatmul.mubr.bf16.gmra.mrb[16].mxu0 %v11852_v33  ;;  %v3230_v33 = vshll.u32 %v15778_v52, 16  ;;  %v11856_v53 = vcombine.low %v3199_v29, %v3209_v18  ;;  %v3252_v54 = vrot.slane %v3251_v48, 4  ;;  %v11867_v20 = vrot.slane %v3580_v11, 9  ;;  %v3583_v18 = vld [vmem:[#allocation2 + $0x30] sm:$0xe]  ;;  %v14337_v11 = vld [vmem:[#allocation6 + $0x188] sm:$0xff]  }
 0x210   : > { %13024 = vmatprep.mubr.bf16.mxu0 %v11853_v51  ;;  %v15788_v51 = vld [vmem:[#allocation2 + $0xc8] sm:$0x1]  ;;  %v3242_v50 = vrot.slane %v3241_v47, 4  ;;  %v3648_v5 = vrot.slane %v3646_v49, 4  ;;  %v3649_v16 = vrot.slane %v15563_v27, 5  ;;  %v3653_v15 = vrot.slane %v15557_v62, 5 }
 0x211   : > { %v3232_v63 = vrot.slane %v3230_v33, 5  ;;  %v3254_v55 = vshll.u32 %v15788_v51, 16  ;;  %v3647_v33 = vsel %vm15456_vm13, %v11867_v20, %v3646_v49  ;;  %v3660_v31 = vrot.slane %v15561_v30, 5  ;;  %v3582_v27 = vld [vmem:[#allocation2 + $0x24] sm:$0xe]  ;;  %v14338_v20 = vld [vmem:[#allocation6 + $0x190] sm:$0xff]  }
 0x212   : > { %v3247_v35 = vsel %vm15051_vm7, %v3242_v50, %v3246_v40  ;;  %v3655_v61 = vrot.slane %v3653_v15, 4  ;;  %v3656_v40 = vrot.slane %v15573_v44, 5  ;;  %v11869_v42 = vrot.slane %v3582_v27, 9 }
 0x213   : > { %v3233_v46 = vsel %vm15051_vm7, %v3228_v26, %v3232_v63  ;;  %v3256_v36 = vrot.slane %v3254_v55, 5  ;;  %v3662_v43 = vrot.slane %v3660_v31, 4  ;;  %v3663_v62 = vrot.slane %v15581_v9, 5  ;;  %v3584_v9 = vld [vmem:[#allocation2 + $0x3c] sm:$0xe] }
 0x214   : > { %v11857_v59 = vcombine.low %v3223_v13, %v3233_v46  ;;  %v3657_v63 = vsel %vm15456_vm13, %v3655_v61, %v3656_v40  ;;  %v3667_v30 = vrot.slane %v15569_v34, 5  ;;  %v3661_v29 = vsel %vm15456_vm13, %v11869_v42, %v3660_v31  ;;  %v14339_v31 = vld [vmem:[#allocation6 + $0x198] sm:$0xff]   ;;  %v14340_v61 = vld [vmem:[#allocation6 + $0x1a0] sm:$0xff]   ;;  %v3588_v40 = vld [vmem:[#allocation2 + $0x6c] sm:$0xe] }
 0x215   : > { %v3257_v21 = vsel %vm15051_vm7, %v3252_v54, %v3256_v36  ;;  %v3664_v44 = vsel %vm15456_vm13, %v3662_v43, %v3663_v62  ;;  %v3674_v47 = vrot.slane %v15588_v10, 5  ;;  %v11870_v13 = vrot.slane %v3583_v18, 9 }
 0x216   : > { %v11858_v1 = vcombine.low %v3247_v35, %v3257_v21  ;;  %v11885_v55 = vcombine.low %v3661_v29, %v3664_v44  ;;  %v3669_v46 = vrot.slane %v3667_v30, 4  ;;  %v3670_v49 = vrot.slane %v15584_v14, 5  ;;  %v14341_v44 = vld [vmem:[#allocation6 + $0x1a8] sm:$0xff]  }
 0x217   : > { %13025 = vmatmul.mubr.bf16.gmra.mrb[20].mxu0 %v11854_v24  ;;  %v3650_v24 = vsel %vm15456_vm13, %v3648_v5, %v3649_v16  ;;  %v3677_v34 = vrot.slane %v15614_v38, 5  ;;  %v3668_v50 = vsel %vm15456_vm13, %v11870_v13, %v3667_v30  ;;  %v3681_v54 = vrot.slane %v15604_v57, 5  ;;  %v3585_v38 = vld [vmem:[#allocation2 + $0x48] sm:$0xe]  ;;  %v3586_v5 = vld [vmem:[#allocation2 + $0x54] sm:$0xe] }
 0x218   : > { %13028 = vmatprep.mubr.bf16.mxu0 %v11855_v7  ;;  %v3581_v7 = vld [vmem:[#allocation2 + $0x18] sm:$0xe]  ;;  %v11883_v37 = vcombine.low %v3647_v33, %v3650_v24  ;;  %v3671_v10 = vsel %vm15456_vm13, %v3669_v46, %v3670_v49  ;;  %v11872_v21 = vrot.slane %v3585_v38, 9  ;;  %v3684_v33 = vrot.slane %v15632_v19, 5  ;;  %v3590_v13 = vld [vmem:[#allocation2 + $0x84] sm:$0xe] }
 0x219   : > { %v11868_v60 = vrot.slane %v3581_v7, 9  ;;  %v11886_v16 = vcombine.low %v3668_v50, %v3671_v10  ;;  %v11873_v57 = vrot.slane %v3586_v5, 9  ;;  %v3691_v7 = vrot.slane %v15643_v32, 5  ;;  %v14343_v10 = vld [vmem:[#allocation6 + $0x1b8] sm:$0xff]  }
 0x21a   : > { %v3682_v27 = vsel %vm15456_vm13, %v11872_v21, %v3681_v54  ;;  %v3702_v32 = vrot.slane %v15650_v56, 5  ;;  %v3705_v29 = vrot.slane %v15674_v12, 5  ;;  %v3589_v12 = vld [vmem:[#allocation2 + $0x78] sm:$0xe]  ;;  %v3719_v50 = vrot.slane %v15716_v45, 5 }
 0x21b   : > { %v3654_v26 = vsel %vm15456_vm13, %v11868_v60, %v3653_v15  ;;  %v3683_v15 = vrot.slane %v3681_v54, 4  ;;  %v3587_v60 = vld [vmem:[#allocation2 + $0x60] sm:$0xe]  ;;  %v3591_v45 = vld [vmem:[#allocation2 + $0x90] sm:$0xe]  ;;  %v3730_v38 = vrot.slane %v15722_v41, 5 }
 0x21c   : > { %v11884_v48 = vcombine.low %v3654_v26, %v3657_v63  ;;  %v11874_v62 = vrot.slane %v3587_v60, 9  ;;  %v3698_v63 = vrot.slane %v15665_v17, 5  ;;  %v3704_v30 = vrot.slane %v3702_v32, 4  ;;  %v3594_v60 = vld [vmem:[#allocation2 + $0xb4] sm:$0xe] }
 0x21f   : > { %13029 = vmatmul.mubr.bf16.gmra.mrb[24].mxu0 %v11856_v53  ;;  %v11871_v53 = vrot.slane %v3584_v9, 9  ;;  %v3706_v9 = vsel %vm15456_vm13, %v3704_v30, %v3705_v29  ;;  %v3751_v29 = vrot.slane %v15769_v8, 5 }
 0x220   : > { %13032 = vmatprep.mubr.bf16.mxu0 %v11857_v59  ;;  %v3676_v59 = vrot.slane %v3674_v47, 4 }
 0x221   : > { %v3675_v14 = vsel %vm15456_vm13, %v11871_v53, %v3674_v47  ;;  %v3709_v47 = vrot.slane %v15663_v39, 5  ;;  %v11877_v39 = vrot.slane %v3590_v13, 9  ;;  %v14345_v13 = vld [vmem:[#allocation2 + $0x24] sm:$0xff]  }
 0x222   : > { %v3678_v36 = vsel %vm15456_vm13, %v3676_v59, %v3677_v34  ;;  %v3712_v59 = vrot.slane %v15701_v3, 5 }
 0x223   : > { %v11887_v35 = vcombine.low %v3675_v14, %v3678_v36  ;;  %v3711_v53 = vrot.slane %v3709_v47, 4  ;;  %v3723_v14 = vrot.slane %v15718_v6, 5 }
 0x225   : > { %v3713_v54 = vsel %vm15456_vm13, %v3711_v53, %v3712_v59  ;;  %v3725_v21 = vrot.slane %v3723_v14, 4  ;;  %v14350_v53 = vld [vmem:[#allocation2 + $0x48] sm:$0xff]   ;;  %v14355_v59 = vld [vmem:[#allocation6 + $0x1d8] sm:$0xff]  }
 0x227   : > { %13033 = vmatmul.mubr.bf16.gmra.mrb[28].mxu0 %v11858_v1  ;;  %v3695_v1 = vrot.slane %v15638_v28, 5  ;;  %v11875_v28 = vrot.slane %v3588_v40, 9 }
 0x228   : > { %13052 = vmatprep.mubr.bf16.mxu0 %v11883_v37 }
 0x229   : > { %v3697_v26 = vrot.slane %v3695_v1, 4  ;;  %v3696_v56 = vsel %vm15456_vm13, %v11874_v62, %v3695_v1  ;;  %v3703_v17 = vsel %vm15456_vm13, %v11875_v28, %v3702_v32  ;;  %v3593_v1 = vld [vmem:[#allocation2 + $0xa8] sm:$0xe]  ;;  %v11881_v62 = vrot.slane %v3594_v60, 9 }
 0x22a   : > { %v11891_v49 = vcombine.low %v3703_v17, %v3706_v9  ;;  %v11880_v40 = vrot.slane %v3593_v1, 9  ;;  %v3753_v17 = vrot.slane %v3751_v29, 4  ;;  %v3754_v9 = vrot.slane %v15788_v51, 5  ;;  %v14352_v51 = vld [vmem:[#allocation6 + $0x1d0] sm:$0xff]  }
 0x22b   : > { %v3699_v18 = vsel %vm15456_vm13, %v3697_v26, %v3698_v63  ;;  %v3747_v63 = vrot.slane %v15778_v52, 5 }
 0x22c   : > { %v11890_v46 = vcombine.low %v3696_v56, %v3699_v18  ;;  %v3595_v56 = vld [vmem:[#allocation2 + $0xc0] sm:$0xe]  ;;  %v3755_v8 = vsel %vm15456_vm13, %v3753_v17, %v3754_v9  ;;  %v15928_v9 = vld [vmem:[#allocation2 + $0x38] sm:$0x1] }
 0x22d   : > { %v11882_v52 = vrot.slane %v3595_v56, 9 }
 0x22f   : > { %13053 = vmatmul.mubr.bf16.vlgmr.msra.gmra.mrb[0].mxu0 %v11884_v48  ;;  %v3716_v48 = vrot.slane %v15692_v4, 5 }
 0x230   : > { %13085 = vmatpush3.bf16.msra.mxu0 %v15765_v2  ;;  %13056 = vmatprep.mubr.bf16.mxu0 %v11885_v55  ;;  %v3688_v2 = vrot.slane %v15610_v25, 5  ;;  %v3685_v25 = vsel %vm15456_vm13, %v3683_v15, %v3684_v33  ;;  %v14342_v55 = vld [vmem:[#allocation6 + $0x1b0] sm:$0xff]   ;;  %v3726_v15 = vrot.slane %v15740_v0, 5  ;;  %v3732_v33 = vrot.slane %v3730_v38, 4 }
 0x231   : > { %13086 = vmatprep.subr.bf16.mxu0 %v14337_v11  ;;  %v11888_v42 = vcombine.low %v3682_v27, %v3685_v25  ;;  %v3718_v34 = vrot.slane %v3716_v48, 4  ;;  %v3717_v3 = vsel %vm15456_vm13, %v11877_v39, %v3716_v48  ;;  %v14358_v39 = vld [vmem:[#allocation6 + $0x1e0] sm:$0xff]  }
 0x232   : > { %v3690_v24 = vrot.slane %v3688_v2, 4  ;;  %v3689_v19 = vsel %vm15456_vm13, %v11873_v57, %v3688_v2  ;;  %v3592_v2 = vld [vmem:[#allocation2 + $0x9c] sm:$0xe]  ;;  %v18947_v57 = vld [vmem:[#allocation21_spill] sm:$0xff] }
 0x233   : > { %v3720_v36 = vsel %vm15456_vm13, %v3718_v34, %v3719_v50  ;;  %v11879_v6 = vrot.slane %v3592_v2, 9  ;;  %v14351_v34 = vld [vmem:[#allocation2 + $0x54] sm:$0xff]   ;;  %v14353_v50 = vld [vmem:[#allocation2 + $0x60] sm:$0xff]  }
 0x234   : > { %13087 = vmatpush3.bf16.msra.mxu0 %v14337_v11  ;;  %v3692_v37 = vsel %vm15456_vm13, %v3690_v24, %v3691_v7  ;;  %v11876_v11 = vrot.slane %v3589_v12, 9  ;;  %v3733_v24 = vrot.slane %v18947_v57, 5  ;;  %v3727_v7 = vsel %vm15456_vm13, %v3725_v21, %v3726_v15  ;;  %v14357_v2 = vld [vmem:[#allocation2 + $0x84] sm:$0xff]   ;;  %v14359_v15 = vld [vmem:[#allocation2 + $0x90] sm:$0xff]  }
 0x235   : > { %13088 = vmatprep.subr.bf16.mxu0 %v14338_v20  ;;  %v11889_v43 = vcombine.low %v3689_v19, %v3692_v37  ;;  %v3731_v25 = vsel %vm15456_vm13, %v11879_v6, %v3730_v38  ;;  %v18949_v19 = vld [vmem:[#allocation23_spill] sm:$0xff]  ;;  %v3752_v12 = vsel %vm15456_vm13, %v11882_v52, %v3751_v29  ;;  %v15906_v6 = vld [vmem:[#allocation2 + $0x28] sm:$0xf]  ;;  %v15925_v52 = vld [vmem:[#allocation2 + $0x40] sm:$0xf] }
 0x236   : > { %v3710_v4 = vsel %vm15456_vm13, %v11876_v11, %v3709_v47  ;;  %v3734_v0 = vsel %vm15456_vm13, %v3732_v33, %v3733_v24  ;;  %v3744_v37 = vrot.slane %v18949_v19, 5  ;;  %v11898_v48 = vcombine.low %v3752_v12, %v3755_v8  ;;  %v14348_v11 = vld [vmem:[#allocation2 + $0x3c] sm:$0xff]   ;;  %v4471_v24 = vld [vmem:[#allocation2 + $0x30] sm:$0xf] }
 0x237   : > { %13057 = vmatmul.mubr.bf16.gmra.mrb[4].mxu0 %v11886_v16  ;;  %v11892_v5 = vcombine.low %v3710_v4, %v3713_v54  ;;  %v11893_v16 = vcombine.low %v3717_v3, %v3720_v36  ;;  %v14364_v4 = vld [vmem:[#allocation6 + $0x1f0] sm:$0xff]   ;;  %v14367_v3 = vld [vmem:[#allocation6 + $0x1f8] sm:$0xff]   ;;  %v4465_v36 = vld [vmem:[#allocation2 + $0x18] sm:$0xf]  ;;  %v4547_v1 = vshll.u32 %v15906_v6, 16  ;;  %v4551_v19 = vshrl.u32 %v15906_v6, 16 }
 0x238   : > { %13060 = vmatprep.mubr.bf16.mxu0 %v11887_v35  ;;  %13089 = vmatpush3.bf16.msra.mxu0 %v14338_v20  ;;  %v14346_v20 = vld [vmem:[#allocation6 + $0x1c0] sm:$0xff]   ;;  %v11878_v35 = vrot.slane %v3591_v45, 9  ;;  %v3746_v26 = vrot.slane %v3744_v37, 4  ;;  %v14354_v54 = vld [vmem:[#allocation2 + $0x6c] sm:$0xff]  }
 0x239   : > { %13090 = vmatprep.subr.bf16.mxu0 %v14339_v31  ;;  %v15900_v45 = vld [vmem:[#allocation2 + $0x1c] sm:$0xf]  ;;  %v15923_v29 = vrot.slane %v4547_v1, 5 }
 0x23a   : > { %v3724_v41 = vsel %vm15456_vm13, %v11878_v35, %v3723_v14  ;;  %v14356_v14 = vld [vmem:[#allocation2 + $0x78] sm:$0xff]   ;;  %v4523_v35 = vshll.u32 %v15900_v45, 16  ;;  %v4527_v21 = vshrl.u32 %v15900_v45, 16 }
 0x23b   : > { %v11894_v32 = vcombine.low %v3724_v41, %v3727_v7  ;;  %v15902_v38 = vld [vmem:[#allocation6 + $0x200] sm:$0xff]  }
 0x23c   : > { %13091 = vmatpush3.bf16.msra.mxu0 %v14339_v31  ;;  %v18948_v31 = vld [vmem:[#allocation22_spill] sm:$0xff] }
 0x23d   : > { %13092 = vmatprep.subr.bf16.mxu0 %v14340_v61  ;;  %v3737_v27 = vrot.slane %v18948_v31, 5  ;;  %v15909_v31 = vrot.slane %v4523_v35, 5 }
 0x23f   : > { %13061 = vmatmul.mubr.bf16.gmra.mrb[8].mxu0 %v11888_v42  ;;  %v3739_v42 = vrot.slane %v3737_v27, 4  ;;  %v3738_v28 = vsel %vm15456_vm13, %v11880_v40, %v3737_v27  ;;  %v4529_v27 = vrot.slane %v4527_v21, 4  ;;  %v4480_v21 = vld [vmem:[#allocation2 + $0x54] sm:$0xf] }
 0x240   : > { %13064 = vmatprep.mubr.bf16.mxu0 %v11889_v43  ;;  %13093 = vmatpush3.bf16.msra.mxu0 %v14340_v61  ;;  %v11895_v61 = vcombine.low %v3731_v25, %v3734_v0  ;;  %v3740_v43 = vrot.slane %v15767_v58, 5  ;;  %v3748_v58 = vsel %vm15456_vm13, %v3746_v26, %v3747_v63  ;;  %v15911_v25 = vld [vmem:[#allocation2 + $0x34] sm:$0xf]  ;;  %v15913_v0 = vld [vmem:[#allocation2 + $0x20] sm:$0x1] }
 0x241   : > { %13094 = vmatprep.subr.bf16.mxu0 %v14341_v44  ;;  %v4571_v40 = vshll.u32 %v15911_v25, 16  ;;  %v4530_v26 = vor.u32 %v4529_v27, %v15909_v31  ;;  %v4533_v63 = vshll.u32 %v15913_v0, 16 }
 0x242   : > { %v3741_v30 = vsel %vm15456_vm13, %v3739_v42, %v3740_v43  ;;  %v4575_v42 = vshrl.u32 %v15911_v25, 16  ;;  %v14360_v43 = vld [vmem:[#allocation2 + $0x9c] sm:$0xff]  }
 0x243   : > { %v11896_v18 = vcombine.low %v3738_v28, %v3741_v30  ;;  %v15921_v28 = vld [vmem:[#allocation2 + $0x2c] sm:$0x1]  ;;  %v15930_v12 = vrot.slane %v4571_v40, 5  ;;  %v4634_v40 = vshrl.u32 %v4480_v21, 16 }
 0x244   : > { %13095 = vmatpush3.bf16.msra.mxu0 %v14341_v44  ;;  %v3745_v44 = vsel %vm15456_vm13, %v11881_v62, %v3744_v37  ;;  %v14362_v30 = vld [vmem:[#allocation2 + $0xa8] sm:$0xff]   ;;  %v4557_v17 = vshll.u32 %v15921_v28, 16  ;;  %v4577_v8 = vrot.slane %v4575_v42, 4 }
 0x245   : > { %13096 = vmatprep.subr.bf16.mxu0 %v14342_v55  ;;  %v11897_v47 = vcombine.low %v3745_v44, %v3748_v58  ;;  %v4553_v44 = vrot.slane %v4551_v19, 4  ;;  %v15961_v19 = vld [vmem:[#allocation2 + $0x58] sm:$0xf] }
 0x247   : > { %13065 = vmatmul.mubr.bf16.gmra.mrb[12].mxu0 %v11890_v46  ;;  %v14347_v46 = vld [vmem:[#allocation2 + $0x30] sm:$0xff]  }
 0x248   : > { %13068 = vmatprep.mubr.bf16.mxu0 %v11891_v49  ;;  %13097 = vmatpush3.bf16.msra.mxu0 %v14342_v55  ;;  %v14344_v55 = vld [vmem:[#allocation2 + $0x18] sm:$0xff]   ;;  %v14349_v49 = vld [vmem:[#allocation6 + $0x1c8] sm:$0xff]  }
 0x249   : > { %13098 = vmatprep.subr.bf16.mxu0 %v14343_v10 }
 0x24c   : > { %13099 = vmatpush3.bf16.msra.mxu0 %v14343_v10  ;;  %v14361_v10 = vld [vmem:[#allocation6 + $0x1e8] sm:$0xff]  }
 0x24d   : > { %13132 = vmatprep.subr.bf16.mxu0 %v14346_v20 }
 0x24f   : > { %13069 = vmatmul.mubr.bf16.gmra.mrb[16].mxu0 %v11892_v5  ;;  %v4514_v5 = vshrl.u32 %v4465_v36, 16 }
 0x250   : > { %13072 = vmatprep.mubr.bf16.mxu0 %v11893_v16  ;;  %v4517_v16 = vshll.u32 %v4465_v36, 16 }
 0x251   : > { %v4516_v41 = vrot.slane %v4514_v5, 4 }
 0x252   : > { %v4519_v7 = vrot.slane %v4517_v16, 5 }
 0x254   : > { %v4520_v62 = vor.u32 %v4519_v7, %v4516_v41 }
 0x257   : > { %13073 = vmatmul.mubr.bf16.gmra.mrb[20].mxu0 %v11894_v32  ;;  %v4562_v32 = vshrl.u32 %v4471_v24, 16 }
 0x258   : > { %13076 = vmatprep.mubr.bf16.mxu0 %v11895_v61  ;;  %v4565_v61 = vshll.u32 %v4471_v24, 16 }
 0x259   : > { %v4564_v56 = vrot.slane %v4562_v32, 4 }
 0x25f   : > { %13077 = vmatmul.mubr.bf16.gmra.mrb[24].mxu0 %v11896_v18  ;;  %v4567_v18 = vrot.slane %v4565_v61, 5 }
 0x260   : > { %13080 = vmatprep.mubr.bf16.mxu0 %v11897_v47  ;;  %v4474_v47 = vld [vmem:[#allocation2 + $0x3c] sm:$0xf] }
 0x267   : > { %13081 = vmatmul.mubr.bf16.gmra.mrb[28].mxu0 %v11898_v48  ;;  %v4521_v48 = vrot.slane %v4520_v62, 4 }
 0x268   : > { %13100 = vmatprep.mubr.bf16.mxu0 %v14344_v55  ;;  %v4531_v55 = vrot.slane %v4530_v26, 4  ;;  %v15969_v26 = vld [vmem:[#allocation2 + $0xd0] sm:$0xf] }
 0x26f   : > { %13101 = vmatmul.mubr.bf16.vlgmr.msra.gmra.mrb[0].mxu0 %v14345_v13  ;;  %v4535_v13 = vrot.slane %v4533_v63, 5  ;;  %v15971_v63 = vld [vmem:[#allocation2 + $0xd4] sm:$0x1] }
 0x270   : > { %13133 = vmatpush3.bf16.msra.mxu0 %v14346_v20  ;;  %13104 = vmatprep.mubr.bf16.mxu0 %v14347_v46  ;;  %v4468_v20 = vld [vmem:[#allocation2 + $0x24] sm:$0xf]  ;;  %v4477_v46 = vld [vmem:[#allocation2 + $0x48] sm:$0xf] }
 0x271   : > { %13134 = vmatprep.subr.bf16.mxu0 %v14349_v49  ;;  %v4538_v33 = vshrl.u32 %v4468_v20, 16  ;;  %v4541_v57 = vshll.u32 %v4468_v20, 16  ;;  %v4613_v36 = vshll.u32 %v4477_v46, 16  ;;  %v14363_v20 = vld [vmem:[#allocation2 + $0xb4] sm:$0xff]   ;;  %v4536_v5 = vsel %vm15051_vm7, %v4531_v55, %v4535_v13  ;;  %v15981_v55 = vld [vmem:[#allocation2 + $0x64] sm:$0xf] }
 0x273   : > { %v4540_v37 = vrot.slane %v4538_v33, 4  ;;  %v4543_v60 = vrot.slane %v4541_v57, 5  ;;  %v4615_v61 = vrot.slane %v4613_v36, 5  ;;  %v4671_v36 = vshrl.u32 %v15981_v55, 16 }
 0x274   : > { %13135 = vmatpush3.bf16.msra.mxu0 %v14349_v49  ;;  %v4554_v49 = vor.u32 %v4553_v44, %v15923_v29 }
 0x275   : > { %13136 = vmatprep.subr.bf16.mxu0 %v14352_v51  ;;  %v4544_v58 = vor.u32 %v4543_v60, %v4540_v37  ;;  %v15965_v60 = vld [vmem:[#allocation2 + $0x50] sm:$0x1] }
 0x276   : > { %v15952_v33 = vrot.slane %v4554_v49, 4 }
 0x277   : > { %13105 = vmatmul.mubr.bf16.gmra.mrb[4].mxu0 %v14348_v11  ;;  %v4589_v11 = vshll.u32 %v4474_v47, 16 }
 0x278   : > { %13108 = vmatprep.mubr.bf16.mxu0 %v14350_v53  ;;  %13137 = vmatpush3.bf16.msra.mxu0 %v14352_v51  ;;  %v4586_v51 = vshrl.u32 %v4474_v47, 16  ;;  %v4595_v53 = vshll.u32 %v15925_v52, 16  ;;  %v5393_v47 = vrot.slane %v15971_v63, 5 }
 0x279   : > { %13138 = vmatprep.subr.bf16.mxu0 %v14355_v59  ;;  %v4591_v24 = vrot.slane %v4589_v11, 5  ;;  %v14366_v11 = vld [vmem:[#allocation2 + $0xcc] sm:$0xff]  }
 0x27a   : > { %v4588_v57 = vrot.slane %v4586_v51, 4  ;;  %v15954_v41 = vrot.slane %v4595_v53, 5 }
 0x27c   : > { %13139 = vmatpush3.bf16.msra.mxu0 %v14355_v59  ;;  %v15934_v59 = vld [vmem:[#allocation2 + $0x4c] sm:$0xf]  ;;  %v4592_v44 = vor.u32 %v4591_v24, %v4588_v57 }
 0x27d   : > { %13140 = vmatprep.subr.bf16.mxu0 %v14358_v39  ;;  %v4619_v16 = vshll.u32 %v15934_v59, 16  ;;  %v4623_v35 = vshrl.u32 %v15934_v59, 16 }
 0x27e   : > { %v16010_v57 = vrot.slane %v4592_v44, 4 }
 0x27f   : > { %13109 = vmatmul.mubr.bf16.gmra.mrb[8].mxu0 %v14351_v34  ;;  %v4568_v34 = vor.u32 %v4567_v18, %v4564_v56  ;;  %v4625_v62 = vrot.slane %v4623_v35, 4  ;;  %v5234_v56 = vld [vmem:[#allocation2 + $0xcc] sm:$0xe]  ;;  %v5390_v18 = vrot.slane %v15969_v26, 5 }
 0x280   : > { %13112 = vmatprep.mubr.bf16.mxu0 %v14353_v50  ;;  %13141 = vmatpush3.bf16.msra.mxu0 %v14358_v39  ;;  %v15936_v39 = vrot.slane %v4544_v58, 4  ;;  %v4581_v50 = vshll.u32 %v15928_v9, 16  ;;  %v4483_v58 = vld [vmem:[#allocation2 + $0x60] sm:$0xf]  ;;  %v11970_v13 = vrot.slane %v5234_v56, 9 }
 0x281   : > { %13142 = vmatprep.subr.bf16.mxu0 %v14361_v10  ;;  %v15956_v7 = vrot.slane %v4568_v34, 4  ;;  %v5392_v51 = vrot.slane %v5390_v18, 4  ;;  %v4658_v34 = vshrl.u32 %v4483_v58, 16 }
 0x282   : > { %v15958_v27 = vrot.slane %v4581_v50, 5  ;;  %v15988_v50 = vsel %vm15456_vm13, %v11970_v13, %v5390_v18 }
 0x283   : > { %18950 = vst [vmem:[#allocation21_spill] sm:$0xff] %v15988_v50  ;;  %v16142_v50 = vld [vmem:[#allocation2 + $0xb8] sm:$0xf] }
 0x284   : > { %13143 = vmatpush3.bf16.msra.mxu0 %v14361_v10  ;;  %v4599_v10 = vshrl.u32 %v15925_v52, 16  ;;  %18954 = vst [vmem:[#allocation25_spill] sm:$0xff] %v16142_v50 }
 0x285   : > { %13144 = vmatprep.subr.bf16.mxu0 %v14364_v4 }
 0x287   : > { %13113 = vmatmul.mubr.bf16.gmra.mrb[12].mxu0 %v14354_v54  ;;  %v4578_v54 = vor.u32 %v4577_v8, %v15930_v12  ;;  %v4643_v8 = vshll.u32 %v15961_v19, 16 }
 0x288   : > { %13116 = vmatprep.mubr.bf16.mxu0 %v14356_v14  ;;  %13145 = vmatpush3.bf16.msra.mxu0 %v14364_v4  ;;  %v15940_v4 = vrot.slane %v4557_v17, 5  ;;  %v15943_v14 = vld [vmem:[#allocation2 + $0x44] sm:$0x1]  ;;  %v4637_v17 = vshll.u32 %v4480_v21, 16 }
 0x289   : > { %13146 = vmatprep.subr.bf16.mxu0 %v14367_v3  ;;  %v4605_v1 = vshll.u32 %v15943_v14, 16  ;;  %v15963_v37 = vrot.slane %v4578_v54, 4  ;;  %v4661_v54 = vshll.u32 %v4483_v58, 16 }
 0x28a   : > { %v4560_v21 = vsel %vm15051_vm7, %v15952_v33, %v15940_v4  ;;  %v4486_v33 = vld [vmem:[#allocation2 + $0x6c] sm:$0xf] }
 0x28b   : > { %v16012_v24 = vrot.slane %v4605_v1, 5  ;;  %v4673_v1 = vrot.slane %v4671_v36, 4  ;;  %v16054_v36 = vld [vmem:[#allocation2 + $0x74] sm:$0x1] }
 0x28c   : > { %13147 = vmatpush3.bf16.msra.mxu0 %v14367_v3  ;;  %v4610_v3 = vshrl.u32 %v4477_v46, 16 }
 0x28d   : > { %13180 = vmatprep.subr.bf16.mxu0 %v15902_v38 }
 0x28e   : > { %v4612_v32 = vrot.slane %v4610_v3, 4  ;;  %v4667_v3 = vshll.u32 %v15981_v55, 16 }
 0x28f   : > { %13117 = vmatmul.mubr.bf16.gmra.mrb[16].mxu0 %v14357_v2  ;;  %v4526_v2 = vsel %vm15051_vm7, %v4521_v48, %v15909_v31  ;;  %v4601_v31 = vrot.slane %v4599_v10, 4  ;;  %v4647_v48 = vshrl.u32 %v15961_v19, 16  ;;  %v15990_v10 = vld [vmem:[#allocation2 + $0x5c] sm:$0x1] }
 0x290   : > { %13120 = vmatprep.mubr.bf16.mxu0 %v14359_v15  ;;  %v14365_v15 = vld [vmem:[#allocation2 + $0xc0] sm:$0xff]   ;;  %v11931_v42 = vcombine.low %v4526_v2, %v4536_v5  ;;  %v4616_v49 = vor.u32 %v4615_v61, %v4612_v32  ;;  %v4639_v2 = vrot.slane %v4637_v17, 5  ;;  %v15998_v5 = vrot.slane %v4643_v8, 5 }
 0x291   : > { %v4602_v46 = vor.u32 %v4601_v31, %v15954_v41  ;;  %v4584_v31 = vsel %vm15051_vm7, %v15963_v37, %v15958_v27  ;;  %v4653_v4 = vshll.u32 %v15990_v10, 16  ;;  %v16028_v37 = vld [vmem:[#allocation2 + $0x68] sm:$0x1]  ;;  %v4682_v17 = vshrl.u32 %v4486_v33, 16 }
 0x292   : > { %v4617_v44 = vrot.slane %v4616_v49, 4  ;;  %v4685_v8 = vshll.u32 %v4486_v33, 16  ;;  %v4489_v49 = vld [vmem:[#allocation2 + $0x78] sm:$0xf] }
 0x293   : > { %v16018_v32 = vrot.slane %v4602_v46, 4 }
 0x297   : > { %13121 = vmatmul.mubr.bf16.gmra.mrb[20].mxu0 %v14360_v43  ;;  %v15967_v43 = vrot.slane %v4619_v16, 5  ;;  %v4649_v16 = vrot.slane %v4647_v48, 4  ;;  %v4608_v48 = vsel %vm15051_vm7, %v16018_v32, %v16012_v24  ;;  %v16058_v24 = vld [vmem:[#allocation2 + $0x88] sm:$0xf] }
 0x298   : > { %13124 = vmatprep.mubr.bf16.mxu0 %v14362_v30  ;;  %v4550_v30 = vsel %vm15051_vm7, %v15936_v39, %v15923_v29  ;;  %v4629_v29 = vshll.u32 %v15965_v60, 16  ;;  %v4636_v39 = vrot.slane %v4634_v40, 4  ;;  %v4660_v40 = vrot.slane %v4658_v34, 4 }
 0x299   : > { %v4626_v53 = vor.u32 %v4625_v62, %v15967_v43  ;;  %v16025_v62 = vld [vmem:[#allocation2 + $0x70] sm:$0xf]  ;;  %v4650_v27 = vor.u32 %v4649_v16, %v15998_v5  ;;  %v11932_v18 = vcombine.low %v4550_v30, %v4560_v21  ;;  %v14369_v30 = vld [vmem:[#allocation6 + $0x208] sm:$0xff]   ;;  %v4706_v16 = vshrl.u32 %v4489_v49, 16 }
 0x29a   : > { %v16020_v61 = vrot.slane %v4629_v29, 5  ;;  %v4640_v56 = vor.u32 %v4639_v2, %v4636_v39  ;;  %v4691_v13 = vshll.u32 %v16025_v62, 16  ;;  %v4695_v46 = vshrl.u32 %v16025_v62, 16  ;;  %v16040_v29 = vld [vmem:[#allocation2 + $0x7c] sm:$0xf] }
 0x29b   : > { %v4627_v58 = vrot.slane %v4626_v53, 4  ;;  %v4622_v39 = vsel %vm15051_vm7, %v4617_v44, %v15967_v43  ;;  %v4492_v2 = vld [vmem:[#allocation2 + $0x84] sm:$0xf]  ;;  %v4709_v21 = vshll.u32 %v4489_v49, 16  ;;  %v4684_v43 = vrot.slane %v4682_v17, 4 }
 0x29c   : > { %v16060_v32 = vrot.slane %v4691_v13, 5  ;;  %v4730_v44 = vshrl.u32 %v4492_v2, 16 }
 0x29d   : > { %v4632_v34 = vsel %vm15051_vm7, %v4627_v58, %v16020_v61  ;;  %v4697_v61 = vrot.slane %v4695_v46, 4  ;;  %v4733_v58 = vshll.u32 %v4492_v2, 16  ;;  %v4711_v17 = vrot.slane %v4709_v21, 5 }
 0x29e   : > { %v4732_v2 = vrot.slane %v4730_v44, 4 }
 0x29f   : > { %13125 = vmatmul.mubr.bf16.gmra.mrb[24].mxu0 %v14363_v20  ;;  %v15996_v20 = vsel %vm15456_vm13, %v5392_v51, %v5393_v47  ;;  %v16042_v51 = vrot.slane %v4653_v4, 5  ;;  %v4698_v49 = vor.u32 %v4697_v61, %v16060_v32 }
 0x2a0   : > { %13128 = vmatprep.mubr.bf16.mxu0 %v14365_v15  ;;  %18951 = vst [vmem:[#allocation22_spill] sm:$0xff] %v15996_v20  ;;  %v4574_v15 = vsel %vm15051_vm7, %v15956_v7, %v15930_v12  ;;  %v4663_v12 = vrot.slane %v4661_v54, 5  ;;  %v16023_v7 = vrot.slane %v4667_v3, 5  ;;  %v16052_v54 = vrot.slane %v4640_v56, 4 }
 0x2a1   : > { %v11933_v47 = vcombine.low %v4574_v15, %v4584_v31  ;;  %v4651_v3 = vrot.slane %v4650_v27, 4  ;;  %v4715_v15 = vshll.u32 %v16040_v29, 16  ;;  %v4687_v31 = vrot.slane %v4685_v8, 5 }
 0x2a2   : > { %v4674_v53 = vor.u32 %v4673_v1, %v16023_v7  ;;  %v14370_v1 = vld [vmem:[#allocation6 + $0x210] sm:$0xff]   ;;  %v4739_v56 = vshll.u32 %v16058_v24, 16  ;;  %v4743_v27 = vshrl.u32 %v16058_v24, 16 }
 0x2a3   : > { %v16066_v8 = vrot.slane %v4715_v15, 5  ;;  %v4688_v46 = vor.u32 %v4687_v31, %v4684_v43  ;;  %v16085_v15 = vld [vmem:[#allocation2 + $0x94] sm:$0xf]  ;;  %v16095_v43 = vrot.slane %v4698_v49, 4 }
 0x2a4   : > { %v4675_v33 = vrot.slane %v4674_v53, 4  ;;  %v4646_v53 = vsel %vm15051_vm7, %v16052_v54, %v15998_v5  ;;  %v4745_v21 = vrot.slane %v4743_v27, 4  ;;  %v4498_v27 = vld [vmem:[#allocation2 + $0x9c] sm:$0xf] }
 0x2a7   : > { %13129 = vmatmul.mubr.bf16.gmra.mrb[28].mxu0 %v14366_v11  ;;  %v4664_v11 = vor.u32 %v4663_v12, %v4660_v40  ;;  %v4701_v12 = vshll.u32 %v16054_v36, 16 }
 0x2a8   : > { %13148 = vmatprep.mubr.bf16.mxu0 %v11931_v42  ;;  %v4598_v42 = vsel %vm15051_vm7, %v16010_v57, %v15954_v41  ;;  %v4677_v41 = vshll.u32 %v16028_v37, 16  ;;  %v4719_v57 = vshrl.u32 %v16040_v29, 16 }
 0x2a9   : > { %v4665_v4 = vrot.slane %v4664_v11, 4  ;;  %v16069_v11 = vld [vmem:[#allocation2 + $0x80] sm:$0x1] }
 0x2aa   : > { %v4679_v40 = vrot.slane %v4677_v41, 5  ;;  %v4721_v13 = vrot.slane %v4719_v57, 4  ;;  %v4656_v41 = vsel %vm15051_vm7, %v4651_v3, %v16042_v51  ;;  %v16091_v3 = vld [vmem:[#allocation2 + $0x8c] sm:$0x1]  ;;  %v16093_v57 = vrot.slane %v4688_v46, 4 }
 0x2ab   : > { %v16101_v46 = vld [vmem:[#allocation2 + $0x98] sm:$0x1] }
 0x2ac   : > { %v4680_v5 = vsel %vm15051_vm7, %v4675_v33, %v4679_v40  ;;  %v4722_v54 = vor.u32 %v4721_v13, %v16066_v8  ;;  %v4767_v33 = vshrl.u32 %v16085_v15, 16  ;;  %v11936_v40 = vcombine.low %v4646_v53, %v4656_v41  ;;  %v16111_v41 = vld [vmem:[#allocation2 + $0xa0] sm:$0xf] }
 0x2ae   : > { %v4723_v13 = vrot.slane %v4722_v54, 4 }
 0x2af   : > { %13149 = vmatmul.mubr.bf16.vlgmr.msra.gmra.mrb[0].mxu0 %v11932_v18  ;;  %v4708_v18 = vrot.slane %v4706_v16, 4  ;;  %v16083_v16 = vrot.slane %v4739_v56, 5  ;;  %v14372_v56 = vld [vmem:[#allocation6 + $0x220] sm:$0xff]  }
 0x2b0   : > { %13181 = vmatpush3.bf16.msra.mxu0 %v15902_v38  ;;  %13152 = vmatprep.mubr.bf16.mxu0 %v11933_v47  ;;  %v11934_v38 = vcombine.low %v4598_v42, %v4608_v48  ;;  %v11935_v47 = vcombine.low %v4622_v39, %v4632_v34  ;;  %v4670_v42 = vsel %vm15051_vm7, %v4665_v4, %v16023_v7  ;;  %v16081_v48 = vrot.slane %v4701_v12, 5  ;;  %v14371_v39 = vld [vmem:[#allocation6 + $0x218] sm:$0xff]  }
 0x2b1   : > { %13182 = vmatprep.subr.bf16.mxu0 %v14369_v30  ;;  %v4495_v34 = vld [vmem:[#allocation2 + $0x90] sm:$0xf]  ;;  %v4712_v51 = vor.u32 %v4711_v17, %v4708_v18  ;;  %v4725_v7 = vshll.u32 %v16069_v11, 16  ;;  %v4763_v4 = vshll.u32 %v16085_v15, 16  ;;  %v4746_v44 = vor.u32 %v4745_v21, %v16083_v16 }
 0x2b2   : > { %v4754_v31 = vshrl.u32 %v4495_v34, 16  ;;  %v4757_v61 = vshll.u32 %v4495_v34, 16  ;;  %v11937_v18 = vcombine.low %v4670_v42, %v4680_v5  ;;  %v4501_v42 = vld [vmem:[#allocation2 + $0xa8] sm:$0xf]  ;;  %v4781_v21 = vshll.u32 %v4498_v27, 16 }
 0x2b3   : > { %v4713_v17 = vrot.slane %v4712_v51, 4  ;;  %v16113_v34 = vrot.slane %v4763_v4, 5  ;;  %v16115_v5 = vld [vmem:[#allocation2 + $0xac] sm:$0xf] }
 0x2b4   : > { %13183 = vmatpush3.bf16.msra.mxu0 %v14369_v30  ;;  %v4735_v30 = vrot.slane %v4733_v58, 5  ;;  %v4749_v58 = vshll.u32 %v16091_v3, 16  ;;  %v4756_v49 = vrot.slane %v4754_v31, 4  ;;  %v4759_v53 = vrot.slane %v4757_v61, 5 }
 0x2b5   : > { %13184 = vmatprep.subr.bf16.mxu0 %v14370_v1  ;;  %v4802_v31 = vshrl.u32 %v4501_v42, 16  ;;  %v4718_v61 = vsel %vm15051_vm7, %v4713_v17, %v16066_v8  ;;  %v4783_v35 = vrot.slane %v4781_v21, 5 }
 0x2b6   : > { %v4736_v12 = vor.u32 %v4735_v30, %v4732_v2  ;;  %v4769_v2 = vrot.slane %v4767_v33, 4  ;;  %v4778_v30 = vshrl.u32 %v4498_v27, 16  ;;  %v4751_v54 = vrot.slane %v4749_v58, 5 }
 0x2b7   : > { %13153 = vmatmul.mubr.bf16.gmra.mrb[4].mxu0 %v11934_v38  ;;  %v4727_v38 = vrot.slane %v4725_v7, 5  ;;  %v4773_v7 = vshll.u32 %v16101_v46, 16  ;;  %v4811_v33 = vshll.u32 %v16115_v5, 16 }
 0x2b8   : > { %13156 = vmatprep.mubr.bf16.mxu0 %v11935_v47  ;;  %13185 = vmatpush3.bf16.msra.mxu0 %v14370_v1  ;;  %v4694_v1 = vsel %vm15051_vm7, %v16093_v57, %v16060_v32  ;;  %v4704_v47 = vsel %vm15051_vm7, %v16095_v43, %v16081_v48  ;;  %v4737_v51 = vrot.slane %v4736_v12, 4  ;;  %v4747_v32 = vrot.slane %v4746_v44, 4  ;;  %v14373_v48 = vld [vmem:[#allocation6 + $0x228] sm:$0xff]  }
 0x2b9   : > { %13186 = vmatprep.subr.bf16.mxu0 %v14371_v39  ;;  %v4787_v57 = vshll.u32 %v16111_v41, 16  ;;  %v4791_v43 = vshrl.u32 %v16111_v41, 16  ;;  %v4728_v4 = vsel %vm15051_vm7, %v4723_v13, %v4727_v38  ;;  %v4815_v12 = vshrl.u32 %v16115_v5, 16  ;;  %v16133_v13 = vld [vmem:[#allocation2 + $0xa4] sm:$0x1]  ;;  %v14374_v38 = vld [vmem:[#allocation6 + $0x230] sm:$0xff]  }
 0x2ba   : > { %v4760_v44 = vor.u32 %v4759_v53, %v4756_v49  ;;  %v4770_v58 = vor.u32 %v4769_v2, %v16113_v34  ;;  %v4780_v27 = vrot.slane %v4778_v30, 4  ;;  %v4752_v8 = vsel %vm15051_vm7, %v4747_v32, %v4751_v54  ;;  %18952 = vst [vmem:[#allocation23_spill] sm:$0xff] %v16133_v13  ;;  %v16137_v30 = vld [vmem:[#allocation2 + $0xb0] sm:$0x1] }
 0x2bb   : > { %v4775_v17 = vrot.slane %v4773_v7, 5  ;;  %v11938_v53 = vcombine.low %v4694_v1, %v4704_v47  ;;  %v11939_v2 = vcombine.low %v4718_v61, %v4728_v4  ;;  %18953 = vst [vmem:[#allocation24_spill] sm:$0xff] %v16137_v30  ;;  %v16139_v21 = vrot.slane %v4811_v33, 5  ;;  %v4507_v61 = vld [vmem:[#allocation2 + $0xc0] sm:$0xf] }
 0x2bc   : > { %13187 = vmatpush3.bf16.msra.mxu0 %v14371_v39  ;;  %v4805_v39 = vshll.u32 %v4501_v42, 16  ;;  %v16135_v42 = vrot.slane %v4787_v57, 5  ;;  %v4761_v20 = vrot.slane %v4760_v44, 4  ;;  %v4771_v32 = vrot.slane %v4770_v58, 4  ;;  %v16146_v4 = vld [vmem:[#allocation2 + $0xc4] sm:$0xf] }
 0x2bd   : > { %13188 = vmatprep.subr.bf16.mxu0 %v14372_v56  ;;  %v4784_v54 = vor.u32 %v4783_v35, %v4780_v27  ;;  %v4797_v7 = vshll.u32 %v16133_v13, 16  ;;  %v4510_v13 = vld [vmem:[#allocation2 + $0xcc] sm:$0xf] }
 0x2be   : > { %v4807_v49 = vrot.slane %v4805_v39, 5  ;;  %v4766_v44 = vsel %vm15051_vm7, %v4761_v20, %v16113_v34  ;;  %v4776_v58 = vsel %vm15051_vm7, %v4771_v32, %v4775_v17 }
 0x2bf   : > { %13157 = vmatmul.mubr.bf16.gmra.mrb[8].mxu0 %v11936_v40  ;;  %v4742_v40 = vsel %vm15051_vm7, %v4737_v51, %v16083_v16  ;;  %v4817_v16 = vrot.slane %v4815_v12, 4  ;;  %v4504_v51 = vld [vmem:[#allocation2 + $0xb4] sm:$0xf]  ;;  %v4839_v12 = vshrl.u32 %v16142_v50, 16  ;;  %v4785_v27 = vrot.slane %v4784_v54, 4 }
 0x2c0   : > { %13160 = vmatprep.mubr.bf16.mxu0 %v11937_v18  ;;  %13189 = vmatpush3.bf16.msra.mxu0 %v14372_v56  ;;  %v4793_v56 = vrot.slane %v4791_v43, 4  ;;  %v4804_v18 = vrot.slane %v4802_v31, 4  ;;  %v11940_v57 = vcombine.low %v4742_v40, %v4752_v8  ;;  %v14375_v43 = vld [vmem:[#allocation6 + $0x238] sm:$0xff]   ;;  %v4821_v31 = vshll.u32 %v16137_v30, 16  ;;  %v16158_v30 = vld [vmem:[#allocation2 + $0xbc] sm:$0x1] }
 0x2c1   : > { %13190 = vmatprep.subr.bf16.mxu0 %v14373_v48  ;;  %v4826_v39 = vshrl.u32 %v4504_v51, 16  ;;  %v4818_v35 = vor.u32 %v4817_v16, %v16139_v21  ;;  %v4829_v33 = vshll.u32 %v4504_v51, 16  ;;  %v4799_v40 = vrot.slane %v4797_v7, 5 }
 0x2c2   : > { %v4794_v1 = vor.u32 %v4793_v56, %v16135_v42  ;;  %v4808_v47 = vor.u32 %v4807_v49, %v4804_v18  ;;  %v4850_v8 = vshrl.u32 %v4507_v61, 16  ;;  %v4853_v56 = vshll.u32 %v4507_v61, 16 }
 0x2c3   : > { %v4859_v18 = vshll.u32 %v16146_v4, 16  ;;  %v4863_v49 = vshrl.u32 %v16146_v4, 16  ;;  %v4828_v51 = vrot.slane %v4826_v39, 4  ;;  %v4831_v20 = vrot.slane %v4829_v33, 5  ;;  %v16166_v39 = vld [vmem:[#allocation2 + $0xc8] sm:$0x1] }
 0x2c4   : > { %13191 = vmatpush3.bf16.msra.mxu0 %v14373_v48  ;;  %v4835_v48 = vshll.u32 %v16142_v50, 16  ;;  %v4809_v16 = vrot.slane %v4808_v47, 4  ;;  %v4819_v50 = vrot.slane %v4818_v35, 4  ;;  %v4841_v17 = vrot.slane %v4839_v12, 4 }
 0x2c5   : > { %13192 = vmatprep.subr.bf16.mxu0 %v14374_v38  ;;  %v11941_v32 = vcombine.low %v4766_v44, %v4776_v58  ;;  %v4855_v54 = vrot.slane %v4853_v56, 5  ;;  %v4861_v7 = vrot.slane %v4859_v18, 5  ;;  %v4865_v61 = vrot.slane %v4863_v49, 4 }
 0x2c6   : > { %v4837_v34 = vrot.slane %v4835_v48, 5  ;;  %v4832_v33 = vor.u32 %v4831_v20, %v4828_v51  ;;  %v4874_v12 = vshrl.u32 %v4510_v13, 16  ;;  %v4883_v44 = vshll.u32 %v15969_v26, 16 }
 0x2c7   : > { %13161 = vmatmul.mubr.bf16.gmra.mrb[12].mxu0 %v11938_v53  ;;  %v4795_v53 = vrot.slane %v4794_v1, 4  ;;  %v4790_v1 = vsel %vm15051_vm7, %v4785_v27, %v16135_v42  ;;  %v4877_v42 = vshll.u32 %v4510_v13, 16  ;;  %v4887_v58 = vshrl.u32 %v15969_v26, 16 }
 0x2c8   : > { %13164 = vmatprep.mubr.bf16.mxu0 %v11939_v2  ;;  %13193 = vmatpush3.bf16.msra.mxu0 %v14374_v38  ;;  %v4823_v2 = vrot.slane %v4821_v31, 5  ;;  %v4852_v38 = vrot.slane %v4850_v8, 4  ;;  %v4845_v31 = vshll.u32 %v16158_v30, 16  ;;  %v4842_v48 = vor.u32 %v4841_v17, %v4837_v34 }
 0x2c9   : > { %13194 = vmatprep.subr.bf16.mxu0 %v14375_v43  ;;  %v4800_v47 = vsel %vm15051_vm7, %v4795_v53, %v4799_v40  ;;  %v4866_v40 = vor.u32 %v4865_v61, %v4861_v7  ;;  %v4833_v18 = vrot.slane %v4832_v33, 4  ;;  %v4876_v53 = vrot.slane %v4874_v12, 4 }
 0x2ca   : > { %v4824_v35 = vsel %vm15051_vm7, %v4819_v50, %v4823_v2  ;;  %v4856_v27 = vor.u32 %v4855_v54, %v4852_v38  ;;  %v11942_v8 = vcombine.low %v4790_v1, %v4800_v47  ;;  %v4847_v49 = vrot.slane %v4845_v31, 5  ;;  %v5219_v31 = vld [vmem:[#allocation2 + $0x18] sm:$0xe] }
 0x2cb   : > { %v4879_v50 = vrot.slane %v4877_v42, 5  ;;  %v4889_v2 = vrot.slane %v4887_v58, 4  ;;  %v4867_v20 = vrot.slane %v4866_v40, 4  ;;  %v4838_v26 = vsel %vm15051_vm7, %v4833_v18, %v4837_v34  ;;  %v5220_v40 = vld [vmem:[#allocation2 + $0x24] sm:$0xe] }
 0x2cc   : > { %13195 = vmatpush3.bf16.msra.mxu0 %v14375_v43  ;;  %v4814_v43 = vsel %vm15051_vm7, %v4809_v16, %v16139_v21  ;;  %v4843_v21 = vrot.slane %v4842_v48, 4  ;;  %v4885_v16 = vrot.slane %v4883_v44, 5  ;;  %v4857_v51 = vrot.slane %v4856_v27, 4 }
 0x2cd   : > { %v11943_v56 = vcombine.low %v4814_v43, %v4824_v35  ;;  %v4893_v54 = vshll.u32 %v15971_v63, 16  ;;  %v5285_v47 = vrot.slane %v15900_v45, 5  ;;  %v11955_v12 = vrot.slane %v5219_v31, 9 }
 0x2ce   : > { %v4848_v17 = vsel %vm15051_vm7, %v4843_v21, %v4847_v49  ;;  %v4890_v38 = vor.u32 %v4889_v2, %v4885_v16  ;;  %v4862_v61 = vsel %vm15051_vm7, %v4857_v51, %v4861_v7  ;;  %v5288_v44 = vrot.slane %v15913_v0, 5  ;;  %v5221_v0 = vld [vmem:[#allocation2 + $0x30] sm:$0xe] }
 0x2cf   : > { %13165 = vmatmul.mubr.bf16.gmra.mrb[16].mxu0 %v11940_v57  ;;  %v4869_v57 = vshll.u32 %v16166_v39, 16  ;;  %v11944_v43 = vcombine.low %v4838_v26, %v4848_v17  ;;  %v4895_v48 = vrot.slane %v4893_v54, 5  ;;  %v5287_v42 = vrot.slane %v5285_v47, 4 }
 0x2d0   : > { %13168 = vmatprep.mubr.bf16.mxu0 %v11941_v32  ;;  %v4880_v32 = vor.u32 %v4879_v50, %v4876_v53  ;;  %v4891_v33 = vrot.slane %v4890_v38, 4  ;;  %v5292_v45 = vrot.slane %v15906_v6, 5  ;;  %v5286_v58 = vsel %vm15456_vm13, %v11955_v12, %v5285_v47 }
 0x2d1   : > { %v4871_v13 = vrot.slane %v4869_v57, 5  ;;  %v5289_v27 = vsel %vm15456_vm13, %v5287_v42, %v5288_v44  ;;  %v5299_v57 = vrot.slane %v15911_v25, 5  ;;  %v11956_v18 = vrot.slane %v5220_v40, 9  ;;  %v5226_v40 = vld [vmem:[#allocation2 + $0x6c] sm:$0xe] }
 0x2d2   : > { %v4881_v34 = vrot.slane %v4880_v32, 4  ;;  %v4896_v7 = vsel %vm15051_vm7, %v4891_v33, %v4895_v48  ;;  %v5294_v21 = vrot.slane %v5292_v45, 4  ;;  %v5295_v49 = vrot.slane %v15921_v28, 5 }
 0x2d3   : > { %v4872_v1 = vsel %vm15051_vm7, %v4867_v20, %v4871_v13  ;;  %v11957_v53 = vrot.slane %v5221_v0, 9  ;;  %v5301_v50 = vrot.slane %v5299_v57, 4  ;;  %v5302_v6 = vrot.slane %v15928_v9, 5  ;;  %v5222_v20 = vld [vmem:[#allocation2 + $0x3c] sm:$0xe] }
 0x2d4   : > { %v11945_v35 = vcombine.low %v4862_v61, %v4872_v1  ;;  %v4886_v63 = vsel %vm15051_vm7, %v4881_v34, %v4885_v16  ;;  %v5293_v16 = vsel %vm15456_vm13, %v11956_v18, %v5292_v45  ;;  %v5296_v2 = vsel %vm15456_vm13, %v5294_v21, %v5295_v49  ;;  %v5223_v9 = vld [vmem:[#allocation2 + $0x48] sm:$0xe] }
 0x2d5   : > { %v5306_v25 = vrot.slane %v15925_v52, 5  ;;  %v5300_v51 = vsel %vm15456_vm13, %v11957_v53, %v5299_v57  ;;  %v5303_v28 = vsel %vm15456_vm13, %v5301_v50, %v5302_v6  ;;  %v5313_v13 = vrot.slane %v15934_v59, 5 }
 0x2d6   : > { %v11972_v26 = vcombine.low %v5293_v16, %v5296_v2  ;;  %v11973_v17 = vcombine.low %v5300_v51, %v5303_v28  ;;  %v11958_v32 = vrot.slane %v5222_v20, 9  ;;  %v5309_v54 = vrot.slane %v15943_v14, 5  ;;  %v5228_v2 = vld [vmem:[#allocation2 + $0x84] sm:$0xe] }
 0x2d7   : > { %13169 = vmatmul.mubr.bf16.gmra.mrb[20].mxu0 %v11942_v8  ;;  %v11946_v8 = vcombine.low %v4886_v63, %v4896_v7  ;;  %v5308_v38 = vrot.slane %v5306_v25, 4  ;;  %v11959_v61 = vrot.slane %v5223_v9, 9  ;;  %v5315_v1 = vrot.slane %v5313_v13, 4 }
 0x2d8   : > { %13172 = vmatprep.mubr.bf16.mxu0 %v11943_v56  ;;  %v11971_v56 = vcombine.low %v5286_v58, %v5289_v27  ;;  %v5316_v52 = vrot.slane %v15965_v60, 5  ;;  %v5307_v47 = vsel %vm15456_vm13, %v11958_v32, %v5306_v25  ;;  %v5320_v59 = vrot.slane %v15961_v19, 5  ;;  %v5225_v60 = vld [vmem:[#allocation2 + $0x60] sm:$0xe] }
 0x2d9   : > { %v5310_v31 = vsel %vm15456_vm13, %v5308_v38, %v5309_v54  ;;  %v5327_v34 = vrot.slane %v15981_v55, 5  ;;  %v5323_v44 = vrot.slane %v15990_v10, 5  ;;  %v11961_v63 = vrot.slane %v5225_v60, 9  ;;  %v18956_v60 = vld [vmem:[#allocation24_spill] sm:$0xff] }
 0x2da   : > { %v5317_v14 = vsel %vm15456_vm13, %v5315_v1, %v5316_v52  ;;  %v11974_v33 = vcombine.low %v5307_v47, %v5310_v31  ;;  %v5322_v42 = vrot.slane %v5320_v59, 4  ;;  %v5330_v19 = vrot.slane %v16028_v37, 5  ;;  %v5227_v37 = vld [vmem:[#allocation2 + $0x78] sm:$0xe] }
 0x2db   : > { %v5329_v7 = vrot.slane %v5327_v34, 4  ;;  %v5334_v55 = vrot.slane %v16025_v62, 5  ;;  %v5328_v27 = vsel %vm15456_vm13, %v11961_v63, %v5327_v34  ;;  %v5341_v57 = vrot.slane %v16040_v29, 5  ;;  %v5232_v63 = vld [vmem:[#allocation2 + $0xb4] sm:$0xe] }
 0x2dc   : > { %v5324_v58 = vsel %vm15456_vm13, %v5322_v42, %v5323_v44  ;;  %v5337_v21 = vrot.slane %v16054_v36, 5  ;;  %v11963_v49 = vrot.slane %v5227_v37, 9  ;;  %v5344_v62 = vrot.slane %v16069_v11, 5  ;;  %v5229_v11 = vld [vmem:[#allocation2 + $0x90] sm:$0xe] }
 0x2dd   : > { %v5331_v10 = vsel %vm15456_vm13, %v5329_v7, %v5330_v19  ;;  %v5336_v18 = vrot.slane %v5334_v55, 4  ;;  %v5343_v53 = vrot.slane %v5341_v57, 4  ;;  %v5348_v29 = vrot.slane %v16058_v24, 5  ;;  %v5233_v19 = vld [vmem:[#allocation2 + $0xc0] sm:$0xe] }
 0x2de   : > { %v5342_v16 = vsel %vm15456_vm13, %v11963_v49, %v5341_v57  ;;  %v5355_v25 = vrot.slane %v16085_v15, 5  ;;  %v11964_v20 = vrot.slane %v5228_v2, 9  ;;  %v5351_v9 = vrot.slane %v16091_v3, 5 }
 0x2df   : > { %13173 = vmatmul.mubr.bf16.gmra.mrb[24].mxu0 %v11944_v43  ;;  %v5314_v43 = vsel %vm15456_vm13, %v11959_v61, %v5313_v13  ;;  %v5338_v6 = vsel %vm15456_vm13, %v5336_v18, %v5337_v21  ;;  %v5345_v36 = vsel %vm15456_vm13, %v5343_v53, %v5344_v62  ;;  %v5350_v13 = vrot.slane %v5348_v29, 4  ;;  %v5230_v61 = vld [vmem:[#allocation2 + $0x9c] sm:$0xe]  ;;  %v18958_v21 = vld [vmem:[#allocation21_spill] sm:$0xff]  ;;  %v16282_v62 = vld [vmem:[#allocation8] ss:$0 sm:$0xff] }
 0x2e0   : > { %13176 = vmatprep.mubr.bf16.mxu0 %v11945_v35  ;;  %v5224_v35 = vld [vmem:[#allocation2 + $0x54] sm:$0xe]  ;;  %v11975_v48 = vcombine.low %v5314_v43, %v5317_v14  ;;  %v11979_v28 = vcombine.low %v5342_v16, %v5345_v36  ;;  %v5358_v24 = vrot.slane %v16101_v46, 5  ;;  %v5349_v32 = vsel %vm15456_vm13, %v11964_v20, %v5348_v29  ;;  %v5231_v46 = vld [vmem:[#allocation2 + $0xa8] sm:$0xe] }
 0x2e1   : > { %v11960_v12 = vrot.slane %v5224_v35, 9  ;;  %v5352_v38 = vsel %vm15456_vm13, %v5350_v13, %v5351_v9  ;;  %v5362_v15 = vrot.slane %v16111_v41, 5  ;;  %v5369_v1 = vrot.slane %v16115_v5, 5  ;;  %v18955_v43 = vld [vmem:[#allocation23_spill] sm:$0xff]  ;;  %v18957_v5 = vld [vmem:[#allocation25_spill] sm:$0xff] }
 0x2e2   : > { %v11980_v52 = vcombine.low %v5349_v32, %v5352_v38  ;;  %v11966_v31 = vrot.slane %v5230_v61, 9  ;;  %v5365_v14 = vrot.slane %v18955_v43, 5  ;;  %v11967_v35 = vrot.slane %v5231_v46, 9 }
 0x2e3   : > { %v5321_v45 = vsel %vm15456_vm13, %v11960_v12, %v5320_v59  ;;  %v5364_v59 = vrot.slane %v5362_v15, 4  ;;  %v5371_v34 = vrot.slane %v5369_v1, 4  ;;  %v5372_v41 = vrot.slane %v18956_v60, 5 }
 0x2e4   : > { %v11976_v0 = vcombine.low %v5321_v45, %v5324_v58  ;;  %v5376_v12 = vrot.slane %v18957_v5, 5  ;;  %v5370_v42 = vsel %vm15456_vm13, %v11967_v35, %v5369_v1  ;;  %v5383_v7 = vrot.slane %v16146_v4, 5 }
 0x2e5   : > { %v5373_v44 = vsel %vm15456_vm13, %v5371_v34, %v5372_v41  ;;  %v5386_v37 = vrot.slane %v16166_v39, 5  ;;  %v18959_v39 = vld [vmem:[#allocation22_spill] sm:$0xff] }
 0x2e6   : > { %v11983_v58 = vcombine.low %v5370_v42, %v5373_v44  ;;  %v5385_v57 = vrot.slane %v5383_v7, 4  ;;  %v18960_v49 = vcombine.low %v18958_v21, %v18959_v39 }
 0x2e7   : > { %13177 = vmatmul.mubr.bf16.gmra.mrb[28].mxu0 %v11946_v8  ;;  %v11977_v8 = vcombine.low %v5328_v27, %v5331_v10  ;;  %v5378_v27 = vrot.slane %v5376_v12, 4  ;;  %v5379_v10 = vrot.slane %v16158_v30, 5 }
 0x2e8   : > { %13196 = vmatprep.mubr.bf16.mxu0 %v11971_v56  ;;  %v11962_v56 = vrot.slane %v5226_v40, 9  ;;  %v11969_v40 = vrot.slane %v5233_v19, 9 }
 0x2ea   : > { %v5335_v50 = vsel %vm15456_vm13, %v11962_v56, %v5334_v55  ;;  %v11968_v55 = vrot.slane %v5232_v63, 9  ;;  %v5384_v4 = vsel %vm15456_vm13, %v11969_v40, %v5383_v7  ;;  %v5387_v56 = vsel %vm15456_vm13, %v5385_v57, %v5386_v37 }
 0x2eb   : > { %v11978_v51 = vcombine.low %v5335_v50, %v5338_v6  ;;  %v11985_v30 = vcombine.low %v5384_v4, %v5387_v56 }
 0x2ef   : > { %13197 = vmatmul.mubr.bf16.vlgmr.msra.gmra.mrb[0].mxu0 %v11972_v26  ;;  %v11965_v26 = vrot.slane %v5229_v11, 9 }
 0x2f0   : > { %13200 = vmatprep.mubr.bf16.mxu0 %v11973_v17  ;;  %v5357_v17 = vrot.slane %v5355_v25, 4 }
 0x2f1   : > { %v5356_v54 = vsel %vm15456_vm13, %v11965_v26, %v5355_v25 }
 0x2f2   : > { %v5359_v3 = vsel %vm15456_vm13, %v5357_v17, %v5358_v24 }
 0x2f3   : > { %v11981_v47 = vcombine.low %v5356_v54, %v5359_v3 }
 0x2f7   : > { %13201 = vmatmul.mubr.bf16.gmra.mrb[4].mxu0 %v11974_v33  ;;  %v5363_v33 = vsel %vm15456_vm13, %v11966_v31, %v5362_v15 }
 0x2f8   : > { %13204 = vmatprep.mubr.bf16.mxu0 %v11975_v48  ;;  %v5366_v48 = vsel %vm15456_vm13, %v5364_v59, %v5365_v14 }
 0x2f9   : > { %v11982_v45 = vcombine.low %v5363_v33, %v5366_v48 }
 0x2ff   : > { %13205 = vmatmul.mubr.bf16.gmra.mrb[8].mxu0 %v11976_v0  ;;  %v5377_v0 = vsel %vm15456_vm13, %v11968_v55, %v5376_v12 }
 0x300   : > { %13208 = vmatprep.mubr.bf16.mxu0 %v11977_v8  ;;  %v5380_v8 = vsel %vm15456_vm13, %v5378_v27, %v5379_v10 }
 0x301   : > { %v11984_v18 = vcombine.low %v5377_v0, %v5380_v8 }
 0x307   : > { %13209 = vmatmul.mubr.bf16.gmra.mrb[12].mxu0 %v11978_v51 }
 0x308   : > { %13212 = vmatprep.mubr.bf16.mxu0 %v11979_v28 }
 0x30f   : > { %13213 = vmatmul.mubr.bf16.gmra.mrb[16].mxu0 %v11980_v52 }
 0x310   : > { %13216 = vmatprep.mubr.bf16.mxu0 %v11981_v47 }
 0x317   : > { %13217 = vmatmul.mubr.bf16.gmra.mrb[20].mxu0 %v11982_v45 }
 0x318   : > { %13220 = vmatprep.mubr.bf16.mxu0 %v11983_v58 }
 0x31f   : > { %13221 = vmatmul.mubr.bf16.gmra.mrb[24].mxu0 %v11984_v18 }
 0x320   : > { %13224 = vmatprep.mubr.bf16.mxu0 %v11985_v30 }
 0x327   : > { %13225 = vmatmul.mubr.bf16.gmra.mrb[28].mxu0 %v18960_v49 }
 0x3c2   : > { %v13198_v53 = vpop.f32.mrb[0].mxu0 }
 0x3c3   : > { %v5558_v50 = vpop.f32.mrb[1].mxu0  ;;  %v16291_v2 = vadd.f32 %v13198_v53, %v16282_v62 }
 0x3c4   : > { %v13199_v6 = vpop.f32.mrb[2].mxu0  ;;  %v16285_v16 = vadd.f32 %v16282_v62, %v5558_v50 }
 0x3c5   : > { %v5561_v29 = vpop.f32.mrb[3].mxu0  ;;  %v16296_v11 = vadd.f32 %v13199_v6, %v16282_v62 }
 0x3c6   : > { %v16288_v36 = vadd.f32 %v16282_v62, %v5561_v29 }
 0x3c8   : > { %v5756_v25 = vadd.f32 %v16288_v36, %v16285_v16 }
 0x3ca   : > { %v5757_v51 = vadd.f32 %v5756_v25, %v16291_v2  ;;  %v13202_v28 = vpop.f32.mrb[4].mxu0 }
 0x3cb   : > { %v5574_v20 = vpop.f32.mrb[5].mxu0  ;;  %v16308_v38 = vadd.f32 %v13202_v28, %v16282_v62 }
 0x3cc   : > { %v16300_v13 = vadd.f32 %v16282_v62, %v5574_v20  ;;  %v5758_v9 = vadd.f32 %v5757_v51, %v16296_v11  ;;  %v13203_v26 = vpop.f32.mrb[6].mxu0 }
 0x3cd   : > { %v5577_v17 = vpop.f32.mrb[7].mxu0  ;;  %v16312_v54 = vadd.f32 %v13203_v26, %v16282_v62 }
 0x3ce   : > { %v5759_v24 = vadd.f32 %v5758_v9, %v16300_v13  ;;  %v16305_v32 = vadd.f32 %v16282_v62, %v5577_v17 }
 0x3d0   : > { %v5760_v15 = vadd.f32 %v5759_v24, %v16305_v32 }
 0x3d2   : > { %v5761_v3 = vadd.f32 %v5760_v15, %v16308_v38  ;;  %v13206_v61 = vpop.f32.mrb[8].mxu0 }
 0x3d3   : > { %v5590_v1 = vpop.f32.mrb[9].mxu0  ;;  %v16324_v14 = vadd.f32 %v13206_v61, %v16282_v62 }
 0x3d4   : > { %v16316_v46 = vadd.f32 %v16282_v62, %v5590_v1  ;;  %v5762_v52 = vadd.f32 %v5761_v3, %v16312_v54  ;;  %v13207_v47 = vpop.f32.mrb[10].mxu0 }
 0x3d5   : > { %v5593_v31 = vpop.f32.mrb[11].mxu0  ;;  %v16328_v34 = vadd.f32 %v13207_v47, %v16282_v62 }
 0x3d6   : > { %v5763_v59 = vadd.f32 %v5762_v52, %v16316_v46  ;;  %v16321_v43 = vadd.f32 %v16282_v62, %v5593_v31 }
 0x3d8   : > { %v5764_v35 = vadd.f32 %v5763_v59, %v16321_v43 }
 0x3da   : > { %v5765_v60 = vadd.f32 %v5764_v35, %v16324_v14  ;;  %v13210_v41 = vpop.f32.mrb[12].mxu0 }
 0x3db   : > { %v5606_v33 = vpop.f32.mrb[13].mxu0  ;;  %v16340_v7 = vadd.f32 %v13210_v41, %v16282_v62 }
 0x3dc   : > { %v16332_v48 = vadd.f32 %v16282_v62, %v5606_v33  ;;  %v5766_v5 = vadd.f32 %v5765_v60, %v16328_v34  ;;  %v13211_v12 = vpop.f32.mrb[14].mxu0 }
 0x3dd   : > { %v5609_v42 = vpop.f32.mrb[15].mxu0  ;;  %v16344_v45 = vadd.f32 %v13211_v12, %v16282_v62 }
 0x3de   : > { %v5767_v44 = vadd.f32 %v5766_v5, %v16332_v48  ;;  %v16337_v63 = vadd.f32 %v16282_v62, %v5609_v42 }
 0x3e0   : > { %v5768_v19 = vadd.f32 %v5767_v44, %v16337_v63 }
 0x3e2   : > { %v5769_v58 = vadd.f32 %v5768_v19, %v16340_v7  ;;  %v13214_v55 = vpop.f32.mrb[16].mxu0 }
 0x3e3   : > { %v5622_v27 = vpop.f32.mrb[17].mxu0  ;;  %v5742_v4 = vadd.f32 %v13214_v55, %v16282_v62 }
 0x3e4   : > { %v5740_v10 = vadd.f32 %v16282_v62, %v5622_v27  ;;  %v5770_v40 = vadd.f32 %v5769_v58, %v16344_v45  ;;  %v13215_v57 = vpop.f32.mrb[18].mxu0 }
 0x3e5   : > { %v5625_v37 = vpop.f32.mrb[19].mxu0  ;;  %v5743_v18 = vadd.f32 %v13215_v57, %v16282_v62 }
 0x3e6   : > { %v5771_v0 = vadd.f32 %v5770_v40, %v5740_v10  ;;  %v5741_v8 = vadd.f32 %v16282_v62, %v5625_v37 }
 0x3e8   : > { %v5772_v56 = vadd.f32 %v5771_v0, %v5741_v8 }
 0x3ea   : > { %v5773_v30 = vadd.f32 %v5772_v56, %v5742_v4  ;;  %v13218_v21 = vpop.f32.mrb[20].mxu0 }
 0x3eb   : > { %v5638_v39 = vpop.f32.mrb[21].mxu0  ;;  %v5746_v51 = vadd.f32 %v13218_v21, %v16282_v62 }
 0x3ec   : > { %v5744_v49 = vadd.f32 %v16282_v62, %v5638_v39  ;;  %v5774_v53 = vadd.f32 %v5773_v30, %v5743_v18  ;;  %v13219_v50 = vpop.f32.mrb[22].mxu0 }
 0x3ed   : > { %v5641_v6 = vpop.f32.mrb[23].mxu0  ;;  %v5747_v20 = vadd.f32 %v13219_v50, %v16282_v62 }
 0x3ee   : > { %v5775_v29 = vadd.f32 %v5774_v53, %v5744_v49  ;;  %v5745_v25 = vadd.f32 %v16282_v62, %v5641_v6 }
 0x3f0   : > { %v5776_v28 = vadd.f32 %v5775_v29, %v5745_v25 }
 0x3f2   : > { %v5777_v9 = vadd.f32 %v5776_v28, %v5746_v51  ;;  %v13222_v26 = vpop.f32.mrb[24].mxu0 }
 0x3f3   : > { %v5654_v17 = vpop.f32.mrb[25].mxu0  ;;  %v5750_v47 = vadd.f32 %v13222_v26, %v16282_v62 }
 0x3f4   : > { %v5748_v24 = vadd.f32 %v16282_v62, %v5654_v17  ;;  %v5778_v15 = vadd.f32 %v5777_v9, %v5747_v20  ;;  %v13223_v3 = vpop.f32.mrb[26].mxu0 }
 0x3f5   : > { %v5657_v61 = vpop.f32.mrb[27].mxu0  ;;  %v5751_v59 = vadd.f32 %v13223_v3, %v16282_v62 }
 0x3f6   : > { %v5779_v1 = vadd.f32 %v5778_v15, %v5748_v24  ;;  %v5749_v52 = vadd.f32 %v16282_v62, %v5657_v61 }
 0x3f8   : > { %v5780_v31 = vadd.f32 %v5779_v1, %v5749_v52 }
 0x3fa   : > { %v5781_v35 = vadd.f32 %v5780_v31, %v5750_v47  ;;  %v13226_v60 = vpop.f32.mrb[28].mxu0 }
 0x3fb   : > { %v5670_v41 = vpop.f32.mrb[29].mxu0  ;;  %v5754_v58 = vadd.f32 %v13226_v60, %v16282_v62 }
 0x3fc   : > { %v5752_v33 = vadd.f32 %v16282_v62, %v5670_v41  ;;  %v5782_v5 = vadd.f32 %v5781_v35, %v5751_v59  ;;  %v13227_v12 = vpop.f32.mrb[30].mxu0 }
 0x3fd   : > { %v5673_v42 = vpop.f32.mrb[31].mxu0  ;;  %v5755_v27 = vadd.f32 %v13227_v12, %v16282_v62 }
 0x3fe   : > { %v5783_v44 = vadd.f32 %v5782_v5, %v5752_v33  ;;  %v5753_v19 = vadd.f32 %v16282_v62, %v5673_v42 }
 0x400   : > { %v5784_v55 = vadd.f32 %v5783_v44, %v5753_v19 }
 0x402   : > { %v5785_v40 = vadd.f32 %v5784_v55, %v5754_v58 }
 0x404   : > { %v5786_v57 = vadd.f32 %v5785_v40, %v5755_v27 }
 0x406   : > { %v5787_v37 = vrot.slane %v5786_v57, 4 }
 0x408   : > { %v5788_v0 = vadd.f32 %v5787_v37, %v5786_v57 }
 0x40a   : > { %v5789_v56 = vrot.slane %v5788_v0, 2 }
 0x40c   : > { %v5790_v30 = vadd.f32 %v5789_v56, %v5788_v0 }
 0x40e   : > { %v5791_v21 = vrot.slane %v5790_v30, 1 }
 0x410   : > { %v5792_v39 = vadd.f32 %v5791_v21, %v5790_v30  ;;  %v14376_v30 = vld [vmem:[#allocation9 + $0x40] sm:$0xff]  }
 0x411   : > { %13228 = vmatprep.subr.bf16.mxu1 %v14376_v30 }
 0x412   : > { %v5794_v53 = vmul.f32 0.00390625, %v5792_v39  ;;  %13229 = vmatpush3.bf16.msra.mxu1 %v14376_v30 }
 0x414   : > { %v16365_v50 = vsub.f32 %v16316_v46, %v5794_v53  ;;  %v16368_v6 = vsub.f32 %v16321_v43, %v5794_v53  ;;  %v16371_v29 = vsub.f32 %v16324_v14, %v5794_v53  ;;  %v16374_v62 = vsub.f32 %v16328_v34, %v5794_v53 }
 0x415   : > { %v16377_v28 = vsub.f32 %v16332_v48, %v5794_v53  ;;  %v16380_v9 = vsub.f32 %v16337_v63, %v5794_v53  ;;  %v16383_v26 = vsub.f32 %v16340_v7, %v5794_v53  ;;  %v16386_v46 = vsub.f32 %v16344_v45, %v5794_v53 }
 0x416   : > { %v16388_v43 = vsub.f32 %v5740_v10, %v5794_v53  ;;  %v16390_v17 = vsub.f32 %v5741_v8, %v5794_v53  ;;  %v16392_v14 = vsub.f32 %v5742_v4, %v5794_v53  ;;  %v16394_v34 = vsub.f32 %v5743_v18, %v5794_v53 }
 0x417   : > { %v16396_v15 = vsub.f32 %v5744_v49, %v5794_v53  ;;  %v16398_v48 = vsub.f32 %v5745_v25, %v5794_v53  ;;  %v16400_v63 = vsub.f32 %v5746_v51, %v5794_v53  ;;  %v16402_v3 = vsub.f32 %v5747_v20, %v5794_v53 }
 0x418   : > { %v16404_v7 = vsub.f32 %v5748_v24, %v5794_v53  ;;  %v16406_v45 = vsub.f32 %v5749_v52, %v5794_v53  ;;  %v16408_v10 = vsub.f32 %v5750_v47, %v5794_v53  ;;  %v16410_v8 = vsub.f32 %v5751_v59, %v5794_v53 }
 0x419   : > { %v16412_v4 = vsub.f32 %v5752_v33, %v5794_v53  ;;  %v16414_v18 = vsub.f32 %v5753_v19, %v5794_v53  ;;  %v16416_v49 = vsub.f32 %v5754_v58, %v5794_v53  ;;  %v16418_v25 = vsub.f32 %v5755_v27, %v5794_v53 }
 0x41a   : > { %v16421_v51 = vsub.f32 %v16285_v16, %v5794_v53  ;;  %v16424_v20 = vsub.f32 %v16288_v36, %v5794_v53  ;;  %v16427_v24 = vsub.f32 %v16291_v2, %v5794_v53  ;;  %v16434_v52 = vsub.f32 %v16296_v11, %v5794_v53 }
 0x41b   : > { %v16437_v47 = vsub.f32 %v16300_v13, %v5794_v53  ;;  %v16442_v31 = vsub.f32 %v16305_v32, %v5794_v53  ;;  %v16447_v35 = vsub.f32 %v16308_v38, %v5794_v53  ;;  %v16452_v13 = vsub.f32 %v16312_v54, %v5794_v53 }
 0x41c   : > { %v5827_v61 = vmul.f32 %v16421_v51, %v16421_v51  ;;  %v5828_v1 = vmul.f32 %v16424_v20, %v16424_v20  ;;  %v5829_v16 = vmul.f32 %v16427_v24, %v16427_v24  ;;  %v5830_v2 = vmul.f32 %v16434_v52, %v16434_v52 }
 0x41d   : > { %v5831_v11 = vmul.f32 %v16437_v47, %v16437_v47  ;;  %v5832_v41 = vmul.f32 %v16442_v31, %v16442_v31  ;;  %v5833_v32 = vmul.f32 %v16447_v35, %v16447_v35  ;;  %v5834_v12 = vmul.f32 %v16452_v13, %v16452_v13 }
 0x41e   : > { %v5859_v36 = vadd.f32 %v5828_v1, %v5827_v61  ;;  %v5835_v42 = vmul.f32 %v16365_v50, %v16365_v50  ;;  %v5836_v54 = vmul.f32 %v16368_v6, %v16368_v6  ;;  %v5837_v58 = vmul.f32 %v16371_v29, %v16371_v29  ;;  %v14377_v1 = vld [vmem:[#allocation9 + $0x48] sm:$0xff]  }
 0x41f   : > { %v5838_v27 = vmul.f32 %v16374_v62, %v16374_v62  ;;  %v5839_v57 = vmul.f32 %v16377_v28, %v16377_v28  ;;  %v5840_v0 = vmul.f32 %v16380_v9, %v16380_v9  ;;  %v5841_v21 = vmul.f32 %v16383_v26, %v16383_v26  ;;  %13230 = vmatprep.subr.bf16.mxu1 %v14377_v1 }
 0x420   : > { %v5860_v59 = vadd.f32 %v5859_v36, %v5829_v16  ;;  %v5842_v53 = vmul.f32 %v16386_v46, %v16386_v46  ;;  %v5843_v16 = vmul.f32 %v16388_v43, %v16388_v43  ;;  %13231 = vmatpush3.bf16.msra.mxu1 %v14377_v1 }
 0x422   : > { %v5861_v60 = vadd.f32 %v5860_v59, %v5830_v2  ;;  %v5844_v2 = vmul.f32 %v16390_v17, %v16390_v17 }
 0x424   : > { %v5862_v33 = vadd.f32 %v5861_v60, %v5831_v11  ;;  %v14378_v11 = vld [vmem:[#allocation9 + $0x50] sm:$0xff]   ;;  %v5845_v60 = vmul.f32 %v16392_v14, %v16392_v14 }
 0x425   : > { %13232 = vmatprep.subr.bf16.mxu1 %v14378_v11 }
 0x426   : > { %v5863_v5 = vadd.f32 %v5862_v33, %v5832_v41  ;;  %13233 = vmatpush3.bf16.msra.mxu1 %v14378_v11  ;;  %v5846_v33 = vmul.f32 %v16394_v34, %v16394_v34 }
 0x428   : > { %v5864_v38 = vadd.f32 %v5863_v5, %v5833_v32  ;;  %v14379_v5 = vld [vmem:[#allocation9 + $0x58] sm:$0xff]  }
 0x429   : > { %13234 = vmatprep.subr.bf16.mxu1 %v14379_v5 }
 0x42a   : > { %v5865_v44 = vadd.f32 %v5864_v38, %v5834_v12  ;;  %v5847_v12 = vmul.f32 %v16396_v15, %v16396_v15  ;;  %13235 = vmatpush3.bf16.msra.mxu1 %v14379_v5 }
 0x42c   : > { %v5866_v19 = vadd.f32 %v5865_v44, %v5835_v42  ;;  %v14380_v42 = vld [vmem:[#allocation9 + $0x60] sm:$0xff]   ;;  %v5848_v44 = vmul.f32 %v16398_v48, %v16398_v48 }
 0x42d   : > { %13236 = vmatprep.subr.bf16.mxu1 %v14380_v42 }
 0x42e   : > { %v5867_v55 = vadd.f32 %v5866_v19, %v5836_v54  ;;  %v14381_v19 = vld [vmem:[#allocation9 + $0x68] sm:$0xff]   ;;  %13237 = vmatpush3.bf16.msra.mxu1 %v14380_v42  ;;  %v14383_v42 = vld [vmem:[#allocation9 + $0x78] sm:$0xff]  }
 0x42f   : > { %13238 = vmatprep.subr.bf16.mxu1 %v14381_v19 }
 0x430   : > { %v5868_v40 = vadd.f32 %v5867_v55, %v5837_v58  ;;  %v6490_v58 = vld [vmem:[#allocation2] sm:$0xf]  ;;  %v6491_v55 = vld [vmem:[#allocation2 + $0x4] sm:$0xf] }
 0x432   : > { %v5869_v37 = vadd.f32 %v5868_v40, %v5838_v27  ;;  %v6538_v27 = vld [vmem:[#allocation2 + $0x8] sm:$0x1]  ;;  %v6555_v40 = vshrl.u32 %v6490_v58, 16  ;;  %13239 = vmatpush3.bf16.msra.mxu1 %v14381_v19  ;;  %v5854_v19 = vmul.f32 %v16410_v8, %v16410_v8 }
 0x434   : > { %v5870_v56 = vadd.f32 %v5869_v37, %v5839_v57  ;;  %v6558_v57 = vshll.u32 %v6490_v58, 16  ;;  %v6564_v37 = vshll.u32 %v6491_v55, 16  ;;  %v5853_v58 = vmul.f32 %v16408_v10, %v16408_v10 }
 0x436   : > { %v5871_v39 = vadd.f32 %v5870_v56, %v5840_v0  ;;  %v6568_v0 = vshrl.u32 %v6491_v55, 16  ;;  %v5849_v56 = vmul.f32 %v16400_v63, %v16400_v63 }
 0x438   : > { %v5872_v61 = vadd.f32 %v5871_v39, %v5841_v21  ;;  %v6574_v21 = vshll.u32 %v6538_v27, 16  ;;  %v6557_v39 = vrot.slane %v6555_v40, 4  ;;  %v6570_v1 = vrot.slane %v6568_v0, 4 }
 0x43a   : > { %v5873_v36 = vadd.f32 %v5872_v61, %v5842_v53  ;;  %v6560_v53 = vrot.slane %v6558_v57, 5  ;;  %v6566_v61 = vrot.slane %v6564_v37, 5  ;;  %v16504_v57 = vld [vmem:[#allocation9] sm:$0xff]   ;;  %v5855_v37 = vmul.f32 %v16412_v4, %v16412_v4 }
 0x43b   : > { %18961 = vst [vmem:[#allocation23_spill] sm:$0xff] %v16504_v57 }
 0x43c   : > { %v5874_v59 = vadd.f32 %v5873_v36, %v5843_v16  ;;  %v5850_v16 = vmul.f32 %v16402_v3, %v16402_v3  ;;  %v6571_v11 = vor.u32 %v6570_v1, %v6566_v61 }
 0x43e   : > { %v5875_v41 = vadd.f32 %v5874_v59, %v5844_v2  ;;  %v14382_v2 = vld [vmem:[#allocation9 + $0x70] sm:$0xff]   ;;  %v6561_v59 = vor.u32 %v6560_v53, %v6557_v39  ;;  %v6572_v5 = vrot.slane %v6571_v11, 4  ;;  %v5858_v53 = vmul.f32 %v16418_v25, %v16418_v25 }
 0x43f   : > { %13240 = vmatprep.subr.bf16.mxu1 %v14382_v2 }
 0x440   : > { %v5876_v32 = vadd.f32 %v5875_v41, %v5845_v60  ;;  %v6576_v60 = vrot.slane %v6574_v21, 5  ;;  %v5851_v41 = vmul.f32 %v16404_v7, %v16404_v7  ;;  %13241 = vmatpush3.bf16.msra.mxu1 %v14382_v2  ;;  %v5857_v21 = vmul.f32 %v16416_v49, %v16416_v49 }
 0x441   : > { %13242 = vmatprep.subr.bf16.mxu1 %v14383_v42 }
 0x442   : > { %v5877_v38 = vadd.f32 %v5876_v32, %v5846_v33  ;;  %v6562_v32 = vrot.slane %v6561_v59, 4 }
 0x444   : > { %v5878_v54 = vadd.f32 %v5877_v38, %v5847_v12  ;;  %v5852_v12 = vmul.f32 %v16406_v45, %v16406_v45  ;;  %13243 = vmatpush3.bf16.msra.mxu1 %v14383_v42 }
 0x445   : > { %13276 = vmatprep.subr.bf16.mxu1 %v16504_v57  ;;  %v6438_v57 = vld [vmem:[#allocation2 + $0x74] sm:$0x1] }
 0x446   : > { %v5879_v30 = vadd.f32 %v5878_v54, %v5848_v44  ;;  %v6567_v44 = vsel %vm15051_vm7, %v6562_v32, %v6566_v61  ;;  %v6577_v54 = vsel %vm15051_vm7, %v6572_v5, %v6576_v60 }
 0x447   : > { %v12028_v27 = vcombine.low %v6567_v44, %v6577_v54 }
 0x448   : > { %v5880_v36 = vadd.f32 %v5879_v30, %v5849_v56  ;;  %v5856_v56 = vmul.f32 %v16414_v18, %v16414_v18 }
 0x449   : > { %13244 = vmatprep.mubr.bf16.mxu1 %v12028_v27 }
 0x44a   : > { %v5881_v33 = vadd.f32 %v5880_v36, %v5850_v16 }
 0x44c   : > { %v5882_v38 = vadd.f32 %v5881_v33, %v5851_v41 }
 0x44e   : > { %v5883_v55 = vadd.f32 %v5882_v38, %v5852_v12 }
 0x450   : > { %v5884_v40 = vadd.f32 %v5883_v55, %v5853_v58 }
 0x452   : > { %v5885_v0 = vadd.f32 %v5884_v40, %v5854_v19 }
 0x454   : > { %v5886_v30 = vadd.f32 %v5885_v0, %v5855_v37 }
 0x456   : > { %v5887_v39 = vadd.f32 %v5886_v30, %v5856_v56 }
 0x458   : > { %v5888_v61 = vadd.f32 %v5887_v39, %v5857_v21 }
 0x45a   : > { %v5889_v1 = vadd.f32 %v5888_v61, %v5858_v53 }
 0x45c   : > { %v5890_v16 = vrot.slane %v5889_v1, 4 }
 0x45e   : > { %v5891_v36 = vadd.f32 %v5890_v16, %v5889_v1 }
 0x460   : > { %v5892_v2 = vrot.slane %v5891_v36, 2 }
 0x462   : > { %v5893_v59 = vadd.f32 %v5892_v2, %v5891_v36 }
 0x464   : > { %v5894_v11 = vrot.slane %v5893_v59, 1 }
 0x466   : > { %v5895_v60 = vadd.f32 %v5894_v11, %v5893_v59 }
 0x468   : > { %v5896_v41 = vmul.f32 0.00390625, %v5895_v60 }
 0x46a   : > { %v5897_v33 = vadd.f32 1e-05, %v5896_v41 }
 0x46c   : > { %14496 = vrsqrt.f32 %v5897_v33 }
 0x476   : > { %v14497_v32 = vpop.eup %14496 }
 0x477   : > { %v5927_v5 = vmul.f32 %v14497_v32, %v16412_v4  ;;  %v5928_v12 = vmul.f32 %v14497_v32, %v16414_v18  ;;  %v16518_v38 = vmul.f32 %v14497_v32, %v16421_v51  ;;  %v16521_v42 = vmul.f32 %v14497_v32, %v16424_v20 }
 0x478   : > { %v16524_v44 = vmul.f32 %v14497_v32, %v16427_v24  ;;  %v16527_v54 = vmul.f32 %v14497_v32, %v16434_v52  ;;  %v16530_v58 = vmul.f32 %v14497_v32, %v16437_v47  ;;  %v16533_v55 = vmul.f32 %v14497_v32, %v16442_v31 }
 0x479   : > { %v5959_v4 = vmax.f32 %v5927_v5, 0.0  ;;  %v5960_v18 = vmax.f32 %v5928_v12, 0.0  ;;  %v16536_v51 = vmul.f32 %v14497_v32, %v16447_v35  ;;  %v16539_v20 = vmul.f32 %v14497_v32, %v16452_v13 }
 0x47a   : > { %v16542_v24 = vmul.f32 %v14497_v32, %v16365_v50  ;;  %v16545_v52 = vmul.f32 %v14497_v32, %v16368_v6  ;;  %v16548_v47 = vmul.f32 %v14497_v32, %v16371_v29  ;;  %v16551_v31 = vmul.f32 %v14497_v32, %v16374_v62 }
 0x47b   : > { %v16553_v27 = vpack.c.bf16 %v5959_v4, %v5959_v4  ;;  %v12360_v19 = vpack.c.bf16 %v5960_v18, %v5960_v18  ;;  %v16556_v35 = vmul.f32 %v14497_v32, %v16377_v28  ;;  %v16559_v13 = vmul.f32 %v14497_v32, %v16380_v9 }
 0x47c   : > { %v16562_v50 = vmul.f32 %v14497_v32, %v16383_v26  ;;  %v16565_v6 = vmul.f32 %v14497_v32, %v16386_v46  ;;  %v16568_v29 = vmul.f32 %v14497_v32, %v16388_v43  ;;  %v16571_v62 = vmul.f32 %v14497_v32, %v16390_v17 }
 0x47d   : > { %v6298_v40 = vshrl.u32 %v16553_v27, 16  ;;  %v6306_v37 = vshrl.u32 %v12360_v19, 16  ;;  %v6309_v28 = vshll.u32 %v12360_v19, 16  ;;  %v16575_v0 = vmul.f32 %v14497_v32, %v16392_v14 }
 0x47e   : > { %v16578_v9 = vmul.f32 %v14497_v32, %v16394_v34  ;;  %v16581_v26 = vmul.f32 %v14497_v32, %v16396_v15  ;;  %v16584_v46 = vmul.f32 %v14497_v32, %v16398_v48  ;;  %v16587_v43 = vmul.f32 %v14497_v32, %v16400_v63  ;;  %v6480_v34 = vld [vmem:[#allocation2 + $0xbc] sm:$0x1] }
 0x47f   : > { %v16589_v17 = vrot.slane %v6298_v40, 7  ;;  %v6308_v56 = vrot.slane %v6306_v37, 7  ;;  %v16592_v30 = vmul.f32 %v14497_v32, %v16402_v3  ;;  %v16595_v14 = vmul.f32 %v14497_v32, %v16404_v7 }
 0x480   : > { %v16598_v21 = vmul.f32 %v14497_v32, %v16406_v45  ;;  %v16601_v15 = vmul.f32 %v14497_v32, %v16408_v10  ;;  %v16604_v48 = vmul.f32 %v14497_v32, %v16410_v8  ;;  %v16607_v63 = vmul.f32 %v14497_v32, %v16416_v49  ;;  %v6483_v8 = vld [vmem:[#allocation2 + $0xc0] sm:$0xf] }
 0x481   : > { %v6304_v39 = vrot.slane %v16589_v17, 4  ;;  %v6311_v3 = vor.u32 %v6309_v28, %v6308_v56  ;;  %v6313_v53 = vrot.slane %v6308_v56, 4  ;;  %v16611_v7 = vmul.f32 %v14497_v32, %v16418_v25 }
 0x482   : > { %v6301_v61 = vshll.u32 %v16553_v27, 16  ;;  %v5931_v45 = vmax.f32 %v16518_v38, 0.0  ;;  %v5932_v10 = vmax.f32 %v16521_v42, 0.0  ;;  %v5933_v1 = vmax.f32 %v16524_v44, 0.0 }
 0x483   : > { %v6312_v16 = vsel %vm15057_vm8, %v6304_v39, %v6311_v3  ;;  %v6481_v36 = vsel %vm15071_vm10, %v6313_v53, %v6480_v34  ;;  %v5934_v2 = vmax.f32 %v16527_v54, 0.0  ;;  %v5935_v59 = vmax.f32 %v16530_v58, 0.0 }
 0x484   : > { %6479 = vst [vmem:[#allocation2 + $0xb8] sm:$0xf] %v6312_v16  ;;  %6482 = vst [vmem:[#allocation2 + $0xbc] sm:$0x1] %v6481_v36  ;;  %v5936_v25 = vmax.f32 %v16533_v55, 0.0  ;;  %v5937_v11 = vmax.f32 %v16536_v51, 0.0 }
 0x485   : > { %v5938_v60 = vmax.f32 %v16539_v20, 0.0  ;;  %v5939_v41 = vmax.f32 %v16542_v24, 0.0  ;;  %v5940_v33 = vmax.f32 %v16545_v52, 0.0  ;;  %v5941_v32 = vmax.f32 %v16548_v47, 0.0 }
 0x486   : > { %v5942_v5 = vmax.f32 %v16551_v31, 0.0  ;;  %v5943_v12 = vmax.f32 %v16556_v35, 0.0  ;;  %v5944_v38 = vmax.f32 %v16559_v13, 0.0  ;;  %v5945_v42 = vmax.f32 %v16562_v50, 0.0 }
 0x487   : > { %v5946_v44 = vmax.f32 %v16565_v6, 0.0  ;;  %v5947_v54 = vmax.f32 %v16568_v29, 0.0  ;;  %v5948_v58 = vmax.f32 %v16571_v62, 0.0  ;;  %v5949_v55 = vmax.f32 %v16575_v0, 0.0 }
 0x488   : > { %v5950_v4 = vmax.f32 %v16578_v9, 0.0  ;;  %v5951_v18 = vmax.f32 %v16581_v26, 0.0  ;;  %v5952_v51 = vmax.f32 %v16584_v46, 0.0  ;;  %v5953_v20 = vmax.f32 %v16587_v43, 0.0 }
 0x489   : > { %v5954_v24 = vmax.f32 %v16592_v30, 0.0  ;;  %v5955_v52 = vmax.f32 %v16595_v14, 0.0  ;;  %v5956_v47 = vmax.f32 %v16598_v21, 0.0  ;;  %v5957_v31 = vmax.f32 %v16601_v15, 0.0 }
 0x48a   : > { %v5958_v19 = vmax.f32 %v16604_v48, 0.0  ;;  %v5961_v35 = vmax.f32 %v16607_v63, 0.0  ;;  %v5962_v13 = vmax.f32 %v16611_v7, 0.0  ;;  %v12331_v50 = vpack.c.bf16 %v5931_v45, %v5931_v45 }
 0x48b   : > { %v12332_v6 = vpack.c.bf16 %v5932_v10, %v5932_v10  ;;  %v12333_v29 = vpack.c.bf16 %v5933_v1, %v5933_v1  ;;  %v12334_v62 = vpack.c.bf16 %v5934_v2, %v5934_v2  ;;  %v12335_v40 = vpack.c.bf16 %v5935_v59, %v5935_v59 }
 0x48c   : > { %v12336_v37 = vpack.c.bf16 %v5936_v25, %v5936_v25  ;;  %v16648_v28 = vpack.c.bf16 %v5937_v11, %v5937_v11  ;;  %v16650_v0 = vpack.c.bf16 %v5938_v60, %v5938_v60  ;;  %v16652_v9 = vpack.c.bf16 %v5939_v41, %v5939_v41 }
 0x48d   : > { %v16654_v26 = vpack.c.bf16 %v5940_v33, %v5940_v33  ;;  %v16656_v46 = vpack.c.bf16 %v5941_v32, %v5941_v32  ;;  %v16658_v43 = vpack.c.bf16 %v5942_v5, %v5942_v5  ;;  %v16660_v56 = vpack.c.bf16 %v5943_v12, %v5943_v12 }
 0x48e   : > { %v16662_v30 = vpack.c.bf16 %v5944_v38, %v5944_v38  ;;  %v16664_v14 = vpack.c.bf16 %v5945_v42, %v5945_v42  ;;  %v16666_v34 = vpack.c.bf16 %v5946_v44, %v5946_v44  ;;  %v16668_v21 = vpack.c.bf16 %v5947_v54, %v5947_v54 }
 0x48f   : > { %v16670_v15 = vpack.c.bf16 %v5948_v58, %v5948_v58  ;;  %v16672_v48 = vpack.c.bf16 %v5949_v55, %v5949_v55  ;;  %v16674_v63 = vpack.c.bf16 %v5950_v4, %v5950_v4  ;;  %v16676_v39 = vpack.c.bf16 %v5951_v18, %v5951_v18 }
 0x490   : > { %v16678_v3 = vpack.c.bf16 %v5952_v51, %v5952_v51  ;;  %v16680_v53 = vpack.c.bf16 %v5953_v20, %v5953_v20  ;;  %v16682_v7 = vpack.c.bf16 %v5954_v24, %v5954_v24  ;;  %v16684_v45 = vpack.c.bf16 %v5955_v52, %v5955_v52 }
 0x491   : > { %v16686_v10 = vpack.c.bf16 %v5956_v47, %v5956_v47  ;;  %v16688_v1 = vpack.c.bf16 %v5957_v31, %v5957_v31  ;;  %v16690_v16 = vpack.c.bf16 %v5958_v19, %v5958_v19  ;;  %v16692_v36 = vpack.c.bf16 %v5961_v35, %v5961_v35 }
 0x492   : > { %v16694_v2 = vpack.c.bf16 %v5962_v13, %v5962_v13  ;;  %v6060_v59 = vshrl.u32 %v12331_v50, 16  ;;  %v6063_v25 = vshll.u32 %v12331_v50, 16  ;;  %v6068_v11 = vshrl.u32 %v12332_v6, 16 }
 0x493   : > { %v6071_v60 = vshll.u32 %v12332_v6, 16  ;;  %v6077_v41 = vshrl.u32 %v12333_v29, 16  ;;  %v6080_v32 = vshll.u32 %v12333_v29, 16  ;;  %v6085_v5 = vshrl.u32 %v12334_v62, 16 }
 0x494   : > { %v6062_v33 = vrot.slane %v6060_v59, 7  ;;  %v6088_v12 = vshll.u32 %v12334_v62, 16  ;;  %v16696_v38 = vrot.slane %v6068_v11, 7  ;;  %v6094_v44 = vshrl.u32 %v12335_v40, 16 }
 0x495   : > { %v6079_v42 = vrot.slane %v6077_v41, 7  ;;  %v6097_v54 = vshll.u32 %v12335_v40, 16  ;;  %v16700_v4 = vrot.slane %v6085_v5, 7  ;;  %v6102_v18 = vshrl.u32 %v12336_v37, 16 }
 0x496   : > { %v16698_v58 = vor.u32 %v6063_v25, %v6062_v33  ;;  %v6066_v55 = vrot.slane %v6062_v33, 4  ;;  %v6073_v51 = vor.u32 %v6071_v60, %v16696_v38  ;;  %v6096_v19 = vrot.slane %v6094_v44, 7  ;;  %v14531_v25 = vld [vmem:[#allocation2 + $0xc] sm:$0xf] }
 0x497   : > { %v16704_v24 = vor.u32 %v6080_v32, %v6079_v42  ;;  %v6083_v52 = vrot.slane %v6079_v42, 4  ;;  %v6090_v47 = vor.u32 %v6088_v12, %v16700_v4  ;;  %v16708_v35 = vrot.slane %v6102_v18, 7 }
 0x498   : > { %v6074_v13 = vsel %vm15057_vm8, %v6066_v55, %v6073_v51  ;;  %v6105_v50 = vshll.u32 %v12336_v37, 16  ;;  %v6111_v6 = vshrl.u32 %v16648_v28, 16  ;;  %v6114_v29 = vshll.u32 %v16648_v28, 16 }
 0x499   : > { %v6091_v62 = vsel %vm15057_vm8, %v6083_v52, %v6090_v47  ;;  %v16716_v40 = vor.u32 %v6097_v54, %v6096_v19  ;;  %v6100_v59 = vrot.slane %v6096_v19, 4  ;;  %6381 = vst [vmem:[#allocation2 + $0x10] sm:$0xf] %v6074_v13  ;;  %v6119_v41 = vshrl.u32 %v16650_v0, 16 }
 0x49a   : > { %v6107_v11 = vor.u32 %v6105_v50, %v16708_v35  ;;  %v6113_v60 = vrot.slane %v6111_v6, 7  ;;  %v6122_v37 = vshll.u32 %v16650_v0, 16  ;;  %6388 = vst [vmem:[#allocation2 + $0x1c] sm:$0xf] %v6091_v62  ;;  %v6128_v33 = vshrl.u32 %v16652_v9, 16 }
 0x49b   : > { %v6131_v28 = vshll.u32 %v16652_v9, 16  ;;  %v6136_v32 = vshrl.u32 %v16654_v26, 16  ;;  %v6139_v5 = vshll.u32 %v16654_v26, 16  ;;  %v16730_v54 = vrot.slane %v6119_v41, 7  ;;  %v6424_v6 = vld [vmem:[#allocation2 + $0x5c] sm:$0x1] }
 0x49c   : > { %v6108_v12 = vsel %vm15057_vm8, %v6100_v59, %v6107_v11  ;;  %v16728_v42 = vor.u32 %v6114_v29, %v6113_v60  ;;  %v6117_v44 = vrot.slane %v6113_v60, 4  ;;  %v6130_v55 = vrot.slane %v6128_v33, 7 }
 0x49d   : > { %v16732_v18 = vrot.slane %v6136_v32, 7  ;;  %v6145_v0 = vshrl.u32 %v16656_v46, 16  ;;  %v6148_v51 = vshll.u32 %v16656_v46, 16  ;;  %6395 = vst [vmem:[#allocation2 + $0x28] sm:$0xf] %v6108_v12  ;;  %v6124_v9 = vor.u32 %v6122_v37, %v16730_v54 }
 0x49e   : > { %v6153_v52 = vshrl.u32 %v16658_v43, 16  ;;  %v6156_v47 = vshll.u32 %v16658_v43, 16  ;;  %v16740_v19 = vor.u32 %v6131_v28, %v6130_v55  ;;  %v6134_v13 = vrot.slane %v6130_v55, 4  ;;  %v6410_v32 = vld [vmem:[#allocation2 + $0x44] sm:$0x1] }
 0x49f   : > { %v6141_v50 = vor.u32 %v6139_v5, %v16732_v18  ;;  %v6125_v29 = vsel %vm15057_vm8, %v6117_v44, %v6124_v9  ;;  %v6147_v46 = vrot.slane %v6145_v0, 7  ;;  %v6162_v59 = vshrl.u32 %v16660_v56, 16 }
 0x4a0   : > { %v16746_v62 = vrot.slane %v6153_v52, 7  ;;  %v6165_v43 = vshll.u32 %v16660_v56, 16  ;;  %v6170_v60 = vshrl.u32 %v16662_v30, 16  ;;  %v6173_v41 = vshll.u32 %v16662_v30, 16  ;;  %6402 = vst [vmem:[#allocation2 + $0x34] sm:$0xf] %v6125_v29 }
 0x4a1   : > { %v6142_v11 = vsel %vm15057_vm8, %v6134_v13, %v6141_v50  ;;  %v16754_v37 = vor.u32 %v6148_v51, %v6147_v46  ;;  %v6151_v33 = vrot.slane %v6147_v46, 4  ;;  %v6164_v5 = vrot.slane %v6162_v59, 7  ;;  %v6403_v13 = vld [vmem:[#allocation2 + $0x38] sm:$0x1] }
 0x4a2   : > { %v6158_v28 = vor.u32 %v6156_v47, %v16746_v62  ;;  %6409 = vst [vmem:[#allocation2 + $0x40] sm:$0xf] %v6142_v11  ;;  %v16758_v12 = vrot.slane %v6170_v60, 7  ;;  %v6179_v44 = vshrl.u32 %v16664_v14, 16  ;;  %v6182_v56 = vshll.u32 %v16664_v14, 16 }
 0x4a3   : > { %v6187_v30 = vshrl.u32 %v16666_v34, 16  ;;  %v6190_v0 = vshll.u32 %v16666_v34, 16  ;;  %v6196_v51 = vshrl.u32 %v16668_v21, 16  ;;  %v16767_v9 = vor.u32 %v6165_v43, %v6164_v5 }
 0x4a4   : > { %v6159_v55 = vsel %vm15057_vm8, %v6151_v33, %v6158_v28  ;;  %v6168_v52 = vrot.slane %v6164_v5, 4  ;;  %v6175_v47 = vor.u32 %v6173_v41, %v16758_v12  ;;  %v6181_v50 = vrot.slane %v6179_v44, 7  ;;  %v6399_v28 = vld [vmem:[#allocation2 + $0x30] sm:$0xf] }
 0x4a5   : > { %6416 = vst [vmem:[#allocation2 + $0x4c] sm:$0xf] %v6159_v55  ;;  %v16771_v29 = vrot.slane %v6187_v30, 7  ;;  %v6198_v14 = vrot.slane %v6196_v51, 7  ;;  %v6199_v46 = vshll.u32 %v16668_v21, 16  ;;  %v6204_v34 = vshrl.u32 %v16670_v15, 16 }
 0x4a6   : > { %v6176_v59 = vsel %vm15057_vm8, %v6168_v52, %v6175_v47  ;;  %v6207_v11 = vshll.u32 %v16670_v15, 16  ;;  %v6213_v43 = vshrl.u32 %v16672_v48, 16  ;;  %v16779_v60 = vor.u32 %v6182_v56, %v6181_v50  ;;  %v6392_v52 = vld [vmem:[#allocation2 + $0x24] sm:$0xf] }
 0x4a7   : > { %v6185_v41 = vrot.slane %v6181_v50, 4  ;;  %v6192_v33 = vor.u32 %v6190_v0, %v16771_v29  ;;  %6423 = vst [vmem:[#allocation2 + $0x58] sm:$0xf] %v6176_v59  ;;  %v16783_v5 = vor.u32 %v6199_v46, %v6198_v14  ;;  %v6202_v21 = vrot.slane %v6198_v14, 4 }
 0x4a8   : > { %v16785_v44 = vrot.slane %v6204_v34, 7  ;;  %v6215_v55 = vrot.slane %v6213_v43, 7  ;;  %v6216_v15 = vshll.u32 %v16672_v48, 16  ;;  %v6221_v56 = vshrl.u32 %v16674_v63, 16 }
 0x4a9   : > { %v6193_v30 = vsel %vm15057_vm8, %v6185_v41, %v6192_v33  ;;  %v6224_v51 = vshll.u32 %v16674_v63, 16  ;;  %v6230_v50 = vshrl.u32 %v16676_v39, 16  ;;  %v6233_v59 = vshll.u32 %v16676_v39, 16 }
 0x4aa   : > { %v6209_v0 = vor.u32 %v6207_v11, %v16785_v44  ;;  %v6219_v47 = vrot.slane %v6215_v55, 4  ;;  %6430 = vst [vmem:[#allocation2 + $0x64] sm:$0xf] %v6193_v30  ;;  %v16795_v14 = vor.u32 %v6216_v15, %v6215_v55  ;;  %v16797_v46 = vrot.slane %v6221_v56, 7 }
 0x4ab   : > { %v6238_v48 = vshrl.u32 %v16678_v3, 16  ;;  %v6232_v63 = vrot.slane %v6230_v50, 7  ;;  %v6241_v11 = vshll.u32 %v16678_v3, 16  ;;  %v6247_v43 = vshrl.u32 %v16680_v53, 16 }
 0x4ac   : > { %v6210_v34 = vsel %vm15057_vm8, %v6202_v21, %v6209_v0  ;;  %v6226_v41 = vor.u32 %v6224_v51, %v16797_v46  ;;  %v6250_v30 = vshll.u32 %v16680_v53, 16  ;;  %v6255_v21 = vshrl.u32 %v16682_v7, 16  ;;  %v6382_v51 = vld [vmem:[#allocation2 + $0x14] sm:$0x1] }
 0x4ad   : > { %v16807_v55 = vrot.slane %v6238_v48, 7  ;;  %6437 = vst [vmem:[#allocation2 + $0x70] sm:$0xf] %v6210_v34  ;;  %v16810_v39 = vor.u32 %v6233_v59, %v6232_v63  ;;  %v6236_v15 = vrot.slane %v6232_v63, 4  ;;  %v6249_v56 = vrot.slane %v6247_v43, 7 }
 0x4ae   : > { %v6227_v3 = vsel %vm15057_vm8, %v6219_v47, %v6226_v41  ;;  %v6258_v50 = vshll.u32 %v16682_v7, 16  ;;  %v16820_v53 = vrot.slane %v6255_v21, 7  ;;  %v6264_v59 = vshrl.u32 %v16684_v45, 16 }
 0x4af   : > { %v6243_v0 = vor.u32 %v6241_v11, %v16807_v55  ;;  %v16818_v48 = vor.u32 %v6250_v30, %v6249_v56  ;;  %v6253_v33 = vrot.slane %v6249_v56, 4  ;;  %6444 = vst [vmem:[#allocation2 + $0x7c] sm:$0xf] %v6227_v3  ;;  %v6267_v63 = vshll.u32 %v16684_v45, 16  ;;  %v6385_v3 = vld [vmem:[#allocation2 + $0x18] sm:$0xf] }
 0x4b0   : > { %v6272_v47 = vshrl.u32 %v16686_v10, 16  ;;  %v6275_v11 = vshll.u32 %v16686_v10, 16  ;;  %v6260_v43 = vor.u32 %v6258_v50, %v16820_v53  ;;  %v6266_v41 = vrot.slane %v6264_v59, 7 }
 0x4b1   : > { %v6244_v34 = vsel %vm15057_vm8, %v6236_v15, %v6243_v0  ;;  %v6281_v30 = vshrl.u32 %v16688_v1, 16  ;;  %v6284_v21 = vshll.u32 %v16688_v1, 16  ;;  %v6289_v15 = vshrl.u32 %v16690_v16, 16  ;;  %v6389_v0 = vld [vmem:[#allocation2 + $0x20] sm:$0x1] }
 0x4b2   : > { %6451 = vst [vmem:[#allocation2 + $0x88] sm:$0xf] %v6244_v34  ;;  %v16831_v56 = vrot.slane %v6272_v47, 7  ;;  %v6292_v45 = vshll.u32 %v16690_v16, 16  ;;  %v6261_v10 = vsel %vm15057_vm8, %v6253_v33, %v6260_v43  ;;  %v16838_v50 = vor.u32 %v6267_v63, %v6266_v41  ;;  %v6396_v33 = vld [vmem:[#allocation2 + $0x2c] sm:$0x1] }
 0x4b3   : > { %v6270_v59 = vrot.slane %v6266_v41, 4  ;;  %v6283_v7 = vrot.slane %v6281_v30, 7  ;;  %v16842_v1 = vrot.slane %v6289_v15, 7  ;;  %v16847_v16 = vor.u32 %v6301_v61, %v16589_v17  ;;  %6458 = vst [vmem:[#allocation2 + $0x94] sm:$0xf] %v6261_v10 }
 0x4b4   : > { %v6277_v34 = vor.u32 %v6275_v11, %v16831_v56  ;;  %v6315_v41 = vshrl.u32 %v16692_v36, 16  ;;  %v6318_v11 = vshll.u32 %v16692_v36, 16  ;;  %v6413_v30 = vld [vmem:[#allocation2 + $0x48] sm:$0xf]  ;;  %v6406_v47 = vld [vmem:[#allocation2 + $0x3c] sm:$0xf]  ;;  %v6379_v20 = vsel %vm15065_vm9, %v16698_v58, %v14531_v25 }
 0x4b5   : > { %18964 = vst [vmem:[#allocation24_spill] sm:$0xff] %v16847_v16  ;;  %v16849_v63 = vor.u32 %v6284_v21, %v6283_v7  ;;  %v6287_v43 = vrot.slane %v6283_v7, 4  ;;  %v6417_v15 = vld [vmem:[#allocation2 + $0x50] sm:$0x1]  ;;  %v6294_v17 = vor.u32 %v6292_v45, %v16842_v1  ;;  %v6323_v10 = vshrl.u32 %v16694_v2, 16 }
 0x4b6   : > { %v6278_v27 = vsel %vm15057_vm8, %v6270_v59, %v6277_v34  ;;  %v16858_v21 = vld [vmem:[#allocation2 + $0x60] sm:$0xf]  ;;  %v16860_v7 = vld [vmem:[#allocation2 + $0x54] sm:$0xf]  ;;  %v6317_v26 = vrot.slane %v6315_v41, 7  ;;  %v6326_v36 = vshll.u32 %v16694_v2, 16 }
 0x4b7   : > { %v18966_v59 = vrot.slane %v16696_v38, 4  ;;  %6465 = vst [vmem:[#allocation2 + $0xa0] sm:$0xf] %v6278_v27  ;;  %v6431_v34 = vld [vmem:[#allocation2 + $0x68] sm:$0x1]  ;;  %v6295_v41 = vsel %vm15057_vm8, %v6287_v43, %v6294_v17  ;;  %v16874_v2 = vrot.slane %v6323_v10, 7  ;;  %v6386_v38 = vsel %vm15065_vm9, %v16704_v24, %v6385_v3 }
 0x4b8   : > { %v16870_v61 = vld [vmem:[#allocation2 + $0x78] sm:$0xf]  ;;  %6380 = vst [vmem:[#allocation2 + $0xc] sm:$0xf] %v6379_v20  ;;  %v18967_v58 = vrot.slane %v16700_v4, 4  ;;  %v16883_v16 = vor.u32 %v6318_v11, %v6317_v26  ;;  %v6321_v43 = vrot.slane %v6317_v26, 4  ;;  %v6393_v20 = vsel %vm15065_vm9, %v16716_v40, %v6392_v52 }
 0x4b9   : > { %v6383_v45 = vsel %vm15071_vm10, %v18966_v59, %v6382_v51  ;;  %v6445_v51 = vld [vmem:[#allocation2 + $0x80] sm:$0x1]  ;;  %v6455_v27 = vld [vmem:[#allocation2 + $0x90] sm:$0xf]  ;;  %v6448_v59 = vld [vmem:[#allocation2 + $0x84] sm:$0xf]  ;;  %v6328_v10 = vor.u32 %v6326_v36, %v16874_v2  ;;  %v6400_v26 = vsel %vm15065_vm9, %v16728_v42, %v6399_v28  ;;  %v6407_v36 = vsel %vm15065_vm9, %v16740_v19, %v6406_v47 }
 0x4ba   : > { %6384 = vst [vmem:[#allocation2 + $0x14] sm:$0x1] %v6383_v45  ;;  %v6390_v25 = vsel %vm15071_vm10, %v18967_v58, %v6389_v0  ;;  %v18968_v17 = vrot.slane %v16708_v35, 4  ;;  %6472 = vst [vmem:[#allocation2 + $0xac] sm:$0xf] %v6295_v41  ;;  %v6330_v11 = vrot.slane %v16874_v2, 4  ;;  %v6414_v42 = vsel %vm15065_vm9, %v16754_v37, %v6413_v30 }
 0x4bb   : > { %6391 = vst [vmem:[#allocation2 + $0x20] sm:$0x1] %v6390_v25  ;;  %6387 = vst [vmem:[#allocation2 + $0x18] sm:$0xf] %v6386_v38  ;;  %v6459_v24 = vld [vmem:[#allocation2 + $0x98] sm:$0x1]  ;;  %v6329_v28 = vsel %vm15057_vm8, %v6321_v43, %v6328_v10 }
 0x4bc   : > { %v6397_v4 = vsel %vm15071_vm10, %v18968_v17, %v6396_v33  ;;  %v6469_v3 = vld [vmem:[#allocation2 + $0xa8] sm:$0xf]  ;;  %v6462_v0 = vld [vmem:[#allocation2 + $0x9c] sm:$0xf]  ;;  %v18969_v40 = vrot.slane %v16730_v54, 4  ;;  %v18970_v45 = vrot.slane %v16732_v18, 4  ;;  %v6421_v18 = vsel %vm15065_vm9, %v16767_v9, %v16860_v7 }
 0x4bd   : > { %6398 = vst [vmem:[#allocation2 + $0x2c] sm:$0x1] %v6397_v4  ;;  %6394 = vst [vmem:[#allocation2 + $0x24] sm:$0xf] %v6393_v20  ;;  %v6473_v52 = vld [vmem:[#allocation2 + $0xb0] sm:$0x1] }
 0x4be   : > { %v6404_v35 = vsel %vm15071_vm10, %v18969_v40, %v6403_v13  ;;  %v6466_v33 = vld [vmem:[#allocation2 + $0xa4] sm:$0x1]  ;;  %v6411_v41 = vsel %vm15071_vm10, %v18970_v45, %v6410_v32  ;;  %v18971_v54 = vrot.slane %v16746_v62, 4  ;;  %6401 = vst [vmem:[#allocation2 + $0x30] sm:$0xf] %v6400_v26  ;;  %v18972_v19 = vrot.slane %v16758_v12, 4 }
 0x4bf   : > { %6405 = vst [vmem:[#allocation2 + $0x38] sm:$0x1] %v6404_v35  ;;  %6412 = vst [vmem:[#allocation2 + $0x44] sm:$0x1] %v6411_v41  ;;  %v6428_v62 = vsel %vm15065_vm9, %v16779_v60, %v16858_v21  ;;  %v6476_v32 = vld [vmem:[#allocation2 + $0xb4] sm:$0xf]  ;;  %v6470_v21 = vsel %vm15065_vm9, %v16849_v63, %v6469_v3  ;;  %v6484_v63 = vsel %vm15065_vm9, %v16883_v16, %v6483_v8 }
 0x4c0   : > { %v6418_v13 = vsel %vm15071_vm10, %v18971_v54, %v6417_v15  ;;  %v6425_v37 = vsel %vm15071_vm10, %v18972_v19, %v6424_v6  ;;  %6408 = vst [vmem:[#allocation2 + $0x3c] sm:$0xf] %v6407_v36  ;;  %6415 = vst [vmem:[#allocation2 + $0x48] sm:$0xf] %v6414_v42  ;;  %v6487_v47 = vld [vmem:[#allocation2 + $0xc8] sm:$0x1]  ;;  %v6435_v6 = vsel %vm15065_vm9, %v16783_v5, %v6434_v23 }
 0x4c1   : > { %6419 = vst [vmem:[#allocation2 + $0x50] sm:$0x1] %v6418_v13  ;;  %6426 = vst [vmem:[#allocation2 + $0x5c] sm:$0x1] %v6425_v37  ;;  %v18973_v30 = vrot.slane %v16771_v29, 4  ;;  %v18974_v12 = vrot.slane %v16785_v44, 4  ;;  %v6442_v15 = vsel %vm15065_vm9, %v16795_v14, %v16870_v61  ;;  %v6449_v5 = vsel %vm15065_vm9, %v16810_v39, %v6448_v59 }
 0x4c2   : > { %6486 = vst [vmem:[#allocation2 + $0xc4] sm:$0xf] %v6329_v28  ;;  %6422 = vst [vmem:[#allocation2 + $0x54] sm:$0xf] %v6421_v18  ;;  %v18975_v29 = vrot.slane %v16797_v46, 4  ;;  %v6456_v14 = vsel %vm15065_vm9, %v16818_v48, %v6455_v27  ;;  %v18977_v46 = vrot.slane %v16820_v53, 4  ;;  %v6488_v38 = vsel %vm15071_vm10, %v6330_v11, %v6487_v47 }
 0x4c3   : > { %v6432_v9 = vsel %vm15071_vm10, %v18973_v30, %v6431_v34  ;;  %v6439_v60 = vsel %vm15071_vm10, %v18974_v12, %v6438_v57  ;;  %6429 = vst [vmem:[#allocation2 + $0x60] sm:$0xf] %v6428_v62  ;;  %v18976_v57 = vrot.slane %v16807_v55, 4  ;;  %6436 = vst [vmem:[#allocation2 + $0x6c] sm:$0xf] %v6435_v6  ;;  %v6463_v55 = vsel %vm15065_vm9, %v16838_v50, %v6462_v0 }
 0x4c4   : > { %6433 = vst [vmem:[#allocation2 + $0x68] sm:$0x1] %v6432_v9  ;;  %6440 = vst [vmem:[#allocation2 + $0x74] sm:$0x1] %v6439_v60  ;;  %v6446_v23 = vsel %vm15071_vm10, %v18975_v29, %v6445_v51  ;;  %v16958_v61 = vld [vmem:[#allocation2 + $0x10] sm:$0xf]  ;;  %v6460_v39 = vsel %vm15071_vm10, %v18977_v46, %v6459_v24 }
 0x4c5   : > { %v6453_v44 = vsel %vm15071_vm10, %v18976_v57, %v6452_v22  ;;  %6443 = vst [vmem:[#allocation2 + $0x78] sm:$0xf] %v6442_v15  ;;  %6447 = vst [vmem:[#allocation2 + $0x80] sm:$0x1] %v6446_v23  ;;  %v18978_v22 = vrot.slane %v16831_v56, 4  ;;  %v18979_v34 = vrot.slane %v16842_v1, 4 }
 0x4c6   : > { %6454 = vst [vmem:[#allocation2 + $0x8c] sm:$0x1] %v6453_v44  ;;  %6450 = vst [vmem:[#allocation2 + $0x84] sm:$0xf] %v6449_v5  ;;  %v16974_v7 = vld [vmem:[#allocation2 + $0xc] sm:$0xf] }
 0x4c7   : > { %v6467_v48 = vsel %vm15071_vm10, %v18978_v22, %v6466_v33  ;;  %6457 = vst [vmem:[#allocation2 + $0x90] sm:$0xf] %v6456_v14  ;;  %v6539_v53 = vld [vmem:[#allocation2 + $0x14] sm:$0x1]  ;;  %6461 = vst [vmem:[#allocation2 + $0x98] sm:$0x1] %v6460_v39  ;;  %v6474_v50 = vsel %vm15071_vm10, %v18979_v34, %v6473_v52 }
 0x4c8   : > { %6468 = vst [vmem:[#allocation2 + $0xa4] sm:$0x1] %v6467_v48  ;;  %v18980_v56 = vld [vmem:[#allocation24_spill] sm:$0xff]  ;;  %6464 = vst [vmem:[#allocation2 + $0x9c] sm:$0xf] %v6463_v55  ;;  %v6579_v1 = vshrl.u32 %v16974_v7, 16 }
 0x4c9   : > { %v6477_v2 = vsel %vm15065_vm9, %v18980_v56, %v6476_v32  ;;  %6471 = vst [vmem:[#allocation2 + $0xa8] sm:$0xf] %v6470_v21  ;;  %v16988_v58 = vld [vmem:[#allocation2 + $0x18] sm:$0xf]  ;;  %6475 = vst [vmem:[#allocation2 + $0xb0] sm:$0x1] %v6474_v50 }
 0x4ca   : > { %6489 = vst [vmem:[#allocation2 + $0xc8] sm:$0x1] %v6488_v38  ;;  %6478 = vst [vmem:[#allocation2 + $0xb4] sm:$0xf] %v6477_v2  ;;  %v6582_v25 = vshll.u32 %v16974_v7, 16  ;;  %v6588_v51 = vshll.u32 %v16958_v61, 16 }
 0x4cb   : > { %6485 = vst [vmem:[#allocation2 + $0xc0] sm:$0xf] %v6484_v63  ;;  %v6592_v31 = vshrl.u32 %v16958_v61, 16  ;;  %v16994_v16 = vld [vmem:[#allocation2 + $0x1c] sm:$0xf]  ;;  %v6598_v49 = vshll.u32 %v6539_v53, 16 }
 0x4cc   : > { %v6540_v27 = vld [vmem:[#allocation2 + $0x20] sm:$0x1]  ;;  %v6603_v59 = vshrl.u32 %v16988_v58, 16  ;;  %v6606_v43 = vshll.u32 %v16988_v58, 16  ;;  %v6581_v20 = vrot.slane %v6579_v1, 4  ;;  %v6584_v17 = vrot.slane %v6582_v25, 5 }
 0x4cd   : > { %v6590_v4 = vrot.slane %v6588_v51, 5  ;;  %v6594_v24 = vrot.slane %v6592_v31, 4  ;;  %v16998_v3 = vld [vmem:[#allocation2 + $0x24] sm:$0xf]  ;;  %v6600_v0 = vrot.slane %v6598_v49, 5  ;;  %v6612_v26 = vshll.u32 %v16994_v16, 16 }
 0x4ce   : > { %v6605_v10 = vrot.slane %v6603_v59, 4  ;;  %v6608_v11 = vrot.slane %v6606_v43, 5  ;;  %v6585_v40 = vor.u32 %v6584_v17, %v6581_v20  ;;  %v6616_v52 = vshrl.u32 %v16994_v16, 16  ;;  %v17002_v36 = vld [vmem:[#allocation2 + $0x28] sm:$0xf]  ;;  %v18982_v63 = vld [vmem:[#allocation23_spill] sm:$0xff] }
 0x4cf   : > { %v6595_v35 = vor.u32 %v6594_v24, %v6590_v4  ;;  %v6622_v33 = vshll.u32 %v6540_v27, 16  ;;  %v6614_v41 = vrot.slane %v6612_v26, 5  ;;  %v6627_v42 = vshrl.u32 %v16998_v3, 16  ;;  %v17006_v37 = vld [vmem:[#allocation2 + $0x2c] sm:$0x1]  ;;  %v14385_v14 = vld [vmem:[#allocation9 + $0x8] sm:$0xff]  }
 0x4d0   : > { %v6609_v45 = vor.u32 %v6608_v11, %v6605_v10  ;;  %v6630_v54 = vshll.u32 %v16998_v3, 16  ;;  %v6586_v13 = vrot.slane %v6585_v40, 4  ;;  %v6618_v18 = vrot.slane %v6616_v52, 4  ;;  %v17009_v30 = vld [vmem:[#allocation2 + $0x30] sm:$0xf] }
 0x4d1   : > { %v6596_v28 = vrot.slane %v6595_v35, 4  ;;  %v6624_v19 = vrot.slane %v6622_v33, 5  ;;  %v6629_v8 = vrot.slane %v6627_v42, 4  ;;  %v6636_v47 = vshll.u32 %v17002_v36, 16  ;;  %v17016_v29 = vld [vmem:[#allocation2 + $0x34] sm:$0xf] }
 0x4d2   : > { %v6610_v62 = vrot.slane %v6609_v45, 4  ;;  %v6632_v32 = vrot.slane %v6630_v54, 5  ;;  %v6591_v6 = vsel %vm15051_vm7, %v6586_v13, %v6590_v4  ;;  %v6619_v60 = vor.u32 %v6618_v18, %v6614_v41  ;;  %v17021_v22 = vld [vmem:[#allocation2 + $0x38] sm:$0x1]  ;;  %v17027_v56 = vld [vmem:[#allocation2 + $0x3c] sm:$0xf] }
 0x4d3   : > { %v6601_v12 = vsel %vm15051_vm7, %v6596_v28, %v6600_v0  ;;  %v6640_v15 = vshrl.u32 %v17002_v36, 16  ;;  %v6638_v44 = vrot.slane %v6636_v47, 5  ;;  %v6646_v55 = vshll.u32 %v17006_v37, 16  ;;  %v17032_v51 = vld [vmem:[#allocation2 + $0x40] sm:$0xf]  ;;  %v14386_v43 = vld [vmem:[#allocation9 + $0x10] sm:$0xff]  }
 0x4d4   : > { %v12029_v23 = vcombine.low %v6591_v6, %v6601_v12  ;;  %v6615_v5 = vsel %vm15051_vm7, %v6610_v62, %v6614_v41  ;;  %v6633_v57 = vor.u32 %v6632_v32, %v6629_v8  ;;  %v6620_v46 = vrot.slane %v6619_v60, 4  ;;  %v17037_v24 = vld [vmem:[#allocation2 + $0x44] sm:$0x1]  ;;  %v17043_v35 = vld [vmem:[#allocation2 + $0x48] sm:$0xf] }
 0x4d5   : > { %v6642_v39 = vrot.slane %v6640_v15, 4  ;;  %v6651_v48 = vshrl.u32 %v17009_v30, 16  ;;  %v6654_v53 = vshll.u32 %v17009_v30, 16  ;;  %v6660_v34 = vshll.u32 %v17016_v29, 16  ;;  %v17047_v42 = vld [vmem:[#allocation2 + $0x4c] sm:$0xf] }
 0x4d6   : > { %13245 = vmatmul.mubr.bf16.vlgmr.msra.gmra.mrb[0].mxu1 %v12029_v23  ;;  %v6634_v21 = vrot.slane %v6633_v57, 4  ;;  %v6664_v50 = vshrl.u32 %v17016_v29, 16  ;;  %v6625_v2 = vsel %vm15051_vm7, %v6620_v46, %v6624_v19  ;;  %v6648_v1 = vrot.slane %v6646_v55, 5  ;;  %v14387_v19 = vld [vmem:[#allocation9 + $0x18] sm:$0xff]   ;;  %v17053_v60 = vld [vmem:[#allocation2 + $0x50] sm:$0x1] }
 0x4d7   : > { %13277 = vmatpush3.bf16.msra.mxu1 %v18982_v63  ;;  %v6643_v38 = vor.u32 %v6642_v39, %v6638_v44  ;;  %v6653_v25 = vrot.slane %v6651_v48, 4  ;;  %v12030_v31 = vcombine.low %v6615_v5, %v6625_v2  ;;  %v6656_v27 = vrot.slane %v6654_v53, 5  ;;  %v17057_v5 = vld [vmem:[#allocation2 + $0x54] sm:$0xf]  ;;  %v17061_v39 = vld [vmem:[#allocation2 + $0x58] sm:$0xf] }
 0x4d8   : > { %v6639_v49 = vsel %vm15051_vm7, %v6634_v21, %v6638_v44  ;;  %13278 = vmatprep.subr.bf16.mxu1 %v14385_v14  ;;  %v6662_v59 = vrot.slane %v6660_v34, 5  ;;  %v6666_v17 = vrot.slane %v6664_v50, 4  ;;  %v6670_v4 = vshll.u32 %v17021_v22, 16  ;;  %v14388_v34 = vld [vmem:[#allocation9 + $0x20] sm:$0xff]  }
 0x4d9   : > { %v6644_v20 = vrot.slane %v6643_v38, 4  ;;  %v6675_v0 = vshrl.u32 %v17027_v56, 16  ;;  %13248 = vmatprep.mubr.bf16.mxu1 %v12030_v31  ;;  %v6657_v10 = vor.u32 %v6656_v27, %v6653_v25  ;;  %v6678_v11 = vshll.u32 %v17027_v56, 16  ;;  %v17068_v31 = vld [vmem:[#allocation2 + $0x5c] sm:$0x1] }
 0x4da   : > { %v6684_v26 = vshll.u32 %v17032_v51, 16  ;;  %v6688_v40 = vshrl.u32 %v17032_v51, 16  ;;  %v6667_v33 = vor.u32 %v6666_v17, %v6662_v59  ;;  %v6672_v45 = vrot.slane %v6670_v4, 5 }
 0x4db   : > { %v6649_v52 = vsel %vm15051_vm7, %v6644_v20, %v6648_v1  ;;  %13279 = vmatpush3.bf16.msra.mxu1 %v14385_v14  ;;  %v6677_v41 = vrot.slane %v6675_v0, 4  ;;  %v6658_v13 = vrot.slane %v6657_v10, 4  ;;  %v6680_v28 = vrot.slane %v6678_v11, 5  ;;  %v17076_v0 = vld [vmem:[#allocation2 + $0x64] sm:$0xf] }
 0x4dc   : > { %v12031_v54 = vcombine.low %v6639_v49, %v6649_v52  ;;  %v6686_v18 = vrot.slane %v6684_v26, 5  ;;  %13280 = vmatprep.subr.bf16.mxu1 %v14386_v43  ;;  %v6668_v62 = vrot.slane %v6667_v33, 4  ;;  %v6690_v8 = vrot.slane %v6688_v40, 4  ;;  %v14389_v52 = vld [vmem:[#allocation9 + $0x28] sm:$0xff]  }
 0x4dd   : > { %v6694_v32 = vshll.u32 %v17037_v24, 16  ;;  %v6699_v47 = vshrl.u32 %v17043_v35, 16  ;;  %v6663_v6 = vsel %vm15051_vm7, %v6658_v13, %v6662_v59  ;;  %v6681_v12 = vor.u32 %v6680_v28, %v6677_v41  ;;  %v17072_v59 = vld [vmem:[#allocation2 + $0x60] sm:$0xf] }
 0x4de   : > { %13249 = vmatmul.mubr.bf16.gmra.mrb[4].mxu1 %v12031_v54  ;;  %v6702_v15 = vshll.u32 %v17043_v35, 16  ;;  %v6708_v23 = vshll.u32 %v17047_v42, 16  ;;  %v6673_v57 = vsel %vm15051_vm7, %v6668_v62, %v6672_v45  ;;  %v6691_v44 = vor.u32 %v6690_v8, %v6686_v18  ;;  %v17087_v8 = vld [vmem:[#allocation2 + $0x6c] sm:$0xf] }
 0x4df   : > { %v6696_v14 = vrot.slane %v6694_v32, 5  ;;  %v6701_v46 = vrot.slane %v6699_v47, 4  ;;  %13281 = vmatpush3.bf16.msra.mxu1 %v14386_v43  ;;  %v12032_v55 = vcombine.low %v6663_v6, %v6673_v57  ;;  %v6682_v48 = vrot.slane %v6681_v12, 4  ;;  %v14390_v32 = vld [vmem:[#allocation9 + $0x30] sm:$0xff]  }
 0x4e0   : > { %v6704_v21 = vrot.slane %v6702_v15, 5  ;;  %v6710_v53 = vrot.slane %v6708_v23, 5  ;;  %13282 = vmatprep.subr.bf16.mxu1 %v14387_v19  ;;  %v6692_v50 = vrot.slane %v6691_v44, 4  ;;  %v6712_v2 = vshrl.u32 %v17047_v42, 16  ;;  %v17089_v23 = vld [vmem:[#allocation2 + $0x70] sm:$0xf] }
 0x4e1   : > { %v6718_v63 = vshll.u32 %v17053_v60, 16  ;;  %v6723_v38 = vshrl.u32 %v17057_v5, 16  ;;  %13252 = vmatprep.mubr.bf16.mxu1 %v12032_v55  ;;  %v6687_v1 = vsel %vm15051_vm7, %v6682_v48, %v6686_v18  ;;  %v6726_v49 = vshll.u32 %v17057_v5, 16  ;;  %v17083_v18 = vld [vmem:[#allocation2 + $0x68] sm:$0x1] }
 0x4e2   : > { %v6705_v25 = vor.u32 %v6704_v21, %v6701_v46  ;;  %v6732_v27 = vshll.u32 %v17061_v39, 16  ;;  %v6697_v43 = vsel %vm15051_vm7, %v6692_v50, %v6696_v14  ;;  %v6714_v20 = vrot.slane %v6712_v2, 4  ;;  %18983 = vst [vmem:[#allocation25_spill] sm:$0xff] %v17083_v18  ;;  %v17092_v55 = vld [vmem:[#allocation2 + $0x74] sm:$0x1] }
 0x4e3   : > { %v6720_v17 = vrot.slane %v6718_v63, 5  ;;  %v6725_v4 = vrot.slane %v6723_v38, 4  ;;  %13283 = vmatpush3.bf16.msra.mxu1 %v14387_v19  ;;  %v12033_v10 = vcombine.low %v6687_v1, %v6697_v43  ;;  %v6728_v26 = vrot.slane %v6726_v49, 5  ;;  %18984 = vst [vmem:[#allocation21_spill] sm:$0xff] %v17092_v55  ;;  %v17098_v2 = vld [vmem:[#allocation2 + $0x78] sm:$0xf] }
 0x4e4   : > { %v6706_v11 = vrot.slane %v6705_v25, 4  ;;  %v6734_v40 = vrot.slane %v6732_v27, 5  ;;  %13284 = vmatprep.subr.bf16.mxu1 %v14388_v34  ;;  %v6715_v33 = vor.u32 %v6714_v20, %v6710_v53  ;;  %v6736_v45 = vshrl.u32 %v17061_v39, 16  ;;  %v17103_v20 = vld [vmem:[#allocation2 + $0x7c] sm:$0xf] }
 0x4e5   : > { %v6742_v41 = vshll.u32 %v17068_v31, 16  ;;  %v6747_v54 = vshrl.u32 %v17072_v59, 16  ;;  %v6729_v28 = vor.u32 %v6728_v26, %v6725_v4  ;;  %v6750_v19 = vshll.u32 %v17072_v59, 16  ;;  %v17107_v26 = vld [vmem:[#allocation2 + $0x80] sm:$0x1] }
 0x4e6   : > { %13253 = vmatmul.mubr.bf16.gmra.mrb[8].mxu1 %v12033_v10  ;;  %v6711_v13 = vsel %vm15051_vm7, %v6706_v11, %v6710_v53  ;;  %v6756_v62 = vshll.u32 %v17076_v0, 16  ;;  %v6716_v47 = vrot.slane %v6715_v33, 4  ;;  %v6738_v6 = vrot.slane %v6736_v45, 4  ;;  %18985 = vst [vmem:[#allocation22_spill] sm:$0xff] %v17107_v26 }
 0x4e7   : > { %v6744_v12 = vrot.slane %v6742_v41, 5  ;;  %v6749_v15 = vrot.slane %v6747_v54, 4  ;;  %13285 = vmatpush3.bf16.msra.mxu1 %v14388_v34  ;;  %v6730_v57 = vrot.slane %v6729_v28, 4  ;;  %v6752_v44 = vrot.slane %v6750_v19, 5 }
 0x4e8   : > { %v6758_v14 = vrot.slane %v6756_v62, 5  ;;  %v6760_v46 = vshrl.u32 %v17076_v0, 16  ;;  %13286 = vmatprep.subr.bf16.mxu1 %v14389_v52  ;;  %v6721_v48 = vsel %vm15051_vm7, %v6716_v47, %v6720_v17  ;;  %v6739_v21 = vor.u32 %v6738_v6, %v6734_v40 }
 0x4e9   : > { %v6766_v53 = vshll.u32 %v17083_v18, 16  ;;  %v6771_v50 = vshrl.u32 %v17087_v8, 16  ;;  %v12034_v63 = vcombine.low %v6711_v13, %v6721_v48  ;;  %v6735_v34 = vsel %vm15051_vm7, %v6730_v57, %v6734_v40  ;;  %v14391_v40 = vld [vmem:[#allocation9 + $0x38] sm:$0xff]   ;;  %v17201_v18 = vld [vmem:[#allocation2 + $0x4] sm:$0xf] }
 0x4ea   : > { %v6753_v38 = vor.u32 %v6752_v44, %v6749_v15  ;;  %v6762_v1 = vrot.slane %v6760_v46, 4  ;;  %v6740_v25 = vrot.slane %v6739_v21, 4  ;;  %v6774_v43 = vshll.u32 %v17087_v8, 16  ;;  %v17117_v44 = vld [vmem:[#allocation2 + $0x88] sm:$0xf] }
 0x4eb   : > { %v6768_v49 = vrot.slane %v6766_v53, 5  ;;  %v6773_v27 = vrot.slane %v6771_v50, 4  ;;  %13287 = vmatpush3.bf16.msra.mxu1 %v14389_v52  ;;  %13256 = vmatprep.mubr.bf16.mxu1 %v12034_v63  ;;  %v6780_v10 = vshll.u32 %v17089_v23, 16  ;;  %v6784_v11 = vshrl.u32 %v17089_v23, 16  ;;  %v17113_v52 = vld [vmem:[#allocation2 + $0x84] sm:$0xf] }
 0x4ec   : > { %v6754_v17 = vrot.slane %v6753_v38, 4  ;;  %v6763_v4 = vor.u32 %v6762_v1, %v6758_v14  ;;  %13288 = vmatprep.subr.bf16.mxu1 %v14390_v32  ;;  %v6745_v33 = vsel %vm15051_vm7, %v6740_v25, %v6744_v12  ;;  %v6776_v45 = vrot.slane %v6774_v43, 5  ;;  %v17126_v53 = vld [vmem:[#allocation9 + $0x80] sm:$0xff]  }
 0x4ed   : > { %v6790_v41 = vshll.u32 %v17092_v55, 16  ;;  %v6795_v54 = vshrl.u32 %v17098_v2, 16  ;;  %v12035_v13 = vcombine.low %v6735_v34, %v6745_v33  ;;  %v6782_v62 = vrot.slane %v6780_v10, 5  ;;  %v14532_v55 = vld [vmem:[#allocation2] sm:$0xf] }
 0x4ee   : > { %v6759_v28 = vsel %vm15051_vm7, %v6754_v17, %v6758_v14  ;;  %v6764_v19 = vrot.slane %v6763_v4, 4  ;;  %v6777_v47 = vor.u32 %v6776_v45, %v6773_v27  ;;  %v6786_v6 = vrot.slane %v6784_v11, 4  ;;  %v17124_v14 = vld [vmem:[#allocation2 + $0x8c] sm:$0x1]  ;;  %v17130_v27 = vld [vmem:[#allocation2 + $0x90] sm:$0xf] }
 0x4ef   : > { %v6792_v15 = vrot.slane %v6790_v41, 5  ;;  %v6797_v57 = vrot.slane %v6795_v54, 4  ;;  %13289 = vmatpush3.bf16.msra.mxu1 %v14390_v32  ;;  %v6798_v46 = vshll.u32 %v17098_v2, 16  ;;  %v6804_v48 = vshll.u32 %v17103_v20, 16  ;;  %18986 = vst [vmem:[#allocation17_spill] sm:$0xff] %v17124_v14 }
 0x4f0   : > { %13257 = vmatmul.mubr.bf16.gmra.mrb[12].mxu1 %v12035_v13  ;;  %v6769_v12 = vsel %vm15051_vm7, %v6764_v19, %v6768_v49  ;;  %v6808_v21 = vshrl.u32 %v17103_v20, 16  ;;  %13290 = vmatprep.subr.bf16.mxu1 %v14391_v40  ;;  %v6778_v63 = vrot.slane %v6777_v47, 4  ;;  %v6787_v34 = vor.u32 %v6786_v6, %v6782_v62  ;;  %v17135_v11 = vld [vmem:[#allocation2 + $0x94] sm:$0xf]  ;;  %v17143_v47 = vld [vmem:[#allocation2 + $0x98] sm:$0x1] }
 0x4f1   : > { %v12036_v50 = vcombine.low %v6759_v28, %v6769_v12  ;;  %v6814_v32 = vshll.u32 %v17107_v26, 16  ;;  %v6800_v38 = vrot.slane %v6798_v46, 5  ;;  %v6806_v1 = vrot.slane %v6804_v48, 5  ;;  %18987 = vst [vmem:[#allocation19_spill] sm:$0xff] %v17143_v47 }
 0x4f2   : > { %v6810_v25 = vrot.slane %v6808_v21, 4  ;;  %v6819_v49 = vshrl.u32 %v17113_v52, 16  ;;  %v6783_v43 = vsel %vm15051_vm7, %v6778_v63, %v6782_v62  ;;  %v6788_v17 = vrot.slane %v6787_v34, 4 }
 0x4f3   : > { %13260 = vmatprep.mubr.bf16.mxu1 %v12036_v50  ;;  %v6816_v4 = vrot.slane %v6814_v32, 5  ;;  %v6822_v10 = vshll.u32 %v17113_v52, 16  ;;  %13291 = vmatpush3.bf16.msra.mxu1 %v14391_v40  ;;  %v6801_v33 = vor.u32 %v6800_v38, %v6797_v57  ;;  %v6828_v54 = vshll.u32 %v17117_v44, 16  ;;  %v17152_v38 = vld [vmem:[#allocation2 + $0x9c] sm:$0xf] }
 0x4f4   : > { %v6811_v45 = vor.u32 %v6810_v25, %v6806_v1  ;;  %v6821_v41 = vrot.slane %v6819_v49, 4  ;;  %13324 = vmatprep.subr.bf16.mxu1 %v17126_v53  ;;  %v6793_v13 = vsel %vm15051_vm7, %v6788_v17, %v6792_v15  ;;  %v6832_v19 = vshrl.u32 %v17117_v44, 16 }
 0x4f5   : > { %v6824_v28 = vrot.slane %v6822_v10, 5  ;;  %v6838_v62 = vshll.u32 %v17124_v14, 16  ;;  %v12037_v6 = vcombine.low %v6783_v43, %v6793_v13  ;;  %v6802_v12 = vrot.slane %v6801_v33, 4  ;;  %v17154_v10 = vld [vmem:[#allocation2 + $0xa0] sm:$0xf] }
 0x4f6   : > { %v6812_v40 = vrot.slane %v6811_v45, 4  ;;  %v6830_v57 = vrot.slane %v6828_v54, 5  ;;  %v6834_v48 = vrot.slane %v6832_v19, 4  ;;  %v6843_v50 = vshrl.u32 %v17130_v27, 16  ;;  %v17160_v13 = vld [vmem:[#allocation2 + $0xa4] sm:$0x1] }
 0x4f7   : > { %v6825_v46 = vor.u32 %v6824_v28, %v6821_v41  ;;  %v6840_v21 = vrot.slane %v6838_v62, 5  ;;  %v6807_v15 = vsel %vm15051_vm7, %v6802_v12, %v6806_v1  ;;  %v6846_v34 = vshll.u32 %v17130_v27, 16  ;;  %18988 = vst [vmem:[#allocation18_spill] sm:$0xff] %v17160_v13 }
 0x4f8   : > { %13261 = vmatmul.mubr.bf16.gmra.mrb[16].mxu1 %v12037_v6  ;;  %v6817_v63 = vsel %vm15051_vm7, %v6812_v40, %v6816_v4  ;;  %v6852_v32 = vshll.u32 %v17135_v11, 16  ;;  %v6835_v43 = vor.u32 %v6834_v48, %v6830_v57  ;;  %v6845_v17 = vrot.slane %v6843_v50, 4 }
 0x4f9   : > { %v12038_v25 = vcombine.low %v6807_v15, %v6817_v63  ;;  %v6826_v49 = vrot.slane %v6825_v46, 4  ;;  %v6848_v33 = vrot.slane %v6846_v34, 5  ;;  %v6856_v41 = vshrl.u32 %v17135_v11, 16  ;;  %v17165_v46 = vld [vmem:[#allocation2 + $0xa8] sm:$0xf] }
 0x4fa   : > { %v6854_v45 = vrot.slane %v6852_v32, 5  ;;  %v6862_v1 = vshll.u32 %v17143_v47, 16  ;;  %v6836_v54 = vrot.slane %v6835_v43, 4  ;;  %v6867_v28 = vshrl.u32 %v17152_v38, 16  ;;  %v17170_v63 = vld [vmem:[#allocation2 + $0xac] sm:$0xf] }
 0x4fb   : > { %13264 = vmatprep.mubr.bf16.mxu1 %v12038_v25  ;;  %v6831_v4 = vsel %vm15051_vm7, %v6826_v49, %v6830_v57  ;;  %v6870_v19 = vshll.u32 %v17152_v38, 16  ;;  %v6849_v62 = vor.u32 %v6848_v33, %v6845_v17  ;;  %v6858_v6 = vrot.slane %v6856_v41, 4 }
 0x4fc   : > { %v6864_v12 = vrot.slane %v6862_v1, 5  ;;  %v6876_v40 = vshll.u32 %v17154_v10, 16  ;;  %v6841_v48 = vsel %vm15051_vm7, %v6836_v54, %v6840_v21  ;;  %v6869_v50 = vrot.slane %v6867_v28, 4  ;;  %v17176_v54 = vld [vmem:[#allocation2 + $0xb0] sm:$0x1] }
 0x4fd   : > { %v6872_v15 = vrot.slane %v6870_v19, 5  ;;  %v6880_v57 = vshrl.u32 %v17154_v10, 16  ;;  %v12039_v34 = vcombine.low %v6831_v4, %v6841_v48  ;;  %v6850_v32 = vrot.slane %v6849_v62, 4  ;;  %18989 = vst [vmem:[#allocation24_spill] sm:$0xff] %v17176_v54  ;;  %v17180_v48 = vld [vmem:[#allocation2 + $0xb4] sm:$0xf] }
 0x4fe   : > { %v6859_v25 = vor.u32 %v6858_v6, %v6854_v45  ;;  %v6878_v49 = vrot.slane %v6876_v40, 5  ;;  %v6886_v33 = vshll.u32 %v17160_v13, 16  ;;  %v6891_v41 = vshrl.u32 %v17165_v46, 16 }
 0x4ff   : > { %v6873_v43 = vor.u32 %v6872_v15, %v6869_v50  ;;  %v6882_v17 = vrot.slane %v6880_v57, 4  ;;  %v6855_v21 = vsel %vm15051_vm7, %v6850_v32, %v6854_v45  ;;  %v6894_v28 = vshll.u32 %v17165_v46, 16 }
 0x500   : > { %13265 = vmatmul.mubr.bf16.gmra.mrb[20].mxu1 %v12039_v34  ;;  %v6860_v1 = vrot.slane %v6859_v25, 4  ;;  %v6900_v4 = vshll.u32 %v17170_v63, 16  ;;  %v6888_v6 = vrot.slane %v6886_v33, 5  ;;  %v6893_v40 = vrot.slane %v6891_v41, 4  ;;  %v17185_v34 = vld [vmem:[#allocation2 + $0xb8] sm:$0xf] }
 0x501   : > { %v6874_v19 = vrot.slane %v6873_v43, 4  ;;  %v6883_v62 = vor.u32 %v6882_v17, %v6878_v49  ;;  %v6896_v15 = vrot.slane %v6894_v28, 5  ;;  %v6904_v45 = vshrl.u32 %v17170_v63, 16  ;;  %v17190_v41 = vld [vmem:[#allocation2 + $0xbc] sm:$0x1] }
 0x502   : > { %v6865_v50 = vsel %vm15051_vm7, %v6860_v1, %v6864_v12  ;;  %v6902_v57 = vrot.slane %v6900_v4, 5  ;;  %v6910_v43 = vshll.u32 %v17176_v54, 16  ;;  %v6915_v47 = vshrl.u32 %v17180_v48, 16 }
 0x503   : > { %v12040_v32 = vcombine.low %v6855_v21, %v6865_v50  ;;  %v6879_v25 = vsel %vm15051_vm7, %v6874_v19, %v6878_v49  ;;  %v6884_v13 = vrot.slane %v6883_v62, 4  ;;  %v6897_v17 = vor.u32 %v6896_v15, %v6893_v40 }
 0x504   : > { %v6906_v33 = vrot.slane %v6904_v45, 4  ;;  %v6918_v12 = vshll.u32 %v17180_v48, 16  ;;  %v6924_v21 = vshll.u32 %v17185_v34, 16  ;;  %v6928_v28 = vshrl.u32 %v17185_v34, 16 }
 0x505   : > { %13268 = vmatprep.mubr.bf16.mxu1 %v12040_v32  ;;  %v6889_v1 = vsel %vm15051_vm7, %v6884_v13, %v6888_v6  ;;  %v6898_v4 = vrot.slane %v6897_v17, 4  ;;  %v6917_v62 = vrot.slane %v6915_v47, 4  ;;  %v6934_v45 = vshll.u32 %v17190_v41, 16 }
 0x506   : > { %v12041_v49 = vcombine.low %v6879_v25, %v6889_v1  ;;  %v6907_v19 = vor.u32 %v6906_v33, %v6902_v57  ;;  %v6920_v40 = vrot.slane %v6918_v12, 5  ;;  %v6926_v50 = vrot.slane %v6924_v21, 5 }
 0x507   : > { %v6930_v15 = vrot.slane %v6928_v28, 4  ;;  %v6903_v32 = vsel %vm15051_vm7, %v6898_v4, %v6902_v57  ;;  %v6912_v14 = vrot.slane %v6910_v43, 5  ;;  %v6936_v26 = vrot.slane %v6934_v45, 5  ;;  %v14397_v45 = vld [vmem:[#allocation9 + $0x88] sm:$0xff]  }
 0x508   : > { %13269 = vmatmul.mubr.bf16.gmra.mrb[24].mxu1 %v12041_v49  ;;  %v6908_v54 = vrot.slane %v6907_v19, 4  ;;  %v6921_v13 = vor.u32 %v6920_v40, %v6917_v62  ;;  %v12052_v25 = vcombine.low %v14532_v55, %v17201_v18  ;;  %v12055_v17 = vcombine.low %v16998_v3, %v17002_v36  ;;  %v7544_v28 = vld [vmem:[#allocation2 + $0x84] sm:$0xe]  ;;  %v18993_v55 = vld [vmem:[#allocation22_spill] sm:$0xff] }
 0x509   : > { %v6931_v6 = vor.u32 %v6930_v15, %v6926_v50  ;;  %v12056_v33 = vcombine.low %v17009_v30, %v17016_v29  ;;  %v12057_v57 = vcombine.low %v17027_v56, %v17032_v51  ;;  %v7614_v62 = vrot.slane %v17021_v22, 5  ;;  %v8441_v56 = vld [vmem:[#allocation2 + $0xac] sm:$0xf] }
 0x50a   : > { %v6913_v47 = vsel %vm15051_vm7, %v6908_v54, %v6912_v14  ;;  %v6922_v12 = vrot.slane %v6921_v13, 4  ;;  %v7537_v13 = vld [vmem:[#allocation2 + $0x30] sm:$0xe]  ;;  %v7628_v19 = vrot.slane %v17053_v60, 5  ;;  %v7656_v21 = vrot.slane %v18993_v55, 5 }
 0x50b   : > { %v12042_v43 = vcombine.low %v6903_v32, %v6913_v47  ;;  %v6932_v1 = vrot.slane %v6931_v6, 4  ;;  %v7604_v6 = vrot.slane %v17002_v36, 5  ;;  %v12080_v47 = vrot.slane %v7537_v13, 9  ;;  %v7539_v32 = vld [vmem:[#allocation2 + $0x48] sm:$0xe] }
 0x50c   : > { %v6927_v49 = vsel %vm15051_vm7, %v6922_v12, %v6926_v50  ;;  %v7536_v50 = vld [vmem:[#allocation2 + $0x24] sm:$0xe]  ;;  %v7538_v12 = vld [vmem:[#allocation2 + $0x3c] sm:$0xe]  ;;  %v7545_v60 = vld [vmem:[#allocation2 + $0x90] sm:$0xe] }
 0x50d   : > { %13272 = vmatprep.mubr.bf16.mxu1 %v12042_v43  ;;  %v6937_v4 = vsel %vm15051_vm7, %v6932_v1, %v6936_v26  ;;  %v12079_v26 = vrot.slane %v7536_v50, 9  ;;  %v7611_v43 = vrot.slane %v17016_v29, 5  ;;  %v12053_v1 = vcombine.low %v16974_v7, %v16958_v61  ;;  %v18994_v29 = vld [vmem:[#allocation17_spill] sm:$0xff] }
 0x50e   : > { %v12043_v40 = vcombine.low %v6927_v49, %v6937_v4  ;;  %v12054_v49 = vcombine.low %v16988_v58, %v16994_v16  ;;  %v7607_v4 = vrot.slane %v17006_v37, 5  ;;  %v7606_v50 = vrot.slane %v7604_v6, 4  ;;  %v7540_v16 = vld [vmem:[#allocation2 + $0x54] sm:$0xe] }
 0x50f   : > { %v17249_v13 = vsel %vm15456_vm13, %v12080_v47, %v7611_v43  ;;  %v7613_v15 = vrot.slane %v7611_v43, 4  ;;  %v12081_v61 = vrot.slane %v7538_v12, 9  ;;  %v7618_v7 = vrot.slane %v17032_v51, 5  ;;  %v7541_v47 = vld [vmem:[#allocation2 + $0x60] sm:$0xe] }
 0x510   : > { %13273 = vmatmul.mubr.bf16.gmra.mrb[28].mxu1 %v12043_v40  ;;  %v7621_v58 = vrot.slane %v17037_v24, 5  ;;  %v17256_v37 = vsel %vm15456_vm13, %v7606_v50, %v7607_v4  ;;  %v12083_v4 = vrot.slane %v7540_v16, 9  ;;  %v7542_v50 = vld [vmem:[#allocation2 + $0x6c] sm:$0xe]  ;;  %v7639_v16 = vrot.slane %v17076_v0, 5 }
 0x511   : > { %13292 = vmatprep.mubr.bf16.mxu1 %v12052_v25  ;;  %v17245_v25 = vsel %vm15456_vm13, %v12079_v26, %v7604_v6  ;;  %v12082_v26 = vrot.slane %v7539_v32, 9  ;;  %v7625_v6 = vrot.slane %v17047_v42, 5  ;;  %v17264_v43 = vsel %vm15456_vm13, %v7613_v15, %v7614_v62  ;;  %v14400_v62 = vld [vmem:[#allocation9 + $0x90] sm:$0xff]  }
 0x512   : > { %v17268_v24 = vsel %vm15456_vm13, %v12081_v61, %v7618_v7  ;;  %v7620_v12 = vrot.slane %v7618_v7, 4  ;;  %v12084_v61 = vrot.slane %v7541_v47, 9  ;;  %v7543_v7 = vld [vmem:[#allocation2 + $0x78] sm:$0xe]  ;;  %v12085_v54 = vrot.slane %v7542_v50, 9  ;;  %v18992_v50 = vld [vmem:[#allocation21_spill] sm:$0xff] }
 0x513   : > { %v17275_v32 = vsel %vm15456_vm13, %v12082_v26, %v7625_v6  ;;  %v12086_v14 = vrot.slane %v7543_v7, 9  ;;  %v7660_v36 = vrot.slane %v17117_v44, 5  ;;  %v7548_v7 = vld [vmem:[#allocation2 + $0xb4] sm:$0xe] }
 0x514   : > { %v17279_v15 = vsel %vm15456_vm13, %v7620_v12, %v7621_v58  ;;  %v17299_v47 = vsel %vm15456_vm13, %v12084_v61, %v7639_v16 }
 0x518   : > { %13293 = vmatmul.mubr.bf16.vlgmr.msra.gmra.mrb[0].mxu1 %v12053_v1  ;;  %v7627_v1 = vrot.slane %v7625_v6, 4  ;;  %v18991_v6 = vld [vmem:[#allocation25_spill] sm:$0xff] }
 0x519   : > { %13296 = vmatprep.mubr.bf16.mxu1 %v12054_v49  ;;  %13325 = vmatpush3.bf16.msra.mxu1 %v17126_v53  ;;  %v7632_v49 = vrot.slane %v17061_v39, 5  ;;  %v7635_v53 = vrot.slane %v17068_v31, 5  ;;  %v7642_v22 = vrot.slane %v18991_v6, 5  ;;  %v14403_v6 = vld [vmem:[#allocation9 + $0x98] sm:$0xff]  }
 0x51a   : > { %13326 = vmatprep.subr.bf16.mxu1 %v14397_v45  ;;  %v17287_v26 = vsel %vm15456_vm13, %v7627_v1, %v7628_v19  ;;  %v7641_v19 = vrot.slane %v7639_v16, 4  ;;  %v7646_v1 = vrot.slane %v17089_v23, 5 }
 0x51b   : > { %v7634_v12 = vrot.slane %v7632_v49, 4  ;;  %v17295_v31 = vsel %vm15456_vm13, %v12083_v4, %v7632_v49  ;;  %v7653_v4 = vrot.slane %v17103_v20, 5  ;;  %v12087_v49 = vrot.slane %v7544_v28, 9 }
 0x51c   : > { %v17312_v61 = vsel %vm15456_vm13, %v7641_v19, %v7642_v22  ;;  %v7648_v16 = vrot.slane %v7646_v1, 4  ;;  %v7667_v22 = vrot.slane %v17135_v11, 5  ;;  %v7662_v19 = vrot.slane %v7660_v36, 4 }
 0x51d   : > { %13327 = vmatpush3.bf16.msra.mxu1 %v14397_v45  ;;  %v17304_v58 = vsel %vm15456_vm13, %v7634_v12, %v7635_v53  ;;  %v7649_v45 = vrot.slane %v18992_v50, 5  ;;  %v14406_v53 = vld [vmem:[#allocation9 + $0xa0] sm:$0xff]   ;;  %v17322_v12 = vsel %vm15456_vm13, %v12085_v54, %v7646_v1  ;;  %v7655_v50 = vrot.slane %v7653_v4, 4  ;;  %v18995_v1 = vld [vmem:[#allocation19_spill] sm:$0xff] }
 0x51e   : > { %13328 = vmatprep.subr.bf16.mxu1 %v14400_v62  ;;  %v17333_v3 = vsel %vm15456_vm13, %v12086_v14, %v7653_v4  ;;  %v7546_v54 = vld [vmem:[#allocation2 + $0x9c] sm:$0xe]  ;;  %v17349_v4 = vsel %vm15456_vm13, %v12087_v49, %v7660_v36 }
 0x51f   : > { %v17329_v55 = vsel %vm15456_vm13, %v7648_v16, %v7649_v45  ;;  %v17340_v30 = vsel %vm15456_vm13, %v7655_v50, %v7656_v21  ;;  %v14409_v45 = vld [vmem:[#allocation9 + $0xa8] sm:$0xff]   ;;  %v7669_v16 = vrot.slane %v7667_v22, 4  ;;  %v12089_v28 = vrot.slane %v7546_v54, 9  ;;  %v18996_v54 = vld [vmem:[#allocation18_spill] sm:$0xff] }
 0x520   : > { %13297 = vmatmul.mubr.bf16.gmra.mrb[4].mxu1 %v12055_v17  ;;  %v12088_v17 = vrot.slane %v7545_v60, 9  ;;  %v7670_v60 = vrot.slane %v18995_v1, 5  ;;  %v7674_v21 = vrot.slane %v17154_v10, 5  ;;  %v7681_v1 = vrot.slane %v17170_v63, 5 }
 0x521   : > { %13300 = vmatprep.mubr.bf16.mxu1 %v12056_v33  ;;  %13329 = vmatpush3.bf16.msra.mxu1 %v14400_v62  ;;  %v7663_v33 = vrot.slane %v18994_v29, 5  ;;  %v7547_v62 = vld [vmem:[#allocation2 + $0xa8] sm:$0xe] }
 0x522   : > { %13330 = vmatprep.subr.bf16.mxu1 %v14403_v6  ;;  %v17358_v29 = vsel %vm15456_vm13, %v12088_v17, %v7667_v22  ;;  %v12090_v14 = vrot.slane %v7547_v62, 9  ;;  %v17365_v36 = vsel %vm15456_vm13, %v7669_v16, %v7670_v60  ;;  %v7683_v17 = vrot.slane %v7681_v1, 4  ;;  %v18997_v22 = vld [vmem:[#allocation24_spill] sm:$0xff] }
 0x523   : > { %v17354_v50 = vsel %vm15456_vm13, %v7662_v19, %v7663_v33  ;;  %v7677_v33 = vrot.slane %v18996_v54, 5  ;;  %v7684_v62 = vrot.slane %v18997_v22, 5  ;;  %v17376_v49 = vsel %vm15456_vm13, %v12089_v28, %v7674_v21  ;;  %v8439_v28 = vld [vmem:[#allocation2 + $0xa4] sm:$0x1] }
 0x524   : > { %v12091_v16 = vrot.slane %v7548_v7, 9  ;;  %v7688_v54 = vrot.slane %v17185_v34, 5  ;;  %v18998_v19 = vcombine.low %v17043_v35, %v17047_v42  ;;  %v17390_v51 = vsel %vm15456_vm13, %v12090_v14, %v7681_v1  ;;  %v14412_v7 = vld [vmem:[#allocation9 + $0xb0] sm:$0xff]   ;;  %v14415_v1 = vld [vmem:[#allocation9 + $0xb8] sm:$0xff]   ;;  %v9167_v14 = vld [vmem:[#allocation2 + $0x9c] sm:$0xe] }
 0x525   : > { %13331 = vmatpush3.bf16.msra.mxu1 %v14403_v6  ;;  %v7676_v6 = vrot.slane %v7674_v21, 4  ;;  %v7691_v35 = vrot.slane %v17190_v41, 5  ;;  %v19000_v41 = vcombine.low %v17072_v59, %v17076_v0  ;;  %v7583_v59 = vrot.slane %v17201_v18, 5  ;;  %v7533_v0 = vld [vmem:[#allocation2] sm:$0xe] }
 0x526   : > { %13332 = vmatprep.subr.bf16.mxu1 %v14406_v53  ;;  %v7690_v21 = vrot.slane %v7688_v54, 4  ;;  %v17401_v42 = vsel %vm15456_vm13, %v12091_v16, %v7688_v54  ;;  %v14535_v18 = vld [vmem:[#allocation2 + $0x10] sm:$0xf]  ;;  %v7534_v54 = vld [vmem:[#allocation2 + $0xc] sm:$0xe] }
 0x527   : > { %v17380_v60 = vsel %vm15456_vm13, %v7676_v6, %v7677_v33  ;;  %v18999_v6 = vcombine.low %v17057_v5, %v17061_v39  ;;  %v14416_v33 = vld [vmem:[#allocation9 + $0xc0] sm:$0xff]   ;;  %v19003_v5 = vcombine.low %v17113_v52, %v17117_v44  ;;  %v19004_v39 = vcombine.low %v17130_v27, %v17135_v11 }
 0x528   : > { %13301 = vmatmul.mubr.bf16.gmra.mrb[8].mxu1 %v12057_v57  ;;  %v17394_v57 = vsel %vm15456_vm13, %v7683_v17, %v7684_v62  ;;  %v14534_v17 = vld [vmem:[#allocation2 + $0x8] sm:$0x1]  ;;  %v12076_v62 = vrot.slane %v7533_v0, 9  ;;  %v7590_v44 = vrot.slane %v14535_v18, 5  ;;  %v14536_v27 = vld [vmem:[#allocation2 + $0x1c] sm:$0xf] }
 0x529   : > { %13304 = vmatprep.mubr.bf16.mxu1 %v18998_v19  ;;  %13333 = vmatpush3.bf16.msra.mxu1 %v14406_v53  ;;  %v17405_v53 = vsel %vm15456_vm13, %v7690_v21, %v7691_v35  ;;  %v19002_v19 = vcombine.low %v17098_v2, %v17103_v20  ;;  %v7586_v22 = vrot.slane %v14534_v17, 5  ;;  %v19006_v2 = vcombine.low %v17165_v46, %v17170_v63  ;;  %v7535_v21 = vld [vmem:[#allocation2 + $0x18] sm:$0xe]  ;;  %v14537_v46 = vld [vmem:[#allocation2 + $0x14] sm:$0x1]  ;;  %v14418_v0 = vld [vmem:[#allocation9 + $0xd0] sm:$0xff]  }
 0x52a   : > { %13334 = vmatprep.subr.bf16.mxu1 %v14409_v45  ;;  %v7584_v20 = vsel %vm15456_vm13, %v12076_v62, %v7583_v59  ;;  %v7597_v11 = vrot.slane %v14536_v27, 5  ;;  %v7593_v63 = vrot.slane %v14537_v46, 5  ;;  %v12077_v35 = vrot.slane %v7534_v54, 9  ;;  %v14419_v17 = vld [vmem:[#allocation9 + $0xd8] sm:$0xff]   ;;  %v9159_v54 = vld [vmem:[#allocation2 + $0x3c] sm:$0xe] }
 0x52b   : > { %v19009_v62 = vcombine.low %v17249_v13, %v17264_v43  ;;  %v17461_v13 = vld [vmem:[#allocation2 + $0x28] sm:$0xf]  ;;  %v14423_v43 = vld [vmem:[#allocation9 + $0xf8] sm:$0xff]  }
 0x52c   : > { %v17465_v18 = vld [vmem:[#allocation2 + $0x34] sm:$0xf]  ;;  %v17476_v27 = vld [vmem:[#allocation2 + $0x38] sm:$0x1] }
 0x52d   : > { %13335 = vmatpush3.bf16.msra.mxu1 %v14409_v45  ;;  %v19001_v45 = vcombine.low %v17087_v8, %v17089_v23  ;;  %v7585_v8 = vrot.slane %v7583_v59, 4  ;;  %v19005_v23 = vcombine.low %v17152_v38, %v17154_v10  ;;  %v19007_v38 = vcombine.low %v17180_v48, %v17185_v34  ;;  %v14417_v34 = vld [vmem:[#allocation9 + $0xc8] sm:$0xff]   ;;  %v9161_v46 = vld [vmem:[#allocation2 + $0x54] sm:$0xe] }
 0x52e   : > { %13336 = vmatprep.subr.bf16.mxu1 %v14412_v7  ;;  %v7599_v10 = vrot.slane %v7597_v11, 4 }
 0x52f   : > { %v7587_v52 = vsel %vm15456_vm13, %v7585_v8, %v7586_v22  ;;  %v19008_v22 = vcombine.low %v17245_v25, %v17256_v37  ;;  %v14420_v8 = vld [vmem:[#allocation9 + $0xe0] sm:$0xff]   ;;  %v14422_v25 = vld [vmem:[#allocation9 + $0xf0] sm:$0xff]   ;;  %v9157_v37 = vld [vmem:[#allocation2 + $0x24] sm:$0xe] }
 0x530   : > { %13305 = vmatmul.mubr.bf16.gmra.mrb[12].mxu1 %v18999_v6  ;;  %v12092_v16 = vcombine.low %v7584_v20, %v7587_v52  ;;  %v14538_v6 = vld [vmem:[#allocation2 + $0x20] sm:$0x1]  ;;  %v9158_v20 = vld [vmem:[#allocation2 + $0x30] sm:$0xe]  ;;  %v17463_v52 = vld [vmem:[#allocation2 + $0x2c] sm:$0x1] }
 0x531   : > { %13308 = vmatprep.mubr.bf16.mxu1 %v19000_v41  ;;  %13337 = vmatpush3.bf16.msra.mxu1 %v14412_v7  ;;  %v7592_v7 = vrot.slane %v7590_v44, 4  ;;  %v7600_v41 = vrot.slane %v14538_v6, 5 }
 0x532   : > { %13338 = vmatprep.subr.bf16.mxu1 %v14415_v1 }
 0x535   : > { %13339 = vmatpush3.bf16.msra.mxu1 %v14415_v1  ;;  %v12078_v1 = vrot.slane %v7535_v21, 9  ;;  %v9242_v21 = vrot.slane %v17465_v18, 5 }
 0x536   : > { %13372 = vmatprep.subr.bf16.mxu1 %v14416_v33 }
 0x537   : > { %v7598_v48 = vsel %vm15456_vm13, %v12078_v1, %v7597_v11  ;;  %v17478_v11 = vld [vmem:[#allocation2 + $0x4c] sm:$0xf]  ;;  %v9244_v6 = vrot.slane %v9242_v21, 4 }
 0x538   : > { %13309 = vmatmul.mubr.bf16.gmra.mrb[16].mxu1 %v19001_v45  ;;  %v7594_v45 = vsel %vm15456_vm13, %v7592_v7, %v7593_v63  ;;  %v17480_v7 = vld [vmem:[#allocation9 + $0x100] sm:$0xff]   ;;  %v17492_v63 = vld [vmem:[#allocation2 + $0x50] sm:$0x1] }
 0x539   : > { %13312 = vmatprep.mubr.bf16.mxu1 %v19002_v19  ;;  %v7601_v19 = vsel %vm15456_vm13, %v7599_v10, %v7600_v41  ;;  %v17484_v10 = vld [vmem:[#allocation2 + $0x44] sm:$0x1]  ;;  %v9245_v41 = vrot.slane %v17476_v27, 5 }
 0x53a   : > { %v12094_v59 = vcombine.low %v7598_v48, %v7601_v19  ;;  %v17501_v19 = vld [vmem:[#allocation2 + $0x5c] sm:$0x1] }
 0x540   : > { %13313 = vmatmul.mubr.bf16.gmra.mrb[20].mxu1 %v19003_v5  ;;  %v7591_v5 = vsel %vm15456_vm13, %v12077_v35, %v7590_v44  ;;  %v19013_v44 = vcombine.low %v17299_v47, %v17312_v61  ;;  %v17486_v47 = vld [vmem:[#allocation2 + $0x58] sm:$0xf]  ;;  %v17494_v35 = vld [vmem:[#allocation2 + $0x64] sm:$0xf] }
 0x541   : > { %13316 = vmatprep.mubr.bf16.mxu1 %v19004_v39  ;;  %v12093_v39 = vcombine.low %v7591_v5, %v7594_v45  ;;  %v12168_v45 = vrot.slane %v9159_v54, 9  ;;  %v19016_v54 = vcombine.low %v17333_v3, %v17340_v30 }
 0x548   : > { %13317 = vmatmul.mubr.bf16.gmra.mrb[24].mxu1 %v19005_v23  ;;  %v14421_v23 = vld [vmem:[#allocation9 + $0xe8] sm:$0xff]  }
 0x549   : > { %13320 = vmatprep.mubr.bf16.mxu1 %v19006_v2  ;;  %v19011_v2 = vcombine.low %v17275_v32, %v17287_v26  ;;  %v17470_v32 = vld [vmem:[#allocation2 + $0x40] sm:$0xf]  ;;  %v9235_v26 = vrot.slane %v17461_v13, 5 }
 0x54a   : > { %v9249_v48 = vrot.slane %v17470_v32, 5 }
 0x550   : > { %13321 = vmatmul.mubr.bf16.gmra.mrb[28].mxu1 %v19007_v38  ;;  %v9160_v38 = vld [vmem:[#allocation2 + $0x48] sm:$0xe] }
 0x551   : > { %13340 = vmatprep.mubr.bf16.mxu1 %v12092_v16  ;;  %v12167_v16 = vrot.slane %v9158_v20, 9  ;;  %v17528_v20 = vld [vmem:[#allocation2 + $0x74] sm:$0x1] }
 0x558   : > { %13341 = vmatmul.mubr.bf16.vlgmr.msra.gmra.mrb[0].mxu1 %v12093_v39  ;;  %v17507_v39 = vsel %vm15456_vm13, %v12167_v16, %v9242_v21  ;;  %v9163_v16 = vld [vmem:[#allocation2 + $0x6c] sm:$0xe]  ;;  %v9164_v21 = vld [vmem:[#allocation2 + $0x78] sm:$0xe] }
 0x559   : > { %13344 = vmatprep.mubr.bf16.mxu1 %v12094_v59  ;;  %13373 = vmatpush3.bf16.msra.mxu1 %v14416_v33  ;;  %v19010_v33 = vcombine.low %v17268_v24, %v17279_v15  ;;  %v12166_v24 = vrot.slane %v9157_v37, 9  ;;  %v19012_v15 = vcombine.low %v17295_v31, %v17304_v58  ;;  %v9237_v58 = vrot.slane %v9235_v26, 4  ;;  %v9162_v59 = vld [vmem:[#allocation2 + $0x60] sm:$0xe] }
 0x55a   : > { %13374 = vmatprep.subr.bf16.mxu1 %v14417_v34  ;;  %v9238_v31 = vrot.slane %v17463_v52, 5  ;;  %v9263_v37 = vrot.slane %v17486_v47, 5 }
 0x55b   : > { %v17490_v61 = vsel %vm15456_vm13, %v12166_v24, %v9235_v26  ;;  %v17532_v24 = vsel %vm15456_vm13, %v12168_v45, %v9249_v48  ;;  %v17560_v45 = vld [vmem:[#allocation2 + $0x80] sm:$0x1] }
 0x55c   : > { %v17498_v1 = vsel %vm15456_vm13, %v9237_v58, %v9238_v31  ;;  %v9266_v58 = vrot.slane %v17501_v19, 5  ;;  %v9270_v31 = vrot.slane %v17494_v35, 5 }
 0x55d   : > { %13375 = vmatpush3.bf16.msra.mxu1 %v14417_v34  ;;  %v12169_v34 = vrot.slane %v9160_v38, 9  ;;  %v17547_v38 = vld [vmem:[#allocation2 + $0x7c] sm:$0xf] }
 0x55e   : > { %13376 = vmatprep.subr.bf16.mxu1 %v14418_v0 }
 0x560   : > { %13345 = vmatmul.mubr.bf16.gmra.mrb[4].mxu1 %v19008_v22  ;;  %v9252_v22 = vrot.slane %v17484_v10, 5 }
 0x561   : > { %13348 = vmatprep.mubr.bf16.mxu1 %v19009_v62  ;;  %13377 = vmatpush3.bf16.msra.mxu1 %v14418_v0  ;;  %v17511_v0 = vld [vmem:[#allocation2 + $0x68] sm:$0x1]  ;;  %v9256_v62 = vrot.slane %v17478_v11, 5 }
 0x562   : > { %13378 = vmatprep.subr.bf16.mxu1 %v14419_v17  ;;  %v9273_v30 = vrot.slane %v17511_v0, 5 }
 0x563   : > { %v9258_v26 = vrot.slane %v9256_v62, 4 }
 0x565   : > { %13379 = vmatpush3.bf16.msra.mxu1 %v14419_v17  ;;  %v17515_v17 = vsel %vm15456_vm13, %v9244_v6, %v9245_v41  ;;  %v9165_v41 = vld [vmem:[#allocation2 + $0x84] sm:$0xe] }
 0x566   : > { %13380 = vmatprep.subr.bf16.mxu1 %v14420_v8 }
 0x568   : > { %13349 = vmatmul.mubr.bf16.gmra.mrb[8].mxu1 %v19010_v33  ;;  %v17591_v33 = vld [vmem:[#allocation2 + $0xa0] sm:$0xf] }
 0x569   : > { %13352 = vmatprep.mubr.bf16.mxu1 %v19011_v2  ;;  %13381 = vmatpush3.bf16.msra.mxu1 %v14420_v8  ;;  %v12170_v8 = vrot.slane %v9161_v46, 9  ;;  %v9251_v2 = vrot.slane %v9249_v48, 4  ;;  %v17562_v48 = vld [vmem:[#allocation2 + $0x88] sm:$0xf]  ;;  %v9287_v46 = vrot.slane %v17560_v45, 5 }
 0x56a   : > { %13382 = vmatprep.subr.bf16.mxu1 %v14421_v23 }
 0x56b   : > { %v17557_v3 = vsel %vm15456_vm13, %v12170_v8, %v9263_v37  ;;  %v8436_v8 = vld [vmem:[#allocation2 + $0x98] sm:$0x1] }
 0x56c   : > { %19018 = vst [vmem:[#allocation20_spill] sm:$0xff] %v17557_v3 }
 0x56d   : > { %13383 = vmatpush3.bf16.msra.mxu1 %v14421_v23  ;;  %v17519_v23 = vld [vmem:[#allocation2 + $0x70] sm:$0xf] }
 0x56e   : > { %13384 = vmatprep.subr.bf16.mxu1 %v14422_v25 }
 0x570   : > { %13353 = vmatmul.mubr.bf16.gmra.mrb[12].mxu1 %v19012_v15  ;;  %v17536_v15 = vsel %vm15456_vm13, %v12169_v34, %v9256_v62  ;;  %v12172_v62 = vrot.slane %v9163_v16, 9  ;;  %v9280_v16 = vrot.slane %v17528_v20, 5  ;;  %v12174_v34 = vrot.slane %v9165_v41, 9 }
 0x571   : > { %13356 = vmatprep.mubr.bf16.mxu1 %v19013_v44  ;;  %13385 = vmatpush3.bf16.msra.mxu1 %v14422_v25  ;;  %v9259_v25 = vrot.slane %v17492_v63, 5  ;;  %19015 = vst [vmem:[#allocation16_spill] sm:$0xff] %v17536_v15  ;;  %v12171_v44 = vrot.slane %v9162_v59, 9  ;;  %v8422_v15 = vld [vmem:[#allocation2 + $0x60] sm:$0xf] }
 0x572   : > { %13386 = vmatprep.subr.bf16.mxu1 %v14423_v43 }
 0x573   : > { %v17553_v6 = vsel %vm15456_vm13, %v9258_v26, %v9259_v25  ;;  %v17576_v25 = vsel %vm15456_vm13, %v12171_v44, %v9270_v31  ;;  %v9166_v26 = vld [vmem:[#allocation2 + $0x90] sm:$0xe]  ;;  %v19024_v44 = vcombine.low %v17349_v4, %v17354_v50 }
 0x574   : > { %19017 = vst [vmem:[#allocation23_spill] sm:$0xff] %v17553_v6  ;;  %19020 = vst [vmem:[#allocation21_spill] sm:$0xff] %v17576_v25  ;;  %v12175_v5 = vrot.slane %v9166_v26, 9  ;;  %v12176_v26 = vrot.slane %v9167_v14, 9  ;;  %v14433_v14 = vld [vmem:[#allocation2 + $0x54] sm:$0xff]  }
 0x575   : > { %13387 = vmatpush3.bf16.msra.mxu1 %v14423_v43  ;;  %v19014_v43 = vcombine.low %v17322_v12, %v17329_v55  ;;  %v17543_v12 = vsel %vm15456_vm13, %v9251_v2, %v9252_v22  ;;  %v9265_v55 = vrot.slane %v9263_v37, 4  ;;  %v9272_v22 = vrot.slane %v9270_v31, 4  ;;  %v17570_v2 = vld [vmem:[#allocation2 + $0x8c] sm:$0x1] }
 0x576   : > { %13420 = vmatprep.subr.bf16.mxu1 %v17480_v7  ;;  %v9277_v37 = vrot.slane %v17519_v23, 5 }
 0x577   : > { %v17568_v59 = vsel %vm15456_vm13, %v9265_v55, %v9266_v58  ;;  %v17583_v55 = vsel %vm15456_vm13, %v9272_v22, %v9273_v30  ;;  %v9284_v58 = vrot.slane %v17547_v38, 5 }
 0x578   : > { %13357 = vmatmul.mubr.bf16.gmra.mrb[16].mxu1 %v19014_v43  ;;  %19019 = vst [vmem:[#allocation25_spill] sm:$0xff] %v17568_v59  ;;  %v12173_v43 = vrot.slane %v9164_v21, 9  ;;  %19021 = vst [vmem:[#allocation22_spill] sm:$0xff] %v17583_v55  ;;  %v9279_v31 = vrot.slane %v9277_v37, 4  ;;  %v9291_v21 = vrot.slane %v17562_v48, 5  ;;  %v17595_v30 = vsel %vm15456_vm13, %v12172_v62, %v9277_v37 }
 0x579   : > { %13360 = vmatprep.mubr.bf16.mxu1 %v19016_v54  ;;  %v17579_v54 = vld [vmem:[#allocation2 + $0x94] sm:$0xf]  ;;  %19022 = vst [vmem:[#allocation17_spill] sm:$0xff] %v17595_v30  ;;  %v9286_v41 = vrot.slane %v9284_v58, 4  ;;  %v9294_v62 = vrot.slane %v17570_v2, 5  ;;  %v9308_v30 = vrot.slane %v8439_v28, 5 }
 0x57a   : > { %v17599_v22 = vsel %vm15456_vm13, %v12173_v43, %v9284_v58  ;;  %v17606_v55 = vsel %vm15456_vm13, %v9279_v31, %v9280_v16  ;;  %v9293_v25 = vrot.slane %v9291_v21, 4  ;;  %v9298_v37 = vrot.slane %v17579_v54, 5  ;;  %v9168_v58 = vld [vmem:[#allocation2 + $0xa8] sm:$0xe]  ;;  %v8442_v31 = vld [vmem:[#allocation2 + $0xb0] sm:$0x1] }
 0x57b   : > { %19023 = vst [vmem:[#allocation19_spill] sm:$0xff] %v17599_v22  ;;  %19025 = vst [vmem:[#allocation18_spill] sm:$0xff] %v17606_v55  ;;  %v19026_v43 = vcombine.low %v17358_v29, %v17365_v36  ;;  %v17617_v4 = vsel %vm15456_vm13, %v9286_v41, %v9287_v46  ;;  %v17621_v50 = vsel %vm15456_vm13, %v12174_v34, %v9291_v21  ;;  %v9301_v16 = vrot.slane %v8436_v8, 5  ;;  %v8444_v59 = vld [vmem:[#allocation2 + $0xb8] sm:$0xf] }
 0x57c   : > { %19027 = vst [vmem:[#allocation24_spill] sm:$0xff] %v17617_v4  ;;  %19028 = vst [vmem:[#allocation26_spill] sm:$0xff] %v17621_v50  ;;  %v17627_v36 = vsel %vm15456_vm13, %v9293_v25, %v9294_v62  ;;  %v8445_v46 = vld [vmem:[#allocation2 + $0xbc] sm:$0x1]  ;;  %v8447_v41 = vld [vmem:[#allocation2 + $0xc4] sm:$0xf]  ;;  %v17633_v8 = vsel %vm15456_vm13, %v12175_v5, %v9298_v37 }
 0x57d   : > { %19029 = vst [vmem:[#allocation27_spill] sm:$0xff] %v17627_v36  ;;  %19030 = vst [vmem:[#allocation28_spill] sm:$0xff] %v17633_v8  ;;  %v9305_v21 = vrot.slane %v17591_v33, 5  ;;  %v12177_v4 = vrot.slane %v9168_v58, 9  ;;  %v9312_v25 = vrot.slane %v8441_v56, 5  ;;  %v9319_v34 = vrot.slane %v8444_v59, 5 }
 0x57e   : > { %v9170_v22 = vld [vmem:[#allocation2 + $0xc0] sm:$0xe]  ;;  %v8448_v36 = vld [vmem:[#allocation2 + $0xc8] sm:$0x1]  ;;  %v9315_v50 = vrot.slane %v8442_v31, 5  ;;  %v9322_v3 = vrot.slane %v8445_v46, 5 }
 0x57f   : > { %v9307_v55 = vrot.slane %v9305_v21, 4  ;;  %v17644_v5 = vsel %vm15456_vm13, %v12176_v26, %v9305_v21  ;;  %v9321_v56 = vrot.slane %v9319_v34, 4  ;;  %v12179_v58 = vrot.slane %v9170_v22, 9  ;;  %v14424_v46 = vld [vmem:[#allocation2 + $0xc] sm:$0xff]  }
 0x580   : > { %13361 = vmatmul.mubr.bf16.gmra.mrb[20].mxu1 %v19024_v44  ;;  %v9169_v44 = vld [vmem:[#allocation2 + $0xb4] sm:$0xe]  ;;  %19032 = vst [vmem:[#allocation30_spill] sm:$0xff] %v17644_v5  ;;  %v17657_v59 = vsel %vm15456_vm13, %v12177_v4, %v9312_v25  ;;  %v9329_v4 = vrot.slane %v8448_v36, 5  ;;  %v14425_v36 = vld [vmem:[#allocation2 + $0x18] sm:$0xff]  }
 0x581   : > { %13364 = vmatprep.mubr.bf16.mxu1 %v19026_v43  ;;  %v9300_v43 = vrot.slane %v9298_v37, 4  ;;  %v12178_v62 = vrot.slane %v9169_v44, 9  ;;  %v9314_v37 = vrot.slane %v9312_v25, 4  ;;  %v9326_v44 = vrot.slane %v8447_v41, 5  ;;  %19035 = vst [vmem:[#allocation32_spill] sm:$0xff] %v17657_v59  ;;  %v14429_v41 = vld [vmem:[#allocation9 + $0x108] sm:$0xff]  }
 0x582   : > { %v8401_v21 = vld [vmem:[#allocation2 + $0xc] sm:$0xf]  ;;  %v8402_v25 = vld [vmem:[#allocation2 + $0x10] sm:$0xf] }
 0x583   : > { %v17638_v29 = vsel %vm15456_vm13, %v9300_v43, %v9301_v16  ;;  %v17648_v16 = vsel %vm15456_vm13, %v9307_v55, %v9308_v30  ;;  %v19034_v43 = vcombine.low %v17376_v49, %v17380_v60  ;;  %v17661_v26 = vsel %vm15456_vm13, %v9314_v37, %v9315_v50 }
 0x584   : > { %19031 = vst [vmem:[#allocation29_spill] sm:$0xff] %v17638_v29  ;;  %19033 = vst [vmem:[#allocation31_spill] sm:$0xff] %v17648_v16  ;;  %v17665_v55 = vsel %vm15456_vm13, %v12178_v62, %v9319_v34  ;;  %v19038_v30 = vcombine.low %v17390_v51, %v17394_v57  ;;  %v17674_v60 = vsel %vm15456_vm13, %v9321_v56, %v9322_v3  ;;  %v9328_v22 = vrot.slane %v9326_v44, 4  ;;  %v14427_v34 = vld [vmem:[#allocation2 + $0x24] sm:$0xff]   ;;  %v8419_v16 = vld [vmem:[#allocation2 + $0x54] sm:$0xf] }
 0x585   : > { %19036 = vst [vmem:[#allocation33_spill] sm:$0xff] %v17661_v26  ;;  %19037 = vst [vmem:[#allocation34_spill] sm:$0xff] %v17665_v55  ;;  %v17680_v31 = vsel %vm15456_vm13, %v12179_v58, %v9326_v44  ;;  %v19042_v3 = vcombine.low %v17401_v42, %v17405_v53  ;;  %v14432_v62 = vld [vmem:[#allocation9 + $0x110] sm:$0xff]   ;;  %v8450_v37 = vshrl.u32 %v8401_v21, 16  ;;  %v8453_v56 = vshll.u32 %v8401_v21, 16  ;;  %v14435_v53 = vld [vmem:[#allocation9 + $0x118] sm:$0xff]  }
 0x586   : > { %19039 = vst [vmem:[#allocation35_spill] sm:$0xff] %v17674_v60  ;;  %19040 = vst [vmem:[#allocation36_spill] sm:$0xff] %v17680_v31  ;;  %v17684_v51 = vsel %vm15456_vm13, %v9328_v22, %v9329_v4  ;;  %v8459_v58 = vshll.u32 %v8402_v25, 16  ;;  %v8463_v44 = vshrl.u32 %v8402_v25, 16  ;;  %v14428_v42 = vld [vmem:[#allocation2 + $0x30] sm:$0xff]   ;;  %v8511_v31 = vshrl.u32 %v17461_v13, 16 }
 0x587   : > { %19041 = vst [vmem:[#allocation37_spill] sm:$0xff] %v17684_v51  ;;  %v8455_v22 = vrot.slane %v8453_v56, 5  ;;  %v8405_v4 = vld [vmem:[#allocation2 + $0x1c] sm:$0xf]  ;;  %v17692_v21 = vld [vmem:[#allocation2 + $0x14] sm:$0x1] }
 0x588   : > { %13365 = vmatmul.mubr.bf16.gmra.mrb[24].mxu1 %v19034_v43  ;;  %v8404_v43 = vld [vmem:[#allocation2 + $0x18] sm:$0xf]  ;;  %v17694_v56 = vld [vmem:[#allocation2 + $0x20] sm:$0x1]  ;;  %v8410_v60 = vld [vmem:[#allocation2 + $0x30] sm:$0xf] }
 0x589   : > { %13368 = vmatprep.mubr.bf16.mxu1 %v19038_v30  ;;  %v8452_v30 = vrot.slane %v8450_v37, 4  ;;  %v8477_v57 = vshll.u32 %v8404_v43, 16  ;;  %v8487_v37 = vshrl.u32 %v8405_v4, 16  ;;  %v8525_v55 = vshll.u32 %v8410_v60, 16 }
 0x58b   : > { %v8456_v25 = vor.u32 %v8455_v22, %v8452_v30  ;;  %v8479_v28 = vrot.slane %v8477_v57, 5  ;;  %v8489_v22 = vrot.slane %v8487_v37, 4 }
 0x590   : > { %13369 = vmatmul.mubr.bf16.gmra.mrb[28].mxu1 %v19042_v3  ;;  %v8461_v3 = vrot.slane %v8459_v58, 5  ;;  %v8469_v58 = vshll.u32 %v17692_v21, 16 }
 0x591   : > { %13388 = vmatprep.mubr.bf16.mxu1 %v14424_v46  ;;  %v14430_v46 = vld [vmem:[#allocation2 + $0x3c] sm:$0xff]  }
 0x598   : > { %13389 = vmatmul.mubr.bf16.vlgmr.msra.gmra.mrb[0].mxu1 %v14425_v36  ;;  %v8465_v36 = vrot.slane %v8463_v44, 4  ;;  %v8407_v44 = vld [vmem:[#allocation2 + $0x24] sm:$0xf] }
 0x599   : > { %13392 = vmatprep.mubr.bf16.mxu1 %v14427_v34  ;;  %13421 = vmatpush3.bf16.msra.mxu1 %v17480_v7  ;;  %v8474_v34 = vshrl.u32 %v8404_v43, 16  ;;  %v14438_v7 = vld [vmem:[#allocation9 + $0x120] sm:$0xff]   ;;  %v14431_v43 = vld [vmem:[#allocation2 + $0x48] sm:$0xff]   ;;  %v8498_v57 = vshrl.u32 %v8407_v44, 16 }
 0x59a   : > { %13422 = vmatprep.subr.bf16.mxu1 %v14429_v41  ;;  %v8466_v50 = vor.u32 %v8465_v36, %v8461_v3  ;;  %v8493_v36 = vshll.u32 %v17694_v56, 16 }
 0x59b   : > { %v8476_v49 = vrot.slane %v8474_v34, 4  ;;  %v8471_v34 = vrot.slane %v8469_v58, 5 }
 0x59c   : > { %v8467_v51 = vrot.slane %v8466_v50, 4  ;;  %v17709_v37 = vrot.slane %v8493_v36, 5  ;;  %v8517_v36 = vshll.u32 %v17463_v52, 16 }
 0x59d   : > { %13423 = vmatpush3.bf16.msra.mxu1 %v14429_v41  ;;  %v8483_v41 = vshll.u32 %v8405_v4, 16  ;;  %v8480_v30 = vor.u32 %v8479_v28, %v8476_v49  ;;  %v8501_v4 = vshll.u32 %v8407_v44, 16 }
 0x59e   : > { %13424 = vmatprep.subr.bf16.mxu1 %v14432_v62  ;;  %v8472_v28 = vsel %vm15051_vm7, %v8467_v51, %v8471_v34  ;;  %v8416_v51 = vld [vmem:[#allocation2 + $0x48] sm:$0xf]  ;;  %v14447_v34 = vld [vmem:[#allocation9 + $0x138] sm:$0xff]  }
 0x59f   : > { %v17706_v49 = vrot.slane %v8480_v30, 4  ;;  %v8503_v58 = vrot.slane %v8501_v4, 5  ;;  %v14434_v30 = vld [vmem:[#allocation2 + $0x60] sm:$0xff]  }
 0x5a0   : > { %13393 = vmatmul.mubr.bf16.gmra.mrb[4].mxu1 %v14428_v42  ;;  %v14441_v42 = vld [vmem:[#allocation9 + $0x128] sm:$0xff]  }
 0x5a1   : > { %13396 = vmatprep.mubr.bf16.mxu1 %v14430_v46  ;;  %13425 = vmatpush3.bf16.msra.mxu1 %v14432_v62  ;;  %v8457_v62 = vrot.slane %v8456_v25, 4  ;;  %v17697_v46 = vrot.slane %v8483_v41, 5  ;;  %v14444_v25 = vld [vmem:[#allocation9 + $0x130] sm:$0xff]  }
 0x5a2   : > { %13426 = vmatprep.subr.bf16.mxu1 %v14435_v53 }
 0x5a3   : > { %v8462_v50 = vsel %vm15051_vm7, %v8457_v62, %v8461_v3  ;;  %v8490_v41 = vor.u32 %v8489_v22, %v17697_v46  ;;  %v8531_v3 = vshll.u32 %v17465_v18, 16  ;;  %v8535_v62 = vshrl.u32 %v17465_v18, 16 }
 0x5a4   : > { %v17715_v22 = vcombine.low %v8462_v50, %v8472_v28  ;;  %v8559_v18 = vshrl.u32 %v17470_v32, 16  ;;  %v8570_v50 = vshrl.u32 %v8416_v51, 16  ;;  %v8573_v28 = vshll.u32 %v8416_v51, 16 }
 0x5a5   : > { %13427 = vmatpush3.bf16.msra.mxu1 %v14435_v53  ;;  %v8507_v53 = vshll.u32 %v17461_v13, 16  ;;  %v8522_v13 = vshrl.u32 %v8410_v60, 16  ;;  %v8486_v60 = vsel %vm15051_vm7, %v17706_v49, %v17697_v46  ;;  %v17725_v5 = vrot.slane %v8531_v3, 5  ;;  %v17727_v46 = vld [vmem:[#allocation9 + $0x140] sm:$0xff]  }
 0x5a6   : > { %13428 = vmatprep.subr.bf16.mxu1 %v14438_v7  ;;  %v8537_v29 = vrot.slane %v8535_v62, 4  ;;  %v8594_v51 = vshrl.u32 %v8419_v16, 16  ;;  %v8607_v3 = vshrl.u32 %v17486_v47, 16 }
 0x5a7   : > { %v17711_v44 = vrot.slane %v8507_v53, 5  ;;  %v14436_v53 = vld [vmem:[#allocation2 + $0x6c] sm:$0xff]   ;;  %v8524_v59 = vrot.slane %v8522_v13, 4  ;;  %v8561_v13 = vrot.slane %v8559_v18, 4 }
 0x5a8   : > { %13397 = vmatmul.mubr.bf16.gmra.mrb[8].mxu1 %v14431_v43  ;;  %v8513_v43 = vrot.slane %v8511_v31, 4  ;;  %v8491_v31 = vrot.slane %v8490_v41, 4  ;;  %v8596_v8 = vrot.slane %v8594_v51, 4 }
 0x5a9   : > { %13400 = vmatprep.mubr.bf16.mxu1 %v14433_v14  ;;  %13429 = vmatpush3.bf16.msra.mxu1 %v14438_v7  ;;  %v8413_v14 = vld [vmem:[#allocation2 + $0x3c] sm:$0xf]  ;;  %v8500_v7 = vrot.slane %v8498_v57, 4 }
 0x5aa   : > { %13430 = vmatprep.subr.bf16.mxu1 %v14441_v42  ;;  %v8546_v57 = vshrl.u32 %v8413_v14, 16  ;;  %v8549_v4 = vshll.u32 %v8413_v14, 16  ;;  %v8514_v52 = vor.u32 %v8513_v43, %v17711_v44  ;;  %v8527_v14 = vrot.slane %v8525_v55, 5 }
 0x5ab   : > { %v8504_v26 = vor.u32 %v8503_v58, %v8500_v7  ;;  %v8583_v7 = vshrl.u32 %v17478_v11, 16  ;;  %v8575_v43 = vrot.slane %v8573_v28, 5  ;;  %v8603_v55 = vshll.u32 %v17486_v47, 16  ;;  %v14439_v28 = vld [vmem:[#allocation2 + $0x84] sm:$0xff]  }
 0x5ac   : > { %v8548_v49 = vrot.slane %v8546_v57, 4  ;;  %v8551_v41 = vrot.slane %v8549_v4, 5  ;;  %v8496_v62 = vsel %vm15051_vm7, %v8491_v31, %v17709_v37  ;;  %v8519_v4 = vrot.slane %v8517_v36, 5 }
 0x5ad   : > { %13431 = vmatpush3.bf16.msra.mxu1 %v14441_v42  ;;  %v8555_v42 = vshll.u32 %v17470_v32, 16  ;;  %v8579_v32 = vshll.u32 %v17478_v11, 16  ;;  %v8505_v57 = vrot.slane %v8504_v26, 4  ;;  %v8541_v11 = vshll.u32 %v17476_v27, 16 }
 0x5ae   : > { %13432 = vmatprep.subr.bf16.mxu1 %v14444_v25  ;;  %v8538_v47 = vor.u32 %v8537_v29, %v17725_v5  ;;  %v17744_v27 = vrot.slane %v8603_v55, 5  ;;  %v8609_v36 = vrot.slane %v8607_v3, 4  ;;  %v17746_v31 = vcombine.low %v8486_v60, %v8496_v62  ;;  %v14440_v55 = vld [vmem:[#allocation2 + $0x90] sm:$0xff]  }
 0x5af   : > { %v17731_v58 = vrot.slane %v8555_v42, 5  ;;  %v8515_v42 = vrot.slane %v8514_v52, 4  ;;  %v17740_v18 = vrot.slane %v8579_v32, 5  ;;  %v8543_v52 = vrot.slane %v8541_v11, 5 }
 0x5b0   : > { %13401 = vmatmul.mubr.bf16.gmra.mrb[12].mxu1 %v14434_v30  ;;  %v8572_v30 = vrot.slane %v8570_v50, 4  ;;  %v8585_v50 = vrot.slane %v8583_v7, 4  ;;  %v8565_v29 = vshll.u32 %v17484_v10, 16  ;;  %v8621_v32 = vshll.u32 %v8422_v15, 16 }
 0x5b1   : > { %13404 = vmatprep.mubr.bf16.mxu1 %v14436_v53  ;;  %13433 = vmatpush3.bf16.msra.mxu1 %v14444_v25  ;;  %v8597_v25 = vshll.u32 %v8419_v16, 16  ;;  %v14437_v53 = vld [vmem:[#allocation2 + $0x78] sm:$0xff]   ;;  %v8528_v16 = vor.u32 %v8527_v14, %v8524_v59  ;;  %v8562_v26 = vor.u32 %v8561_v13, %v17731_v58  ;;  %v8510_v59 = vsel %vm15051_vm7, %v8505_v57, %v17711_v44 }
 0x5b2   : > { %13434 = vmatprep.subr.bf16.mxu1 %v14447_v34  ;;  %v8576_v37 = vor.u32 %v8575_v43, %v8572_v30  ;;  %v8520_v14 = vsel %vm15051_vm7, %v8515_v42, %v8519_v4  ;;  %v8539_v13 = vrot.slane %v8538_v47, 4  ;;  %v8589_v43 = vshll.u32 %v17492_v63, 16 }
 0x5b3   : > { %v8599_v6 = vrot.slane %v8597_v25, 5  ;;  %v8529_v7 = vrot.slane %v8528_v16, 4  ;;  %v8563_v60 = vrot.slane %v8562_v26, 4  ;;  %v8610_v44 = vor.u32 %v8609_v36, %v17744_v27  ;;  %v8428_v36 = vld [vmem:[#allocation2 + $0x78] sm:$0xf] }
 0x5b4   : > { %v8577_v30 = vrot.slane %v8576_v37, 4  ;;  %v17757_v3 = vcombine.low %v8510_v59, %v8520_v14  ;;  %v8567_v10 = vrot.slane %v8565_v29, 5  ;;  %v8627_v62 = vshll.u32 %v17494_v35, 16 }
 0x5b5   : > { %13435 = vmatpush3.bf16.msra.mxu1 %v14447_v34  ;;  %v8552_v34 = vor.u32 %v8551_v41, %v8548_v49  ;;  %v8586_v49 = vor.u32 %v8585_v50, %v17740_v18  ;;  %v8618_v41 = vshrl.u32 %v8422_v15, 16  ;;  %v8600_v25 = vor.u32 %v8599_v6, %v8596_v8  ;;  %v8425_v6 = vld [vmem:[#allocation2 + $0x6c] sm:$0xf]  ;;  %v14442_v8 = vld [vmem:[#allocation2 + $0x9c] sm:$0xff]  }
 0x5b6   : > { %13468 = vmatprep.subr.bf16.mxu1 %v17727_v46  ;;  %v8631_v57 = vshrl.u32 %v17494_v35, 16  ;;  %v8613_v15 = vshll.u32 %v17501_v19, 16  ;;  %v8534_v63 = vsel %vm15051_vm7, %v8529_v7, %v17725_v5  ;;  %v8544_v42 = vsel %vm15051_vm7, %v8539_v13, %v8543_v52  ;;  %v14443_v7 = vld [vmem:[#allocation2 + $0xa8] sm:$0xff]  }
 0x5b7   : > { %v8553_v51 = vrot.slane %v8552_v34, 4  ;;  %v8587_v4 = vrot.slane %v8586_v49, 4  ;;  %v8620_v11 = vrot.slane %v8618_v41, 4  ;;  %v8601_v50 = vrot.slane %v8600_v25, 4 }
 0x5b8   : > { %13405 = vmatmul.mubr.bf16.gmra.mrb[16].mxu1 %v14437_v53  ;;  %v8623_v53 = vrot.slane %v8621_v32, 5  ;;  %v8568_v35 = vsel %vm15051_vm7, %v8563_v60, %v8567_v10  ;;  %v8582_v19 = vsel %vm15051_vm7, %v8577_v30, %v17740_v18  ;;  %v8611_v47 = vrot.slane %v8610_v44, 4  ;;  %v17788_v32 = vld [vmem:[#allocation2 + $0x1c] sm:$0xf]  ;;  %v10793_v60 = vld [vmem:[#allocation2 + $0x18] sm:$0xe] }
 0x5b9   : > { %13408 = vmatprep.mubr.bf16.mxu1 %v14439_v28  ;;  %v8558_v16 = vsel %vm15051_vm7, %v8553_v51, %v17731_v58  ;;  %v8591_v28 = vrot.slane %v8589_v43, 5  ;;  %v17775_v5 = vrot.slane %v8627_v62, 5  ;;  %v8633_v34 = vrot.slane %v8631_v57, 4  ;;  %19043 = vst [vmem:[#allocation38_spill] sm:$0xff] %v17788_v32  ;;  %v17802_v10 = vld [vmem:[#allocation2 + $0x28] sm:$0xf] }
 0x5ba   : > { %v8642_v26 = vshrl.u32 %v8425_v6, 16  ;;  %v8645_v37 = vshll.u32 %v8425_v6, 16  ;;  %v8615_v59 = vrot.slane %v8613_v15, 5  ;;  %v8624_v52 = vor.u32 %v8623_v53, %v8620_v11  ;;  %19045 = vst [vmem:[#allocation40_spill] sm:$0xff] %v17802_v10  ;;  %v17810_v15 = vld [vmem:[#allocation2 + $0x34] sm:$0xf] }
 0x5bb   : > { %v8592_v58 = vsel %vm15051_vm7, %v8587_v4, %v8591_v28  ;;  %v8637_v29 = vshll.u32 %v17511_v0, 16  ;;  %v17780_v14 = vcombine.low %v8534_v63, %v8544_v42  ;;  %v17782_v49 = vcombine.low %v8558_v16, %v8568_v35  ;;  %19046 = vst [vmem:[#allocation41_spill] sm:$0xff] %v17810_v15  ;;  %v14445_v11 = vld [vmem:[#allocation2 + $0xb4] sm:$0xff]   ;;  %v10794_v16 = vld [vmem:[#allocation2 + $0x24] sm:$0xe] }
 0x5bc   : > { %v8606_v18 = vsel %vm15051_vm7, %v8601_v50, %v17744_v27  ;;  %v8651_v41 = vshll.u32 %v17519_v23, 16  ;;  %v8616_v13 = vsel %vm15051_vm7, %v8611_v47, %v8615_v59  ;;  %v8655_v51 = vshrl.u32 %v17519_v23, 16  ;;  %v17826_v28 = vld [vmem:[#allocation2 + $0x2c] sm:$0x1]  ;;  %v10795_v47 = vld [vmem:[#allocation2 + $0x30] sm:$0xe] }
 0x5bd   : > { %v8666_v25 = vshrl.u32 %v8428_v36, 16  ;;  %v8669_v0 = vshll.u32 %v8428_v36, 16  ;;  %v17793_v30 = vcombine.low %v8582_v19, %v8592_v58  ;;  %v8634_v43 = vor.u32 %v8633_v34, %v17775_v5  ;;  %19047 = vst [vmem:[#allocation42_spill] sm:$0xff] %v17826_v28 }
 0x5be   : > { %v17796_v44 = vrot.slane %v8642_v26, 4  ;;  %v17798_v27 = vrot.slane %v8645_v37, 5  ;;  %v17804_v62 = vrot.slane %v8624_v52, 4  ;;  %v17806_v57 = vrot.slane %v8637_v29, 5  ;;  %v17832_v37 = vld [vmem:[#allocation2 + $0x38] sm:$0x1] }
 0x5bf   : > { %v8675_v23 = vshll.u32 %v17547_v38, 16  ;;  %v8679_v4 = vshrl.u32 %v17547_v38, 16  ;;  %v17812_v53 = vcombine.low %v8606_v18, %v8616_v13  ;;  %v17814_v6 = vrot.slane %v8651_v41, 5  ;;  %19048 = vst [vmem:[#allocation43_spill] sm:$0xff] %v17832_v37  ;;  %v17839_v29 = vld [vmem:[#allocation2 + $0x40] sm:$0xf] }
 0x5c0   : > { %13409 = vmatmul.mubr.bf16.gmra.mrb[20].mxu1 %v14440_v55  ;;  %v17800_v55 = vld [vmem:[#allocation2 + $0x20] sm:$0x1]  ;;  %v12252_v63 = vrot.slane %v10793_v60, 9  ;;  %v10859_v42 = vrot.slane %v17788_v32, 5  ;;  %v17819_v50 = vrot.slane %v8655_v51, 4  ;;  %v17822_v19 = vrot.slane %v8666_v25, 4 }
 0x5c1   : > { %13412 = vmatprep.mubr.bf16.mxu1 %v14442_v8  ;;  %19044 = vst [vmem:[#allocation39_spill] sm:$0xff] %v17800_v55  ;;  %v17816_v8 = vld [vmem:[#allocation2 + $0x84] sm:$0xf]  ;;  %v17824_v38 = vrot.slane %v8669_v0, 5  ;;  %v17828_v34 = vrot.slane %v8634_v43, 4  ;;  %v10862_v58 = vrot.slane %v17800_v55, 5 }
 0x5c2   : > { %v10861_v36 = vrot.slane %v10859_v42, 4  ;;  %v17835_v59 = vrot.slane %v8675_v23, 5  ;;  %v17837_v52 = vrot.slane %v8679_v4, 4  ;;  %19049 = vst [vmem:[#allocation44_spill] sm:$0xff] %v17839_v29  ;;  %v12253_v18 = vrot.slane %v10794_v16, 9  ;;  %v14446_v43 = vld [vmem:[#allocation2 + $0xc0] sm:$0xff]  }
 0x5c3   : > { %v10866_v41 = vrot.slane %v17802_v10, 5  ;;  %v17846_v13 = vsel %vm15456_vm13, %v12252_v63, %v10859_v42  ;;  %v12254_v25 = vrot.slane %v10795_v47, 9  ;;  %v10873_v0 = vrot.slane %v17810_v15, 5  ;;  %v10796_v60 = vld [vmem:[#allocation2 + $0x3c] sm:$0xe] }
 0x5c4   : > { %19051 = vst [vmem:[#allocation46_spill] sm:$0xff] %v17846_v13  ;;  %v17850_v51 = vsel %vm15456_vm13, %v10861_v36, %v10862_v58  ;;  %v17858_v16 = vld [vmem:[#allocation2 + $0x4c] sm:$0xf]  ;;  %v10797_v42 = vld [vmem:[#allocation2 + $0x48] sm:$0xe]  ;;  %v10869_v58 = vrot.slane %v17826_v28, 5 }
 0x5c5   : > { %19052 = vst [vmem:[#allocation47_spill] sm:$0xff] %v17850_v51  ;;  %19053 = vst [vmem:[#allocation48_spill] sm:$0xff] %v17858_v16  ;;  %v17862_v36 = vld [vmem:[#allocation2 + $0x50] sm:$0x1]  ;;  %v10868_v47 = vrot.slane %v10866_v41, 4  ;;  %v10875_v26 = vrot.slane %v10873_v0, 4 }
 0x5c6   : > { %19054 = vst [vmem:[#allocation49_spill] sm:$0xff] %v17862_v36  ;;  %v10876_v35 = vrot.slane %v17832_v37, 5  ;;  %v17868_v4 = vld [vmem:[#allocation2 + $0x58] sm:$0xf]  ;;  %v12255_v15 = vrot.slane %v10796_v60, 9  ;;  %v10880_v63 = vrot.slane %v17839_v29, 5  ;;  %v17883_v37 = vsel %vm15456_vm13, %v12254_v25, %v10873_v0 }
 0x5c7   : > { %19055 = vst [vmem:[#allocation50_spill] sm:$0xff] %v17868_v4  ;;  %v10798_v51 = vld [vmem:[#allocation2 + $0x54] sm:$0xe]  ;;  %v17875_v13 = vld [vmem:[#allocation2 + $0x64] sm:$0xf]  ;;  %v17879_v28 = vsel %vm15456_vm13, %v10868_v47, %v10869_v58  ;;  %19059 = vst [vmem:[#allocation54_spill] sm:$0xff] %v17883_v37 }
 0x5c8   : > { %13413 = vmatmul.mubr.bf16.gmra.mrb[24].mxu1 %v14443_v7  ;;  %v17842_v7 = vld [vmem:[#allocation2 + $0x44] sm:$0x1]  ;;  %19057 = vst [vmem:[#allocation52_spill] sm:$0xff] %v17875_v13  ;;  %19058 = vst [vmem:[#allocation53_spill] sm:$0xff] %v17879_v28  ;;  %v17887_v23 = vsel %vm15456_vm13, %v10875_v26, %v10876_v35  ;;  %v17889_v60 = vld [vmem:[#allocation2 + $0x5c] sm:$0x1]  ;;  %v17903_v26 = vsel %vm15456_vm13, %v12255_v15, %v10880_v63 }
 0x5c9   : > { %13416 = vmatprep.mubr.bf16.mxu1 %v14445_v11  ;;  %19050 = vst [vmem:[#allocation45_spill] sm:$0xff] %v17842_v7  ;;  %v17872_v11 = vsel %vm15456_vm13, %v12253_v18, %v10866_v41  ;;  %19060 = vst [vmem:[#allocation55_spill] sm:$0xff] %v17887_v23  ;;  %v12256_v18 = vrot.slane %v10797_v42, 9  ;;  %v10799_v41 = vld [vmem:[#allocation2 + $0x60] sm:$0xe]  ;;  %v10882_v58 = vrot.slane %v10880_v63, 4 }
 0x5ca   : > { %19056 = vst [vmem:[#allocation51_spill] sm:$0xff] %v17872_v11  ;;  %19061 = vst [vmem:[#allocation56_spill] sm:$0xff] %v17889_v60  ;;  %v17891_v29 = vld [vmem:[#allocation2 + $0x68] sm:$0x1]  ;;  %v10883_v25 = vrot.slane %v17842_v7, 5  ;;  %v10887_v0 = vrot.slane %v17858_v16, 5 }
 0x5cb   : > { %19062 = vst [vmem:[#allocation57_spill] sm:$0xff] %v17891_v29  ;;  %v17899_v35 = vld [vmem:[#allocation2 + $0x70] sm:$0xf]  ;;  %19064 = vst [vmem:[#allocation59_spill] sm:$0xff] %v17903_v26  ;;  %v10894_v42 = vrot.slane %v17868_v4, 5  ;;  %v10890_v47 = vrot.slane %v17862_v36, 5 }
 0x5cc   : > { %19063 = vst [vmem:[#allocation58_spill] sm:$0xff] %v17899_v35  ;;  %v17909_v55 = vsel %vm15456_vm13, %v10882_v58, %v10883_v25  ;;  %v12258_v23 = vrot.slane %v10799_v41, 9  ;;  %v10800_v37 = vld [vmem:[#allocation2 + $0x6c] sm:$0xe]  ;;  %v10062_v28 = vld [vmem:[#allocation2 + $0x74] sm:$0x1] }
 0x5cd   : > { %19065 = vst [vmem:[#allocation60_spill] sm:$0xff] %v17909_v55  ;;  %v17913_v11 = vld [vmem:[#allocation2 + $0x7c] sm:$0xf]  ;;  %v10889_v63 = vrot.slane %v10887_v0, 4  ;;  %v10897_v58 = vrot.slane %v17889_v60, 5  ;;  %v10896_v41 = vrot.slane %v10894_v42, 4 }
 0x5ce   : > { %v10904_v36 = vrot.slane %v17891_v29, 5  ;;  %v10801_v7 = vld [vmem:[#allocation2 + $0x78] sm:$0xe]  ;;  %v10065_v4 = vld [vmem:[#allocation2 + $0x80] sm:$0x1]  ;;  %v10908_v55 = vrot.slane %v17899_v35, 5 }
 0x5cf   : > { %v10067_v16 = vld [vmem:[#allocation2 + $0x88] sm:$0xf]  ;;  %v17929_v15 = vsel %vm15456_vm13, %v10889_v63, %v10890_v47  ;;  %v17940_v60 = vsel %vm15456_vm13, %v10896_v41, %v10897_v58  ;;  %v10911_v63 = vrot.slane %v10062_v28, 5  ;;  %v12260_v29 = vrot.slane %v10801_v7, 9  ;;  %v10073_v41 = vld [vmem:[#allocation2 + $0xa0] sm:$0xf] }
 0x5d0   : > { %13417 = vmatmul.mubr.bf16.gmra.mrb[28].mxu1 %v14446_v43  ;;  %v12257_v43 = vrot.slane %v10798_v51, 9  ;;  %v17919_v51 = vsel %vm15456_vm13, %v12256_v18, %v10887_v0  ;;  %19067 = vst [vmem:[#allocation62_spill] sm:$0xff] %v17929_v15  ;;  %v12259_v0 = vrot.slane %v10800_v37, 9  ;;  %v14449_v26 = vld [vmem:[#allocation9 + $0x148] sm:$0xff]   ;;  %19069 = vst [vmem:[#allocation64_spill] sm:$0xff] %v17940_v60  ;;  %v10910_v32 = vrot.slane %v10908_v55, 4 }
 0x5d1   : > { %13436 = vmatprep.mubr.bf16.mxu1 %v17715_v22  ;;  %v10901_v22 = vrot.slane %v17875_v13, 5  ;;  %v10071_v37 = vld [vmem:[#allocation2 + $0x98] sm:$0x1]  ;;  %v10922_v28 = vrot.slane %v10067_v16, 5  ;;  %v10074_v15 = vld [vmem:[#allocation2 + $0xa4] sm:$0x1] }
 0x5d2   : > { %v17924_v25 = vsel %vm15456_vm13, %v12257_v43, %v10894_v42  ;;  %v10802_v43 = vld [vmem:[#allocation2 + $0x84] sm:$0xe]  ;;  %v10070_v42 = vld [vmem:[#allocation2 + $0x94] sm:$0xf]  ;;  %v17957_v35 = vsel %vm15456_vm13, %v12259_v0, %v10908_v55  ;;  %v17961_v7 = vsel %vm15456_vm13, %v10910_v32, %v10911_v63  ;;  %v10804_v58 = vld [vmem:[#allocation2 + $0x9c] sm:$0xe] }
 0x5d3   : > { %19066 = vst [vmem:[#allocation61_spill] sm:$0xff] %v17924_v25  ;;  %v10903_v13 = vrot.slane %v10901_v22, 4  ;;  %v17933_v18 = vsel %vm15456_vm13, %v12258_v23, %v10901_v22  ;;  %v10803_v23 = vld [vmem:[#allocation2 + $0x90] sm:$0xe]  ;;  %v10068_v22 = vld [vmem:[#allocation2 + $0x8c] sm:$0x1] }
 0x5d4   : > { %19068 = vst [vmem:[#allocation63_spill] sm:$0xff] %v17933_v18  ;;  %19071 = vst [vmem:[#allocation66_spill] sm:$0xff] %v17957_v35  ;;  %v10929_v10 = vrot.slane %v10070_v42, 5  ;;  %v10925_v18 = vrot.slane %v10068_v22, 5  ;;  %v10079_v60 = vld [vmem:[#allocation2 + $0xb8] sm:$0xf] }
 0x5d5   : > { %v17944_v47 = vsel %vm15456_vm13, %v10903_v13, %v10904_v36  ;;  %v10915_v13 = vrot.slane %v17913_v11, 5  ;;  %v12261_v36 = vrot.slane %v10802_v43, 9  ;;  %19072 = vst [vmem:[#allocation67_spill] sm:$0xff] %v17961_v7  ;;  %v10076_v43 = vld [vmem:[#allocation2 + $0xac] sm:$0xf]  ;;  %v10924_v0 = vrot.slane %v10922_v28, 4 }
 0x5d6   : > { %19070 = vst [vmem:[#allocation65_spill] sm:$0xff] %v17944_v47  ;;  %v14450_v47 = vld [vmem:[#allocation9 + $0x150] sm:$0xff]   ;;  %v10931_v32 = vrot.slane %v10929_v10, 4  ;;  %v10932_v63 = vrot.slane %v10071_v37, 5  ;;  %v10936_v7 = vrot.slane %v10073_v41, 5 }
 0x5d7   : > { %v10917_v16 = vrot.slane %v10915_v13, 4  ;;  %v17967_v55 = vsel %vm15456_vm13, %v12260_v29, %v10915_v13  ;;  %v10806_v22 = vld [vmem:[#allocation2 + $0xb4] sm:$0xe]  ;;  %v10077_v35 = vld [vmem:[#allocation2 + $0xb0] sm:$0x1]  ;;  %v17981_v37 = vsel %vm15456_vm13, %v10924_v0, %v10925_v18 }
 0x5d8   : > { %13437 = vmatmul.mubr.bf16.vlgmr.msra.gmra.mrb[0].mxu1 %v17746_v31  ;;  %v12262_v31 = vrot.slane %v10803_v23, 9  ;;  %v17975_v23 = vsel %vm15456_vm13, %v12261_v36, %v10922_v28  ;;  %v10082_v25 = vld [vmem:[#allocation2 + $0xc4] sm:$0xf]  ;;  %19074 = vst [vmem:[#allocation69_spill] sm:$0xff] %v17981_v37  ;;  %v10807_v41 = vld [vmem:[#allocation2 + $0xc0] sm:$0xe] }
 0x5d9   : > { %13440 = vmatprep.mubr.bf16.mxu1 %v17757_v3  ;;  %13469 = vmatpush3.bf16.msra.mxu1 %v17727_v46  ;;  %v10918_v46 = vrot.slane %v10065_v4, 5  ;;  %v12263_v3 = vrot.slane %v10804_v58, 9  ;;  %v10805_v4 = vld [vmem:[#allocation2 + $0xa8] sm:$0xe]  ;;  %v17989_v58 = vsel %vm15456_vm13, %v10931_v32, %v10932_v63  ;;  %v10080_v36 = vld [vmem:[#allocation2 + $0xbc] sm:$0x1] }
 0x5da   : > { %13470 = vmatprep.subr.bf16.mxu1 %v14449_v26  ;;  %v17985_v13 = vsel %vm15456_vm13, %v12262_v31, %v10929_v10  ;;  %v10938_v18 = vrot.slane %v10936_v7, 4  ;;  %v10083_v0 = vld [vmem:[#allocation2 + $0xc8] sm:$0x1]  ;;  %v12264_v29 = vrot.slane %v10805_v4, 9  ;;  %v10943_v10 = vrot.slane %v10076_v43, 5  ;;  %v14452_v4 = vld [vmem:[#allocation9 + $0x160] sm:$0xff]  }
 0x5db   : > { %v17971_v42 = vsel %vm15456_vm13, %v10917_v16, %v10918_v46  ;;  %v10939_v46 = vrot.slane %v10074_v15, 5  ;;  %v12265_v31 = vrot.slane %v10806_v22, 9  ;;  %v17998_v32 = vsel %vm15456_vm13, %v12263_v3, %v10936_v7  ;;  %v19145_v9 = vld [vmem:[#allocation62_spill] sm:$0xff] }
 0x5dc   : > { %19073 = vst [vmem:[#allocation68_spill] sm:$0xff] %v17971_v42  ;;  %v10950_v42 = vrot.slane %v10079_v60, 5  ;;  %v12266_v28 = vrot.slane %v10807_v41, 9  ;;  %v10957_v37 = vrot.slane %v10082_v25, 5  ;;  %v8699_v15 = vshll.u32 %v17562_v48, 16 }
 0x5dd   : > { %13471 = vmatpush3.bf16.msra.mxu1 %v14449_v26  ;;  %v14451_v26 = vld [vmem:[#allocation9 + $0x158] sm:$0xff]   ;;  %v18002_v63 = vsel %vm15456_vm13, %v10938_v18, %v10939_v46  ;;  %v10945_v43 = vrot.slane %v10943_v10, 4  ;;  %v10953_v3 = vrot.slane %v10080_v36, 5  ;;  %v10960_v16 = vrot.slane %v10083_v0, 5 }
 0x5de   : > { %13472 = vmatprep.subr.bf16.mxu1 %v14450_v47  ;;  %v12279_v60 = vcombine.low %v17998_v32, %v18002_v63  ;;  %v10952_v7 = vrot.slane %v10950_v42, 4  ;;  %v10959_v22 = vrot.slane %v10957_v37, 4  ;;  %v8703_v18 = vshrl.u32 %v17562_v48, 16  ;;  %v8434_v0 = vld [vmem:[#allocation2 + $0x90] sm:$0xf] }
 0x5df   : > { %v18011_v25 = vsel %vm15456_vm13, %v12264_v29, %v10943_v10  ;;  %v18029_v48 = vsel %vm15456_vm13, %v12266_v28, %v10957_v37  ;;  %v19075_v36 = vshll.u32 %v17528_v20, 16  ;;  %v8437_v10 = vld [vmem:[#allocation2 + $0x9c] sm:$0xf]  ;;  %v19076_v28 = vor.u32 %v17798_v27, %v17796_v44 }
 0x5e0   : > { %13441 = vmatmul.mubr.bf16.gmra.mrb[4].mxu1 %v17780_v14  ;;  %v10946_v14 = vrot.slane %v10077_v35, 5  ;;  %v18025_v41 = vsel %vm15456_vm13, %v10952_v7, %v10953_v3  ;;  %v18033_v29 = vsel %vm15456_vm13, %v10959_v22, %v10960_v16  ;;  %v19078_v20 = vor.u32 %v17824_v38, %v17822_v19 }
 0x5e1   : > { %13444 = vmatprep.mubr.bf16.mxu1 %v17782_v49  ;;  %13473 = vmatpush3.bf16.msra.mxu1 %v14450_v47  ;;  %v18019_v47 = vsel %vm15456_vm13, %v12265_v31, %v10950_v42  ;;  %v8630_v42 = vsel %vm15051_vm7, %v17804_v62, %v17775_v5  ;;  %v8663_v46 = vrot.slane %v19075_v36, 5  ;;  %v8649_v16 = vrot.slane %v19076_v28, 4 }
 0x5e2   : > { %13474 = vmatprep.subr.bf16.mxu1 %v14451_v26  ;;  %v18015_v49 = vsel %vm15456_vm13, %v10945_v43, %v10946_v14  ;;  %v12281_v31 = vcombine.low %v18019_v47, %v18025_v41  ;;  %v19077_v43 = vor.u32 %v17819_v50, %v17814_v6  ;;  %v8673_v62 = vrot.slane %v19078_v20, 4  ;;  %v14453_v14 = vld [vmem:[#allocation9 + $0x168] sm:$0xff]  }
 0x5e3   : > { %v12280_v35 = vcombine.low %v18011_v25, %v18015_v49  ;;  %v19079_v7 = vshrl.u32 %v17816_v8, 16  ;;  %v19080_v22 = vshll.u32 %v17816_v8, 16  ;;  %v18059_v44 = vrot.slane %v8699_v15, 5 }
 0x5e4   : > { %v8659_v5 = vrot.slane %v19077_v43, 4  ;;  %v8705_v27 = vrot.slane %v8703_v18, 4  ;;  %v8640_v50 = vsel %vm15051_vm7, %v17828_v34, %v17806_v57  ;;  %v8714_v38 = vshrl.u32 %v8434_v0, 16 }
 0x5e5   : > { %13475 = vmatpush3.bf16.msra.mxu1 %v14451_v26  ;;  %v8685_v26 = vshll.u32 %v17560_v45, 16  ;;  %v8692_v3 = vrot.slane %v19079_v7, 4  ;;  %v8695_v36 = vrot.slane %v19080_v22, 5  ;;  %v19081_v45 = vor.u32 %v17837_v52, %v17835_v59 }
 0x5e6   : > { %13476 = vmatprep.subr.bf16.mxu1 %v14452_v4  ;;  %v8717_v28 = vshll.u32 %v8434_v0, 16  ;;  %v8723_v8 = vshll.u32 %v17579_v54, 16  ;;  %v8727_v15 = vshrl.u32 %v17579_v54, 16  ;;  %v8738_v18 = vshrl.u32 %v8437_v10, 16  ;;  %v14454_v0 = vld [vmem:[#allocation9 + $0x170] sm:$0xff]  }
 0x5e7   : > { %v8683_v19 = vrot.slane %v19081_v45, 4  ;;  %v8654_v43 = vsel %vm15051_vm7, %v8649_v16, %v17814_v6  ;;  %v8687_v57 = vrot.slane %v8685_v26, 5  ;;  %v8747_v34 = vshll.u32 %v17591_v33, 16 }
 0x5e8   : > { %13445 = vmatmul.mubr.bf16.gmra.mrb[8].mxu1 %v17793_v30  ;;  %v8741_v30 = vshll.u32 %v8437_v10, 16  ;;  %v8751_v52 = vshrl.u32 %v17591_v33, 16  ;;  %v8678_v54 = vsel %vm15051_vm7, %v8673_v62, %v17835_v59  ;;  %v8706_v10 = vor.u32 %v8705_v27, %v18059_v44  ;;  %v8440_v62 = vld [vmem:[#allocation2 + $0xa8] sm:$0xf] }
 0x5e9   : > { %13448 = vmatprep.mubr.bf16.mxu1 %v17812_v53  ;;  %13477 = vmatpush3.bf16.msra.mxu1 %v14452_v4  ;;  %v8664_v53 = vsel %vm15051_vm7, %v8659_v5, %v8663_v46  ;;  %v8696_v4 = vor.u32 %v8695_v36, %v8692_v3  ;;  %v8688_v6 = vsel %vm15051_vm7, %v8683_v19, %v8687_v57  ;;  %v8709_v16 = vshll.u32 %v17570_v2, 16  ;;  %v14455_v3 = vld [vmem:[#allocation9 + $0x178] sm:$0xff]  }
 0x5ea   : > { %13478 = vmatprep.subr.bf16.mxu1 %v14453_v14  ;;  %v8716_v20 = vrot.slane %v8714_v38, 4  ;;  %v8719_v26 = vrot.slane %v8717_v28, 5  ;;  %v18086_v7 = vrot.slane %v8723_v8, 5  ;;  %v8729_v33 = vrot.slane %v8727_v15, 4 }
 0x5eb   : > { %v8740_v22 = vrot.slane %v8738_v18, 4  ;;  %v8743_v45 = vrot.slane %v8741_v30, 5  ;;  %v12147_v46 = vcombine.low %v8630_v42, %v8640_v50  ;;  %v18088_v5 = vrot.slane %v8747_v34, 5  ;;  %v14539_v30 = vld [vmem:[#allocation2 + $0xac] sm:$0xf] }
 0x5ec   : > { %v8753_v59 = vrot.slane %v8751_v52, 4  ;;  %v12148_v36 = vcombine.low %v8654_v43, %v8664_v53  ;;  %v8697_v27 = vrot.slane %v8696_v4, 4  ;;  %v8707_v19 = vrot.slane %v8706_v10, 4  ;;  %v18092_v43 = vld [vmem:[#allocation9 + $0x180] sm:$0xff]   ;;  %v14541_v10 = vld [vmem:[#allocation2 + $0xa4] sm:$0x1] }
 0x5ed   : > { %13479 = vmatpush3.bf16.msra.mxu1 %v14453_v14  ;;  %v12149_v2 = vcombine.low %v8678_v54, %v8688_v6  ;;  %v8711_v38 = vrot.slane %v8709_v16, 5  ;;  %v8720_v28 = vor.u32 %v8719_v26, %v8716_v20  ;;  %v8730_v8 = vor.u32 %v8729_v33, %v18086_v7  ;;  %v8443_v14 = vld [vmem:[#allocation2 + $0xb4] sm:$0xf]  ;;  %v14540_v54 = vld [vmem:[#allocation2 + $0x98] sm:$0x1] }
 0x5ee   : > { %13480 = vmatprep.subr.bf16.mxu1 %v14454_v0  ;;  %v8744_v15 = vor.u32 %v8743_v45, %v8740_v22  ;;  %v8762_v18 = vshrl.u32 %v8440_v62, 16  ;;  %v8754_v42 = vor.u32 %v8753_v59, %v18088_v5  ;;  %v8765_v50 = vshll.u32 %v8440_v62, 16  ;;  %v14542_v20 = vld [vmem:[#allocation2 + $0xb8] sm:$0xf] }
 0x5ef   : > { %v8771_v57 = vshll.u32 %v14539_v30, 16  ;;  %v8775_v34 = vshrl.u32 %v14539_v30, 16  ;;  %v8702_v52 = vsel %vm15051_vm7, %v8697_v27, %v18059_v44  ;;  %v8712_v53 = vsel %vm15051_vm7, %v8707_v19, %v8711_v38 }
 0x5f0   : > { %13449 = vmatmul.mubr.bf16.gmra.mrb[12].mxu1 %v12147_v46  ;;  %v8733_v4 = vshll.u32 %v14540_v54, 16  ;;  %v8786_v6 = vshrl.u32 %v8443_v14, 16  ;;  %v8789_v16 = vshll.u32 %v8443_v14, 16  ;;  %v8795_v26 = vshll.u32 %v14542_v20, 16 }
 0x5f1   : > { %13452 = vmatprep.mubr.bf16.mxu1 %v12148_v36  ;;  %13481 = vmatpush3.bf16.msra.mxu1 %v14454_v0  ;;  %v8757_v0 = vshll.u32 %v14541_v10, 16  ;;  %v8799_v33 = vshrl.u32 %v14542_v20, 16  ;;  %v8721_v22 = vrot.slane %v8720_v28, 4  ;;  %v8731_v45 = vrot.slane %v8730_v8, 4  ;;  %v8446_v20 = vld [vmem:[#allocation2 + $0xc0] sm:$0xf] }
 0x5f2   : > { %13482 = vmatprep.subr.bf16.mxu1 %v14455_v3  ;;  %v8745_v46 = vrot.slane %v8744_v15, 4  ;;  %v8764_v59 = vrot.slane %v8762_v18, 4  ;;  %v8755_v62 = vrot.slane %v8754_v42, 4  ;;  %v8767_v36 = vrot.slane %v8765_v50, 5 }
 0x5f3   : > { %v8773_v44 = vrot.slane %v8771_v57, 5  ;;  %v8777_v27 = vrot.slane %v8775_v34, 4  ;;  %v12150_v19 = vcombine.low %v8702_v52, %v8712_v53  ;;  %v8735_v38 = vrot.slane %v8733_v4, 5  ;;  %v14543_v57 = vld [vmem:[#allocation2 + $0xc4] sm:$0xf] }
 0x5f4   : > { %v8759_v30 = vrot.slane %v8757_v0, 5  ;;  %v8788_v54 = vrot.slane %v8786_v6, 4  ;;  %v8791_v14 = vrot.slane %v8789_v16, 5  ;;  %v8797_v10 = vrot.slane %v8795_v26, 5  ;;  %v14544_v0 = vld [vmem:[#allocation2 + $0xb0] sm:$0x1] }
 0x5f5   : > { %13483 = vmatpush3.bf16.msra.mxu1 %v14455_v3  ;;  %v8801_v37 = vrot.slane %v8799_v33, 4  ;;  %v8726_v3 = vsel %vm15051_vm7, %v8721_v22, %v18086_v7  ;;  %v8736_v28 = vsel %vm15051_vm7, %v8731_v45, %v8735_v38  ;;  %v8750_v8 = vsel %vm15051_vm7, %v8745_v46, %v18088_v5  ;;  %v14545_v22 = vld [vmem:[#allocation2 + $0xbc] sm:$0x1] }
 0x5f6   : > { %13516 = vmatprep.subr.bf16.mxu1 %v18092_v43  ;;  %v8768_v15 = vor.u32 %v8767_v36, %v8764_v59  ;;  %v8778_v18 = vor.u32 %v8777_v27, %v8773_v44  ;;  %v8810_v42 = vshrl.u32 %v8446_v20, 16  ;;  %v8813_v50 = vshll.u32 %v8446_v20, 16 }
 0x5f7   : > { %v8819_v34 = vshll.u32 %v14543_v57, 16  ;;  %v8823_v52 = vshrl.u32 %v14543_v57, 16  ;;  %v8792_v53 = vor.u32 %v8791_v14, %v8788_v54  ;;  %v8802_v4 = vor.u32 %v8801_v37, %v8797_v10 }
 0x5f8   : > { %13453 = vmatmul.mubr.bf16.gmra.mrb[16].mxu1 %v12149_v2  ;;  %v8760_v2 = vsel %vm15051_vm7, %v8755_v62, %v8759_v30  ;;  %v12151_v7 = vcombine.low %v8726_v3, %v8736_v28  ;;  %v8781_v6 = vshll.u32 %v14544_v0, 16  ;;  %v8769_v26 = vrot.slane %v8768_v15, 4  ;;  %v14546_v28 = vld [vmem:[#allocation2 + $0x10] sm:$0xf]  ;;  %v14548_v0 = vld [vmem:[#allocation2 + $0x1c] sm:$0xf] }
 0x5f9   : > { %13456 = vmatprep.mubr.bf16.mxu1 %v12150_v19  ;;  %v12152_v16 = vcombine.low %v8750_v8, %v8760_v2  ;;  %v8779_v33 = vrot.slane %v8778_v18, 4  ;;  %v8805_v5 = vshll.u32 %v14545_v22, 16  ;;  %v8812_v45 = vrot.slane %v8810_v42, 4  ;;  %v14547_v2 = vld [vmem:[#allocation2 + $0xc8] sm:$0x1] }
 0x5fa   : > { %v8815_v46 = vrot.slane %v8813_v50, 5  ;;  %v8821_v62 = vrot.slane %v8819_v34, 5  ;;  %v8825_v59 = vrot.slane %v8823_v52, 4  ;;  %v8793_v36 = vrot.slane %v8792_v53, 4  ;;  %v9156_v22 = vld [vmem:[#allocation2 + $0x18] sm:$0xe] }
 0x5fb   : > { %v8803_v27 = vrot.slane %v8802_v4, 4  ;;  %v8783_v19 = vrot.slane %v8781_v6, 5  ;;  %v8807_v38 = vrot.slane %v8805_v5, 5  ;;  %v8774_v37 = vsel %vm15051_vm7, %v8769_v26, %v8773_v44  ;;  %v9155_v44 = vld [vmem:[#allocation2 + $0xc] sm:$0xe] }
 0x5fc   : > { %v8816_v54 = vor.u32 %v8815_v46, %v8812_v45  ;;  %v8826_v14 = vor.u32 %v8825_v59, %v8821_v62  ;;  %v8798_v20 = vsel %vm15051_vm7, %v8793_v36, %v8797_v10  ;;  %v9221_v8 = vrot.slane %v14546_v28, 5 }
 0x5fd   : > { %v8784_v30 = vsel %vm15051_vm7, %v8779_v33, %v8783_v19  ;;  %v8808_v3 = vsel %vm15051_vm7, %v8803_v27, %v8807_v38  ;;  %v8829_v15 = vshll.u32 %v14547_v2, 16  ;;  %v12164_v53 = vrot.slane %v9155_v44, 9  ;;  %v14457_v27 = vld [vmem:[#allocation9 + $0x188] sm:$0xff]   ;;  %v14458_v38 = vld [vmem:[#allocation9 + $0x190] sm:$0xff]  }
 0x5fe   : > { %v12153_v18 = vcombine.low %v8774_v37, %v8784_v30  ;;  %v12154_v42 = vcombine.low %v8798_v20, %v8808_v3  ;;  %v8817_v50 = vrot.slane %v8816_v54, 4  ;;  %v8827_v57 = vrot.slane %v8826_v14, 4  ;;  %v14460_v54 = vld [vmem:[#allocation9 + $0x1a0] sm:$0xff]   ;;  %v19089_v3 = vld [vmem:[#allocation25_spill] sm:$0xff] }
 0x5ff   : > { %v9223_v34 = vrot.slane %v9221_v8, 4  ;;  %v8831_v52 = vrot.slane %v8829_v15, 5  ;;  %v9224_v4 = vrot.slane %v17692_v21, 5  ;;  %v9228_v6 = vrot.slane %v14548_v0, 5  ;;  %v19088_v20 = vld [vmem:[#allocation20_spill] sm:$0xff]  ;;  %v19094_v2 = vld [vmem:[#allocation17_spill] sm:$0xff] }
 0x600   : > { %13457 = vmatmul.mubr.bf16.gmra.mrb[20].mxu1 %v12151_v7  ;;  %v8822_v10 = vsel %vm15051_vm7, %v8817_v50, %v8821_v62  ;;  %v9222_v33 = vsel %vm15456_vm13, %v12164_v53, %v9221_v8  ;;  %v12165_v21 = vrot.slane %v9156_v22, 9  ;;  %v9231_v46 = vrot.slane %v17694_v56, 5  ;;  %v14459_v56 = vld [vmem:[#allocation9 + $0x198] sm:$0xff]   ;;  %v19095_v15 = vld [vmem:[#allocation18_spill] sm:$0xff] }
 0x601   : > { %13460 = vmatprep.mubr.bf16.mxu1 %v12152_v16  ;;  %v8832_v7 = vsel %vm15051_vm7, %v8827_v57, %v8831_v52  ;;  %v9225_v16 = vsel %vm15456_vm13, %v9223_v34, %v9224_v4  ;;  %v9230_v45 = vrot.slane %v9228_v6, 4  ;;  %v19082_v19 = vcombine.low %v17490_v61, %v17498_v1  ;;  %v14461_v61 = vld [vmem:[#allocation9 + $0x1a8] sm:$0xff]   ;;  %v19085_v1 = vld [vmem:[#allocation16_spill] sm:$0xff]  ;;  %v19097_v50 = vld [vmem:[#allocation19_spill] sm:$0xff] }
 0x602   : > { %v12155_v26 = vcombine.low %v8822_v10, %v8832_v7  ;;  %v12180_v5 = vcombine.low %v9222_v33, %v9225_v16  ;;  %v9229_v59 = vsel %vm15456_vm13, %v12165_v21, %v9228_v6  ;;  %v19083_v37 = vcombine.low %v17507_v39, %v17515_v17  ;;  %v14462_v39 = vld [vmem:[#allocation9 + $0x1b0] sm:$0xff]   ;;  %v14463_v17 = vld [vmem:[#allocation9 + $0x1b8] sm:$0xff]   ;;  %v19098_v57 = vld [vmem:[#allocation24_spill] sm:$0xff] }
 0x603   : > { %v9232_v62 = vsel %vm15456_vm13, %v9230_v45, %v9231_v46  ;;  %v19084_v30 = vcombine.low %v17532_v24, %v17543_v12  ;;  %v19090_v28 = vcombine.low %v19088_v20, %v19089_v3  ;;  %v19091_v24 = vld [vmem:[#allocation21_spill] sm:$0xff]  ;;  %v19092_v12 = vld [vmem:[#allocation22_spill] sm:$0xff]  ;;  %v19099_v44 = vcombine.low %v19097_v50, %v19098_v57  ;;  %v19101_v52 = vld [vmem:[#allocation27_spill] sm:$0xff] }
 0x604   : > { %v12181_v36 = vcombine.low %v9229_v59, %v9232_v62  ;;  %v19093_v8 = vcombine.low %v19091_v24, %v19092_v12  ;;  %v19100_v34 = vld [vmem:[#allocation26_spill] sm:$0xff]  ;;  %v19103_v4 = vld [vmem:[#allocation28_spill] sm:$0xff]  ;;  %v19104_v10 = vld [vmem:[#allocation29_spill] sm:$0xff] }
 0x605   : > { %v19102_v53 = vcombine.low %v19100_v34, %v19101_v52  ;;  %v19105_v7 = vcombine.low %v19103_v4, %v19104_v10  ;;  %v19106_v0 = vld [vmem:[#allocation30_spill] sm:$0xff]  ;;  %v19107_v6 = vld [vmem:[#allocation31_spill] sm:$0xff]  ;;  %v19110_v33 = vld [vmem:[#allocation33_spill] sm:$0xff] }
 0x606   : > { %v19108_v16 = vcombine.low %v19106_v0, %v19107_v6  ;;  %v19113_v45 = vld [vmem:[#allocation35_spill] sm:$0xff]  ;;  %v19115_v62 = vld [vmem:[#allocation36_spill] sm:$0xff]  ;;  %v19116_v59 = vld [vmem:[#allocation37_spill] sm:$0xff] }
 0x607   : > { %v14464_v46 = vld [vmem:[#allocation2 + $0x18] sm:$0xff]   ;;  %v14484_v20 = vld [vmem:[#allocation9 + $0x1f0] sm:$0xff]  }
 0x608   : > { %13461 = vmatmul.mubr.bf16.gmra.mrb[24].mxu1 %v12153_v18  ;;  %v19096_v18 = vcombine.low %v19094_v2, %v19095_v15  ;;  %v14474_v3 = vld [vmem:[#allocation2 + $0x6c] sm:$0xff]   ;;  %v18175_v24 = vld [vmem:[#allocation9 + $0x200] sm:$0xff]   ;;  %v10042_v2 = vld [vmem:[#allocation2 + $0x24] sm:$0xf] }
 0x609   : > { %13464 = vmatprep.mubr.bf16.mxu1 %v12154_v42  ;;  %v14466_v42 = vld [vmem:[#allocation9 + $0x1c0] sm:$0xff]   ;;  %v19118_v15 = vld [vmem:[#allocation38_spill] sm:$0xff] }
 0x60a   : > { %v14477_v50 = vld [vmem:[#allocation2 + $0x84] sm:$0xff]   ;;  %v14479_v57 = vld [vmem:[#allocation2 + $0x90] sm:$0xff]   ;;  %v19119_v6 = vld [vmem:[#allocation40_spill] sm:$0xff] }
 0x610   : > { %13465 = vmatmul.mubr.bf16.gmra.mrb[28].mxu1 %v12155_v26  ;;  %v19109_v26 = vld [vmem:[#allocation32_spill] sm:$0xff] }
 0x611   : > { %13484 = vmatprep.mubr.bf16.mxu1 %v12180_v5  ;;  %v19111_v22 = vcombine.low %v19109_v26, %v19110_v33  ;;  %v19112_v5 = vld [vmem:[#allocation34_spill] sm:$0xff]  ;;  %v10125_v26 = vshrl.u32 %v19119_v6, 16 }
 0x612   : > { %v19114_v21 = vcombine.low %v19112_v5, %v19113_v45 }
 0x618   : > { %13485 = vmatmul.mubr.bf16.vlgmr.msra.gmra.mrb[0].mxu1 %v12181_v36  ;;  %v19117_v36 = vcombine.low %v19115_v62, %v19116_v59  ;;  %v14482_v62 = vld [vmem:[#allocation2 + $0xa8] sm:$0xff]   ;;  %v19120_v59 = vld [vmem:[#allocation39_spill] sm:$0xff] }
 0x619   : > { %13488 = vmatprep.mubr.bf16.mxu1 %v19082_v19  ;;  %13517 = vmatpush3.bf16.msra.mxu1 %v18092_v43  ;;  %v19086_v43 = vld [vmem:[#allocation23_spill] sm:$0xff]  ;;  %v14469_v19 = vld [vmem:[#allocation9 + $0x1c8] sm:$0xff]  }
 0x61a   : > { %13518 = vmatprep.subr.bf16.mxu1 %v14457_v27  ;;  %v19087_v14 = vcombine.low %v19085_v1, %v19086_v43  ;;  %v14471_v1 = vld [vmem:[#allocation2 + $0x54] sm:$0xff]   ;;  %v14481_v43 = vld [vmem:[#allocation9 + $0x1e8] sm:$0xff]  }
 0x61d   : > { %13519 = vmatpush3.bf16.msra.mxu1 %v14457_v27  ;;  %v14465_v27 = vld [vmem:[#allocation2 + $0x24] sm:$0xff]  }
 0x61e   : > { %13520 = vmatprep.subr.bf16.mxu1 %v14458_v38 }
 0x620   : > { %13489 = vmatmul.mubr.bf16.gmra.mrb[4].mxu1 %v19083_v37  ;;  %v14468_v37 = vld [vmem:[#allocation2 + $0x3c] sm:$0xff]  }
 0x621   : > { %13492 = vmatprep.mubr.bf16.mxu1 %v19084_v30  ;;  %13521 = vmatpush3.bf16.msra.mxu1 %v14458_v38  ;;  %v14467_v38 = vld [vmem:[#allocation2 + $0x30] sm:$0xff]  }
 0x622   : > { %13522 = vmatprep.subr.bf16.mxu1 %v14459_v56  ;;  %v14475_v30 = vld [vmem:[#allocation9 + $0x1d8] sm:$0xff]  }
 0x625   : > { %13523 = vmatpush3.bf16.msra.mxu1 %v14459_v56  ;;  %v14472_v56 = vld [vmem:[#allocation9 + $0x1d0] sm:$0xff]  }
 0x626   : > { %13524 = vmatprep.subr.bf16.mxu1 %v14460_v54 }
 0x628   : > { %13493 = vmatmul.mubr.bf16.gmra.mrb[8].mxu1 %v19087_v14  ;;  %v14473_v14 = vld [vmem:[#allocation2 + $0x60] sm:$0xff]  }
 0x629   : > { %13496 = vmatprep.mubr.bf16.mxu1 %v19090_v28  ;;  %13525 = vmatpush3.bf16.msra.mxu1 %v14460_v54  ;;  %v14470_v54 = vld [vmem:[#allocation2 + $0x48] sm:$0xff]   ;;  %v14487_v28 = vld [vmem:[#allocation9 + $0x1f8] sm:$0xff]  }
 0x62a   : > { %13526 = vmatprep.subr.bf16.mxu1 %v14461_v61 }
 0x62d   : > { %13527 = vmatpush3.bf16.msra.mxu1 %v14461_v61  ;;  %v14478_v61 = vld [vmem:[#allocation9 + $0x1e0] sm:$0xff]  }
 0x62e   : > { %13528 = vmatprep.subr.bf16.mxu1 %v14462_v39 }
 0x630   : > { %13497 = vmatmul.mubr.bf16.gmra.mrb[12].mxu1 %v19093_v8 }
 0x631   : > { %13500 = vmatprep.mubr.bf16.mxu1 %v19096_v18  ;;  %13529 = vmatpush3.bf16.msra.mxu1 %v14462_v39  ;;  %v14476_v39 = vld [vmem:[#allocation2 + $0x78] sm:$0xff]   ;;  %v10097_v18 = vshll.u32 %v19118_v15, 16 }
 0x632   : > { %13530 = vmatprep.subr.bf16.mxu1 %v14463_v17 }
 0x633   : > { %v10099_v4 = vrot.slane %v10097_v18, 5 }
 0x635   : > { %13531 = vmatpush3.bf16.msra.mxu1 %v14463_v17  ;;  %v10039_v17 = vld [vmem:[#allocation2 + $0x18] sm:$0xf] }
 0x636   : > { %13564 = vmatprep.subr.bf16.mxu1 %v14466_v42  ;;  %v10088_v12 = vshrl.u32 %v10039_v17, 16  ;;  %v10091_v8 = vshll.u32 %v10039_v17, 16 }
 0x638   : > { %13501 = vmatmul.mubr.bf16.gmra.mrb[16].mxu1 %v19099_v44  ;;  %v10112_v44 = vshrl.u32 %v10042_v2, 16  ;;  %v10090_v34 = vrot.slane %v10088_v12, 4  ;;  %v10093_v52 = vrot.slane %v10091_v8, 5 }
 0x639   : > { %13504 = vmatprep.mubr.bf16.mxu1 %v19102_v53  ;;  %v10115_v53 = vshll.u32 %v10042_v2, 16 }
 0x63a   : > { %v10114_v0 = vrot.slane %v10112_v44, 4  ;;  %v10094_v33 = vor.u32 %v10093_v52, %v10090_v34  ;;  %v14483_v44 = vld [vmem:[#allocation2 + $0xb4] sm:$0xff]   ;;  %v14485_v34 = vld [vmem:[#allocation2 + $0xc0] sm:$0xff]  }
 0x63b   : > { %v19123_v52 = vld [vmem:[#allocation43_spill] sm:$0xff] }
 0x640   : > { %13505 = vmatmul.mubr.bf16.gmra.mrb[20].mxu1 %v19105_v7  ;;  %v10045_v7 = vld [vmem:[#allocation2 + $0x30] sm:$0xf] }
 0x641   : > { %13508 = vmatprep.mubr.bf16.mxu1 %v19108_v16  ;;  %v10121_v16 = vshll.u32 %v19119_v6, 16  ;;  %v10136_v5 = vshrl.u32 %v10045_v7, 16  ;;  %v10139_v45 = vshll.u32 %v10045_v7, 16  ;;  %v19124_v7 = vld [vmem:[#allocation44_spill] sm:$0xff] }
 0x648   : > { %13509 = vmatmul.mubr.bf16.gmra.mrb[24].mxu1 %v19111_v22  ;;  %v10117_v22 = vrot.slane %v10115_v53, 5  ;;  %v10155_v53 = vshll.u32 %v19123_v52, 16 }
 0x649   : > { %13512 = vmatprep.mubr.bf16.mxu1 %v19114_v21 }
 0x650   : > { %13513 = vmatmul.mubr.bf16.gmra.mrb[28].mxu1 %v19117_v36  ;;  %v10107_v36 = vshll.u32 %v19120_v59, 16  ;;  %v18210_v59 = vld [vmem:[#allocation2 + $0xd0] sm:$0xf] }
 0x651   : > { %13532 = vmatprep.mubr.bf16.mxu1 %v14464_v46  ;;  %v14480_v46 = vld [vmem:[#allocation2 + $0x9c] sm:$0xff]  }
 0x658   : > { %13533 = vmatmul.mubr.bf16.vlgmr.msra.gmra.mrb[0].mxu1 %v14465_v27  ;;  %v18183_v27 = vrot.slane %v10121_v16, 5 }
 0x659   : > { %13536 = vmatprep.mubr.bf16.mxu1 %v14467_v38  ;;  %13565 = vmatpush3.bf16.msra.mxu1 %v14466_v42  ;;  %v10101_v42 = vshrl.u32 %v19118_v15, 16  ;;  %v19121_v38 = vld [vmem:[#allocation42_spill] sm:$0xff] }
 0x65a   : > { %13566 = vmatprep.subr.bf16.mxu1 %v14469_v19  ;;  %v10051_v15 = vld [vmem:[#allocation2 + $0x48] sm:$0xf] }
 0x65b   : > { %v10103_v10 = vrot.slane %v10101_v42, 4  ;;  %v10184_v16 = vshrl.u32 %v10051_v15, 16 }
 0x65d   : > { %13567 = vmatpush3.bf16.msra.mxu1 %v14469_v19  ;;  %v10104_v21 = vor.u32 %v10103_v10, %v10099_v4  ;;  %v10127_v19 = vrot.slane %v10125_v26, 4  ;;  %v10187_v26 = vshll.u32 %v10051_v15, 16 }
 0x65e   : > { %13568 = vmatprep.subr.bf16.mxu1 %v14472_v56 }
 0x660   : > { %13537 = vmatmul.mubr.bf16.gmra.mrb[4].mxu1 %v14468_v37  ;;  %v10095_v37 = vrot.slane %v10094_v33, 4  ;;  %v19125_v33 = vld [vmem:[#allocation48_spill] sm:$0xff] }
 0x661   : > { %13540 = vmatprep.mubr.bf16.mxu1 %v14470_v54  ;;  %13569 = vmatpush3.bf16.msra.mxu1 %v14472_v56  ;;  %v10131_v56 = vshll.u32 %v19121_v38, 16  ;;  %v10138_v54 = vrot.slane %v10136_v5, 4  ;;  %v10054_v5 = vld [vmem:[#allocation2 + $0x54] sm:$0xf] }
 0x662   : > { %13570 = vmatprep.subr.bf16.mxu1 %v14475_v30  ;;  %v10100_v17 = vsel %vm15051_vm7, %v10095_v37, %v10099_v4  ;;  %v10169_v4 = vshll.u32 %v19124_v7, 16  ;;  %v10964_v37 = vrot.slane %v18210_v59, 5 }
 0x663   : > { %v18193_v8 = vrot.slane %v10131_v56, 5  ;;  %v10808_v56 = vld [vmem:[#allocation2 + $0xcc] sm:$0xe] }
 0x665   : > { %13571 = vmatpush3.bf16.msra.mxu1 %v14475_v30  ;;  %v10118_v30 = vor.u32 %v10117_v22, %v10114_v0  ;;  %v10173_v0 = vshrl.u32 %v19124_v7, 16  ;;  %v10193_v22 = vshll.u32 %v19125_v33, 16 }
 0x666   : > { %13572 = vmatprep.subr.bf16.mxu1 %v14478_v61 }
 0x667   : > { %v18191_v12 = vrot.slane %v10118_v30, 4 }
 0x668   : > { %13541 = vmatmul.mubr.bf16.gmra.mrb[8].mxu1 %v14471_v1  ;;  %v10105_v1 = vrot.slane %v10104_v21, 4 }
 0x669   : > { %13544 = vmatprep.mubr.bf16.mxu1 %v14473_v14  ;;  %13573 = vmatpush3.bf16.msra.mxu1 %v14478_v61  ;;  %v10141_v61 = vrot.slane %v10139_v45, 5  ;;  %v10124_v21 = vsel %vm15051_vm7, %v18191_v12, %v18183_v27  ;;  %v10211_v12 = vshll.u32 %v10054_v5, 16 }
 0x66a   : > { %13574 = vmatprep.subr.bf16.mxu1 %v14481_v43 }
 0x66b   : > { %v10142_v2 = vor.u32 %v10141_v61, %v10138_v54  ;;  %v18217_v61 = vrot.slane %v10169_v4, 5 }
 0x66d   : > { %13575 = vmatpush3.bf16.msra.mxu1 %v14481_v43  ;;  %v19122_v43 = vld [vmem:[#allocation41_spill] sm:$0xff] }
 0x66e   : > { %13576 = vmatprep.subr.bf16.mxu1 %v14484_v20  ;;  %v10145_v14 = vshll.u32 %v19122_v43, 16 }
 0x670   : > { %13545 = vmatmul.mubr.bf16.gmra.mrb[12].mxu1 %v14474_v3  ;;  %v10048_v3 = vld [vmem:[#allocation2 + $0x3c] sm:$0xf]  ;;  %v18197_v42 = vrot.slane %v10145_v14, 5  ;;  %v10189_v14 = vrot.slane %v10187_v26, 5 }
 0x671   : > { %13548 = vmatprep.mubr.bf16.mxu1 %v14476_v39  ;;  %13577 = vmatpush3.bf16.msra.mxu1 %v14484_v20  ;;  %v10149_v20 = vshrl.u32 %v19122_v43, 16  ;;  %v10128_v39 = vor.u32 %v10127_v19, %v18183_v27  ;;  %v10163_v10 = vshll.u32 %v10048_v3, 16  ;;  %v10175_v27 = vrot.slane %v10173_v0, 4 }
 0x672   : > { %13578 = vmatprep.subr.bf16.mxu1 %v14487_v28  ;;  %v10186_v43 = vrot.slane %v10184_v16, 4 }
 0x673   : > { %v10129_v6 = vrot.slane %v10128_v39, 4  ;;  %v10165_v54 = vrot.slane %v10163_v10, 5  ;;  %v19127_v10 = vld [vmem:[#allocation45_spill] sm:$0xff] }
 0x674   : > { %v10179_v7 = vshll.u32 %v19127_v10, 16  ;;  %v10190_v26 = vor.u32 %v10189_v14, %v10186_v43  ;;  %v10060_v43 = vld [vmem:[#allocation2 + $0x6c] sm:$0xf] }
 0x675   : > { %13579 = vmatpush3.bf16.msra.mxu1 %v14487_v28  ;;  %v10109_v28 = vrot.slane %v10107_v36, 5  ;;  %v18212_v36 = vld [vmem:[#allocation2 + $0xd4] sm:$0x1]  ;;  %v10134_v52 = vsel %vm15051_vm7, %v10129_v6, %v18193_v8 }
 0x676   : > { %13612 = vmatprep.subr.bf16.mxu1 %v18175_v24  ;;  %v10967_v30 = vrot.slane %v18212_v36, 5  ;;  %v12229_v8 = vcombine.low %v10124_v21, %v10134_v52  ;;  %v10181_v21 = vrot.slane %v10179_v7, 5 }
 0x677   : > { %v10110_v18 = vsel %vm15051_vm7, %v10105_v1, %v10109_v28  ;;  %v12267_v1 = vrot.slane %v10808_v56, 9  ;;  %v14486_v28 = vld [vmem:[#allocation2 + $0xcc] sm:$0xff]  }
 0x678   : > { %13549 = vmatmul.mubr.bf16.gmra.mrb[16].mxu1 %v14477_v50  ;;  %v10151_v50 = vrot.slane %v10149_v20, 4  ;;  %v12228_v45 = vcombine.low %v10100_v17, %v10110_v18  ;;  %v18219_v20 = vrot.slane %v10193_v22, 5  ;;  %v10208_v17 = vshrl.u32 %v10054_v5, 16 }
 0x679   : > { %13552 = vmatprep.mubr.bf16.mxu1 %v14479_v57  ;;  %v10160_v57 = vshrl.u32 %v10048_v3, 16  ;;  %v10966_v3 = vrot.slane %v10964_v37, 4  ;;  %v10157_v18 = vrot.slane %v10155_v53, 5  ;;  %v10176_v53 = vor.u32 %v10175_v27, %v18217_v61 }
 0x67a   : > { %v10152_v19 = vor.u32 %v10151_v50, %v18197_v42  ;;  %v19126_v50 = vld [vmem:[#allocation50_spill] sm:$0xff]  ;;  %v10210_v5 = vrot.slane %v10208_v17, 4 }
 0x67b   : > { %v10162_v38 = vrot.slane %v10160_v57, 4  ;;  %v10217_v57 = vshll.u32 %v19126_v50, 16  ;;  %v10221_v4 = vshrl.u32 %v19126_v50, 16 }
 0x67c   : > { %v10153_v15 = vrot.slane %v10152_v19, 4 }
 0x67d   : > { %v10166_v16 = vor.u32 %v10165_v54, %v10162_v38  ;;  %v18246_v56 = vrot.slane %v10217_v57, 5  ;;  %v19129_v54 = vld [vmem:[#allocation52_spill] sm:$0xff]  ;;  %v14489_v57 = vld [vmem:[#allocation9 + $0x208] sm:$0xff]  }
 0x67e   : > { %v10158_v38 = vsel %vm15051_vm7, %v10153_v15, %v10157_v18  ;;  %v10241_v27 = vshll.u32 %v19129_v54, 16  ;;  %v19130_v15 = vld [vmem:[#allocation58_spill] sm:$0xff] }
 0x67f   : > { %v10167_v14 = vrot.slane %v10166_v16, 4  ;;  %v10265_v18 = vshll.u32 %v19130_v15, 16  ;;  %v10269_v50 = vshrl.u32 %v19130_v15, 16 }
 0x680   : > { %13553 = vmatmul.mubr.bf16.gmra.mrb[20].mxu1 %v14480_v46  ;;  %v18207_v46 = vrot.slane %v10142_v2, 4  ;;  %v18223_v2 = vsel %vm15456_vm13, %v12267_v1, %v10964_v37  ;;  %v10223_v37 = vrot.slane %v10221_v4, 4  ;;  %v10245_v1 = vshrl.u32 %v19129_v54, 16 }
 0x681   : > { %13556 = vmatprep.mubr.bf16.mxu1 %v14482_v62  ;;  %v10197_v62 = vshrl.u32 %v19125_v33, 16  ;;  %v19128_v33 = vld [vmem:[#allocation49_spill] sm:$0xff]  ;;  %v18253_v10 = vrot.slane %v10241_v27, 5  ;;  %v10172_v7 = vsel %vm15051_vm7, %v10167_v14, %v18217_v61  ;;  %v10289_v14 = vshll.u32 %v17913_v11, 16 }
 0x682   : > { %v10203_v22 = vshll.u32 %v19128_v33, 16  ;;  %v10148_v6 = vsel %vm15051_vm7, %v18207_v46, %v18197_v42  ;;  %v10256_v46 = vshrl.u32 %v10060_v43, 16  ;;  %v10247_v4 = vrot.slane %v10245_v1, 4 }
 0x683   : > { %v10199_v39 = vrot.slane %v10197_v62, 4  ;;  %v10213_v62 = vrot.slane %v10211_v12, 5  ;;  %v10259_v12 = vshll.u32 %v10060_v43, 16  ;;  %v12230_v16 = vcombine.low %v10148_v6, %v10158_v38  ;;  %v10063_v6 = vld [vmem:[#allocation2 + $0x78] sm:$0xf] }
 0x684   : > { %v10258_v61 = vrot.slane %v10256_v46, 4  ;;  %v10248_v27 = vor.u32 %v10247_v4, %v18253_v10  ;;  %v10280_v1 = vshrl.u32 %v10063_v6, 16  ;;  %v10283_v43 = vshll.u32 %v10063_v6, 16  ;;  %v10066_v46 = vld [vmem:[#allocation2 + $0x84] sm:$0xf] }
 0x685   : > { %v10200_v40 = vor.u32 %v10199_v39, %v18219_v20  ;;  %v10214_v17 = vor.u32 %v10213_v62, %v10210_v5  ;;  %v19132_v62 = vld [vmem:[#allocation57_spill] sm:$0xff]  ;;  %v10261_v38 = vrot.slane %v10259_v12, 5 }
 0x686   : > { %v10249_v15 = vrot.slane %v10248_v27, 4  ;;  %v10285_v4 = vrot.slane %v10283_v43, 5  ;;  %v14552_v43 = vld [vmem:[#allocation2 + $0x80] sm:$0x1] }
 0x687   : > { %v10201_v39 = vrot.slane %v10200_v40, 4  ;;  %v18266_v5 = vrot.slane %v10214_v17, 4  ;;  %v10262_v17 = vor.u32 %v10261_v38, %v10258_v61  ;;  %v14492_v38 = vld [vmem:[#allocation9 + $0x220] sm:$0xff]  }
 0x688   : > { %13557 = vmatmul.mubr.bf16.gmra.mrb[24].mxu1 %v14483_v44  ;;  %v10057_v44 = vld [vmem:[#allocation2 + $0x60] sm:$0xf] }
 0x689   : > { %13560 = vmatprep.mubr.bf16.mxu1 %v14485_v34  ;;  %v18228_v34 = vsel %vm15456_vm13, %v10966_v3, %v10967_v30  ;;  %v10232_v19 = vshrl.u32 %v10057_v44, 16  ;;  %v10235_v30 = vshll.u32 %v10057_v44, 16  ;;  %v10205_v3 = vrot.slane %v10203_v22, 5 }
 0x68a   : > { %v12283_v0 = vcombine.low %v18223_v2, %v18228_v34  ;;  %v10224_v44 = vor.u32 %v10223_v37, %v18246_v56  ;;  %v18270_v37 = vrot.slane %v10265_v18, 5  ;;  %v14549_v18 = vld [vmem:[#allocation2 + $0x74] sm:$0x1] }
 0x68b   : > { %v10234_v42 = vrot.slane %v10232_v19, 4  ;;  %v10237_v52 = vrot.slane %v10235_v30, 5  ;;  %v10206_v40 = vsel %vm15051_vm7, %v10201_v39, %v10205_v3  ;;  %v10251_v19 = vshll.u32 %v19132_v62, 16 }
 0x68c   : > { %v18272_v30 = vrot.slane %v10224_v44, 4  ;;  %v10069_v44 = vld [vmem:[#allocation2 + $0x90] sm:$0xf] }
 0x68d   : > { %v10238_v54 = vor.u32 %v10237_v52, %v10234_v42  ;;  %v10253_v39 = vrot.slane %v10251_v19, 5  ;;  %v10282_v52 = vrot.slane %v10280_v1, 4  ;;  %v10328_v62 = vshrl.u32 %v10069_v44, 16 }
 0x68e   : > { %v10331_v19 = vshll.u32 %v10069_v44, 16 }
 0x68f   : > { %v10254_v27 = vsel %vm15051_vm7, %v10249_v15, %v10253_v39  ;;  %v10286_v1 = vor.u32 %v10285_v4, %v10282_v52 }
 0x690   : > { %13561 = vmatmul.mubr.bf16.gmra.mrb[28].mxu1 %v14486_v28  ;;  %v10191_v28 = vrot.slane %v10190_v26, 4  ;;  %v19131_v26 = vld [vmem:[#allocation56_spill] sm:$0xff]  ;;  %v10333_v39 = vrot.slane %v10331_v19, 5 }
 0x691   : > { %13580 = vmatprep.mubr.bf16.mxu1 %v12228_v45  ;;  %v10177_v45 = vrot.slane %v10176_v53, 4  ;;  %v10227_v33 = vshll.u32 %v19131_v26, 16  ;;  %v14550_v26 = vld [vmem:[#allocation2 + $0x88] sm:$0xf]  ;;  %v10287_v52 = vrot.slane %v10286_v1, 4 }
 0x692   : > { %v10196_v22 = vsel %vm15051_vm7, %v10191_v28, %v18219_v20  ;;  %v14490_v20 = vld [vmem:[#allocation9 + $0x210] sm:$0xff]   ;;  %v10220_v28 = vsel %vm15051_vm7, %v18266_v5, %v18246_v56 }
 0x693   : > { %v10182_v53 = vsel %vm15051_vm7, %v10177_v45, %v10181_v21  ;;  %v10293_v45 = vshrl.u32 %v17913_v11, 16  ;;  %v10229_v3 = vrot.slane %v10227_v33, 5  ;;  %v10239_v11 = vrot.slane %v10238_v54, 4 }
 0x694   : > { %v12231_v21 = vcombine.low %v10172_v7, %v10182_v53  ;;  %v10304_v7 = vshrl.u32 %v10066_v46, 16  ;;  %v10307_v53 = vshll.u32 %v10066_v46, 16  ;;  %v10313_v33 = vshll.u32 %v14550_v26, 16 }
 0x695   : > { %v10230_v12 = vsel %vm15051_vm7, %v18272_v30, %v10229_v3  ;;  %v10295_v56 = vrot.slane %v10293_v45, 4  ;;  %v10244_v6 = vsel %vm15051_vm7, %v10239_v11, %v18253_v10 }
 0x696   : > { %v10306_v45 = vrot.slane %v10304_v7, 4  ;;  %v12233_v46 = vcombine.low %v10220_v28, %v10230_v12  ;;  %v12234_v44 = vcombine.low %v10244_v6, %v10254_v27  ;;  %v14494_v6 = vld [vmem:[#allocation9 + $0x230] sm:$0xff]  }
 0x698   : > { %13581 = vmatmul.mubr.bf16.vlgmr.msra.gmra.mrb[0].mxu1 %v12229_v8  ;;  %v10271_v8 = vrot.slane %v10269_v50, 4  ;;  %v10275_v50 = vshll.u32 %v14549_v18, 16  ;;  %v10072_v18 = vld [vmem:[#allocation2 + $0x9c] sm:$0xf] }
 0x699   : > { %13584 = vmatprep.mubr.bf16.mxu1 %v12230_v16  ;;  %13613 = vmatpush3.bf16.msra.mxu1 %v18175_v24  ;;  %v12232_v24 = vcombine.low %v10196_v22, %v10206_v40  ;;  %v18285_v16 = vrot.slane %v10289_v14, 5  ;;  %v10317_v22 = vshrl.u32 %v14550_v26, 16  ;;  %v10263_v40 = vrot.slane %v10262_v17, 4 }
 0x69a   : > { %13614 = vmatprep.subr.bf16.mxu1 %v14489_v57  ;;  %v10272_v42 = vor.u32 %v10271_v8, %v18270_v37  ;;  %v10277_v61 = vrot.slane %v10275_v50, 5  ;;  %v14551_v8 = vld [vmem:[#allocation2 + $0x94] sm:$0xf]  ;;  %v10299_v14 = vshll.u32 %v14552_v43, 16  ;;  %v14493_v50 = vld [vmem:[#allocation9 + $0x228] sm:$0xff]   ;;  %v10352_v28 = vshrl.u32 %v10072_v18, 16 }
 0x69b   : > { %v10337_v30 = vshll.u32 %v14551_v8, 16  ;;  %v10341_v54 = vshrl.u32 %v14551_v8, 16  ;;  %v10319_v3 = vrot.slane %v10317_v22, 4  ;;  %v10268_v10 = vsel %vm15051_vm7, %v10263_v40, %v18270_v37  ;;  %v14554_v8 = vld [vmem:[#allocation2 + $0x8c] sm:$0x1] }
 0x69c   : > { %v10273_v5 = vrot.slane %v10272_v42, 4  ;;  %v10330_v42 = vrot.slane %v10328_v62, 4  ;;  %v10301_v4 = vrot.slane %v10299_v14, 5  ;;  %v10355_v12 = vshll.u32 %v10072_v18, 16  ;;  %v14556_v14 = vld [vmem:[#allocation2 + $0x98] sm:$0x1] }
 0x69d   : > { %13615 = vmatpush3.bf16.msra.mxu1 %v14489_v57  ;;  %v14491_v57 = vld [vmem:[#allocation9 + $0x218] sm:$0xff]   ;;  %v18300_v11 = vrot.slane %v10337_v30, 5  ;;  %v10343_v15 = vrot.slane %v10341_v54, 4  ;;  %v10323_v30 = vshll.u32 %v14554_v8, 16  ;;  %v14555_v54 = vld [vmem:[#allocation2 + $0xac] sm:$0xf] }
 0x69e   : > { %13616 = vmatprep.subr.bf16.mxu1 %v14490_v20  ;;  %v10278_v17 = vsel %vm15051_vm7, %v10273_v5, %v10277_v61  ;;  %v10292_v61 = vsel %vm15051_vm7, %v10287_v52, %v18285_v16  ;;  %v10385_v27 = vshll.u32 %v14555_v54, 16 }
 0x69f   : > { %v12235_v7 = vcombine.low %v10268_v10, %v10278_v17  ;;  %v10344_v40 = vor.u32 %v10343_v15, %v18300_v11  ;;  %v10357_v10 = vrot.slane %v10355_v12, 5  ;;  %v14495_v15 = vld [vmem:[#allocation9 + $0x238] sm:$0xff]  }
 0x6a0   : > { %13585 = vmatmul.mubr.bf16.gmra.mrb[4].mxu1 %v12231_v21  ;;  %v10309_v21 = vrot.slane %v10307_v53, 5  ;;  %v18311_v52 = vrot.slane %v10385_v27, 5 }
 0x6a1   : > { %13588 = vmatprep.mubr.bf16.mxu1 %v12232_v24  ;;  %13617 = vmatpush3.bf16.msra.mxu1 %v14490_v20  ;;  %v10296_v20 = vor.u32 %v10295_v56, %v18285_v16  ;;  %v18293_v24 = vrot.slane %v10313_v33, 5  ;;  %v10075_v56 = vld [vmem:[#allocation2 + $0xa8] sm:$0xf]  ;;  %v14553_v33 = vld [vmem:[#allocation2 + $0xa0] sm:$0xf] }
 0x6a2   : > { %13618 = vmatprep.subr.bf16.mxu1 %v14491_v57  ;;  %v10310_v53 = vor.u32 %v10309_v21, %v10306_v45  ;;  %v10361_v22 = vshll.u32 %v14553_v33, 16  ;;  %v10365_v5 = vshrl.u32 %v14553_v33, 16  ;;  %v10376_v62 = vshrl.u32 %v10075_v56, 16  ;;  %v10081_v33 = vld [vmem:[#allocation2 + $0xc0] sm:$0xf] }
 0x6a3   : > { %v10297_v37 = vrot.slane %v10296_v20, 4  ;;  %v10320_v26 = vor.u32 %v10319_v3, %v18293_v24  ;;  %v10379_v19 = vshll.u32 %v10075_v56, 16  ;;  %v10347_v45 = vshll.u32 %v14556_v14, 16  ;;  %v10078_v56 = vld [vmem:[#allocation2 + $0xb4] sm:$0xf] }
 0x6a4   : > { %v10311_v20 = vrot.slane %v10310_v53, 4  ;;  %v10354_v3 = vrot.slane %v10352_v28, 4  ;;  %v18309_v17 = vrot.slane %v10361_v22, 5  ;;  %v10367_v16 = vrot.slane %v10365_v5, 4  ;;  %v14557_v28 = vld [vmem:[#allocation2 + $0xa4] sm:$0x1] }
 0x6a5   : > { %13619 = vmatpush3.bf16.msra.mxu1 %v14491_v57  ;;  %v10334_v57 = vor.u32 %v10333_v39, %v10330_v42  ;;  %v10302_v1 = vsel %vm15051_vm7, %v10297_v37, %v10301_v4  ;;  %v10321_v43 = vrot.slane %v10320_v26, 4  ;;  %v10345_v42 = vrot.slane %v10344_v40, 4 }
 0x6a6   : > { %13620 = vmatprep.subr.bf16.mxu1 %v14492_v38  ;;  %v10378_v39 = vrot.slane %v10376_v62, 4  ;;  %v12236_v18 = vcombine.low %v10292_v61, %v10302_v1  ;;  %v10316_v37 = vsel %vm15051_vm7, %v10311_v20, %v18293_v24  ;;  %v10349_v53 = vrot.slane %v10347_v45, 5 }
 0x6a7   : > { %v10335_v21 = vrot.slane %v10334_v57, 4  ;;  %v10358_v57 = vor.u32 %v10357_v10, %v10354_v3  ;;  %v10371_v12 = vshll.u32 %v14557_v28, 16  ;;  %v10368_v22 = vor.u32 %v10367_v16, %v18309_v17 }
 0x6a8   : > { %13589 = vmatmul.mubr.bf16.gmra.mrb[8].mxu1 %v12233_v46  ;;  %v10381_v46 = vrot.slane %v10379_v19, 5  ;;  %v10400_v40 = vshrl.u32 %v10078_v56, 16  ;;  %v10403_v62 = vshll.u32 %v10078_v56, 16  ;;  %v14558_v19 = vld [vmem:[#allocation2 + $0xb8] sm:$0xf] }
 0x6a9   : > { %13592 = vmatprep.mubr.bf16.mxu1 %v12234_v44  ;;  %13621 = vmatpush3.bf16.msra.mxu1 %v14492_v38  ;;  %v10389_v38 = vshrl.u32 %v14555_v54, 16  ;;  %v10325_v44 = vrot.slane %v10323_v30, 5  ;;  %v10340_v26 = vsel %vm15051_vm7, %v10335_v21, %v18300_v11  ;;  %v10409_v61 = vshll.u32 %v14558_v19, 16  ;;  %v14559_v54 = vld [vmem:[#allocation2 + $0xc4] sm:$0xf] }
 0x6aa   : > { %13622 = vmatprep.subr.bf16.mxu1 %v14493_v50  ;;  %v10382_v24 = vor.u32 %v10381_v46, %v10378_v39  ;;  %v10413_v8 = vshrl.u32 %v14558_v19, 16  ;;  %v10424_v11 = vshrl.u32 %v10081_v33, 16  ;;  %v10427_v30 = vshll.u32 %v10081_v33, 16  ;;  %v14560_v21 = vld [vmem:[#allocation2 + $0xb0] sm:$0x1] }
 0x6ab   : > { %v10391_v4 = vrot.slane %v10389_v38, 4  ;;  %v10433_v27 = vshll.u32 %v14559_v54, 16  ;;  %v10437_v38 = vshrl.u32 %v14559_v54, 16  ;;  %v10359_v20 = vrot.slane %v10358_v57, 4 }
 0x6ac   : > { %v10369_v14 = vrot.slane %v10368_v22, 4  ;;  %v10383_v45 = vrot.slane %v10382_v24, 4  ;;  %v10395_v3 = vshll.u32 %v14560_v21, 16  ;;  %v10402_v10 = vrot.slane %v10400_v40, 4  ;;  %v14561_v22 = vld [vmem:[#allocation2 + $0xbc] sm:$0x1] }
 0x6ad   : > { %13623 = vmatpush3.bf16.msra.mxu1 %v14493_v50  ;;  %v10326_v50 = vsel %vm15051_vm7, %v10321_v43, %v10325_v44  ;;  %v10392_v5 = vor.u32 %v10391_v4, %v18311_v52  ;;  %v10373_v43 = vrot.slane %v10371_v12, 5  ;;  %v10405_v39 = vrot.slane %v10403_v62, 5 }
 0x6ae   : > { %13624 = vmatprep.subr.bf16.mxu1 %v14494_v6  ;;  %v10411_v46 = vrot.slane %v10409_v61, 5  ;;  %v10426_v44 = vrot.slane %v10424_v11, 4  ;;  %v10429_v4 = vrot.slane %v10427_v30, 5  ;;  %v10435_v56 = vrot.slane %v10433_v27, 5  ;;  %v14562_v30 = vld [vmem:[#allocation2 + $0xc8] sm:$0x1] }
 0x6af   : > { %v10393_v16 = vrot.slane %v10392_v5, 4  ;;  %v10364_v57 = vsel %vm15051_vm7, %v10359_v20, %v18309_v17  ;;  %v10397_v28 = vrot.slane %v10395_v3, 5  ;;  %v10374_v12 = vsel %vm15051_vm7, %v10369_v14, %v10373_v43 }
 0x6b0   : > { %13593 = vmatmul.mubr.bf16.gmra.mrb[12].mxu1 %v12235_v7  ;;  %v10350_v7 = vsel %vm15051_vm7, %v10345_v42, %v10349_v53  ;;  %v10084_v42 = vld [vmem:[#allocation2 + $0xcc] sm:$0xf]  ;;  %v10439_v53 = vrot.slane %v10437_v38, 4  ;;  %v10406_v33 = vor.u32 %v10405_v39, %v10402_v10  ;;  %v10419_v24 = vshll.u32 %v14561_v22, 16  ;;  %v19142_v22 = vld [vmem:[#allocation59_spill] sm:$0xff] }
 0x6b1   : > { %13596 = vmatprep.mubr.bf16.mxu1 %v12236_v18  ;;  %13625 = vmatpush3.bf16.msra.mxu1 %v14494_v6  ;;  %v12237_v6 = vcombine.low %v10316_v37, %v10326_v50  ;;  %v12238_v1 = vcombine.low %v10340_v26, %v10350_v7  ;;  %v10415_v18 = vrot.slane %v10413_v8, 4  ;;  %v10448_v37 = vshrl.u32 %v10084_v42, 16 }
 0x6b2   : > { %13626 = vmatprep.subr.bf16.mxu1 %v14495_v15  ;;  %v10451_v50 = vshll.u32 %v10084_v42, 16  ;;  %v10461_v26 = vshrl.u32 %v18210_v59, 16  ;;  %v10388_v40 = vsel %vm15051_vm7, %v10383_v45, %v18311_v52  ;;  %v10398_v5 = vsel %vm15051_vm7, %v10393_v16, %v10397_v28 }
 0x6b3   : > { %v10416_v7 = vor.u32 %v10415_v18, %v10411_v46  ;;  %v10440_v62 = vor.u32 %v10439_v53, %v10435_v56  ;;  %v10450_v19 = vrot.slane %v10448_v37, 4  ;;  %v12239_v11 = vcombine.low %v10364_v57, %v10374_v12  ;;  %v19137_v57 = vld [vmem:[#allocation53_spill] sm:$0xff]  ;;  %v19139_v12 = vld [vmem:[#allocation54_spill] sm:$0xff] }
 0x6b4   : > { %v10453_v61 = vrot.slane %v10451_v50, 5  ;;  %v10463_v8 = vrot.slane %v10461_v26, 4  ;;  %v10443_v54 = vshll.u32 %v14562_v30, 16  ;;  %v12240_v27 = vcombine.low %v10388_v40, %v10398_v5  ;;  %v19133_v50 = vld [vmem:[#allocation46_spill] sm:$0xff]  ;;  %v19136_v26 = vld [vmem:[#allocation51_spill] sm:$0xff] }
 0x6b5   : > { %13627 = vmatpush3.bf16.msra.mxu1 %v14495_v15  ;;  %v10457_v15 = vshll.u32 %v18210_v59, 16  ;;  %v10430_v59 = vor.u32 %v10429_v4, %v10426_v44  ;;  %v10407_v38 = vrot.slane %v10406_v33, 4  ;;  %v10441_v20 = vrot.slane %v10440_v62, 4  ;;  %v19140_v33 = vld [vmem:[#allocation55_spill] sm:$0xff]  ;;  %v19148_v62 = vld [vmem:[#allocation64_spill] sm:$0xff] }
 0x6b6   : > { %v10421_v52 = vrot.slane %v10419_v24, 5  ;;  %v10454_v43 = vor.u32 %v10453_v61, %v10450_v19  ;;  %v10467_v45 = vshll.u32 %v18212_v36, 16  ;;  %v10445_v21 = vrot.slane %v10443_v54, 5  ;;  %v19143_v24 = vld [vmem:[#allocation60_spill] sm:$0xff]  ;;  %v19150_v61 = vld [vmem:[#allocation63_spill] sm:$0xff] }
 0x6b7   : > { %v10459_v17 = vrot.slane %v10457_v15, 5  ;;  %v10412_v3 = vsel %vm15051_vm7, %v10407_v38, %v10411_v46  ;;  %v19138_v28 = vcombine.low %v19136_v26, %v19137_v57  ;;  %v19144_v40 = vcombine.low %v19142_v22, %v19143_v24  ;;  %v19154_v30 = vld [vmem:[#allocation67_spill] sm:$0xff] }
 0x6b8   : > { %13597 = vmatmul.mubr.bf16.gmra.mrb[16].mxu1 %v12237_v6  ;;  %v10417_v6 = vrot.slane %v10416_v7, 4  ;;  %v10446_v16 = vsel %vm15051_vm7, %v10441_v20, %v10445_v21  ;;  %v10455_v39 = vrot.slane %v10454_v43, 4  ;;  %v10469_v44 = vrot.slane %v10467_v45, 5 }
 0x6b9   : > { %13600 = vmatprep.mubr.bf16.mxu1 %v12238_v1  ;;  %v10431_v1 = vrot.slane %v10430_v59, 4  ;;  %v10464_v14 = vor.u32 %v10463_v8, %v10459_v17  ;;  %v19141_v7 = vcombine.low %v19139_v12, %v19140_v33  ;;  %v19146_v5 = vcombine.low %v17919_v51, %v19145_v9  ;;  %v19147_v59 = vld [vmem:[#allocation61_spill] sm:$0xff] }
 0x6ba   : > { %v10422_v10 = vsel %vm15051_vm7, %v10417_v6, %v10421_v52  ;;  %v10460_v36 = vsel %vm15051_vm7, %v10455_v39, %v10459_v17  ;;  %v19149_v19 = vcombine.low %v19147_v59, %v19148_v62  ;;  %v19151_v17 = vld [vmem:[#allocation65_spill] sm:$0xff] }
 0x6bb   : > { %v10436_v42 = vsel %vm15051_vm7, %v10431_v1, %v10435_v56  ;;  %v10465_v18 = vrot.slane %v10464_v14, 4  ;;  %v12241_v4 = vcombine.low %v10412_v3, %v10422_v10  ;;  %v19134_v56 = vld [vmem:[#allocation47_spill] sm:$0xff]  ;;  %v19152_v8 = vcombine.low %v19150_v61, %v19151_v17  ;;  %v19158_v6 = vld [vmem:[#allocation69_spill] sm:$0xff] }
 0x6bc   : > { %v12242_v53 = vcombine.low %v10436_v42, %v10446_v16  ;;  %v19135_v15 = vcombine.low %v19133_v50, %v19134_v56  ;;  %v19159_v51 = vcombine.low %v17975_v23, %v19158_v6  ;;  %v19160_v1 = vcombine.low %v17985_v13, %v17989_v58  ;;  %v18401_v13 = vld [vmem:[%s18822_s4] ss:$0 sm:$0xff] }
 0x6bd   : > { %v10470_v46 = vsel %vm15051_vm7, %v10465_v18, %v10469_v44 }
 0x6be   : > { %v12243_v37 = vcombine.low %v10460_v36, %v10470_v46 }
 0x6c0   : > { %13601 = vmatmul.mubr.bf16.gmra.mrb[20].mxu1 %v12239_v11  ;;  %v19153_v11 = vld [vmem:[#allocation66_spill] sm:$0xff] }
 0x6c1   : > { %13604 = vmatprep.mubr.bf16.mxu1 %v12240_v27  ;;  %v19155_v54 = vcombine.low %v19153_v11, %v19154_v30  ;;  %v19156_v27 = vld [vmem:[#allocation68_spill] sm:$0xff] }
 0x6c2   : > { %v19157_v38 = vcombine.low %v17967_v55, %v19156_v27  ;;  %v19161_v55 = vcombine.low %v18029_v48, %v18033_v29 }
 0x6c8   : > { %13605 = vmatmul.mubr.bf16.gmra.mrb[24].mxu1 %v12241_v4 }
 0x6c9   : > { %13608 = vmatprep.mubr.bf16.mxu1 %v12242_v53 }
 0x6d0   : > { %13609 = vmatmul.mubr.bf16.gmra.mrb[28].mxu1 %v12243_v37 }
 0x6d1   : > { %13628 = vmatprep.mubr.bf16.mxu1 %v19135_v15 }
 0x6d8   : > { %13629 = vmatmul.mubr.bf16.vlgmr.msra.gmra.mrb[0].mxu1 %v19138_v28 }
 0x6d9   : > { %13632 = vmatprep.mubr.bf16.mxu1 %v19141_v7 }
 0x6e0   : > { %13633 = vmatmul.mubr.bf16.gmra.mrb[4].mxu1 %v19144_v40 }
 0x6e1   : > { %13636 = vmatprep.mubr.bf16.mxu1 %v19146_v5 }
 0x6e8   : > { %13637 = vmatmul.mubr.bf16.gmra.mrb[8].mxu1 %v19149_v19 }
 0x6e9   : > { %13640 = vmatprep.mubr.bf16.mxu1 %v19152_v8 }
 0x6f0   : > { %13641 = vmatmul.mubr.bf16.gmra.mrb[12].mxu1 %v19155_v54 }
 0x6f1   : > { %13644 = vmatprep.mubr.bf16.mxu1 %v19157_v38 }
 0x6f8   : > { %13645 = vmatmul.mubr.bf16.gmra.mrb[16].mxu1 %v19159_v51 }
 0x6f9   : > { %13648 = vmatprep.mubr.bf16.mxu1 %v19160_v1 }
 0x700   : > { %13649 = vmatmul.mubr.bf16.gmra.mrb[20].mxu1 %v12279_v60 }
 0x701   : > { %13652 = vmatprep.mubr.bf16.mxu1 %v12280_v35 }
 0x708   : > { %13653 = vmatmul.mubr.bf16.gmra.mrb[24].mxu1 %v12281_v31 }
 0x709   : > { %13656 = vmatprep.mubr.bf16.mxu1 %v19161_v55 }
 0x710   : > { %13657 = vmatmul.mubr.bf16.gmra.mrb[28].mxu1 %v12283_v0 }
 0x7ab   : > { %v13630_v23 = vpop.f32.mrb[0].mxu1 }
 0x7ac   : > { %v11132_v58 = vpop.f32.mrb[1].mxu1  ;;  %v18410_v49 = vadd.f32 %v13630_v23, %v18401_v13 }
 0x7ad   : > { %v13631_v32 = vpop.f32.mrb[2].mxu1  ;;  %v18404_v60 = vadd.f32 %v18401_v13, %v11132_v58 }
 0x7ae   : > { %v11135_v63 = vpop.f32.mrb[3].mxu1  ;;  %v18415_v35 = vadd.f32 %v13631_v32, %v18401_v13 }
 0x7af   : > { %v18407_v25 = vadd.f32 %v18401_v13, %v11135_v63 }
 0x7b1   : > { %v11330_v47 = vadd.f32 %v18407_v25, %v18404_v60 }
 0x7b3   : > { %v11331_v41 = vadd.f32 %v11330_v47, %v18410_v49  ;;  %v13634_v48 = vpop.f32.mrb[4].mxu1 }
 0x7b4   : > { %v11148_v29 = vpop.f32.mrb[5].mxu1  ;;  %v18427_v43 = vadd.f32 %v13634_v48, %v18401_v13 }
 0x7b5   : > { %v18419_v31 = vadd.f32 %v18401_v13, %v11148_v29  ;;  %v11332_v2 = vadd.f32 %v11331_v41, %v18415_v35  ;;  %v13635_v34 = vpop.f32.mrb[6].mxu1 }
 0x7b6   : > { %v11151_v0 = vpop.f32.mrb[7].mxu1  ;;  %v18431_v45 = vadd.f32 %v13635_v34, %v18401_v13 }
 0x7b7   : > { %v11333_v20 = vadd.f32 %v11332_v2, %v18419_v31  ;;  %v18424_v52 = vadd.f32 %v18401_v13, %v11151_v0 }
 0x7b9   : > { %v11334_v14 = vadd.f32 %v11333_v20, %v18424_v52 }
 0x7bb   : > { %v11335_v21 = vadd.f32 %v11334_v14, %v18427_v43  ;;  %v13638_v3 = vpop.f32.mrb[8].mxu1 }
 0x7bc   : > { %v11164_v10 = vpop.f32.mrb[9].mxu1  ;;  %v18443_v53 = vadd.f32 %v13638_v3, %v18401_v13 }
 0x7bd   : > { %v18435_v42 = vadd.f32 %v18401_v13, %v11164_v10  ;;  %v11336_v16 = vadd.f32 %v11335_v21, %v18431_v45  ;;  %v13639_v39 = vpop.f32.mrb[10].mxu1 }
 0x7be   : > { %v11167_v18 = vpop.f32.mrb[11].mxu1  ;;  %v18447_v46 = vadd.f32 %v13639_v39, %v18401_v13 }
 0x7bf   : > { %v11337_v44 = vadd.f32 %v11336_v16, %v18435_v42  ;;  %v18440_v4 = vadd.f32 %v18401_v13, %v11167_v18 }
 0x7c1   : > { %v11338_v36 = vadd.f32 %v11337_v44, %v18440_v4 }
 0x7c3   : > { %v11339_v37 = vadd.f32 %v11338_v36, %v18443_v53  ;;  %v13642_v50 = vpop.f32.mrb[12].mxu1 }
 0x7c4   : > { %v11180_v56 = vpop.f32.mrb[13].mxu1  ;;  %v18459_v7 = vadd.f32 %v13642_v50, %v18401_v13 }
 0x7c5   : > { %v18451_v15 = vadd.f32 %v18401_v13, %v11180_v56  ;;  %v11340_v26 = vadd.f32 %v11339_v37, %v18447_v46  ;;  %v13643_v57 = vpop.f32.mrb[14].mxu1 }
 0x7c6   : > { %v11183_v28 = vpop.f32.mrb[15].mxu1  ;;  %v18463_v24 = vadd.f32 %v13643_v57, %v18401_v13 }
 0x7c7   : > { %v11341_v12 = vadd.f32 %v11340_v26, %v18451_v15  ;;  %v18456_v33 = vadd.f32 %v18401_v13, %v11183_v28 }
 0x7c9   : > { %v11342_v22 = vadd.f32 %v11341_v12, %v18456_v33 }
 0x7cb   : > { %v11343_v40 = vadd.f32 %v11342_v22, %v18459_v7  ;;  %v13646_v9 = vpop.f32.mrb[16].mxu1 }
 0x7cc   : > { %v11196_v5 = vpop.f32.mrb[17].mxu1  ;;  %v11316_v11 = vadd.f32 %v13646_v9, %v18401_v13 }
 0x7cd   : > { %v11314_v59 = vadd.f32 %v18401_v13, %v11196_v5  ;;  %v11344_v62 = vadd.f32 %v11343_v40, %v18463_v24  ;;  %v13647_v19 = vpop.f32.mrb[18].mxu1 }
 0x7ce   : > { %v11199_v61 = vpop.f32.mrb[19].mxu1  ;;  %v11317_v54 = vadd.f32 %v13647_v19, %v18401_v13 }
 0x7cf   : > { %v11345_v17 = vadd.f32 %v11344_v62, %v11314_v59  ;;  %v11315_v8 = vadd.f32 %v18401_v13, %v11199_v61 }
 0x7d1   : > { %v11346_v30 = vadd.f32 %v11345_v17, %v11315_v8 }
 0x7d3   : > { %v11347_v27 = vadd.f32 %v11346_v30, %v11316_v11  ;;  %v13650_v38 = vpop.f32.mrb[20].mxu1 }
 0x7d4   : > { %v11212_v6 = vpop.f32.mrb[21].mxu1  ;;  %v11320_v63 = vadd.f32 %v13650_v38, %v18401_v13 }
 0x7d5   : > { %v11318_v51 = vadd.f32 %v18401_v13, %v11212_v6  ;;  %v11348_v1 = vadd.f32 %v11347_v27, %v11317_v54  ;;  %v13651_v55 = vpop.f32.mrb[22].mxu1 }
 0x7d6   : > { %v11215_v23 = vpop.f32.mrb[23].mxu1  ;;  %v11321_v41 = vadd.f32 %v13651_v55, %v18401_v13 }
 0x7d7   : > { %v11349_v58 = vadd.f32 %v11348_v1, %v11318_v51  ;;  %v11319_v32 = vadd.f32 %v18401_v13, %v11215_v23 }
 0x7d9   : > { %v11350_v47 = vadd.f32 %v11349_v58, %v11319_v32 }
 0x7db   : > { %v11351_v48 = vadd.f32 %v11350_v47, %v11320_v63  ;;  %v13654_v29 = vpop.f32.mrb[24].mxu1 }
 0x7dc   : > { %v11228_v2 = vpop.f32.mrb[25].mxu1  ;;  %v11324_v10 = vadd.f32 %v13654_v29, %v18401_v13 }
 0x7dd   : > { %v11322_v34 = vadd.f32 %v18401_v13, %v11228_v2  ;;  %v11352_v0 = vadd.f32 %v11351_v48, %v11321_v41  ;;  %v13655_v20 = vpop.f32.mrb[26].mxu1 }
 0x7de   : > { %v11231_v14 = vpop.f32.mrb[27].mxu1  ;;  %v11325_v39 = vadd.f32 %v13655_v20, %v18401_v13 }
 0x7df   : > { %v11353_v21 = vadd.f32 %v11352_v0, %v11322_v34  ;;  %v11323_v3 = vadd.f32 %v18401_v13, %v11231_v14 }
 0x7e1   : > { %v11354_v16 = vadd.f32 %v11353_v21, %v11323_v3 }
 0x7e3   : > { %v11355_v18 = vadd.f32 %v11354_v16, %v11324_v10  ;;  %v13658_v44 = vpop.f32.mrb[28].mxu1 }
 0x7e4   : > { %v11244_v36 = vpop.f32.mrb[29].mxu1  ;;  %v11328_v12 = vadd.f32 %v13658_v44, %v18401_v13 }
 0x7e5   : > { %v11326_v37 = vadd.f32 %v18401_v13, %v11244_v36  ;;  %v11356_v50 = vadd.f32 %v11355_v18, %v11325_v39  ;;  %v13659_v56 = vpop.f32.mrb[30].mxu1 }
 0x7e6   : > { %v11247_v26 = vpop.f32.mrb[31].mxu1  ;;  %v11329_v40 = vadd.f32 %v13659_v56, %v18401_v13 }
 0x7e7   : > { %v11357_v57 = vadd.f32 %v11356_v50, %v11326_v37  ;;  %v11327_v28 = vadd.f32 %v18401_v13, %v11247_v26 }
 0x7e9   : > { %v11358_v22 = vadd.f32 %v11357_v57, %v11327_v28 }
 0x7eb   : > { %v11359_v9 = vadd.f32 %v11358_v22, %v11328_v12 }
 0x7ed   : > { %v11360_v5 = vadd.f32 %v11359_v9, %v11329_v40 }
 0x7ef   : > { %v11361_v62 = vrot.slane %v11360_v5, 4 }
 0x7f1   : > { %v11362_v19 = vadd.f32 %v11361_v62, %v11360_v5 }
 0x7f3   : > { %v11363_v61 = vrot.slane %v11362_v19, 2 }
 0x7f5   : > { %v11364_v17 = vadd.f32 %v11363_v61, %v11362_v19 }
 0x7f7   : > { %v11365_v30 = vrot.slane %v11364_v17, 1 }
 0x7f9   : > { %v11366_v27 = vadd.f32 %v11365_v30, %v11364_v17 }
 0x7fb   : > { %v11367_v38 = vmul.f32 0.00390625, %v11366_v27 }
 0x7fd   : > { %v18484_v6 = vsub.f32 %v18435_v42, %v11367_v38  ;;  %v18487_v1 = vsub.f32 %v18440_v4, %v11367_v38  ;;  %v18490_v55 = vsub.f32 %v18443_v53, %v11367_v38  ;;  %v18493_v13 = vsub.f32 %v18447_v46, %v11367_v38 }
 0x7fe   : > { %v18496_v23 = vsub.f32 %v18451_v15, %v11367_v38  ;;  %v18499_v58 = vsub.f32 %v18456_v33, %v11367_v38  ;;  %v18502_v47 = vsub.f32 %v18459_v7, %v11367_v38  ;;  %v18505_v42 = vsub.f32 %v18463_v24, %v11367_v38 }
 0x7ff   : > { %v18507_v4 = vsub.f32 %v11314_v59, %v11367_v38  ;;  %v18509_v48 = vsub.f32 %v11315_v8, %v11367_v38  ;;  %v18511_v53 = vsub.f32 %v11316_v11, %v11367_v38  ;;  %v18513_v46 = vsub.f32 %v11317_v54, %v11367_v38 }
 0x800   : > { %v18515_v29 = vsub.f32 %v11318_v51, %v11367_v38  ;;  %v18517_v15 = vsub.f32 %v11319_v32, %v11367_v38  ;;  %v18519_v33 = vsub.f32 %v11320_v63, %v11367_v38  ;;  %v18521_v2 = vsub.f32 %v11321_v41, %v11367_v38 }
 0x801   : > { %v18523_v7 = vsub.f32 %v11322_v34, %v11367_v38  ;;  %v18525_v24 = vsub.f32 %v11323_v3, %v11367_v38  ;;  %v18527_v59 = vsub.f32 %v11324_v10, %v11367_v38  ;;  %v18529_v8 = vsub.f32 %v11325_v39, %v11367_v38 }
 0x802   : > { %v18531_v11 = vsub.f32 %v11326_v37, %v11367_v38  ;;  %v18533_v54 = vsub.f32 %v11327_v28, %v11367_v38  ;;  %v18535_v51 = vsub.f32 %v11328_v12, %v11367_v38  ;;  %v18537_v32 = vsub.f32 %v11329_v40, %v11367_v38 }
 0x803   : > { %v18540_v63 = vsub.f32 %v18404_v60, %v11367_v38  ;;  %v18543_v41 = vsub.f32 %v18407_v25, %v11367_v38  ;;  %v18546_v34 = vsub.f32 %v18410_v49, %v11367_v38  ;;  %v18553_v14 = vsub.f32 %v18415_v35, %v11367_v38 }
 0x804   : > { %v18556_v21 = vsub.f32 %v18419_v31, %v11367_v38  ;;  %v18561_v3 = vsub.f32 %v18424_v52, %v11367_v38  ;;  %v18566_v16 = vsub.f32 %v18427_v43, %v11367_v38  ;;  %v18571_v31 = vsub.f32 %v18431_v45, %v11367_v38 }
 0x805   : > { %v11400_v0 = vmul.f32 %v18540_v63, %v18540_v63  ;;  %v11401_v20 = vmul.f32 %v18543_v41, %v18543_v41  ;;  %v11402_v60 = vmul.f32 %v18546_v34, %v18546_v34  ;;  %v11403_v49 = vmul.f32 %v18553_v14, %v18553_v14 }
 0x806   : > { %v11404_v35 = vmul.f32 %v18556_v21, %v18556_v21  ;;  %v11405_v18 = vmul.f32 %v18561_v3, %v18561_v3  ;;  %v11406_v52 = vmul.f32 %v18566_v16, %v18566_v16  ;;  %v11407_v37 = vmul.f32 %v18571_v31, %v18571_v31 }
 0x807   : > { %v11432_v25 = vadd.f32 %v11401_v20, %v11400_v0  ;;  %v11408_v50 = vmul.f32 %v18484_v6, %v18484_v6  ;;  %v11409_v45 = vmul.f32 %v18487_v1, %v18487_v1  ;;  %v11410_v57 = vmul.f32 %v18490_v55, %v18490_v55 }
 0x808   : > { %v11411_v12 = vmul.f32 %v18493_v13, %v18493_v13  ;;  %v11412_v40 = vmul.f32 %v18496_v23, %v18496_v23  ;;  %v11413_v5 = vmul.f32 %v18499_v58, %v18499_v58  ;;  %v11414_v19 = vmul.f32 %v18502_v47, %v18502_v47 }
 0x809   : > { %v11433_v10 = vadd.f32 %v11432_v25, %v11402_v60  ;;  %v11415_v17 = vmul.f32 %v18505_v42, %v18505_v42  ;;  %v11416_v27 = vmul.f32 %v18507_v4, %v18507_v4  ;;  %v11417_v0 = vmul.f32 %v18509_v48, %v18509_v48 }
 0x80a   : > { %v11418_v60 = vmul.f32 %v18511_v53, %v18511_v53 }
 0x80b   : > { %v11434_v39 = vadd.f32 %v11433_v10, %v11403_v49  ;;  %v11419_v49 = vmul.f32 %v18513_v46, %v18513_v46 }
 0x80d   : > { %v11435_v44 = vadd.f32 %v11434_v39, %v11404_v35  ;;  %v11420_v35 = vmul.f32 %v18515_v29, %v18515_v29 }
 0x80f   : > { %v11436_v36 = vadd.f32 %v11435_v44, %v11405_v18  ;;  %v11421_v18 = vmul.f32 %v18517_v15, %v18517_v15 }
 0x811   : > { %v11437_v43 = vadd.f32 %v11436_v36, %v11406_v52  ;;  %v11422_v52 = vmul.f32 %v18519_v33, %v18519_v33 }
 0x813   : > { %v11438_v56 = vadd.f32 %v11437_v43, %v11407_v37  ;;  %v11423_v37 = vmul.f32 %v18521_v2, %v18521_v2 }
 0x815   : > { %v11439_v26 = vadd.f32 %v11438_v56, %v11408_v50  ;;  %v11424_v50 = vmul.f32 %v18523_v7, %v18523_v7 }
 0x817   : > { %v11440_v28 = vadd.f32 %v11439_v26, %v11409_v45  ;;  %v11425_v45 = vmul.f32 %v18525_v24, %v18525_v24 }
 0x819   : > { %v11441_v22 = vadd.f32 %v11440_v28, %v11410_v57  ;;  %v11426_v57 = vmul.f32 %v18527_v59, %v18527_v59 }
 0x81b   : > { %v11442_v9 = vadd.f32 %v11441_v22, %v11411_v12  ;;  %v11427_v12 = vmul.f32 %v18529_v8, %v18529_v8 }
 0x81d   : > { %v11443_v62 = vadd.f32 %v11442_v9, %v11412_v40  ;;  %v11428_v40 = vmul.f32 %v18531_v11, %v18531_v11 }
 0x81f   : > { %v11444_v61 = vadd.f32 %v11443_v62, %v11413_v5  ;;  %v11429_v5 = vmul.f32 %v18533_v54, %v18533_v54 }
 0x821   : > { %v11445_v30 = vadd.f32 %v11444_v61, %v11414_v19  ;;  %v11430_v19 = vmul.f32 %v18535_v51, %v18535_v51 }
 0x823   : > { %v11446_v38 = vadd.f32 %v11445_v30, %v11415_v17  ;;  %v11431_v17 = vmul.f32 %v18537_v32, %v18537_v32 }
 0x825   : > { %v11447_v20 = vadd.f32 %v11446_v38, %v11416_v27 }
 0x827   : > { %v11448_v25 = vadd.f32 %v11447_v20, %v11417_v0 }
 0x829   : > { %v11449_v10 = vadd.f32 %v11448_v25, %v11418_v60 }
 0x82b   : > { %v11450_v39 = vadd.f32 %v11449_v10, %v11419_v49 }
 0x82d   : > { %v11451_v44 = vadd.f32 %v11450_v39, %v11420_v35 }
 0x82f   : > { %v11452_v36 = vadd.f32 %v11451_v44, %v11421_v18 }
 0x831   : > { %v11453_v43 = vadd.f32 %v11452_v36, %v11422_v52 }
 0x833   : > { %v11454_v56 = vadd.f32 %v11453_v43, %v11423_v37 }
 0x835   : > { %v11455_v26 = vadd.f32 %v11454_v56, %v11424_v50 }
 0x837   : > { %v11456_v28 = vadd.f32 %v11455_v26, %v11425_v45  ;;  %v14563_v45 = vld [vmem:[%s15033_s8 + $0xe8] sm:$0xff] }
 0x839   : > { %v11457_v22 = vadd.f32 %v11456_v28, %v11426_v57  ;;  %v14567_v28 = vld [vmem:[%s15033_s8 + $0x18] sm:$0xff] }
 0x83b   : > { %v11458_v9 = vadd.f32 %v11457_v22, %v11427_v12  ;;  %v14568_v12 = vld [vmem:[%s15033_s8 + $0x20] sm:$0xff]  ;;  %v14569_v22 = vld [vmem:[%s15033_s8 + $0x28] sm:$0xff] }
 0x83d   : > { %v11459_v62 = vadd.f32 %v11458_v9, %v11428_v40  ;;  %v14570_v40 = vld [vmem:[%s15033_s8 + $0x30] sm:$0xff] }
 0x83f   : > { %v11460_v61 = vadd.f32 %v11459_v62, %v11429_v5  ;;  %v14571_v5 = vld [vmem:[%s15033_s8 + $0x38] sm:$0xff] }
 0x841   : > { %v11461_v30 = vadd.f32 %v11460_v61, %v11430_v19  ;;  %v14572_v19 = vld [vmem:[%s15033_s8 + $0x40] sm:$0xff] }
 0x843   : > { %v11462_v27 = vadd.f32 %v11461_v30, %v11431_v17  ;;  %v14573_v17 = vld [vmem:[%s15033_s8 + $0x48] sm:$0xff] }
 0x845   : > { %v11463_v38 = vrot.slane %v11462_v27, 4 }
 0x847   : > { %v11464_v0 = vadd.f32 %v11463_v38, %v11462_v27  ;;  %v14574_v27 = vld [vmem:[%s15033_s8 + $0x50] sm:$0xff] }
 0x849   : > { %v11465_v20 = vrot.slane %v11464_v0, 2 }
 0x84b   : > { %v11466_v60 = vadd.f32 %v11465_v20, %v11464_v0  ;;  %v14575_v0 = vld [vmem:[%s15033_s8 + $0x58] sm:$0xff] }
 0x84d   : > { %v11467_v25 = vrot.slane %v11466_v60, 1 }
 0x84f   : > { %v11468_v49 = vadd.f32 %v11467_v25, %v11466_v60  ;;  %v14576_v60 = vld [vmem:[%s15033_s8 + $0x60] sm:$0xff] }
 0x851   : > { %v11469_v10 = vmul.f32 0.00390625, %v11468_v49  ;;  %v14577_v49 = vld [vmem:[%s15033_s8 + $0x68] sm:$0xff] }
 0x853   : > { %v11470_v35 = vadd.f32 1e-05, %v11469_v10 }
 0x855   : > { %14498 = vrsqrt.f32 %v11470_v35  ;;  %v14578_v35 = vld [vmem:[%s15033_s8 + $0x70] sm:$0xff] }
 0x85f   : > { %v14499_v39 = vpop.eup %14498 }
 0x860   : > { %v11501_v18 = vmul.f32 %v14499_v39, %v18533_v54  ;;  %v11472_v44 = vmul.f32 %v14499_v39, %v18540_v63  ;;  %v11473_v52 = vmul.f32 %v14499_v39, %v18543_v41  ;;  %v11474_v36 = vmul.f32 %v14499_v39, %v18546_v34 }
 0x861   : > { %v11475_v37 = vmul.f32 %v14499_v39, %v18553_v14  ;;  %v11476_v43 = vmul.f32 %v14499_v39, %v18556_v21  ;;  %v11477_v50 = vmul.f32 %v14499_v39, %v18561_v3  ;;  %v11478_v56 = vmul.f32 %v14499_v39, %v18566_v16 }
 0x862   : > { %v11533_v26 = vadd.f32 %v14563_v45, %v11501_v18  ;;  %v11479_v57 = vmul.f32 %v14499_v39, %v18571_v31  ;;  %v11480_v54 = vmul.f32 %v14499_v39, %v18484_v6  ;;  %v11481_v63 = vmul.f32 %v14499_v39, %v18487_v1  ;;  %v14566_v31 = vld [vmem:[%s15033_s8 + $0x10] sm:$0xff]  ;;  %v14579_v18 = vld [vmem:[%s15033_s8 + $0x78] sm:$0xff] }
 0x863   : > { %v11482_v41 = vmul.f32 %v14499_v39, %v18490_v55  ;;  %v11483_v34 = vmul.f32 %v14499_v39, %v18493_v13  ;;  %v11484_v14 = vmul.f32 %v14499_v39, %v18496_v23  ;;  %v11485_v21 = vmul.f32 %v14499_v39, %v18499_v58  ;;  %v14583_v45 = vld [vmem:[%s15033_s8 + $0x98] sm:$0xff] }
 0x864   : > { %11565 = vst [vmem:[%s18645_s12 + $0xe8] sm:$0xff] %v11533_v26  ;;  %v11486_v3 = vmul.f32 %v14499_v39, %v18502_v47  ;;  %v11487_v16 = vmul.f32 %v14499_v39, %v18505_v42  ;;  %v11488_v6 = vmul.f32 %v14499_v39, %v18507_v4  ;;  %v11489_v1 = vmul.f32 %v14499_v39, %v18509_v48 }
 0x865   : > { %v11490_v55 = vmul.f32 %v14499_v39, %v18511_v53  ;;  %v18654_v13 = vmul.f32 %v14499_v39, %v18513_v46  ;;  %v18657_v23 = vmul.f32 %v14499_v39, %v18515_v29  ;;  %v18660_v58 = vmul.f32 %v14499_v39, %v18517_v15 }
 0x866   : > { %v18663_v47 = vmul.f32 %v14499_v39, %v18519_v33  ;;  %v18666_v42 = vmul.f32 %v14499_v39, %v18521_v2  ;;  %v18669_v4 = vmul.f32 %v14499_v39, %v18523_v7  ;;  %v18672_v48 = vmul.f32 %v14499_v39, %v18525_v24  ;;  %v14564_v2 = vld [vmem:[%s15033_s8] sm:$0xff]  ;;  %v14565_v24 = vld [vmem:[%s15033_s8 + $0x8] sm:$0xff] }
 0x867   : > { %v18675_v53 = vmul.f32 %v14499_v39, %v18527_v59  ;;  %v18678_v46 = vmul.f32 %v14499_v39, %v18529_v8  ;;  %v18681_v29 = vmul.f32 %v14499_v39, %v18531_v11  ;;  %v18684_v15 = vmul.f32 %v14499_v39, %v18535_v51 }
 0x868   : > { %v18687_v33 = vmul.f32 %v14499_v39, %v18537_v32  ;;  %v11504_v7 = vadd.f32 %v14564_v2, %v11472_v44  ;;  %v11505_v59 = vadd.f32 %v14565_v24, %v11473_v52  ;;  %v11506_v8 = vadd.f32 %v14566_v31, %v11474_v36  ;;  %v14580_v52 = vld [vmem:[%s15033_s8 + $0x80] sm:$0xff]  ;;  %v14594_v2 = vld [vmem:[%s15033_s8 + $0xf8] sm:$0xff] }
 0x869   : > { %v11507_v11 = vadd.f32 %v14567_v28, %v11475_v37  ;;  %v11508_v51 = vadd.f32 %v14568_v12, %v11476_v43  ;;  %v11509_v32 = vadd.f32 %v14569_v22, %v11477_v50  ;;  %v11510_v9 = vadd.f32 %v14570_v40, %v11478_v56  ;;  %v14581_v37 = vld [vmem:[%s15033_s8 + $0x88] sm:$0xff]  ;;  %v14582_v50 = vld [vmem:[%s15033_s8 + $0x90] sm:$0xff] }
 0x86a   : > { %v11511_v62 = vadd.f32 %v14571_v5, %v11479_v57  ;;  %v11512_v61 = vadd.f32 %v14572_v19, %v11480_v54  ;;  %v11513_v30 = vadd.f32 %v14573_v17, %v11481_v63  ;;  %v11514_v38 = vadd.f32 %v14574_v27, %v11482_v41  ;;  %11536 = vst [vmem:[%s18645_s12] sm:$0xff] %v11504_v7  ;;  %v14584_v57 = vld [vmem:[%s15033_s8 + $0xa0] sm:$0xff]  ;;  %v14585_v63 = vld [vmem:[%s15033_s8 + $0xa8] sm:$0xff] }
 0x86b   : > { %11537 = vst [vmem:[%s18645_s12 + $0x8] sm:$0xff] %v11505_v59  ;;  %11538 = vst [vmem:[%s18645_s12 + $0x10] sm:$0xff] %v11506_v8  ;;  %v11515_v20 = vadd.f32 %v14575_v0, %v11483_v34  ;;  %v11516_v25 = vadd.f32 %v14576_v60, %v11484_v14  ;;  %v11517_v10 = vadd.f32 %v14577_v49, %v11485_v21  ;;  %v14586_v34 = vld [vmem:[%s15033_s8 + $0xb0] sm:$0xff]  ;;  %v14587_v21 = vld [vmem:[%s15033_s8 + $0xb8] sm:$0xff] }
 0x86c   : > { %v11518_v39 = vadd.f32 %v14578_v35, %v11486_v3  ;;  %11539 = vst [vmem:[%s18645_s12 + $0x18] sm:$0xff] %v11507_v11  ;;  %11540 = vst [vmem:[%s18645_s12 + $0x20] sm:$0xff] %v11508_v51  ;;  %v11519_v44 = vadd.f32 %v14579_v18, %v11487_v16  ;;  %v11520_v36 = vadd.f32 %v14580_v52, %v11488_v6  ;;  %v14588_v16 = vld [vmem:[%s15033_s8 + $0xc0] sm:$0xff] }
 0x86d   : > { %11541 = vst [vmem:[%s18645_s12 + $0x28] sm:$0xff] %v11509_v32  ;;  %11542 = vst [vmem:[%s18645_s12 + $0x30] sm:$0xff] %v11510_v9  ;;  %v11521_v43 = vadd.f32 %v14581_v37, %v11489_v1  ;;  %v11522_v56 = vadd.f32 %v14582_v50, %v11490_v55  ;;  %v11523_v26 = vadd.f32 %v14583_v45, %v18654_v13  ;;  %v14589_v1 = vld [vmem:[%s15033_s8 + $0xc8] sm:$0xff]  ;;  %v14590_v13 = vld [vmem:[%s15033_s8 + $0xd0] sm:$0xff] }
 0x86e   : > { %11543 = vst [vmem:[%s18645_s12 + $0x38] sm:$0xff] %v11511_v62  ;;  %11544 = vst [vmem:[%s18645_s12 + $0x40] sm:$0xff] %v11512_v61  ;;  %v11524_v54 = vadd.f32 %v14584_v57, %v18657_v23  ;;  %v11525_v41 = vadd.f32 %v14585_v63, %v18660_v58  ;;  %v11526_v14 = vadd.f32 %v14586_v34, %v18663_v47  ;;  %v14591_v58 = vld [vmem:[%s15033_s8 + $0xd8] sm:$0xff] }
 0x86f   : > { %11545 = vst [vmem:[%s18645_s12 + $0x48] sm:$0xff] %v11513_v30  ;;  %11546 = vst [vmem:[%s18645_s12 + $0x50] sm:$0xff] %v11514_v38  ;;  %v11527_v3 = vadd.f32 %v14587_v21, %v18666_v42  ;;  %v11528_v6 = vadd.f32 %v14588_v16, %v18669_v4  ;;  %v11529_v55 = vadd.f32 %v14589_v1, %v18672_v48  ;;  %v14592_v42 = vld [vmem:[%s15033_s8 + $0xe0] sm:$0xff]  ;;  %v14593_v48 = vld [vmem:[%s15033_s8 + $0xf0] sm:$0xff] }
 0x870   : > { %11547 = vst [vmem:[%s18645_s12 + $0x58] sm:$0xff] %v11515_v20  ;;  %11548 = vst [vmem:[%s18645_s12 + $0x60] sm:$0xff] %v11516_v25  ;;  %v11530_v23 = vadd.f32 %v14590_v13, %v18675_v53  ;;  %v11531_v47 = vadd.f32 %v14591_v58, %v18678_v46  ;;  %v11532_v4 = vadd.f32 %v14592_v42, %v18681_v29 }
 0x871   : > { %11549 = vst [vmem:[%s18645_s12 + $0x68] sm:$0xff] %v11517_v10  ;;  %11550 = vst [vmem:[%s18645_s12 + $0x70] sm:$0xff] %v11518_v39  ;;  %v11534_v53 = vadd.f32 %v14593_v48, %v18684_v15  ;;  %v11535_v7 = vadd.f32 %v14594_v2, %v18687_v33 }
 0x872   : > { %11551 = vst [vmem:[%s18645_s12 + $0x78] sm:$0xff] %v11519_v44  ;;  %11552 = vst [vmem:[%s18645_s12 + $0x80] sm:$0xff] %v11520_v36 }
 0x873   : > { %11553 = vst [vmem:[%s18645_s12 + $0x88] sm:$0xff] %v11521_v43  ;;  %11554 = vst [vmem:[%s18645_s12 + $0x90] sm:$0xff] %v11522_v56 }
 0x874   : > { %11555 = vst [vmem:[%s18645_s12 + $0x98] sm:$0xff] %v11523_v26  ;;  %11556 = vst [vmem:[%s18645_s12 + $0xa0] sm:$0xff] %v11524_v54 }
 0x875   : > { %11557 = vst [vmem:[%s18645_s12 + $0xa8] sm:$0xff] %v11525_v41  ;;  %11558 = vst [vmem:[%s18645_s12 + $0xb0] sm:$0xff] %v11526_v14 }
 0x876   : > { %11559 = vst [vmem:[%s18645_s12 + $0xb8] sm:$0xff] %v11527_v3  ;;  %11560 = vst [vmem:[%s18645_s12 + $0xc0] sm:$0xff] %v11528_v6 }
 0x877   : > { %11561 = vst [vmem:[%s18645_s12 + $0xc8] sm:$0xff] %v11529_v55  ;;  %11562 = vst [vmem:[%s18645_s12 + $0xd0] sm:$0xff] %v11530_v23 }
 0x878   : > { %11563 = vst [vmem:[%s18645_s12 + $0xd8] sm:$0xff] %v11531_v47  ;;  %11564 = vst [vmem:[%s18645_s12 + $0xe0] sm:$0xff] %v11532_v4 }
 0x879   : > { %11566 = vst [vmem:[%s18645_s12 + $0xf0] sm:$0xff] %v11534_v53  ;;  %11567 = vst [vmem:[%s18645_s12 + $0xf8] sm:$0xff] %v11535_v7 }
 0x87a   : > { %14722 = shalt.err (!%p14719_p4)
}
 0x87b   : > { %s14723_s30 = scalar_lea.hbm %s18750_s23, 4096  ;;  %s14727_s24 = scalar_lea.hbm %s18823_s5, 8192 }
 0x87c   : > { %p14724_p9 = scmp.ne.s32.totalorder %s18750_s23, %s14723_s30  ;;  %p14728_p8 = scmp.lt.u32.totalorder %s18750_s23, %s18823_s5 }
 0x87d   : > { %p14729_p13 = scmp.lt.u32.totalorder %s14727_s24, %s14723_s30  ;;  %p14731_p10 = scmp.lt.u32.totalorder %s14723_s30, %s18750_s23 }
 0x87e   : > { %p14725_p0 = pnand %p14724_p9, %p14979_p5 }
 0x87f   : > { %p14730_p6 = por %p14729_p13, %p14728_p8 }
 0x880   : > { %p14726_p11 = pneg %p14725_p0 }
 0x881   : > { %p14732_p3 = por %p14731_p10, %p14730_p6 }
 0x883   : > { %p14733_p7 = pnand %p14732_p3, %p14726_p11 }
 0x885   : > { %14736 = shalt.err (!%p14733_p7)
}
 0x886   : > { %s14795_s15 = smov 128   ;;  %s14796_s28 = smov 8  }
 0x887   : > { %14186 = dma.vmem_to_hbm [thread:$0]  (%p14979_p5), %s18754_s16, 4096, %s18750_s23, %s11569_s22, %s14795_s15, %s14795_s15, %s14796_s28  }
 0x888 PF: > { %s11597_s10 = sand.u32 1, %s14771_s18   ;;  %p19162_p12 = scmp.ne.s32.totalorder %s18916_s25, 0 }
 0x889   : > { %p19163_p1 = scmp.ge.s32.totalorder %s14783_s21, 2  ;;  %s11598_s27 = scalar_lea.sflag [#allocation5], %s11597_s10 }
 0x88b   : > { %p14203_p2 = pnand %p19163_p1, %p19162_p12 }
 0x88d   : > { %14766 = dma.done.wait (!%p14203_p2), %s11598_s27, 4096  }
 0x88e   : > { %14768 = vsyncadd (!%p14203_p2), %s11598_s27, 4294963200  ;;  %p20_p4 = scmp.ge.s32.totalorder %s14965_s14, 4   ;;  %s19164_s18 = smov %s14775_s19 }
 0x88f   : > { %s19165_s19 = smov %s14779_s20  ;;  %s19166_s20 = smov %s14975_s7 }
 0x890   : > { %s19167_s21 = smov %s14965_s14  ;;  %22 = sbr.rel (!%p20_p4) target bundleno = 7 (0x7), region = 115 }
 0x897   :  { %11603 = vsyncpa [#allocation4], 1 }
 0x898   :  { %11605 = vsyncpa [#allocation4 + $0x1], 1 }
 0x899   :  { %11606 = vsyncpa [#allocation7], 1 }
 0x89a   :  { %11607 = vsyncpa [#allocation10], 1 }
 0x89b   :  { %11608 = vsyncpa [#allocation5], 1 }
 0x89c   :  { %11610 = vsyncpa [#allocation5 + $0x1], 1 }

</bundles_post_ra>
